<compile_context>
chip_gen: v7x
topology: tpu7x:2x2x1
jax: 0.10.0
libtpu: 0.0.40
codegen_flags: <defaults>
</compile_context>

<pallas_src>
import functools

import jax
import jax.numpy as jnp
from jax.experimental import pallas as pl
from jax.experimental.pallas import tpu as pltpu


# ---------------------------------------------------------------------------
# Fused encoder-stack kernel (one grid step == one encoder layer)
# ---------------------------------------------------------------------------

def _encoder_kernel(x_in_ref, bias_ref, fln_ref,
                    ln1_ref, wqkv_ref, sqkv_ref, wo_ref, so_ref,
                    ln2_ref, wi_ref, si_ref, wo_ff_ref, so_ff_ref,
                    out_ref, x_ref,
                    *, n_batch, seq, n_heads, d_kv, eps):
    layer = pl.program_id(0)
    d_inner = n_heads * d_kv
    n_tok = n_batch * seq

    # Load the embedded tokens into the resident hidden-state scratch once.
    @pl.when(layer == 0)
    def _():
        x_ref[...] = x_in_ref[...]

    def rms_norm(h, gain):
        # T5LayerNorm: no mean subtraction, no bias; f32 math.
        var = jnp.mean(h * h, axis=-1, keepdims=True)
        return h * jax.lax.rsqrt(var + eps) * gain

    def qmatmul(lhs_bf16, w_ref, s_ref):
        # int8 weight block -> bf16 (exact for int8), MXU matmul with f32
        # accumulation, then the per-output-channel dequant scale is applied to
        # the small (n_tok, out) result instead of the full weight.
        w = w_ref[0].astype(jnp.bfloat16)
        return jnp.dot(lhs_bf16, w, preferred_element_type=jnp.float32) * s_ref[0]

    x = x_ref[...]                                            # (B*S, D) f32

    # ---- self-attention block ---------------------------------------------
    normed = rms_norm(x, ln1_ref[0]).astype(jnp.bfloat16)     # (B*S, D) bf16
    qkv = qmatmul(normed, wqkv_ref, sqkv_ref)                 # (B*S, 3*inner) f32
    qkv_bf = qkv.astype(jnp.bfloat16)                         # one hoisted cast

    # 128-lane aligned q|k|v slices; leading-dim reshape (free) to batch form.
    q3 = qkv_bf[:, 0:d_inner].reshape(n_batch, seq, d_inner)
    k3 = qkv_bf[:, d_inner:2 * d_inner].reshape(n_batch, seq, d_inner)
    v3 = qkv_bf[:, 2 * d_inner:3 * d_inner].reshape(n_batch, seq, d_inner)
    bias = bias_ref[...]                                      # (H, S, S) f32

    heads = []
    for h in range(n_heads):
        c0 = h * d_kv
        qh = q3[:, :, c0:c0 + d_kv]                           # (B, S, dk) bf16
        kh = k3[:, :, c0:c0 + d_kv]
        vh = v3[:, :, c0:c0 + d_kv]
        # T5 does NOT scale by 1/sqrt(d_kv); shared rel-pos bias added pre-softmax.
        s = jnp.einsum('bqd,bkd->bqk', qh, kh,
                       preferred_element_type=jnp.float32)    # (B, S, S) f32
        s = s + bias[h][None, :, :]
        m = jnp.max(s, axis=-1, keepdims=True)
        p = jnp.exp(s - m)
        inv = pl.reciprocal(jnp.sum(p, axis=-1, keepdims=True), approx=True)
        p = (p * inv).astype(jnp.bfloat16)
        o = jnp.einsum('bqk,bkd->bqd', p, vh,
                       preferred_element_type=jnp.float32)    # (B, S, dk) f32
        heads.append(o.reshape(n_tok, d_kv))

    attn = jnp.concatenate(heads, axis=-1)                    # (B*S, inner) f32
    proj = qmatmul(attn.astype(jnp.bfloat16), wo_ref, so_ref) # one K=512 matmul
    x = x + proj                                              # residual add

    # ---- feed-forward block (ReLU), unchunked -------------------------------
    normed2 = rms_norm(x, ln2_ref[0]).astype(jnp.bfloat16)
    h1 = qmatmul(normed2, wi_ref, si_ref)                     # (B*S, d_ff) f32
    h1 = jnp.maximum(h1, 0.0).astype(jnp.bfloat16)
    x = x + qmatmul(h1, wo_ff_ref, so_ff_ref)                 # residual add

    x_ref[...] = x                                            # carry to next layer

    # Final RMSNorm + write the lane-dense output slab once, on the last layer.
    @pl.when(layer == pl.num_programs(0) - 1)
    def _():
        out_ref[...] = rms_norm(x, fln_ref[...]).astype(out_ref.dtype)


def encoder_stack(hidden, pos_bias, params, bsz, seq, cfg):
    n_tok, d = hidden.shape
    n_layers = cfg["n_layers"]
    nh, dk, dff = cfg["n_heads"], cfg["d_kv"], cfg["d_ff"]
    inner = nh * dk

    kernel = functools.partial(
        _encoder_kernel,
        n_batch=bsz, seq=seq, n_heads=nh, d_kv=dk, eps=1e-6,
    )

    grid_spec = pltpu.PrefetchScalarGridSpec(
        num_scalar_prefetch=0,
        grid=(n_layers,),
        in_specs=[
            pl.BlockSpec((n_tok, d), lambda l: (0, 0)),            # token embeddings
            pl.BlockSpec((nh, seq, seq), lambda l: (0, 0, 0)),     # shared rel-pos bias
            pl.BlockSpec((1, d), lambda l: (0, 0)),                # final layernorm gain
            pl.BlockSpec((1, 1, d), lambda l: (l, 0, 0)),          # ln1 gain   (layer l)
            pl.BlockSpec((1, d, 3 * inner), lambda l: (l, 0, 0)),  # fused q|k|v weight (int8)
            pl.BlockSpec((1, 1, 3 * inner), lambda l: (l, 0, 0)),  # q|k|v dequant scales
            pl.BlockSpec((1, inner, d), lambda l: (l, 0, 0)),      # attn out proj (int8)
            pl.BlockSpec((1, 1, d), lambda l: (l, 0, 0)),          # attn out proj scales
            pl.BlockSpec((1, 1, d), lambda l: (l, 0, 0)),          # ln2 gain   (layer l)
            pl.BlockSpec((1, d, dff), lambda l: (l, 0, 0)),        # ffn wi (int8)
            pl.BlockSpec((1, 1, dff), lambda l: (l, 0, 0)),        # ffn wi scales
            pl.BlockSpec((1, dff, d), lambda l: (l, 0, 0)),        # ffn wo (int8)
            pl.BlockSpec((1, 1, d), lambda l: (l, 0, 0)),          # ffn wo scales
        ],
        out_specs=pl.BlockSpec((n_tok, d), lambda l: (0, 0)),
        scratch_shapes=[pltpu.VMEM((n_tok, d), jnp.float32)],      # hidden-state carry
    )

    return pl.pallas_call(
        kernel,
        grid_spec=grid_spec,
        out_shape=jax.ShapeDtypeStruct((n_tok, d), jnp.float32),
        compiler_params=pltpu.CompilerParams(
            dimension_semantics=("arbitrary",),       # hidden state carries across layers
            vmem_limit_bytes=32 * 1024 * 1024,        # ~14 MB in use (int8 double-buffer
        ),                                            # + bf16 dequant temps); <= v7x 64 MiB
    )(hidden, pos_bias, params["final_ln"],
      params["ln1"], params["wqkv"], params["wqkv_scale"],
      params["wo"], params["wo_scale"], params["ln2"],
      params["wi"], params["wi_scale"], params["wo_ff"], params["wo_ff_scale"])


# ---------------------------------------------------------------------------
# T5 relative position bias (bucket math in plain JAX; parameter/glue)
# ---------------------------------------------------------------------------

def compute_position_bias(rel_emb, seq_len, num_buckets=32, max_distance=128):
    context_position = jnp.arange(seq_len)[:, None]
    memory_position = jnp.arange(seq_len)[None, :]
    relative_position = memory_position - context_position    # (S, S)

    nb = num_buckets // 2                                      # bidirectional
    relative_buckets = (relative_position > 0).astype(jnp.int32) * nb
    rp = jnp.abs(relative_position)
    max_exact = nb // 2
    is_small = rp < max_exact
    rp_if_large = max_exact + (
        jnp.log(jnp.maximum(rp, 1).astype(jnp.float32) / max_exact)
        / jnp.log(max_distance / max_exact)
        * (nb - max_exact)
    ).astype(jnp.int32)
    rp_if_large = jnp.minimum(rp_if_large, nb - 1)
    relative_buckets = relative_buckets + jnp.where(is_small, rp, rp_if_large)

    values = rel_emb[relative_buckets]                         # (S, S, H)
    return jnp.transpose(values, (2, 0, 1)).astype(jnp.float32)  # (H, S, S)


# ---------------------------------------------------------------------------
# Encoder forward (t5-small: 6 layers, d_model=512, 8 heads, d_kv=64, d_ff=2048)
# ---------------------------------------------------------------------------

def encoder_forward(params, input_ids, cfg):
    bsz, seq = input_ids.shape
    d = cfg["d_model"]

    hidden = jnp.take(params["emb"], input_ids, axis=0).reshape(bsz * seq, d)
    pos_bias = compute_position_bias(
        params["rel_emb"], seq, cfg["num_buckets"], cfg["max_distance"]
    )  # (H, S, S): computed by layer 0 and shared across all layers in HF T5

    out = encoder_stack(hidden, pos_bias, params, bsz, seq, cfg)
    return out.reshape(bsz, seq, d)


# ---------------------------------------------------------------------------
# Deterministic synthetic parameters (shapes from t5-small config), stacked
# per-layer and int8-quantized (per-output-channel scales) for streaming.
# ---------------------------------------------------------------------------

def _quantize_per_col(w):
    # w: (L, in, out) f32  ->  int8 weights + per-output-column f32 scales (L, 1, out)
    s = jnp.max(jnp.abs(w), axis=1, keepdims=True) / 127.0
    s = jnp.maximum(s, 1e-8)
    q = jnp.clip(jnp.round(w / s), -127, 127).astype(jnp.int8)
    return q, s.astype(jnp.float32)


def init_params(key, cfg):
    d, h, dk, dff = cfg["d_model"], cfg["n_heads"], cfg["d_kv"], cfg["d_ff"]
    n_layers = cfg["n_layers"]
    inner = h * dk

    def normal(k, shape, scale=0.02):
        return (scale * jax.random.normal(k, shape)).astype(jnp.float32)

    ks = jax.random.split(key, 6)
    wqkv, sqkv = _quantize_per_col(normal(ks[2], (n_layers, d, 3 * inner)))
    wo, so = _quantize_per_col(normal(ks[3], (n_layers, inner, d)))
    wi, si = _quantize_per_col(normal(ks[4], (n_layers, d, dff)))
    wo_ff, so_ff = _quantize_per_col(normal(ks[5], (n_layers, dff, d)))

    return {
        "emb": normal(ks[0], (cfg["vocab"], d), 1.0),
        "rel_emb": normal(ks[1], (cfg["num_buckets"], h), 0.1),
        "final_ln": jnp.ones((1, d), jnp.float32),
        "ln1": jnp.ones((n_layers, 1, d), jnp.float32),
        "ln2": jnp.ones((n_layers, 1, d), jnp.float32),
        "wqkv": wqkv, "wqkv_scale": sqkv,
        "wo": wo, "wo_scale": so,
        "wi": wi, "wi_scale": si,
        "wo_ff": wo_ff, "wo_ff_scale": so_ff,
    }


if __name__ == "__main__":
    cfg = dict(
        d_model=512, n_heads=8, d_kv=64, d_ff=2048, n_layers=6,
        vocab=256, num_buckets=32, max_distance=128,
    )
    key = jax.random.PRNGKey(0)
    params = init_params(key, cfg)

    # Encoder input is token ids: (batch=2, seq=16)
    input_ids = jax.random.randint(
        jax.random.fold_in(key, 999), (2, 16), 0, cfg["vocab"]
    )

    fwd = jax.jit(functools.partial(encoder_forward, cfg=cfg))
    out = jax.block_until_ready(fwd(params, input_ids))

    assert out.shape == (2, 16, cfg["d_model"])
    assert bool(jnp.all(jnp.isfinite(out)))
    print("KERNEL_OK")
</pallas_src>

<mosaic_0001>
module attributes {stable_mosaic.version = 11 : i64} {
  func.func @_encoder_kernel(%arg0: i32, %arg1: memref<32x512xf32, #tpu.memory_space<vmem>>, %arg2: memref<8x16x16xf32, #tpu.memory_space<vmem>>, %arg3: memref<1x512xf32, #tpu.memory_space<vmem>>, %arg4: memref<1x1x512xf32, #tpu.memory_space<vmem>>, %arg5: memref<1x512x1536xi8, #tpu.memory_space<vmem>>, %arg6: memref<1x1x1536xf32, #tpu.memory_space<vmem>>, %arg7: memref<1x512x512xi8, #tpu.memory_space<vmem>>, %arg8: memref<1x1x512xf32, #tpu.memory_space<vmem>>, %arg9: memref<1x1x512xf32, #tpu.memory_space<vmem>>, %arg10: memref<1x512x2048xi8, #tpu.memory_space<vmem>>, %arg11: memref<1x1x2048xf32, #tpu.memory_space<vmem>>, %arg12: memref<1x2048x512xi8, #tpu.memory_space<vmem>>, %arg13: memref<1x1x512xf32, #tpu.memory_space<vmem>>, %arg14: memref<32x512xf32, #tpu.memory_space<vmem>>, %arg15: memref<32x512xf32, #tpu.memory_space<vmem>>) attributes {dimension_semantics = [#tpu.dimension_semantics<arbitrary>], iteration_bounds = array<i64: 6>, scalar_prefetch = 0 : i64, scratch_operands = 1 : i64, tpu.core_type = #tpu.core_type<tc>, window_params = [{pipeline_mode = #tpu.pipeline_mode<synchronous>, transform_indices = @transform_0, window_bounds = array<i64: 32, 512>}, {pipeline_mode = #tpu.pipeline_mode<synchronous>, transform_indices = @transform_1, window_bounds = array<i64: 8, 16, 16>}, {pipeline_mode = #tpu.pipeline_mode<synchronous>, transform_indices = @transform_2, window_bounds = array<i64: 1, 512>}, {transform_indices = @transform_3, window_bounds = array<i64: 1, 1, 512>}, {transform_indices = @transform_4, window_bounds = array<i64: 1, 512, 1536>}, {transform_indices = @transform_5, window_bounds = array<i64: 1, 1, 1536>}, {transform_indices = @transform_6, window_bounds = array<i64: 1, 512, 512>}, {transform_indices = @transform_7, window_bounds = array<i64: 1, 1, 512>}, {transform_indices = @transform_8, window_bounds = array<i64: 1, 1, 512>}, {transform_indices = @transform_9, window_bounds = array<i64: 1, 512, 2048>}, {transform_indices = @transform_10, window_bounds = array<i64: 1, 1, 2048>}, {transform_indices = @transform_11, window_bounds = array<i64: 1, 2048, 512>}, {transform_indices = @transform_12, window_bounds = array<i64: 1, 1, 512>}, {pipeline_mode = #tpu.pipeline_mode<synchronous>, transform_indices = @transform_13, window_bounds = array<i64: 32, 512>}]} {
    %c0_i32 = arith.constant 0 : i32
    %0 = arith.cmpi eq, %arg0, %c0_i32 : i32
    %1 = arith.extui %0 : i1 to i32
    %c0_i32_0 = arith.constant 0 : i32
    %2 = arith.cmpi ne, %1, %c0_i32_0 : i32
    scf.if %2 {
      %c0_80 = arith.constant 0 : index
      %c0_81 = arith.constant 0 : index
      %261 = vector.load %arg1[%c0_80, %c0_81] : memref<32x512xf32, #tpu.memory_space<vmem>>, vector<32x512xf32>
      %c0_82 = arith.constant 0 : index
      %c0_83 = arith.constant 0 : index
      %262 = vector.load %arg15[%c0_82, %c0_83] : memref<32x512xf32, #tpu.memory_space<vmem>>, vector<32x512xf32>
      tpu.vector_store %arg15[%c0_82, %c0_83], %261 {strides = array<i32>} : memref<32x512xf32, #tpu.memory_space<vmem>>, vector<32x512xf32>,
    } else {
    }
    %c0 = arith.constant 0 : index
    %c0_1 = arith.constant 0 : index
    %3 = vector.load %arg15[%c0, %c0_1] : memref<32x512xf32, #tpu.memory_space<vmem>>, vector<32x512xf32>
    %c0_2 = arith.constant 0 : index
    %c0_3 = arith.constant 0 : index
    %c0_4 = arith.constant 0 : index
    %4 = vector.load %arg4[%c0_2, %c0_3, %c0_4] : memref<1x1x512xf32, #tpu.memory_space<vmem>>, vector<1x1x512xf32>
    %5 = vector.shape_cast %4 : vector<1x1x512xf32> to vector<1x512xf32>
    %6 = arith.mulf %3, %3 : vector<32x512xf32>
    %cst = arith.constant dense<0.000000e+00> : vector<32xf32>
    %7 = vector.multi_reduction <add>, %6, %cst [1] : vector<32x512xf32> to vector<32xf32>
    %8 = vector.shape_cast %7 : vector<32xf32> to vector<32x1xf32>
    %cst_5 = arith.constant 5.120000e+02 : f32
    %9 = vector.broadcast %cst_5 : f32 to vector<32x1xf32>
    %10 = arith.divf %8, %9 : vector<32x1xf32>
    %cst_6 = arith.constant 9.99999997E-7 : f32
    %11 = vector.broadcast %cst_6 : f32 to vector<32x1xf32>
    %12 = arith.addf %10, %11 : vector<32x1xf32>
    %13 = math.rsqrt %12 : vector<32x1xf32>
    %14 = vector.broadcast %13 : vector<32x1xf32> to vector<32x512xf32>
    %15 = arith.mulf %3, %14 : vector<32x512xf32>
    %16 = vector.broadcast %5 : vector<1x512xf32> to vector<32x512xf32>
    %17 = arith.mulf %15, %16 : vector<32x512xf32>
    %18 = arith.truncf %17 : vector<32x512xf32> to vector<32x512xbf16>
    %c0_7 = arith.constant 0 : index
    %c0_8 = arith.constant 0 : index
    %c0_9 = arith.constant 0 : index
    %19 = vector.load %arg5[%c0_7, %c0_8, %c0_9] : memref<1x512x1536xi8, #tpu.memory_space<vmem>>, vector<1x512x1536xi8>
    %20 = vector.shape_cast %19 : vector<1x512x1536xi8> to vector<512x1536xi8>
    %21 = arith.sitofp %20 : vector<512x1536xi8> to vector<512x1536xbf16>
    %cst_10 = arith.constant dense<0.000000e+00> : vector<32x1536xf32>
    %22 = tpu.matmul %18, %21, %cst_10 {dimension_numbers = #tpu.dot_dimension_numbers<[1], [0], [0], [1], [0, 0, 1, 1], [], []>} : vector<32x512xbf16>, vector<512x1536xbf16>, vector<32x1536xf32> -> vector<32x1536xf32>
    %c0_11 = arith.constant 0 : index
    %c0_12 = arith.constant 0 : index
    %c0_13 = arith.constant 0 : index
    %23 = vector.load %arg6[%c0_11, %c0_12, %c0_13] : memref<1x1x1536xf32, #tpu.memory_space<vmem>>, vector<1x1x1536xf32>
    %24 = vector.shape_cast %23 : vector<1x1x1536xf32> to vector<1x1536xf32>
    %25 = vector.broadcast %24 : vector<1x1536xf32> to vector<32x1536xf32>
    %26 = arith.mulf %22, %25 : vector<32x1536xf32>
    %27 = arith.truncf %26 : vector<32x1536xf32> to vector<32x1536xbf16>
    %28 = vector.extract_strided_slice %27 {offsets = [0, 0], sizes = [32, 512], strides = [1, 1]} : vector<32x1536xbf16> to vector<32x512xbf16>
    %29 = vector.shape_cast %28 : vector<32x512xbf16> to vector<2x16x512xbf16>
    %30 = vector.extract_strided_slice %27 {offsets = [0, 512], sizes = [32, 512], strides = [1, 1]} : vector<32x1536xbf16> to vector<32x512xbf16>
    %31 = vector.shape_cast %30 : vector<32x512xbf16> to vector<2x16x512xbf16>
    %32 = vector.extract_strided_slice %27 {offsets = [0, 1024], sizes = [32, 512], strides = [1, 1]} : vector<32x1536xbf16> to vector<32x512xbf16>
    %33 = vector.shape_cast %32 : vector<32x512xbf16> to vector<2x16x512xbf16>
    %c0_14 = arith.constant 0 : index
    %c0_15 = arith.constant 0 : index
    %c0_16 = arith.constant 0 : index
    %34 = vector.load %arg2[%c0_14, %c0_15, %c0_16] : memref<8x16x16xf32, #tpu.memory_space<vmem>>, vector<8x16x16xf32>
    %35 = vector.extract_strided_slice %29 {offsets = [0, 0, 0], sizes = [2, 16, 64], strides = [1, 1, 1]} : vector<2x16x512xbf16> to vector<2x16x64xbf16>
    %36 = vector.extract_strided_slice %31 {offsets = [0, 0, 0], sizes = [2, 16, 64], strides = [1, 1, 1]} : vector<2x16x512xbf16> to vector<2x16x64xbf16>
    %37 = vector.extract_strided_slice %33 {offsets = [0, 0, 0], sizes = [2, 16, 64], strides = [1, 1, 1]} : vector<2x16x512xbf16> to vector<2x16x64xbf16>
    "tpu.trace_start"() <{level = 10 : i32, message = "bqd,bkd->bqk"}> : () -> ()
    %cst_17 = arith.constant dense<0.000000e+00> : vector<2x16x16xf32>
    %38 = tpu.matmul %35, %36, %cst_17 {dimension_numbers = #tpu.dot_dimension_numbers<[2], [2], [1], [1], [0, 0, 0, 1, 1, 1], [0], [0]>} : vector<2x16x64xbf16>, vector<2x16x64xbf16>, vector<2x16x16xf32> -> vector<2x16x16xf32>
    "tpu.trace_stop"() : () -> ()
    %39 = vector.extract_strided_slice %34 {offsets = [0, 0, 0], sizes = [1, 16, 16], strides = [1, 1, 1]} : vector<8x16x16xf32> to vector<1x16x16xf32>
    %40 = vector.shape_cast %39 : vector<1x16x16xf32> to vector<16x16xf32>
    %41 = vector.shape_cast %40 : vector<16x16xf32> to vector<1x16x16xf32>
    %42 = vector.broadcast %41 : vector<1x16x16xf32> to vector<2x16x16xf32>
    %43 = arith.addf %38, %42 : vector<2x16x16xf32>
    %cst_18 = arith.constant dense<0xFF800000> : vector<2x16xf32>
    %44 = vector.multi_reduction <maximumf>, %43, %cst_18 [2] : vector<2x16x16xf32> to vector<2x16xf32>
    %45 = vector.shape_cast %44 : vector<2x16xf32> to vector<2x16x1xf32>
    %46 = vector.broadcast %45 : vector<2x16x1xf32> to vector<2x16x16xf32>
    %47 = arith.subf %43, %46 : vector<2x16x16xf32>
    %48 = math.exp %47 : vector<2x16x16xf32>
    %cst_19 = arith.constant dense<0.000000e+00> : vector<2x16xf32>
    %49 = vector.multi_reduction <add>, %48, %cst_19 [2] : vector<2x16x16xf32> to vector<2x16xf32>
    %50 = vector.shape_cast %49 : vector<2x16xf32> to vector<2x16x1xf32>
    %51 = tpu.reciprocal %50 {approx = true} : vector<2x16x1xf32> -> vector<2x16x1xf32>
    %52 = vector.broadcast %51 : vector<2x16x1xf32> to vector<2x16x16xf32>
    %53 = arith.mulf %48, %52 : vector<2x16x16xf32>
    %54 = arith.truncf %53 : vector<2x16x16xf32> to vector<2x16x16xbf16>
    "tpu.trace_start"() <{level = 10 : i32, message = "bqk,bkd->bqd"}> : () -> ()
    %cst_20 = arith.constant dense<0.000000e+00> : vector<2x16x64xf32>
    %55 = tpu.matmul %54, %37, %cst_20 {dimension_numbers = #tpu.dot_dimension_numbers<[2], [1], [1], [2], [0, 0, 0, 1, 1, 2], [0], [0]>} : vector<2x16x16xbf16>, vector<2x16x64xbf16>, vector<2x16x64xf32> -> vector<2x16x64xf32>
    "tpu.trace_stop"() : () -> ()
    %56 = vector.shape_cast %55 : vector<2x16x64xf32> to vector<32x64xf32>
    %57 = vector.extract_strided_slice %29 {offsets = [0, 0, 64], sizes = [2, 16, 64], strides = [1, 1, 1]} : vector<2x16x512xbf16> to vector<2x16x64xbf16>
    %58 = vector.extract_strided_slice %31 {offsets = [0, 0, 64], sizes = [2, 16, 64], strides = [1, 1, 1]} : vector<2x16x512xbf16> to vector<2x16x64xbf16>
    %59 = vector.extract_strided_slice %33 {offsets = [0, 0, 64], sizes = [2, 16, 64], strides = [1, 1, 1]} : vector<2x16x512xbf16> to vector<2x16x64xbf16>
    "tpu.trace_start"() <{level = 10 : i32, message = "bqd,bkd->bqk"}> : () -> ()
    %cst_21 = arith.constant dense<0.000000e+00> : vector<2x16x16xf32>
    %60 = tpu.matmul %57, %58, %cst_21 {dimension_numbers = #tpu.dot_dimension_numbers<[2], [2], [1], [1], [0, 0, 0, 1, 1, 1], [0], [0]>} : vector<2x16x64xbf16>, vector<2x16x64xbf16>, vector<2x16x16xf32> -> vector<2x16x16xf32>
    "tpu.trace_stop"() : () -> ()
    %61 = vector.extract_strided_slice %34 {offsets = [1, 0, 0], sizes = [1, 16, 16], strides = [1, 1, 1]} : vector<8x16x16xf32> to vector<1x16x16xf32>
    %62 = vector.shape_cast %61 : vector<1x16x16xf32> to vector<16x16xf32>
    %63 = vector.shape_cast %62 : vector<16x16xf32> to vector<1x16x16xf32>
    %64 = vector.broadcast %63 : vector<1x16x16xf32> to vector<2x16x16xf32>
    %65 = arith.addf %60, %64 : vector<2x16x16xf32>
    %cst_22 = arith.constant dense<0xFF800000> : vector<2x16xf32>
    %66 = vector.multi_reduction <maximumf>, %65, %cst_22 [2] : vector<2x16x16xf32> to vector<2x16xf32>
    %67 = vector.shape_cast %66 : vector<2x16xf32> to vector<2x16x1xf32>
    %68 = vector.broadcast %67 : vector<2x16x1xf32> to vector<2x16x16xf32>
    %69 = arith.subf %65, %68 : vector<2x16x16xf32>
    %70 = math.exp %69 : vector<2x16x16xf32>
    %cst_23 = arith.constant dense<0.000000e+00> : vector<2x16xf32>
    %71 = vector.multi_reduction <add>, %70, %cst_23 [2] : vector<2x16x16xf32> to vector<2x16xf32>
    %72 = vector.shape_cast %71 : vector<2x16xf32> to vector<2x16x1xf32>
    %73 = tpu.reciprocal %72 {approx = true} : vector<2x16x1xf32> -> vector<2x16x1xf32>
    %74 = vector.broadcast %73 : vector<2x16x1xf32> to vector<2x16x16xf32>
    %75 = arith.mulf %70, %74 : vector<2x16x16xf32>
    %76 = arith.truncf %75 : vector<2x16x16xf32> to vector<2x16x16xbf16>
    "tpu.trace_start"() <{level = 10 : i32, message = "bqk,bkd->bqd"}> : () -> ()
    %cst_24 = arith.constant dense<0.000000e+00> : vector<2x16x64xf32>
    %77 = tpu.matmul %76, %59, %cst_24 {dimension_numbers = #tpu.dot_dimension_numbers<[2], [1], [1], [2], [0, 0, 0, 1, 1, 2], [0], [0]>} : vector<2x16x16xbf16>, vector<2x16x64xbf16>, vector<2x16x64xf32> -> vector<2x16x64xf32>
    "tpu.trace_stop"() : () -> ()
    %78 = vector.shape_cast %77 : vector<2x16x64xf32> to vector<32x64xf32>
    %79 = vector.extract_strided_slice %29 {offsets = [0, 0, 128], sizes = [2, 16, 64], strides = [1, 1, 1]} : vector<2x16x512xbf16> to vector<2x16x64xbf16>
    %80 = vector.extract_strided_slice %31 {offsets = [0, 0, 128], sizes = [2, 16, 64], strides = [1, 1, 1]} : vector<2x16x512xbf16> to vector<2x16x64xbf16>
    %81 = vector.extract_strided_slice %33 {offsets = [0, 0, 128], sizes = [2, 16, 64], strides = [1, 1, 1]} : vector<2x16x512xbf16> to vector<2x16x64xbf16>
    "tpu.trace_start"() <{level = 10 : i32, message = "bqd,bkd->bqk"}> : () -> ()
    %cst_25 = arith.constant dense<0.000000e+00> : vector<2x16x16xf32>
    %82 = tpu.matmul %79, %80, %cst_25 {dimension_numbers = #tpu.dot_dimension_numbers<[2], [2], [1], [1], [0, 0, 0, 1, 1, 1], [0], [0]>} : vector<2x16x64xbf16>, vector<2x16x64xbf16>, vector<2x16x16xf32> -> vector<2x16x16xf32>
    "tpu.trace_stop"() : () -> ()
    %83 = vector.extract_strided_slice %34 {offsets = [2, 0, 0], sizes = [1, 16, 16], strides = [1, 1, 1]} : vector<8x16x16xf32> to vector<1x16x16xf32>
    %84 = vector.shape_cast %83 : vector<1x16x16xf32> to vector<16x16xf32>
    %85 = vector.shape_cast %84 : vector<16x16xf32> to vector<1x16x16xf32>
    %86 = vector.broadcast %85 : vector<1x16x16xf32> to vector<2x16x16xf32>
    %87 = arith.addf %82, %86 : vector<2x16x16xf32>
    %cst_26 = arith.constant dense<0xFF800000> : vector<2x16xf32>
    %88 = vector.multi_reduction <maximumf>, %87, %cst_26 [2] : vector<2x16x16xf32> to vector<2x16xf32>
    %89 = vector.shape_cast %88 : vector<2x16xf32> to vector<2x16x1xf32>
    %90 = vector.broadcast %89 : vector<2x16x1xf32> to vector<2x16x16xf32>
    %91 = arith.subf %87, %90 : vector<2x16x16xf32>
    %92 = math.exp %91 : vector<2x16x16xf32>
    %cst_27 = arith.constant dense<0.000000e+00> : vector<2x16xf32>
    %93 = vector.multi_reduction <add>, %92, %cst_27 [2] : vector<2x16x16xf32> to vector<2x16xf32>
    %94 = vector.shape_cast %93 : vector<2x16xf32> to vector<2x16x1xf32>
    %95 = tpu.reciprocal %94 {approx = true} : vector<2x16x1xf32> -> vector<2x16x1xf32>
    %96 = vector.broadcast %95 : vector<2x16x1xf32> to vector<2x16x16xf32>
    %97 = arith.mulf %92, %96 : vector<2x16x16xf32>
    %98 = arith.truncf %97 : vector<2x16x16xf32> to vector<2x16x16xbf16>
    "tpu.trace_start"() <{level = 10 : i32, message = "bqk,bkd->bqd"}> : () -> ()
    %cst_28 = arith.constant dense<0.000000e+00> : vector<2x16x64xf32>
    %99 = tpu.matmul %98, %81, %cst_28 {dimension_numbers = #tpu.dot_dimension_numbers<[2], [1], [1], [2], [0, 0, 0, 1, 1, 2], [0], [0]>} : vector<2x16x16xbf16>, vector<2x16x64xbf16>, vector<2x16x64xf32> -> vector<2x16x64xf32>
    "tpu.trace_stop"() : () -> ()
    %100 = vector.shape_cast %99 : vector<2x16x64xf32> to vector<32x64xf32>
    %101 = vector.extract_strided_slice %29 {offsets = [0, 0, 192], sizes = [2, 16, 64], strides = [1, 1, 1]} : vector<2x16x512xbf16> to vector<2x16x64xbf16>
    %102 = vector.extract_strided_slice %31 {offsets = [0, 0, 192], sizes = [2, 16, 64], strides = [1, 1, 1]} : vector<2x16x512xbf16> to vector<2x16x64xbf16>
    %103 = vector.extract_strided_slice %33 {offsets = [0, 0, 192], sizes = [2, 16, 64], strides = [1, 1, 1]} : vector<2x16x512xbf16> to vector<2x16x64xbf16>
    "tpu.trace_start"() <{level = 10 : i32, message = "bqd,bkd->bqk"}> : () -> ()
    %cst_29 = arith.constant dense<0.000000e+00> : vector<2x16x16xf32>
    %104 = tpu.matmul %101, %102, %cst_29 {dimension_numbers = #tpu.dot_dimension_numbers<[2], [2], [1], [1], [0, 0, 0, 1, 1, 1], [0], [0]>} : vector<2x16x64xbf16>, vector<2x16x64xbf16>, vector<2x16x16xf32> -> vector<2x16x16xf32>
    "tpu.trace_stop"() : () -> ()
    %105 = vector.extract_strided_slice %34 {offsets = [3, 0, 0], sizes = [1, 16, 16], strides = [1, 1, 1]} : vector<8x16x16xf32> to vector<1x16x16xf32>
    %106 = vector.shape_cast %105 : vector<1x16x16xf32> to vector<16x16xf32>
    %107 = vector.shape_cast %106 : vector<16x16xf32> to vector<1x16x16xf32>
    %108 = vector.broadcast %107 : vector<1x16x16xf32> to vector<2x16x16xf32>
    %109 = arith.addf %104, %108 : vector<2x16x16xf32>
    %cst_30 = arith.constant dense<0xFF800000> : vector<2x16xf32>
    %110 = vector.multi_reduction <maximumf>, %109, %cst_30 [2] : vector<2x16x16xf32> to vector<2x16xf32>
    %111 = vector.shape_cast %110 : vector<2x16xf32> to vector<2x16x1xf32>
    %112 = vector.broadcast %111 : vector<2x16x1xf32> to vector<2x16x16xf32>
    %113 = arith.subf %109, %112 : vector<2x16x16xf32>
    %114 = math.exp %113 : vector<2x16x16xf32>
    %cst_31 = arith.constant dense<0.000000e+00> : vector<2x16xf32>
    %115 = vector.multi_reduction <add>, %114, %cst_31 [2] : vector<2x16x16xf32> to vector<2x16xf32>
    %116 = vector.shape_cast %115 : vector<2x16xf32> to vector<2x16x1xf32>
    %117 = tpu.reciprocal %116 {approx = true} : vector<2x16x1xf32> -> vector<2x16x1xf32>
    %118 = vector.broadcast %117 : vector<2x16x1xf32> to vector<2x16x16xf32>
    %119 = arith.mulf %114, %118 : vector<2x16x16xf32>
    %120 = arith.truncf %119 : vector<2x16x16xf32> to vector<2x16x16xbf16>
    "tpu.trace_start"() <{level = 10 : i32, message = "bqk,bkd->bqd"}> : () -> ()
    %cst_32 = arith.constant dense<0.000000e+00> : vector<2x16x64xf32>
    %121 = tpu.matmul %120, %103, %cst_32 {dimension_numbers = #tpu.dot_dimension_numbers<[2], [1], [1], [2], [0, 0, 0, 1, 1, 2], [0], [0]>} : vector<2x16x16xbf16>, vector<2x16x64xbf16>, vector<2x16x64xf32> -> vector<2x16x64xf32>
    "tpu.trace_stop"() : () -> ()
    %122 = vector.shape_cast %121 : vector<2x16x64xf32> to vector<32x64xf32>
    %123 = vector.extract_strided_slice %29 {offsets = [0, 0, 256], sizes = [2, 16, 64], strides = [1, 1, 1]} : vector<2x16x512xbf16> to vector<2x16x64xbf16>
    %124 = vector.extract_strided_slice %31 {offsets = [0, 0, 256], sizes = [2, 16, 64], strides = [1, 1, 1]} : vector<2x16x512xbf16> to vector<2x16x64xbf16>
    %125 = vector.extract_strided_slice %33 {offsets = [0, 0, 256], sizes = [2, 16, 64], strides = [1, 1, 1]} : vector<2x16x512xbf16> to vector<2x16x64xbf16>
    "tpu.trace_start"() <{level = 10 : i32, message = "bqd,bkd->bqk"}> : () -> ()
    %cst_33 = arith.constant dense<0.000000e+00> : vector<2x16x16xf32>
    %126 = tpu.matmul %123, %124, %cst_33 {dimension_numbers = #tpu.dot_dimension_numbers<[2], [2], [1], [1], [0, 0, 0, 1, 1, 1], [0], [0]>} : vector<2x16x64xbf16>, vector<2x16x64xbf16>, vector<2x16x16xf32> -> vector<2x16x16xf32>
    "tpu.trace_stop"() : () -> ()
    %127 = vector.extract_strided_slice %34 {offsets = [4, 0, 0], sizes = [1, 16, 16], strides = [1, 1, 1]} : vector<8x16x16xf32> to vector<1x16x16xf32>
    %128 = vector.shape_cast %127 : vector<1x16x16xf32> to vector<16x16xf32>
    %129 = vector.shape_cast %128 : vector<16x16xf32> to vector<1x16x16xf32>
    %130 = vector.broadcast %129 : vector<1x16x16xf32> to vector<2x16x16xf32>
    %131 = arith.addf %126, %130 : vector<2x16x16xf32>
    %cst_34 = arith.constant dense<0xFF800000> : vector<2x16xf32>
    %132 = vector.multi_reduction <maximumf>, %131, %cst_34 [2] : vector<2x16x16xf32> to vector<2x16xf32>
    %133 = vector.shape_cast %132 : vector<2x16xf32> to vector<2x16x1xf32>
    %134 = vector.broadcast %133 : vector<2x16x1xf32> to vector<2x16x16xf32>
    %135 = arith.subf %131, %134 : vector<2x16x16xf32>
    %136 = math.exp %135 : vector<2x16x16xf32>
    %cst_35 = arith.constant dense<0.000000e+00> : vector<2x16xf32>
    %137 = vector.multi_reduction <add>, %136, %cst_35 [2] : vector<2x16x16xf32> to vector<2x16xf32>
    %138 = vector.shape_cast %137 : vector<2x16xf32> to vector<2x16x1xf32>
    %139 = tpu.reciprocal %138 {approx = true} : vector<2x16x1xf32> -> vector<2x16x1xf32>
    %140 = vector.broadcast %139 : vector<2x16x1xf32> to vector<2x16x16xf32>
    %141 = arith.mulf %136, %140 : vector<2x16x16xf32>
    %142 = arith.truncf %141 : vector<2x16x16xf32> to vector<2x16x16xbf16>
    "tpu.trace_start"() <{level = 10 : i32, message = "bqk,bkd->bqd"}> : () -> ()
    %cst_36 = arith.constant dense<0.000000e+00> : vector<2x16x64xf32>
    %143 = tpu.matmul %142, %125, %cst_36 {dimension_numbers = #tpu.dot_dimension_numbers<[2], [1], [1], [2], [0, 0, 0, 1, 1, 2], [0], [0]>} : vector<2x16x16xbf16>, vector<2x16x64xbf16>, vector<2x16x64xf32> -> vector<2x16x64xf32>
    "tpu.trace_stop"() : () -> ()
    %144 = vector.shape_cast %143 : vector<2x16x64xf32> to vector<32x64xf32>
    %145 = vector.extract_strided_slice %29 {offsets = [0, 0, 320], sizes = [2, 16, 64], strides = [1, 1, 1]} : vector<2x16x512xbf16> to vector<2x16x64xbf16>
    %146 = vector.extract_strided_slice %31 {offsets = [0, 0, 320], sizes = [2, 16, 64], strides = [1, 1, 1]} : vector<2x16x512xbf16> to vector<2x16x64xbf16>
    %147 = vector.extract_strided_slice %33 {offsets = [0, 0, 320], sizes = [2, 16, 64], strides = [1, 1, 1]} : vector<2x16x512xbf16> to vector<2x16x64xbf16>
    "tpu.trace_start"() <{level = 10 : i32, message = "bqd,bkd->bqk"}> : () -> ()
    %cst_37 = arith.constant dense<0.000000e+00> : vector<2x16x16xf32>
    %148 = tpu.matmul %145, %146, %cst_37 {dimension_numbers = #tpu.dot_dimension_numbers<[2], [2], [1], [1], [0, 0, 0, 1, 1, 1], [0], [0]>} : vector<2x16x64xbf16>, vector<2x16x64xbf16>, vector<2x16x16xf32> -> vector<2x16x16xf32>
    "tpu.trace_stop"() : () -> ()
    %149 = vector.extract_strided_slice %34 {offsets = [5, 0, 0], sizes = [1, 16, 16], strides = [1, 1, 1]} : vector<8x16x16xf32> to vector<1x16x16xf32>
    %150 = vector.shape_cast %149 : vector<1x16x16xf32> to vector<16x16xf32>
    %151 = vector.shape_cast %150 : vector<16x16xf32> to vector<1x16x16xf32>
    %152 = vector.broadcast %151 : vector<1x16x16xf32> to vector<2x16x16xf32>
    %153 = arith.addf %148, %152 : vector<2x16x16xf32>
    %cst_38 = arith.constant dense<0xFF800000> : vector<2x16xf32>
    %154 = vector.multi_reduction <maximumf>, %153, %cst_38 [2] : vector<2x16x16xf32> to vector<2x16xf32>
    %155 = vector.shape_cast %154 : vector<2x16xf32> to vector<2x16x1xf32>
    %156 = vector.broadcast %155 : vector<2x16x1xf32> to vector<2x16x16xf32>
    %157 = arith.subf %153, %156 : vector<2x16x16xf32>
    %158 = math.exp %157 : vector<2x16x16xf32>
    %cst_39 = arith.constant dense<0.000000e+00> : vector<2x16xf32>
    %159 = vector.multi_reduction <add>, %158, %cst_39 [2] : vector<2x16x16xf32> to vector<2x16xf32>
    %160 = vector.shape_cast %159 : vector<2x16xf32> to vector<2x16x1xf32>
    %161 = tpu.reciprocal %160 {approx = true} : vector<2x16x1xf32> -> vector<2x16x1xf32>
    %162 = vector.broadcast %161 : vector<2x16x1xf32> to vector<2x16x16xf32>
    %163 = arith.mulf %158, %162 : vector<2x16x16xf32>
    %164 = arith.truncf %163 : vector<2x16x16xf32> to vector<2x16x16xbf16>
    "tpu.trace_start"() <{level = 10 : i32, message = "bqk,bkd->bqd"}> : () -> ()
    %cst_40 = arith.constant dense<0.000000e+00> : vector<2x16x64xf32>
    %165 = tpu.matmul %164, %147, %cst_40 {dimension_numbers = #tpu.dot_dimension_numbers<[2], [1], [1], [2], [0, 0, 0, 1, 1, 2], [0], [0]>} : vector<2x16x16xbf16>, vector<2x16x64xbf16>, vector<2x16x64xf32> -> vector<2x16x64xf32>
    "tpu.trace_stop"() : () -> ()
    %166 = vector.shape_cast %165 : vector<2x16x64xf32> to vector<32x64xf32>
    %167 = vector.extract_strided_slice %29 {offsets = [0, 0, 384], sizes = [2, 16, 64], strides = [1, 1, 1]} : vector<2x16x512xbf16> to vector<2x16x64xbf16>
    %168 = vector.extract_strided_slice %31 {offsets = [0, 0, 384], sizes = [2, 16, 64], strides = [1, 1, 1]} : vector<2x16x512xbf16> to vector<2x16x64xbf16>
    %169 = vector.extract_strided_slice %33 {offsets = [0, 0, 384], sizes = [2, 16, 64], strides = [1, 1, 1]} : vector<2x16x512xbf16> to vector<2x16x64xbf16>
    "tpu.trace_start"() <{level = 10 : i32, message = "bqd,bkd->bqk"}> : () -> ()
    %cst_41 = arith.constant dense<0.000000e+00> : vector<2x16x16xf32>
    %170 = tpu.matmul %167, %168, %cst_41 {dimension_numbers = #tpu.dot_dimension_numbers<[2], [2], [1], [1], [0, 0, 0, 1, 1, 1], [0], [0]>} : vector<2x16x64xbf16>, vector<2x16x64xbf16>, vector<2x16x16xf32> -> vector<2x16x16xf32>
    "tpu.trace_stop"() : () -> ()
    %171 = vector.extract_strided_slice %34 {offsets = [6, 0, 0], sizes = [1, 16, 16], strides = [1, 1, 1]} : vector<8x16x16xf32> to vector<1x16x16xf32>
    %172 = vector.shape_cast %171 : vector<1x16x16xf32> to vector<16x16xf32>
    %173 = vector.shape_cast %172 : vector<16x16xf32> to vector<1x16x16xf32>
    %174 = vector.broadcast %173 : vector<1x16x16xf32> to vector<2x16x16xf32>
    %175 = arith.addf %170, %174 : vector<2x16x16xf32>
    %cst_42 = arith.constant dense<0xFF800000> : vector<2x16xf32>
    %176 = vector.multi_reduction <maximumf>, %175, %cst_42 [2] : vector<2x16x16xf32> to vector<2x16xf32>
    %177 = vector.shape_cast %176 : vector<2x16xf32> to vector<2x16x1xf32>
    %178 = vector.broadcast %177 : vector<2x16x1xf32> to vector<2x16x16xf32>
    %179 = arith.subf %175, %178 : vector<2x16x16xf32>
    %180 = math.exp %179 : vector<2x16x16xf32>
    %cst_43 = arith.constant dense<0.000000e+00> : vector<2x16xf32>
    %181 = vector.multi_reduction <add>, %180, %cst_43 [2] : vector<2x16x16xf32> to vector<2x16xf32>
    %182 = vector.shape_cast %181 : vector<2x16xf32> to vector<2x16x1xf32>
    %183 = tpu.reciprocal %182 {approx = true} : vector<2x16x1xf32> -> vector<2x16x1xf32>
    %184 = vector.broadcast %183 : vector<2x16x1xf32> to vector<2x16x16xf32>
    %185 = arith.mulf %180, %184 : vector<2x16x16xf32>
    %186 = arith.truncf %185 : vector<2x16x16xf32> to vector<2x16x16xbf16>
    "tpu.trace_start"() <{level = 10 : i32, message = "bqk,bkd->bqd"}> : () -> ()
    %cst_44 = arith.constant dense<0.000000e+00> : vector<2x16x64xf32>
    %187 = tpu.matmul %186, %169, %cst_44 {dimension_numbers = #tpu.dot_dimension_numbers<[2], [1], [1], [2], [0, 0, 0, 1, 1, 2], [0], [0]>} : vector<2x16x16xbf16>, vector<2x16x64xbf16>, vector<2x16x64xf32> -> vector<2x16x64xf32>
    "tpu.trace_stop"() : () -> ()
    %188 = vector.shape_cast %187 : vector<2x16x64xf32> to vector<32x64xf32>
    %189 = vector.extract_strided_slice %29 {offsets = [0, 0, 448], sizes = [2, 16, 64], strides = [1, 1, 1]} : vector<2x16x512xbf16> to vector<2x16x64xbf16>
    %190 = vector.extract_strided_slice %31 {offsets = [0, 0, 448], sizes = [2, 16, 64], strides = [1, 1, 1]} : vector<2x16x512xbf16> to vector<2x16x64xbf16>
    %191 = vector.extract_strided_slice %33 {offsets = [0, 0, 448], sizes = [2, 16, 64], strides = [1, 1, 1]} : vector<2x16x512xbf16> to vector<2x16x64xbf16>
    "tpu.trace_start"() <{level = 10 : i32, message = "bqd,bkd->bqk"}> : () -> ()
    %cst_45 = arith.constant dense<0.000000e+00> : vector<2x16x16xf32>
    %192 = tpu.matmul %189, %190, %cst_45 {dimension_numbers = #tpu.dot_dimension_numbers<[2], [2], [1], [1], [0, 0, 0, 1, 1, 1], [0], [0]>} : vector<2x16x64xbf16>, vector<2x16x64xbf16>, vector<2x16x16xf32> -> vector<2x16x16xf32>
    "tpu.trace_stop"() : () -> ()
    %193 = vector.extract_strided_slice %34 {offsets = [7, 0, 0], sizes = [1, 16, 16], strides = [1, 1, 1]} : vector<8x16x16xf32> to vector<1x16x16xf32>
    %194 = vector.shape_cast %193 : vector<1x16x16xf32> to vector<16x16xf32>
    %195 = vector.shape_cast %194 : vector<16x16xf32> to vector<1x16x16xf32>
    %196 = vector.broadcast %195 : vector<1x16x16xf32> to vector<2x16x16xf32>
    %197 = arith.addf %192, %196 : vector<2x16x16xf32>
    %cst_46 = arith.constant dense<0xFF800000> : vector<2x16xf32>
    %198 = vector.multi_reduction <maximumf>, %197, %cst_46 [2] : vector<2x16x16xf32> to vector<2x16xf32>
    %199 = vector.shape_cast %198 : vector<2x16xf32> to vector<2x16x1xf32>
    %200 = vector.broadcast %199 : vector<2x16x1xf32> to vector<2x16x16xf32>
    %201 = arith.subf %197, %200 : vector<2x16x16xf32>
    %202 = math.exp %201 : vector<2x16x16xf32>
    %cst_47 = arith.constant dense<0.000000e+00> : vector<2x16xf32>
    %203 = vector.multi_reduction <add>, %202, %cst_47 [2] : vector<2x16x16xf32> to vector<2x16xf32>
    %204 = vector.shape_cast %203 : vector<2x16xf32> to vector<2x16x1xf32>
    %205 = tpu.reciprocal %204 {approx = true} : vector<2x16x1xf32> -> vector<2x16x1xf32>
    %206 = vector.broadcast %205 : vector<2x16x1xf32> to vector<2x16x16xf32>
    %207 = arith.mulf %202, %206 : vector<2x16x16xf32>
    %208 = arith.truncf %207 : vector<2x16x16xf32> to vector<2x16x16xbf16>
    "tpu.trace_start"() <{level = 10 : i32, message = "bqk,bkd->bqd"}> : () -> ()
    %cst_48 = arith.constant dense<0.000000e+00> : vector<2x16x64xf32>
    %209 = tpu.matmul %208, %191, %cst_48 {dimension_numbers = #tpu.dot_dimension_numbers<[2], [1], [1], [2], [0, 0, 0, 1, 1, 2], [0], [0]>} : vector<2x16x16xbf16>, vector<2x16x64xbf16>, vector<2x16x64xf32> -> vector<2x16x64xf32>
    "tpu.trace_stop"() : () -> ()
    %210 = vector.shape_cast %209 : vector<2x16x64xf32> to vector<32x64xf32>
    %211 = tpu.concatenate %56, %78, %100, %122, %144, %166, %188, %210 in 1 : vector<32x64xf32>, vector<32x64xf32>, vector<32x64xf32>, vector<32x64xf32>, vector<32x64xf32>, vector<32x64xf32>, vector<32x64xf32>, vector<32x64xf32> -> vector<32x512xf32>
    %212 = arith.truncf %211 : vector<32x512xf32> to vector<32x512xbf16>
    %c0_49 = arith.constant 0 : index
    %c0_50 = arith.constant 0 : index
    %c0_51 = arith.constant 0 : index
    %213 = vector.load %arg7[%c0_49, %c0_50, %c0_51] : memref<1x512x512xi8, #tpu.memory_space<vmem>>, vector<1x512x512xi8>
    %214 = vector.shape_cast %213 : vector<1x512x512xi8> to vector<512x512xi8>
    %215 = arith.sitofp %214 : vector<512x512xi8> to vector<512x512xbf16>
    %cst_52 = arith.constant dense<0.000000e+00> : vector<32x512xf32>
    %216 = tpu.matmul %212, %215, %cst_52 {dimension_numbers = #tpu.dot_dimension_numbers<[1], [0], [0], [1], [0, 0, 1, 1], [], []>} : vector<32x512xbf16>, vector<512x512xbf16>, vector<32x512xf32> -> vector<32x512xf32>
    %c0_53 = arith.constant 0 : index
    %c0_54 = arith.constant 0 : index
    %c0_55 = arith.constant 0 : index
    %217 = vector.load %arg8[%c0_53, %c0_54, %c0_55] : memref<1x1x512xf32, #tpu.memory_space<vmem>>, vector<1x1x512xf32>
    %218 = vector.shape_cast %217 : vector<1x1x512xf32> to vector<1x512xf32>
    %219 = vector.broadcast %218 : vector<1x512xf32> to vector<32x512xf32>
    %220 = arith.mulf %216, %219 : vector<32x512xf32>
    %221 = arith.addf %3, %220 : vector<32x512xf32>
    %c0_56 = arith.constant 0 : index
    %c0_57 = arith.constant 0 : index
    %c0_58 = arith.constant 0 : index
    %222 = vector.load %arg9[%c0_56, %c0_57, %c0_58] : memref<1x1x512xf32, #tpu.memory_space<vmem>>, vector<1x1x512xf32>
    %223 = vector.shape_cast %222 : vector<1x1x512xf32> to vector<1x512xf32>
    %224 = arith.mulf %221, %221 : vector<32x512xf32>
    %cst_59 = arith.constant dense<0.000000e+00> : vector<32xf32>
    %225 = vector.multi_reduction <add>, %224, %cst_59 [1] : vector<32x512xf32> to vector<32xf32>
    %226 = vector.shape_cast %225 : vector<32xf32> to vector<32x1xf32>
    %cst_60 = arith.constant 5.120000e+02 : f32
    %227 = vector.broadcast %cst_60 : f32 to vector<32x1xf32>
    %228 = arith.divf %226, %227 : vector<32x1xf32>
    %cst_61 = arith.constant 9.99999997E-7 : f32
    %229 = vector.broadcast %cst_61 : f32 to vector<32x1xf32>
    %230 = arith.addf %228, %229 : vector<32x1xf32>
    %231 = math.rsqrt %230 : vector<32x1xf32>
    %232 = vector.broadcast %231 : vector<32x1xf32> to vector<32x512xf32>
    %233 = arith.mulf %221, %232 : vector<32x512xf32>
    %234 = vector.broadcast %223 : vector<1x512xf32> to vector<32x512xf32>
    %235 = arith.mulf %233, %234 : vector<32x512xf32>
    %236 = arith.truncf %235 : vector<32x512xf32> to vector<32x512xbf16>
    %c0_62 = arith.constant 0 : index
    %c0_63 = arith.constant 0 : index
    %c0_64 = arith.constant 0 : index
    %237 = vector.load %arg10[%c0_62, %c0_63, %c0_64] : memref<1x512x2048xi8, #tpu.memory_space<vmem>>, vector<1x512x2048xi8>
    %238 = vector.shape_cast %237 : vector<1x512x2048xi8> to vector<512x2048xi8>
    %239 = arith.sitofp %238 : vector<512x2048xi8> to vector<512x2048xbf16>
    %cst_65 = arith.constant dense<0.000000e+00> : vector<32x2048xf32>
    %240 = tpu.matmul %236, %239, %cst_65 {dimension_numbers = #tpu.dot_dimension_numbers<[1], [0], [0], [1], [0, 0, 1, 1], [], []>} : vector<32x512xbf16>, vector<512x2048xbf16>, vector<32x2048xf32> -> vector<32x2048xf32>
    %c0_66 = arith.constant 0 : index
    %c0_67 = arith.constant 0 : index
    %c0_68 = arith.constant 0 : index
    %241 = vector.load %arg11[%c0_66, %c0_67, %c0_68] : memref<1x1x2048xf32, #tpu.memory_space<vmem>>, vector<1x1x2048xf32>
    %242 = vector.shape_cast %241 : vector<1x1x2048xf32> to vector<1x2048xf32>
    %243 = vector.broadcast %242 : vector<1x2048xf32> to vector<32x2048xf32>
    %244 = arith.mulf %240, %243 : vector<32x2048xf32>
    %cst_69 = arith.constant 0.000000e+00 : f32
    %245 = vector.broadcast %cst_69 : f32 to vector<32x2048xf32>
    %246 = arith.maximumf %244, %245 : vector<32x2048xf32>
    %247 = arith.truncf %246 : vector<32x2048xf32> to vector<32x2048xbf16>
    %c0_70 = arith.constant 0 : index
    %c0_71 = arith.constant 0 : index
    %c0_72 = arith.constant 0 : index
    %248 = vector.load %arg12[%c0_70, %c0_71, %c0_72] : memref<1x2048x512xi8, #tpu.memory_space<vmem>>, vector<1x2048x512xi8>
    %249 = vector.shape_cast %248 : vector<1x2048x512xi8> to vector<2048x512xi8>
    %250 = arith.sitofp %249 : vector<2048x512xi8> to vector<2048x512xbf16>
    %cst_73 = arith.constant dense<0.000000e+00> : vector<32x512xf32>
    %251 = tpu.matmul %247, %250, %cst_73 {dimension_numbers = #tpu.dot_dimension_numbers<[1], [0], [0], [1], [0, 0, 1, 1], [], []>} : vector<32x2048xbf16>, vector<2048x512xbf16>, vector<32x512xf32> -> vector<32x512xf32>
    %c0_74 = arith.constant 0 : index
    %c0_75 = arith.constant 0 : index
    %c0_76 = arith.constant 0 : index
    %252 = vector.load %arg13[%c0_74, %c0_75, %c0_76] : memref<1x1x512xf32, #tpu.memory_space<vmem>>, vector<1x1x512xf32>
    %253 = vector.shape_cast %252 : vector<1x1x512xf32> to vector<1x512xf32>
    %254 = vector.broadcast %253 : vector<1x512xf32> to vector<32x512xf32>
    %255 = arith.mulf %251, %254 : vector<32x512xf32>
    %256 = arith.addf %221, %255 : vector<32x512xf32>
    %c0_77 = arith.constant 0 : index
    %c0_78 = arith.constant 0 : index
    %257 = vector.load %arg15[%c0_77, %c0_78] : memref<32x512xf32, #tpu.memory_space<vmem>>, vector<32x512xf32>
    tpu.vector_store %arg15[%c0_77, %c0_78], %256 {strides = array<i32>} : memref<32x512xf32, #tpu.memory_space<vmem>>, vector<32x512xf32>,
    %c5_i32 = arith.constant 5 : i32
    %258 = arith.cmpi eq, %arg0, %c5_i32 : i32
    %259 = arith.extui %258 : i1 to i32
    %c0_i32_79 = arith.constant 0 : i32
    %260 = arith.cmpi ne, %259, %c0_i32_79 : i32
    scf.if %260 {
      %c0_80 = arith.constant 0 : index
      %c0_81 = arith.constant 0 : index
      %261 = vector.load %arg3[%c0_80, %c0_81] : memref<1x512xf32, #tpu.memory_space<vmem>>, vector<1x512xf32>
      %262 = arith.mulf %256, %256 : vector<32x512xf32>
      %cst_82 = arith.constant dense<0.000000e+00> : vector<32xf32>
      %263 = vector.multi_reduction <add>, %262, %cst_82 [1] : vector<32x512xf32> to vector<32xf32>
      %264 = vector.shape_cast %263 : vector<32xf32> to vector<32x1xf32>
      %cst_83 = arith.constant 5.120000e+02 : f32
      %265 = vector.broadcast %cst_83 : f32 to vector<32x1xf32>
      %266 = arith.divf %264, %265 : vector<32x1xf32>
      %cst_84 = arith.constant 9.99999997E-7 : f32
      %267 = vector.broadcast %cst_84 : f32 to vector<32x1xf32>
      %268 = arith.addf %266, %267 : vector<32x1xf32>
      %269 = math.rsqrt %268 : vector<32x1xf32>
      %270 = vector.broadcast %269 : vector<32x1xf32> to vector<32x512xf32>
      %271 = arith.mulf %256, %270 : vector<32x512xf32>
      %272 = vector.broadcast %261 : vector<1x512xf32> to vector<32x512xf32>
      %273 = arith.mulf %271, %272 : vector<32x512xf32>
      %c0_85 = arith.constant 0 : index
      %c0_86 = arith.constant 0 : index
      %274 = vector.load %arg14[%c0_85, %c0_86] : memref<32x512xf32, #tpu.memory_space<vmem>>, vector<32x512xf32>
      tpu.vector_store %arg14[%c0_85, %c0_86], %273 {strides = array<i32>} : memref<32x512xf32, #tpu.memory_space<vmem>>, vector<32x512xf32>,
    } else {
    }
    return
  }
  func.func @transform_0(%arg0: i32) -> (i32, i32) {
    %c0_i32 = arith.constant 0 : i32
    %c0_i32_0 = arith.constant 0 : i32
    %c0_i32_1 = arith.constant 0 : i32
    return %c0_i32, %c0_i32_0 : i32, i32
  }
  func.func @transform_1(%arg0: i32) -> (i32, i32, i32) {
    %c0_i32 = arith.constant 0 : i32
    %c0_i32_0 = arith.constant 0 : i32
    %c0_i32_1 = arith.constant 0 : i32
    %c0_i32_2 = arith.constant 0 : i32
    return %c0_i32, %c0_i32_0, %c0_i32_1 : i32, i32, i32
  }
  func.func @transform_2(%arg0: i32) -> (i32, i32) {
    %c0_i32 = arith.constant 0 : i32
    %c0_i32_0 = arith.constant 0 : i32
    %c0_i32_1 = arith.constant 0 : i32
    return %c0_i32, %c0_i32_0 : i32, i32
  }
  func.func @transform_3(%arg0: i32) -> (i32, i32, i32) {
    %c0_i32 = arith.constant 0 : i32
    %c0_i32_0 = arith.constant 0 : i32
    %c0_i32_1 = arith.constant 0 : i32
    return %arg0, %c0_i32, %c0_i32_0 : i32, i32, i32
  }
  func.func @transform_4(%arg0: i32) -> (i32, i32, i32) {
    %c0_i32 = arith.constant 0 : i32
    %c0_i32_0 = arith.constant 0 : i32
    %c0_i32_1 = arith.constant 0 : i32
    return %arg0, %c0_i32, %c0_i32_0 : i32, i32, i32
  }
  func.func @transform_5(%arg0: i32) -> (i32, i32, i32) {
    %c0_i32 = arith.constant 0 : i32
    %c0_i32_0 = arith.constant 0 : i32
    %c0_i32_1 = arith.constant 0 : i32
    return %arg0, %c0_i32, %c0_i32_0 : i32, i32, i32
  }
  func.func @transform_6(%arg0: i32) -> (i32, i32, i32) {
    %c0_i32 = arith.constant 0 : i32
    %c0_i32_0 = arith.constant 0 : i32
    %c0_i32_1 = arith.constant 0 : i32
    return %arg0, %c0_i32, %c0_i32_0 : i32, i32, i32
  }
  func.func @transform_7(%arg0: i32) -> (i32, i32, i32) {
    %c0_i32 = arith.constant 0 : i32
    %c0_i32_0 = arith.constant 0 : i32
    %c0_i32_1 = arith.constant 0 : i32
    return %arg0, %c0_i32, %c0_i32_0 : i32, i32, i32
  }
  func.func @transform_8(%arg0: i32) -> (i32, i32, i32) {
    %c0_i32 = arith.constant 0 : i32
    %c0_i32_0 = arith.constant 0 : i32
    %c0_i32_1 = arith.constant 0 : i32
    return %arg0, %c0_i32, %c0_i32_0 : i32, i32, i32
  }
  func.func @transform_9(%arg0: i32) -> (i32, i32, i32) {
    %c0_i32 = arith.constant 0 : i32
    %c0_i32_0 = arith.constant 0 : i32
    %c0_i32_1 = arith.constant 0 : i32
    return %arg0, %c0_i32, %c0_i32_0 : i32, i32, i32
  }
  func.func @transform_10(%arg0: i32) -> (i32, i32, i32) {
    %c0_i32 = arith.constant 0 : i32
    %c0_i32_0 = arith.constant 0 : i32
    %c0_i32_1 = arith.constant 0 : i32
    return %arg0, %c0_i32, %c0_i32_0 : i32, i32, i32
  }
  func.func @transform_11(%arg0: i32) -> (i32, i32, i32) {
    %c0_i32 = arith.constant 0 : i32
    %c0_i32_0 = arith.constant 0 : i32
    %c0_i32_1 = arith.constant 0 : i32
    return %arg0, %c0_i32, %c0_i32_0 : i32, i32, i32
  }
  func.func @transform_12(%arg0: i32) -> (i32, i32, i32) {
    %c0_i32 = arith.constant 0 : i32
    %c0_i32_0 = arith.constant 0 : i32
    %c0_i32_1 = arith.constant 0 : i32
    return %arg0, %c0_i32, %c0_i32_0 : i32, i32, i32
  }
  func.func @transform_13(%arg0: i32) -> (i32, i32) {
    %c0_i32 = arith.constant 0 : i32
    %c0_i32_0 = arith.constant 0 : i32
    %c0_i32_1 = arith.constant 0 : i32
    return %c0_i32, %c0_i32_0 : i32, i32
  }
}

</mosaic_0001>

<bundles_post_ra>
// kernel: encoder_forward.1
= control target key start
LH: loop header
LB: loop body
LE: loop exit
PB: predicated region body
PF: predicated region fallthrough
CT: control target
= control target key end

     0   :  { %s13008_s0 = inlined_call_operand.vmem [shape: f32[32,512], index: 0, kind: input, shape index: {}]   ;;  %s13009_s1 = inlined_call_operand.vmem [shape: f32[8,16,16], index: 1, kind: input, shape index: {}]   ;;  %s13010_s2 = inlined_call_operand.hbm [shape: f32[1,512], index: 2, kind: input, shape index: {}]   ;;  %s13011_s3 = inlined_call_operand.hbm [shape: f32[6,1,512], index: 3, kind: input, shape index: {}]   ;;  %s13012_s4 = inlined_call_operand.hbm [shape: s8[6,512,1536], index: 4, kind: input, shape index: {}]   ;;  %s13013_s5 = inlined_call_operand.hbm [shape: f32[6,1,1536], index: 5, kind: input, shape index: {}]   ;;  %s13014_s6 = inlined_call_operand.hbm [shape: s8[6,512,512], index: 6, kind: input, shape index: {}]   ;;  %s13015_s7 = inlined_call_operand.hbm [shape: f32[6,1,512], index: 7, kind: input, shape index: {}]   ;;  %s13016_s8 = inlined_call_operand.hbm [shape: f32[6,1,512], index: 8, kind: input, shape index: {}]   ;;  %s13017_s9 = inlined_call_operand.hbm [shape: s8[6,512,2048], index: 9, kind: input, shape index: {}]   ;;  %s13018_s10 = inlined_call_operand.hbm [shape: f32[6,1,2048], index: 10, kind: input, shape index: {}]   ;;  %s13019_s11 = inlined_call_operand.hbm [shape: s8[6,2048,512], index: 11, kind: input, shape index: {}]   ;;  %s13020_s12 = inlined_call_operand.hbm [shape: f32[6,1,512], index: 12, kind: input, shape index: {}]   ;;  %s13021_s13 = inlined_call_operand.hbm [shape: f32[32,512], index: 13, kind: output, shape index: {}]  }
   0x1   :  { %13052 = sst [smem:[#allocation40_spill]] %s13008_s0 }
   0x2   :  { %13053 = sst [smem:[#allocation41_spill]] %s13009_s1 }
   0x3   :  { %13054 = sst [smem:[#allocation42_spill]] %s13010_s2 }
   0x4   :  { %13055 = sst [smem:[#allocation43_spill]] %s13011_s3 }
   0x5   :  { %13056 = sst [smem:[#allocation44_spill]] %s13013_s5 }
   0x6   :  { %13057 = sst [smem:[#allocation45_spill]] %s13015_s7 }
   0x7   :  { %13058 = sst [smem:[#allocation46_spill]] %s13017_s9 }
   0x8   :  { %13059 = sst [smem:[#allocation47_spill]] %s13019_s11 }
   0x9   :  { %13060 = sst [smem:[#allocation48_spill]] %s13021_s13 }
   0xa   :  { %18 = vsyncpa [#allocation4], 0 }
   0xb   :  { %19 = vsyncpa [#allocation7], 0 }
   0xc   :  { %21 = vsyncpa [#allocation7 + $0x1], 0 }
   0xd   :  { %22 = vsyncpa [#allocation10], 0 }
   0xe   :  { %24 = vsyncpa [#allocation10 + $0x1], 0 }
   0xf   :  { %25 = vsyncpa [#allocation13], 0 }
  0x10   :  { %27 = vsyncpa [#allocation13 + $0x1], 0 }
  0x11   :  { %28 = vsyncpa [#allocation16], 0 }
  0x12   :  { %30 = vsyncpa [#allocation16 + $0x1], 0 }
  0x13   :  { %31 = vsyncpa [#allocation19], 0 }
  0x14   :  { %33 = vsyncpa [#allocation19 + $0x1], 0 }
  0x15   :  { %34 = vsyncpa [#allocation5], 0  ;;  %s10230_s25 = smov 0   ;;  %s10232_s26 = smov 0  }
  0x16   :  { %s10234_s27 = smov 0   ;;  %s10236_s28 = smov 0  }
  0x17 LB: > { %13061 = sst [smem:[#allocation29_spill]] %s10131_s27  ;;  %s10251_s29 = sadd.s32 1, %s10135_s28   ;;  %s10135_s28 = sphi %s10236_s28, %s13114_s28   ;;  %s10131_s27 = sphi %s10234_s27, %s13116_s27   ;;  %s10127_s26 = sphi %s10232_s26, %s13118_s26   ;;  %s10123_s25 = sphi %s10230_s25, %s13117_s25  }
  0x18   : > { %13062 = sst [smem:[#allocation30_spill]] %s10251_s29  ;;  %s110_s30 = sadd.s32 1, %s10131_s27 }
  0x19   : > { %s107_s14 = ssub.s32 %s10135_s28, %s10251_s29  ;;  %p117_p0 = scmp.ne.s32.totalorder %s10131_s27, %s10127_s26 }
  0x1a   : > { %p108_p1 = scmp.eq.s32.totalorder %s107_s14, 0  ;;  %p118_p2 = scmp.eq.s32.totalorder %s10135_s28, 0 }
  0x1b   : > { %p9466_p3 = scmp.lt.s32.totalorder %s10135_s28, 6  ;;  %s10264_s16 = sand.u32 1, %s10135_s28  }
  0x1c   : > { %s10261_s15 = scalar_select %p108_p1, %s10131_s27, %s110_s30  }
  0x1d   : > { %p119_p4 = por %p118_p2, %p117_p0  ;;  %s10267_s17 = sand.u32 1, %s10131_s27  }
  0x1e   : > { %13063 = sst [smem:[#allocation31_spill]] %s10261_s15  ;;  %s10270_s18 = sshll.u32 %s10267_s17, 2 }
  0x1f   : > { %s10273_s19 = sshll.u32 %s10135_s28, 6  ;;  %s13064_s3 = sld [smem:[#allocation43_spill]] }
  0x20   : > { %s423_s23 = scalar_lea.vmem [#allocation6], %s10270_s18  ;;  %p10282_p5 = pnand %p9466_p3, %p119_p4 }
  0x21   : > { %s431_s24 = sshll.u32 %s423_s23, 4  ;;  %s13028_s15 = scalar_lea.sflag [#allocation7], %s10264_s16  ;;  %s10286_s24 = int_to_ptr.vmem [resolvable:$true] %s431_s24 }
  0x22   : > { %s13065_s30 = scalar_select %p10282_p5, 1, 0 }
  0x23   : > { %p10294_p7 = pneg %p10282_p5 }
  0x25   : > { %s10279_s22 = scalar_lea.hbm %s13064_s3, %s10273_s19  ;;  %s9728_s29 = scalar_lea.hbm %s13064_s3, 384 }
  0x26   : > { %s9723_s27 = scalar_lea.hbm %s10279_s22, 64  ;;  %p9729_p10 = scmp.lt.u32.totalorder %s10279_s22, %s13064_s3 }
  0x27   : > { %p9724_p6 = scmp.ne.s32.totalorder %s10279_s22, %s9723_s27  ;;  %p9730_p11 = scmp.lt.u32.totalorder %s9728_s29, %s9723_s27 }
  0x28   : > { %s13066_s20 = scalar_select %p10294_p7, 1, 0 }
  0x29   : > { %p9726_p8 = pnand %p10294_p7, %p9724_p6  ;;  %p9731_p12 = por %p9730_p11, %p9729_p10 }
  0x2a   : > { %p9732_p13 = scmp.lt.u32.totalorder %s9723_s27, %s10279_s22 }
  0x2b   : > { %p9727_p9 = pneg %p9726_p8 }
  0x2c   : > { %p9733_p0 = por %p9732_p13, %p9731_p12 }
  0x2e   : > { %p9734_p1 = pnand %p9733_p0, %p9727_p9 }
  0x30   : > { %9737 = shalt.err (!%p9734_p1)
}
  0x31   : > { %s9738_s14 = scalar_lea.vmem %s10286_s24, 64  ;;  %s10137_s21 = smov [#allocation6]  }
  0x32   : > { %p9739_p2 = scmp.ne.s32.totalorder %s10286_s24, %s9738_s14  ;;  %s9743_s23 = sshll.u32 %s10137_s21, 4  ;;  %s9744_s23 = int_to_ptr.vmem [resolvable:$false] %s9743_s23 }
  0x33   : > { %s9745_s1 = scalar_lea.vmem %s9744_s23, 128  ;;  %p9746_p6 = scmp.lt.s32.totalorder %s10286_s24, %s9744_s23 }
  0x34   : > { %p9741_p3 = pnand %p9739_p2, %p10294_p7  ;;  %p9747_p8 = scmp.lt.s32.totalorder %s9745_s1, %s9738_s14 }
  0x36   : > { %p9742_p4 = pneg %p9741_p3  ;;  %p9748_p10 = por %p9747_p8, %p9746_p6 }
  0x38   : > { %p9749_p11 = pnand %p9748_p10, %p9742_p4 }
  0x3a   : > { %9752 = shalt.err (!%p9749_p11)
}
  0x3b   : > { %9437 = dma.hbm_to_vmem [thread:$0]  (!%p10282_p5), %s10279_s22, 64, %s10286_s24, %s13028_s15  }
  0x3c   : > { %s9399_s13 = smul.u32 192, %s10135_s28  ;;  %s13068_s5 = sld [smem:[#allocation44_spill]] }
  0x3d   : > { %s13067_s27 = smul.u32 12, %s10267_s17  ;;  %s13031_s3 = scalar_lea.sflag [#allocation10], %s10264_s16 }
  0x3f   : > { %s463_s29 = scalar_lea.vmem [#allocation9], %s13067_s27 }
  0x40   : > { %s471_s21 = sshll.u32 %s463_s29, 4  ;;  %s472_s21 = int_to_ptr.vmem [resolvable:$true] %s471_s21 }
  0x42   : > { %s10325_s1 = scalar_lea.hbm %s13068_s5, %s9399_s13  ;;  %s9758_s27 = scalar_lea.hbm %s13068_s5, 1152 }
  0x43   : > { %s9753_s0 = scalar_lea.hbm %s10325_s1, 192  ;;  %p9759_p0 = scmp.lt.u32.totalorder %s10325_s1, %s13068_s5 }
  0x44   : > { %p9754_p9 = scmp.ne.s32.totalorder %s10325_s1, %s9753_s0  ;;  %p9760_p1 = scmp.lt.u32.totalorder %s9758_s27, %s9753_s0 }
  0x45   : > { %p9762_p3 = scmp.lt.u32.totalorder %s9753_s0, %s10325_s1 }
  0x46   : > { %p9756_p12 = pnand %p9754_p9, %p10294_p7  ;;  %p9761_p2 = por %p9760_p1, %p9759_p0 }
  0x48   : > { %p9757_p13 = pneg %p9756_p12  ;;  %p9763_p4 = por %p9762_p3, %p9761_p2 }
  0x4a   : > { %p9764_p6 = pnand %p9763_p4, %p9757_p13 }
  0x4c   : > { %9767 = shalt.err (!%p9764_p6)
}
  0x4d   : > { %s9768_s13 = scalar_lea.vmem %s472_s21, 192  ;;  %s10138_s23 = smov [#allocation9]  }
  0x4e   : > { %p9769_p8 = scmp.ne.s32.totalorder %s472_s21, %s9768_s13  ;;  %s9773_s14 = sshll.u32 %s10138_s23, 4  ;;  %s9774_s14 = int_to_ptr.vmem [resolvable:$false] %s9773_s14 }
  0x4f   : > { %s9775_s22 = scalar_lea.vmem %s9774_s14, 384  ;;  %p9776_p9 = scmp.lt.s32.totalorder %s472_s21, %s9774_s14 }
  0x50   : > { %p9771_p10 = pnand %p9769_p8, %p10294_p7  ;;  %p9777_p12 = scmp.lt.s32.totalorder %s9775_s22, %s9768_s13 }
  0x52   : > { %p9772_p11 = pneg %p9771_p10  ;;  %p9778_p5 = por %p9777_p12, %p9776_p9 }
  0x54   : > { %p9779_p0 = pnand %p9778_p5, %p9772_p11 }
  0x56   : > { %9782 = shalt.err (!%p9779_p0)
}
  0x57   : > { %p13069_p1 = scmp.ne.s32.totalorder %s13065_s30, 0  ;;  %s13070_s7 = sld [smem:[#allocation45_spill]] }
  0x58   : > { %s503_s27 = scalar_lea.vmem [#allocation12], %s10270_s18  ;;  %s8832_s13 = sshll.u32 %s10267_s17, 11 }
  0x59   : > { %9443 = dma.hbm_to_vmem [thread:$0]  (!%p13069_p1), %s10325_s1, 192, %s472_s21, %s13031_s3  }
  0x5a   : > { %s511_s29 = sshll.u32 %s503_s27, 4  ;;  %s13032_s23 = scalar_lea.sflag [#allocation13], %s10264_s16  ;;  %s10354_s29 = int_to_ptr.vmem [resolvable:$true] %s511_s29 }
  0x5d   : > { %s10351_s24 = scalar_lea.hbm %s13070_s7, %s10273_s19  ;;  %s9788_s22 = scalar_lea.hbm %s13070_s7, 384 }
  0x5e   : > { %s9783_s14 = scalar_lea.hbm %s10351_s24, 64  ;;  %p9789_p3 = scmp.lt.u32.totalorder %s10351_s24, %s13070_s7 }
  0x5f   : > { %p9784_p5 = scmp.ne.s32.totalorder %s10351_s24, %s9783_s14  ;;  %p9790_p4 = scmp.lt.u32.totalorder %s9788_s22, %s9783_s14 }
  0x60   : > { %p9792_p8 = scmp.lt.u32.totalorder %s9783_s14, %s10351_s24 }
  0x61   : > { %p9786_p13 = pnand %p9784_p5, %p10294_p7  ;;  %p9791_p6 = por %p9790_p4, %p9789_p3 }
  0x63   : > { %p9787_p2 = pneg %p9786_p13  ;;  %p9793_p10 = por %p9792_p8, %p9791_p6 }
  0x65   : > { %p9794_p11 = pnand %p9793_p10, %p9787_p2 }
  0x67   : > { %9797 = shalt.err (!%p9794_p11)
}
  0x68   : > { %s9798_s27 = scalar_lea.vmem %s10354_s29, 64  ;;  %s10139_s21 = smov [#allocation12]  }
  0x69   : > { %p9799_p9 = scmp.ne.s32.totalorder %s10354_s29, %s9798_s27  ;;  %s9803_s1 = sshll.u32 %s10139_s21, 4  ;;  %s9804_s1 = int_to_ptr.vmem [resolvable:$false] %s9803_s1 }
  0x6a   : > { %s9805_s0 = scalar_lea.vmem %s9804_s1, 128  ;;  %p9806_p5 = scmp.lt.s32.totalorder %s10354_s29, %s9804_s1 }
  0x6b   : > { %p9801_p12 = pnand %p9799_p9, %p10294_p7  ;;  %p9807_p13 = scmp.lt.s32.totalorder %s9805_s0, %s9798_s27 }
  0x6d   : > { %p9802_p0 = pneg %p9801_p12  ;;  %p9808_p3 = por %p9807_p13, %p9806_p5 }
  0x6f   : > { %p9809_p4 = pnand %p9808_p3, %p9802_p0 }
  0x71   : > { %9812 = shalt.err (!%p9809_p4)
}
  0x72   : > { %9449 = dma.hbm_to_vmem [thread:$0]  (!%p13069_p1), %s10351_s24, 64, %s10354_s29, %s13032_s23  }
  0x73   : > { %s8896_s14 = sshll.u32 %s10135_s28, 15  ;;  %s13071_s9 = sld [smem:[#allocation46_spill]] }
  0x74   : > { %s541_s21 = scalar_lea.vmem [#allocation15], %s8832_s13  ;;  %s13034_s0 = scalar_lea.sflag [#allocation16], %s10264_s16 }
  0x75   : > { %s548_s1 = sshll.u32 %s541_s21, 4  ;;  %s10391_s1 = int_to_ptr.vmem [resolvable:$true] %s548_s1 }
  0x79   : > { %s10387_s27 = scalar_lea.hbm %s13071_s9, %s8896_s14  ;;  %s9818_s22 = scalar_lea.hbm %s13071_s9, 196608 }
  0x7a   : > { %s9813_s3 = scalar_lea.hbm %s10387_s27, 32768  ;;  %p9819_p10 = scmp.lt.u32.totalorder %s10387_s27, %s13071_s9 }
  0x7b   : > { %p9814_p2 = scmp.ne.s32.totalorder %s10387_s27, %s9813_s3  ;;  %p9820_p11 = scmp.lt.u32.totalorder %s9818_s22, %s9813_s3 }
  0x7c   : > { %p9822_p12 = scmp.lt.u32.totalorder %s9813_s3, %s10387_s27 }
  0x7d   : > { %p9816_p6 = pnand %p9814_p2, %p10294_p7  ;;  %p9821_p9 = por %p9820_p11, %p9819_p10 }
  0x7f   : > { %p9817_p8 = pneg %p9816_p6  ;;  %p9823_p0 = por %p9822_p12, %p9821_p9 }
  0x81   : > { %p9824_p5 = pnand %p9823_p0, %p9817_p8 }
  0x83   : > { %9827 = shalt.err (!%p9824_p5)
}
  0x84   : > { %s9828_s21 = scalar_lea.vmem %s10391_s1, 32768  ;;  %s10140_s24 = smov [#allocation15]  }
  0x85   : > { %p9829_p13 = scmp.ne.s32.totalorder %s10391_s1, %s9828_s21  ;;  %s9833_s29 = sshll.u32 %s10140_s24, 4  ;;  %s9834_s29 = int_to_ptr.vmem [resolvable:$false] %s9833_s29 }
  0x86   : > { %s9835_s23 = scalar_lea.vmem %s9834_s29, 65536  ;;  %p9836_p2 = scmp.lt.s32.totalorder %s10391_s1, %s9834_s29 }
  0x87   : > { %p9831_p3 = pnand %p9829_p13, %p10294_p7  ;;  %p9837_p6 = scmp.lt.s32.totalorder %s9835_s23, %s9828_s21 }
  0x89   : > { %p9832_p4 = pneg %p9831_p3  ;;  %p9838_p10 = por %p9837_p6, %p9836_p2 }
  0x8b   : > { %p9839_p11 = pnand %p9838_p10, %p9832_p4 }
  0x8d   : > { %9842 = shalt.err (!%p9839_p11)
}
  0x8e   : > { %s10141_s3 = smov 2048   ;;  %s10142_s22 = smov 128  }
  0x8f   : > { %9455 = dma.hbm_to_vmem [thread:$0]  (!%p13069_p1), %s10387_s27, 32768, %s10391_s1, %s13034_s0, %s10141_s3, %s10141_s3, %s10142_s22  }
  0x90   : > { %s13072_s11 = sld [smem:[#allocation47_spill]]  ;;  %s581_s29 = scalar_lea.vmem [#allocation18], %s8832_s13 }
  0x91   : > { %s588_s23 = sshll.u32 %s581_s29, 4  ;;  %s13033_s5 = scalar_lea.sflag [#allocation19], %s10264_s16  ;;  %s10426_s23 = int_to_ptr.vmem [resolvable:$true] %s588_s23 }
  0x96   : > { %s10422_s21 = scalar_lea.hbm %s13072_s11, %s8896_s14  ;;  %s9848_s14 = scalar_lea.hbm %s13072_s11, 196608 }
  0x97   : > { %s9843_s7 = scalar_lea.hbm %s10422_s21, 32768  ;;  %p9849_p0 = scmp.lt.u32.totalorder %s10422_s21, %s13072_s11 }
  0x98   : > { %p9844_p8 = scmp.ne.s32.totalorder %s10422_s21, %s9843_s7  ;;  %p9850_p5 = scmp.lt.u32.totalorder %s9848_s14, %s9843_s7 }
  0x99   : > { %p9852_p3 = scmp.lt.u32.totalorder %s9843_s7, %s10422_s21 }
  0x9a   : > { %p9846_p9 = pnand %p9844_p8, %p10294_p7  ;;  %p9851_p13 = por %p9850_p5, %p9849_p0 }
  0x9c   : > { %p9847_p12 = pneg %p9846_p9  ;;  %p9853_p4 = por %p9852_p3, %p9851_p13 }
  0x9e   : > { %p9854_p2 = pnand %p9853_p4, %p9847_p12 }
  0xa0   : > { %9857 = shalt.err (!%p9854_p2)
}
  0xa1   : > { %s9858_s13 = scalar_lea.vmem %s10426_s23, 32768  ;;  %s10143_s15 = smov [#allocation18]  }
  0xa2   : > { %p9859_p6 = scmp.ne.s32.totalorder %s10426_s23, %s9858_s13  ;;  %s9863_s24 = sshll.u32 %s10143_s15, 4  ;;  %s9864_s24 = int_to_ptr.vmem [resolvable:$false] %s9863_s24 }
  0xa3   : > { %s9865_s29 = scalar_lea.vmem %s9864_s24, 65536  ;;  %p9866_p8 = scmp.lt.s32.totalorder %s10426_s23, %s9864_s24 }
  0xa4   : > { %p9861_p10 = pnand %p9859_p6, %p10294_p7  ;;  %p9867_p9 = scmp.lt.s32.totalorder %s9865_s29, %s9858_s13 }
  0xa6   : > { %p9862_p11 = pneg %p9861_p10  ;;  %p9868_p0 = por %p9867_p9, %p9866_p8 }
  0xa8   : > { %p9869_p5 = pnand %p9868_p0, %p9862_p11 }
  0xaa   : > { %9872 = shalt.err (!%p9869_p5)
}
  0xab   : > { %s13035_s7 = smov 512   ;;  %s13036_s27 = smov 32  }
  0xac   : > { %9461 = dma.hbm_to_vmem [thread:$0]  (!%p13069_p1), %s10422_s21, 32768, %s10426_s23, %s13033_s5, %s13035_s7, %s13035_s7, %s13036_s27  }
  0xad   : > { %s10456_s1 = sadd.s32 4294967295, %s10135_s28   ;;  %p123_p12 = scmp.ne.s32.totalorder %s10127_s26, %s10123_s25 }
  0xae   : > { %p13037_p13 = scmp.eq.s32.totalorder %s10456_s1, 0  ;;  %p8815_p3 = scmp.ge.s32.totalorder %s10135_s28, 1 }
  0xaf   : > { %p389_p4 = scmp.lt.s32.totalorder %s10135_s28, 7  ;;  %s10146_s21 = smov [#allocation3]  }
  0xb0   : > { %p10466_p6 = por %p13037_p13, %p123_p12  ;;  %s408_s23 = sshll.u32 %s10146_s21, 4  ;;  %s409_s23 = int_to_ptr.vmem [resolvable:$true] %s408_s23 }
  0xb1   : > { %p10470_p10 = pnand %p8815_p3, %p389_p4  ;;  %s9396_s22 = smul.u32 1536, %s10267_s17 }
  0xb2   : > { %s13073_s14 = scalar_select %p10466_p6, 1, 0 }
  0xb3   : > { %s13074_s3 = scalar_select %p10470_p10, 1, 0 }
  0xb4   : > { %p9430_p11 = pneg %p10470_p10  ;;  %s9397_s25 = smul.u32 24576, %s10135_s28 }
  0xb5   : > { %s442_s5 = scalar_lea.vmem [#allocation8], %s9396_s22  ;;  %s13076_s2 = sld [smem:[#allocation42_spill]] }
  0xb6   : > { %p10480_p8 = pnand %p9430_p11, %p13037_p13  ;;  %s10487_s29 = scalar_lea.hbm %s13012_s4, %s9397_s25 }
  0xb7   : > { %s449_s0 = sshll.u32 %s442_s5, 4  ;;  %s10489_s0 = int_to_ptr.vmem [resolvable:$true] %s449_s0 }
  0xb8   : > { %p9875_p0 = pneg %p10480_p8 }
  0xbb   : > { %s9873_s27 = scalar_lea.hbm %s13076_s2, 64 }
  0xbc   : > { %p9874_p9 = scmp.ne.s32.totalorder %s13076_s2, %s9873_s27  ;;  %p9880_p3 = scmp.lt.u32.totalorder %s9873_s27, %s13076_s2 }
  0xbe   : > { %p9876_p5 = pnand %p9875_p0, %p9874_p9 }
  0xc0   : > { %p9877_p12 = pneg %p9876_p5 }
  0xc2   : > { %p9882_p4 = pnand %p9880_p3, %p9877_p12 }
  0xc4   : > { %9885 = shalt.err (!%p9882_p4)
}
  0xc5   : > { %s9886_s5 = scalar_lea.vmem %s409_s23, 64  ;;  %p9894_p6 = scmp.lt.s32.totalorder %s409_s23, %s409_s23 }
  0xc6   : > { %p9887_p11 = scmp.ne.s32.totalorder %s409_s23, %s9886_s5  ;;  %p9895_p10 = scmp.lt.s32.totalorder %s9886_s5, %s9886_s5 }
  0xc8   : > { %p9889_p2 = pnand %p9887_p11, %p9875_p0  ;;  %p9896_p1 = por %p9895_p10, %p9894_p6 }
  0xca   : > { %p9890_p13 = pneg %p9889_p2 }
  0xcc   : > { %p9897_p7 = pnand %p9896_p1, %p9890_p13 }
  0xce   : > { %9900 = shalt.err (!%p9897_p7)
}
  0xcf   : > { %9433 = dma.hbm_to_vmem [thread:$0]  (!%p10480_p8), %s13076_s2, 64, %s409_s23, [#allocation4]  }
  0xd0   : > { %s9901_s7 = scalar_lea.hbm %s10487_s29, 24576  ;;  %p13077_p0 = scmp.ne.s32.totalorder %s13066_s20, 0 }
  0xd1   : > { %p9902_p9 = scmp.ne.s32.totalorder %s10487_s29, %s9901_s7  ;;  %s9906_s25 = scalar_lea.hbm %s13012_s4, 147456 }
  0xd2   : > { %p9907_p7 = scmp.lt.u32.totalorder %s10487_s29, %s13012_s4  ;;  %p9908_p1 = scmp.lt.u32.totalorder %s9906_s25, %s9901_s7 }
  0xd3   : > { %p9904_p2 = pnand %p9902_p9, %p13077_p0  ;;  %p9910_p6 = scmp.lt.u32.totalorder %s9901_s7, %s10487_s29 }
  0xd4   : > { %p9909_p13 = por %p9908_p1, %p9907_p7 }
  0xd5   : > { %p9905_p5 = pneg %p9904_p2 }
  0xd6   : > { %p9911_p10 = por %p9910_p6, %p9909_p13 }
  0xd8   : > { %p9912_p12 = pnand %p9911_p10, %p9905_p5 }
  0xda   : > { %9915 = shalt.err (!%p9912_p12)
}
  0xdb   : > { %s9916_s23 = scalar_lea.vmem %s10489_s0, 24576  ;;  %s10147_s15 = smov [#allocation8]  }
  0xdc   : > { %p9917_p8 = scmp.ne.s32.totalorder %s10489_s0, %s9916_s23  ;;  %s9921_s24 = sshll.u32 %s10147_s15, 4  ;;  %s9922_s24 = int_to_ptr.vmem [resolvable:$false] %s9921_s24 }
  0xdd   : > { %s9923_s5 = scalar_lea.vmem %s9922_s24, 49152  ;;  %p9924_p11 = scmp.lt.s32.totalorder %s10489_s0, %s9922_s24 }
  0xde   : > { %p9919_p3 = pnand %p9917_p8, %p13077_p0  ;;  %p9925_p9 = scmp.lt.s32.totalorder %s9923_s5, %s9916_s23 }
  0xe0   : > { %p9920_p4 = pneg %p9919_p3  ;;  %p9926_p2 = por %p9925_p9, %p9924_p11 }
  0xe2   : > { %p9927_p7 = pnand %p9926_p2, %p9920_p4 }
  0xe4   : > { %9930 = shalt.err (!%p9927_p7)
}
  0xe5   : > { %s10148_s9 = smov 1536   ;;  %s10149_s11 = smov 96  }
  0xe6   : > { %p13078_p5 = scmp.ne.s32.totalorder %s13065_s30, 0  ;;  %s13079_s7 = scalar_lea.sflag [#allocation7], %s10264_s16 }
  0xe7   : > { %s8823_s27 = sshll.u32 %s10267_s17, 9  ;;  %s8893_s22 = sshll.u32 %s10135_s28, 13 }
  0xe8   : > { %9440 = dma.hbm_to_vmem [thread:$0]  (!%p13078_p5), %s10487_s29, 24576, %s10489_s0, %s13079_s7, %s10148_s9, %s10148_s9, %s10149_s11  }
  0xe9   : > { %s10535_s13 = scalar_lea.hbm %s13014_s6, %s8893_s22  ;;  %s482_s23 = scalar_lea.vmem [#allocation11], %s8823_s27 }
  0xea   : > { %s489_s15 = sshll.u32 %s482_s23, 4  ;;  %s10543_s2 = scalar_lea.hbm %s13016_s8, %s10273_s19  ;;  %s10537_s15 = int_to_ptr.vmem [resolvable:$true] %s489_s15 }
  0xeb   : > { %s9931_s0 = scalar_lea.hbm %s10535_s13, 8192  ;;  %s9936_s11 = scalar_lea.hbm %s13014_s6, 49152 }
  0xec   : > { %p9932_p1 = scmp.ne.s32.totalorder %s10535_s13, %s9931_s0  ;;  %p9937_p10 = scmp.lt.u32.totalorder %s10535_s13, %s13014_s6 }
  0xed   : > { %p9938_p12 = scmp.lt.u32.totalorder %s9936_s11, %s9931_s0  ;;  %p9940_p3 = scmp.lt.u32.totalorder %s9931_s0, %s10535_s13 }
  0xee   : > { %p9934_p13 = pnand %p9932_p1, %p13077_p0 }
  0xef   : > { %p9939_p8 = por %p9938_p12, %p9937_p10 }
  0xf0   : > { %p9935_p6 = pneg %p9934_p13 }
  0xf1   : > { %p9941_p4 = por %p9940_p3, %p9939_p8 }
  0xf3   : > { %p9942_p11 = pnand %p9941_p4, %p9935_p6 }
  0xf5   : > { %9945 = shalt.err (!%p9942_p11)
}
  0xf6   : > { %s9946_s27 = scalar_lea.vmem %s10537_s15, 8192  ;;  %s10150_s25 = smov [#allocation11]  }
  0xf7   : > { %p9947_p9 = scmp.ne.s32.totalorder %s10537_s15, %s9946_s27  ;;  %s9951_s21 = sshll.u32 %s10150_s25, 4  ;;  %s9952_s21 = int_to_ptr.vmem [resolvable:$false] %s9951_s21 }
  0xf8   : > { %s9953_s23 = scalar_lea.vmem %s9952_s21, 16384  ;;  %p9954_p1 = scmp.lt.s32.totalorder %s10537_s15, %s9952_s21 }
  0xf9   : > { %p9949_p2 = pnand %p9947_p9, %p13077_p0  ;;  %p9955_p13 = scmp.lt.s32.totalorder %s9953_s23, %s9946_s27 }
  0xfb   : > { %p9950_p7 = pneg %p9949_p2  ;;  %p9956_p10 = por %p9955_p13, %p9954_p1 }
  0xfd   : > { %p9957_p12 = pnand %p9956_p10, %p9950_p7 }
  0xff   : > { %9960 = shalt.err (!%p9957_p12)
}
 0x100   : > { %s13080_s24 = smov 32   ;;  %s13081_s5 = smov 512  }
 0x101   : > { %s13082_s0 = scalar_lea.sflag [#allocation10], %s10264_s16  ;;  %s522_s29 = scalar_lea.vmem [#allocation14], %s10270_s18 }
 0x102   : > { %9446 = dma.hbm_to_vmem [thread:$0]  (!%p13078_p5), %s10535_s13, 8192, %s10537_s15, %s13082_s0, %s13081_s5, %s13081_s5, %s13080_s24  }
 0x103   : > { %s530_s9 = sshll.u32 %s522_s29, 4  ;;  %s8835_s11 = sshll.u32 %s10267_s17, 4  ;;  %s531_s9 = int_to_ptr.vmem [resolvable:$true] %s530_s9 }
 0x104   : > { %s9961_s7 = scalar_lea.hbm %s10543_s2, 64  ;;  %s9966_s25 = scalar_lea.hbm %s13016_s8, 384 }
 0x105   : > { %p9962_p6 = scmp.ne.s32.totalorder %s10543_s2, %s9961_s7  ;;  %p9967_p4 = scmp.lt.u32.totalorder %s10543_s2, %s13016_s8 }
 0x106   : > { %p9968_p11 = scmp.lt.u32.totalorder %s9966_s25, %s9961_s7  ;;  %p9970_p2 = scmp.lt.u32.totalorder %s9961_s7, %s10543_s2 }
 0x107   : > { %p9964_p8 = pnand %p9962_p6, %p13077_p0 }
 0x108   : > { %p9969_p9 = por %p9968_p11, %p9967_p4 }
 0x109   : > { %p9965_p3 = pneg %p9964_p8 }
 0x10a   : > { %p9971_p7 = por %p9970_p2, %p9969_p9 }
 0x10c   : > { %p9972_p1 = pnand %p9971_p7, %p9965_p3 }
 0x10e   : > { %9975 = shalt.err (!%p9972_p1)
}
 0x10f   : > { %s9976_s13 = scalar_lea.vmem %s531_s9, 64  ;;  %s10151_s15 = smov [#allocation14]  }
 0x110   : > { %p9977_p13 = scmp.ne.s32.totalorder %s531_s9, %s9976_s13  ;;  %s9981_s24 = sshll.u32 %s10151_s15, 4  ;;  %s9982_s24 = int_to_ptr.vmem [resolvable:$false] %s9981_s24 }
 0x111   : > { %s9983_s5 = scalar_lea.vmem %s9982_s24, 128  ;;  %p9984_p6 = scmp.lt.s32.totalorder %s531_s9, %s9982_s24 }
 0x112   : > { %p9979_p10 = pnand %p9977_p13, %p13077_p0  ;;  %p9985_p8 = scmp.lt.s32.totalorder %s9983_s5, %s9976_s13 }
 0x114   : > { %p9980_p12 = pneg %p9979_p10  ;;  %p9986_p5 = por %p9985_p8, %p9984_p6 }
 0x116   : > { %p9987_p4 = pnand %p9986_p5, %p9980_p12 }
 0x118   : > { %9990 = shalt.err (!%p9987_p4)
}
 0x119   : > { %p13083_p11 = scmp.ne.s32.totalorder %s13065_s30, 0  ;;  %s13084_s0 = scalar_lea.sflag [#allocation13], %s10264_s16 }
 0x11a   : > { %s8897_s29 = sshll.u32 %s10135_s28, 8  ;;  %s562_s7 = scalar_lea.vmem [#allocation17], %s8835_s11 }
 0x11b   : > { %9452 = dma.hbm_to_vmem [thread:$0]  (!%p13083_p11), %s10543_s2, 64, %s531_s9, %s13084_s0  }
 0x11c   : > { %s570_s22 = sshll.u32 %s562_s7, 4  ;;  %s568_s21 = scalar_lea.hbm %s13018_s10, %s8897_s29  ;;  %s571_s22 = int_to_ptr.vmem [resolvable:$true] %s570_s22 }
 0x11d   : > { %s9991_s23 = scalar_lea.hbm %s568_s21, 256  ;;  %s9996_s24 = scalar_lea.hbm %s13018_s10, 1536 }
 0x11e   : > { %p9992_p5 = scmp.ne.s32.totalorder %s568_s21, %s9991_s23  ;;  %p9997_p2 = scmp.lt.u32.totalorder %s568_s21, %s13018_s10 }
 0x11f   : > { %p9998_p7 = scmp.lt.u32.totalorder %s9996_s24, %s9991_s23  ;;  %p10000_p13 = scmp.lt.u32.totalorder %s9991_s23, %s568_s21 }
 0x120   : > { %p9994_p3 = pnand %p9992_p5, %p13077_p0 }
 0x121   : > { %p9999_p1 = por %p9998_p7, %p9997_p2 }
 0x122   : > { %p9995_p9 = pneg %p9994_p3 }
 0x123   : > { %p10001_p10 = por %p10000_p13, %p9999_p1 }
 0x125   : > { %p10002_p12 = pnand %p10001_p10, %p9995_p9 }
 0x127   : > { %10005 = shalt.err (!%p10002_p12)
}
 0x128   : > { %s10006_s28 = scalar_lea.vmem %s571_s22, 256  ;;  %s10152_s17 = smov [#allocation17]  }
 0x129   : > { %p10007_p6 = scmp.ne.s32.totalorder %s571_s22, %s10006_s28  ;;  %s10011_s9 = sshll.u32 %s10152_s17, 4  ;;  %s10012_s9 = int_to_ptr.vmem [resolvable:$false] %s10011_s9 }
 0x12a   : > { %s10013_s11 = scalar_lea.vmem %s10012_s9, 512  ;;  %p10014_p5 = scmp.lt.s32.totalorder %s571_s22, %s10012_s9 }
 0x12b   : > { %p10009_p8 = pnand %p10007_p6, %p13077_p0  ;;  %p10015_p3 = scmp.lt.s32.totalorder %s10013_s11, %s10006_s28 }
 0x12d   : > { %p10010_p4 = pneg %p10009_p8  ;;  %p10016_p11 = por %p10015_p3, %p10014_p5 }
 0x12f   : > { %p10017_p2 = pnand %p10016_p11, %p10010_p4 }
 0x131   : > { %10020 = shalt.err (!%p10017_p2)
}
 0x132   : > { %p13085_p7 = scmp.ne.s32.totalorder %s13065_s30, 0  ;;  %s13086_s0 = scalar_lea.sflag [#allocation16], %s10264_s16 }
 0x133   : > { %s10616_s27 = scalar_lea.hbm %s13020_s12, %s10273_s19  ;;  %s602_s25 = scalar_lea.vmem [#allocation20], %s10270_s18 }
 0x134   : > { %9458 = dma.hbm_to_vmem [thread:$0]  (!%p13085_p7), %s568_s21, 256, %s571_s22, %s13086_s0  }
 0x135   : > { %s610_s23 = sshll.u32 %s602_s25, 4  ;;  %s10021_s13 = scalar_lea.hbm %s10616_s27, 64  ;;  %s611_s23 = int_to_ptr.vmem [resolvable:$true] %s610_s23 }
 0x136   : > { %p10022_p11 = scmp.ne.s32.totalorder %s10616_s27, %s10021_s13  ;;  %s10026_s22 = scalar_lea.hbm %s13020_s12, 384 }
 0x137   : > { %p10027_p13 = scmp.lt.u32.totalorder %s10616_s27, %s13020_s12  ;;  %p10028_p10 = scmp.lt.u32.totalorder %s10026_s22, %s10021_s13 }
 0x138   : > { %p10024_p9 = pnand %p10022_p11, %p13077_p0  ;;  %p10030_p6 = scmp.lt.u32.totalorder %s10021_s13, %s10616_s27 }
 0x139   : > { %p10029_p12 = por %p10028_p10, %p10027_p13 }
 0x13a   : > { %p10025_p1 = pneg %p10024_p9 }
 0x13b   : > { %p10031_p8 = por %p10030_p6, %p10029_p12 }
 0x13d   : > { %p10032_p4 = pnand %p10031_p8, %p10025_p1 }
 0x13f   : > { %10035 = shalt.err (!%p10032_p4)
}
 0x140   : > { %s10036_s18 = scalar_lea.vmem %s611_s23, 64  ;;  %s10153_s19 = smov [#allocation20]  }
 0x141   : > { %p10037_p5 = scmp.ne.s32.totalorder %s611_s23, %s10036_s18  ;;  %s10041_s2 = sshll.u32 %s10153_s19, 4  ;;  %s10042_s2 = int_to_ptr.vmem [resolvable:$false] %s10041_s2 }
 0x142   : > { %s10043_s28 = scalar_lea.vmem %s10042_s2, 128  ;;  %p10044_p11 = scmp.lt.s32.totalorder %s611_s23, %s10042_s2 }
 0x143   : > { %p10039_p3 = pnand %p10037_p5, %p13077_p0  ;;  %p10045_p9 = scmp.lt.s32.totalorder %s10043_s28, %s10036_s18 }
 0x145   : > { %p10040_p2 = pneg %p10039_p3  ;;  %p10046_p7 = por %p10045_p9, %p10044_p11 }
 0x147   : > { %p10047_p10 = pnand %p10046_p7, %p10040_p2 }
 0x149   : > { %10050 = shalt.err (!%p10047_p10)
}
 0x14a   : > { %p13087_p13 = scmp.ne.s32.totalorder %s13065_s30, 0  ;;  %s13088_s17 = scalar_lea.sflag [#allocation19], %s10264_s16 }
 0x14b   : > { %p13089_p1 = scmp.ne.s32.totalorder %s13074_s3, 0 }
 0x14c   : > { %9464 = dma.hbm_to_vmem [thread:$0]  (!%p13087_p13), %s10616_s27, 64, %s611_s23, %s13088_s17  }
 0x14d   : > { %619 = sbr.rel (%p13089_p1) target bundleno = 7440 (0x1d10), region = 72 }
 0x154   : > { %p13090_p0 = scmp.eq.s32.totalorder %s10456_s1, 0 }
 0x156   : > { %10094 = dma.done.wait (%p13090_p0), [#allocation4], 64   ;;  %p13091_p12 = pmov %p13090_p0 }
 0x157   : > { %s10645_s20 = sand.u32 1, %s10456_s1   ;;  %s627_s30 = sand.u32 1, %s10127_s26  }
 0x158   : > { %10096 = vsyncadd (%p13091_p12), [#allocation4], 4294967232  ;;  %s10648_s9 = sshll.u32 %s627_s30, 2  ;;  %s626_s16 = scalar_lea.sflag [#allocation7], %s10645_s20 }
 0x159   : > { %s629_s11 = scalar_lea.vmem [#allocation6], %s10648_s9  ;;  %p13092_p7 = scmp.ne.s32.totalorder %s13073_s14, 0 }
 0x15b   : > { %10098 = dma.done.wait (%p13092_p7), %s626_s16, 24640  }
 0x15c   : > { %10100 = vsyncadd (%p13092_p7), %s626_s16, 4294942656  ;;  %s9400_s3 = smul.u32 1536, %s627_s30  ;;  %s644_s7 = scalar_lea.sflag [#allocation10], %s10645_s20 }
 0x15d   : > { %s9401_s0 = smul.u32 12, %s627_s30 }
 0x15e   : > { %s10656_s29 = scalar_lea.vmem [#allocation8], %s9400_s3 }
 0x15f   : > { %s10659_s27 = scalar_lea.vmem [#allocation9], %s9401_s0 }
 0x160   : > { %10102 = dma.done.wait (%p13092_p7), %s644_s7, 8384  }
 0x161   : > { %10104 = vsyncadd (%p13092_p7), %s644_s7, 4294958912  ;;  %s8847_s25 = sshll.u32 %s627_s30, 9  ;;  %s662_s13 = scalar_lea.sflag [#allocation13], %s10645_s20 }
 0x162   : > { %s10665_s23 = scalar_lea.vmem [#allocation11], %s8847_s25  ;;  %s665_s15 = scalar_lea.vmem [#allocation12], %s10648_s9 }
 0x163   : > { %10106 = dma.done.wait (%p13092_p7), %s662_s13, 128  }
 0x164   : > { %10108 = vsyncadd (%p13092_p7), %s662_s13, 4294967168  ;;  %s8850_s24 = sshll.u32 %s627_s30, 11  ;;  %s674_s22 = scalar_lea.vmem [#allocation14], %s10648_s9 }
 0x165   : > { %s680_s21 = scalar_lea.sflag [#allocation16], %s10645_s20  ;;  %s10675_s5 = scalar_lea.vmem [#allocation15], %s8850_s24 }
 0x166   : > { %10110 = dma.done.wait (%p13092_p7), %s680_s21, 33024  }
 0x167   : > { %10112 = vsyncadd (%p13092_p7), %s680_s21, 4294934272  ;;  %s8851_s18 = sshll.u32 %s627_s30, 4  ;;  %s698_s2 = scalar_lea.sflag [#allocation19], %s10645_s20 }
 0x168   : > { %s10681_s19 = scalar_lea.vmem [#allocation17], %s8851_s18  ;;  %s10684_s28 = scalar_lea.vmem [#allocation18], %s8850_s24 }
 0x169   : > { %10114 = dma.done.wait (%p13092_p7), %s698_s2, 32832  }
 0x16a   : > { %10116 = vsyncadd (%p13092_p7), %s698_s2, 4294934464  ;;  %s710_s17 = scalar_lea.vmem [#allocation20], %s10648_s9  ;;  %p13093_p6 = scmp.ne.s32.totalorder %s10456_s1, 0 }
 0x16b   : > { %s13094_s0 = sld [smem:[#allocation40_spill]] (!%p13093_p6) }
 0x16c   : > { %797 = sbr.rel (%p13093_p6) target bundleno = 378 (0x17a), region = 120 }
 0x171   : > { %v798_v0 = vld [vmem:[%s13094_s0] sm:$0xff] (!%p13093_p6)  ;;  %v799_v1 = vld [vmem:[%s13094_s0 + $0x8] sm:$0xff] (!%p13093_p6)  ;;  %v800_v2 = vld [vmem:[%s13094_s0 + $0x10] sm:$0xff] (!%p13093_p6) }
 0x172   : > { %814 = vst [vmem:[#allocation2] sm:$0xff] (!%p13093_p6), %v798_v0  ;;  %815 = vst [vmem:[#allocation2 + $0x8] sm:$0xff] (!%p13093_p6), %v799_v1  ;;  %v801_v3 = vld [vmem:[%s13094_s0 + $0x18] sm:$0xff] (!%p13093_p6)  ;;  %v802_v4 = vld [vmem:[%s13094_s0 + $0x20] sm:$0xff] (!%p13093_p6) }
 0x173   : > { %816 = vst [vmem:[#allocation2 + $0x10] sm:$0xff] %v800_v2  ;;  %v803_v5 = vld [vmem:[%s13094_s0 + $0x28] sm:$0xff]  ;;  %817 = vst [vmem:[#allocation2 + $0x18] sm:$0xff] %v801_v3  ;;  %v804_v6 = vld [vmem:[%s13094_s0 + $0x30] sm:$0xff] }
 0x174   : > { %818 = vst [vmem:[#allocation2 + $0x20] sm:$0xff] %v802_v4  ;;  %819 = vst [vmem:[#allocation2 + $0x28] sm:$0xff] %v803_v5  ;;  %v805_v7 = vld [vmem:[%s13094_s0 + $0x38] sm:$0xff]  ;;  %v806_v8 = vld [vmem:[%s13094_s0 + $0x40] sm:$0xff] }
 0x175   : > { %820 = vst [vmem:[#allocation2 + $0x30] sm:$0xff] %v804_v6  ;;  %821 = vst [vmem:[#allocation2 + $0x38] sm:$0xff] %v805_v7  ;;  %v807_v9 = vld [vmem:[%s13094_s0 + $0x48] sm:$0xff]  ;;  %v808_v10 = vld [vmem:[%s13094_s0 + $0x50] sm:$0xff] }
 0x176   : > { %822 = vst [vmem:[#allocation2 + $0x40] sm:$0xff] %v806_v8  ;;  %v809_v11 = vld [vmem:[%s13094_s0 + $0x58] sm:$0xff]  ;;  %823 = vst [vmem:[#allocation2 + $0x48] sm:$0xff] %v807_v9  ;;  %v810_v12 = vld [vmem:[%s13094_s0 + $0x60] sm:$0xff] }
 0x177   : > { %824 = vst [vmem:[#allocation2 + $0x50] sm:$0xff] %v808_v10  ;;  %825 = vst [vmem:[#allocation2 + $0x58] sm:$0xff] %v809_v11  ;;  %v811_v13 = vld [vmem:[%s13094_s0 + $0x68] sm:$0xff]  ;;  %v812_v14 = vld [vmem:[%s13094_s0 + $0x70] sm:$0xff] }
 0x178   : > { %826 = vst [vmem:[#allocation2 + $0x60] sm:$0xff] %v810_v12  ;;  %827 = vst [vmem:[#allocation2 + $0x68] sm:$0xff] %v811_v13  ;;  %v813_v15 = vld [vmem:[%s13094_s0 + $0x78] sm:$0xff] }
 0x179   : > { %828 = vst [vmem:[#allocation2 + $0x70] sm:$0xff] %v812_v14  ;;  %829 = vst [vmem:[#allocation2 + $0x78] sm:$0xff] %v813_v15 }
 0x17a PF: > { %v958_v49 = vld [vmem:[%s10656_s29 + $0x8] sm:$0xff]  ;;  %v960_v50 = vld [vmem:[%s10656_s29 + $0x18] sm:$0xff]  ;;  %v957_v55 = vld [vmem:[%s10656_s29] sm:$0xff]  ;;  %vm10155_vm0 = vmmov 0   ;;  %vm2321_vm1 = vcmask 523264   ;;  %vm2416_vm2 = vcmask 130048  }
 0x17b   : > { %v10755_v23 = vld [vmem:[#allocation2 + $0x20] sm:$0xff]  ;;  %v10757_v24 = vld [vmem:[#allocation2 + $0x28] sm:$0xff]  ;;  %v1150_v54 = vunpack.c.l.s8.bf16 %v958_v49  ;;  %v1162_v59 = vunpack.c.h.s8.bf16 %v958_v49  ;;  %v1152_v60 = vunpack.c.l.s8.bf16 %v960_v50  ;;  %v1164_v63 = vunpack.c.h.s8.bf16 %v960_v50  ;;  %v970_v1 = vld [vmem:[%s10656_s29 + $0x68] sm:$0xff]  ;;  %s10156_s2 = smov 64   ;;  %p8887_p8 = scmp.ne.s32.totalorder %s10456_s1, 5 }
 0x17c   : > { %v10759_v25 = vld [vmem:[#allocation2 + $0x30] sm:$0xff]  ;;  %v10761_v26 = vld [vmem:[#allocation2 + $0x38] sm:$0xff]  ;;  %v851_v27 = vmul.f32 %v10755_v23, %v10755_v23  ;;  %v852_v28 = vmul.f32 %v10757_v24, %v10757_v24  ;;  %v1149_v0 = vunpack.c.l.s8.bf16 %v957_v55  ;;  %v972_v5 = vld [vmem:[%s10656_s29 + $0x78] sm:$0xff]  ;;  %v1161_v7 = vunpack.c.h.s8.bf16 %v957_v55 }
 0x17d   : > { %v10767_v29 = vld [vmem:[#allocation2 + $0x40] sm:$0xff]  ;;  %v853_v32 = vmul.f32 %v10759_v25, %v10759_v25  ;;  %v10773_v33 = vld [vmem:[#allocation2 + $0x48] sm:$0xff]  ;;  %v854_v37 = vmul.f32 %v10761_v26, %v10761_v26  ;;  %1533 = vmatprep.subr.bf16.mxu0 %v1150_v54  ;;  %1639 = vmatprep.subr.bf16.mxu1 %v1152_v60  ;;  %v1174_v9 = vunpack.c.l.s8.bf16 %v970_v1  ;;  %v1176_v12 = vunpack.c.l.s8.bf16 %v972_v5 }
 0x17e   : > { %v10775_v34 = vld [vmem:[#allocation2 + $0x50] sm:$0xff]  ;;  %v10777_v35 = vld [vmem:[#allocation2 + $0x58] sm:$0xff]  ;;  %v855_v36 = vmul.f32 %v10767_v29, %v10767_v29  ;;  %v868_v38 = vadd.f32 %v852_v28, %v851_v27  ;;  %v856_v39 = vmul.f32 %v10773_v33, %v10773_v33  ;;  %1534 = vmatpush1.bf16.msra.mxu0 %v1149_v0  ;;  %v984_v27 = vld [vmem:[%s10656_s29 + $0xd8] sm:$0xff] }
 0x17f   : > { %v857_v40 = vmul.f32 %v10775_v34, %v10775_v34  ;;  %v10787_v41 = vld [vmem:[#allocation2 + $0x60] sm:$0xff]  ;;  %v10789_v42 = vld [vmem:[#allocation2 + $0x68] sm:$0xff]  ;;  %v858_v52 = vmul.f32 %v10777_v35, %v10777_v35  ;;  %1535 = vmatprep.subr.bf16.mxu0 %v1162_v59 }
 0x180   : > { %v10741_v16 = vld [vmem:[#allocation2] sm:$0xff]  ;;  %v10743_v17 = vld [vmem:[#allocation2 + $0x8] sm:$0xff]  ;;  %v10791_v43 = vld [vmem:[#allocation2 + $0x70] sm:$0xff]  ;;  %v859_v46 = vmul.f32 %v10787_v41, %v10787_v41  ;;  %v860_v47 = vmul.f32 %v10789_v42, %v10789_v42  ;;  %v869_v51 = vadd.f32 %v868_v38, %v853_v32  ;;  %v873_v53 = vadd.f32 %v856_v39, %v855_v36 }
 0x181   : > { %v10745_v18 = vld [vmem:[#allocation2 + $0x10] sm:$0xff]  ;;  %v10747_v19 = vld [vmem:[#allocation2 + $0x18] sm:$0xff]  ;;  %v847_v20 = vmul.f32 %v10741_v16, %v10741_v16  ;;  %v848_v21 = vmul.f32 %v10743_v17, %v10743_v17  ;;  %v861_v48 = vmul.f32 %v10791_v43, %v10791_v43  ;;  %v1200_v36 = vunpack.c.l.s8.bf16 %v984_v27  ;;  %v1008_v59 = vld [vmem:[%s10656_s29 + $0x198] sm:$0xff] }
 0x182   : > { %v849_v22 = vmul.f32 %v10745_v18, %v10745_v18  ;;  %v850_v30 = vmul.f32 %v10747_v19, %v10747_v19  ;;  %v10793_v45 = vld [vmem:[#allocation2 + $0x78] sm:$0xff]  ;;  %v878_v58 = vadd.f32 %v860_v47, %v859_v46  ;;  %v874_v61 = vadd.f32 %v873_v53, %v857_v40  ;;  %v969_v10 = vld [vmem:[%s10656_s29 + $0x60] sm:$0xff]  ;;  %1536 = vmatpush1.bf16.msra.mxu0 %v1161_v7  ;;  %v996_v47 = vld [vmem:[%s10656_s29 + $0x138] sm:$0xff] }
 0x183   : > { %v863_v31 = vadd.f32 %v848_v21, %v847_v20  ;;  %v959_v56 = vld [vmem:[%s10656_s29 + $0x10] sm:$0xff]  ;;  %v862_v62 = vmul.f32 %v10793_v45, %v10793_v45  ;;  %v870_v2 = vadd.f32 %v869_v51, %v854_v37  ;;  %v1173_v14 = vunpack.c.l.s8.bf16 %v969_v10  ;;  %1537 = vmatprep.subr.bf16.mxu0 %v1174_v9  ;;  %v981_v32 = vld [vmem:[%s10656_s29 + $0xc0] sm:$0xff]  ;;  %v994_v46 = vld [vmem:[%s10656_s29 + $0x128] sm:$0xff] }
 0x184   : > { %v879_v3 = vadd.f32 %v878_v58, %v861_v48  ;;  %v1151_v4 = vunpack.c.l.s8.bf16 %v959_v56  ;;  %v875_v6 = vadd.f32 %v874_v61, %v858_v52  ;;  %v1163_v8 = vunpack.c.h.s8.bf16 %v959_v56  ;;  %v971_v13 = vld [vmem:[%s10656_s29 + $0x70] sm:$0xff]  ;;  %v993_v51 = vld [vmem:[%s10656_s29 + $0x120] sm:$0xff]  ;;  %v1006_v58 = vld [vmem:[%s10656_s29 + $0x188] sm:$0xff] }
 0x185   : > { %v864_v44 = vadd.f32 %v863_v31, %v849_v22  ;;  %v1175_v15 = vunpack.c.l.s8.bf16 %v971_v13  ;;  %v1186_v20 = vunpack.c.h.s8.bf16 %v970_v1  ;;  %v1188_v21 = vunpack.c.h.s8.bf16 %v972_v5  ;;  %v982_v22 = vld [vmem:[%s10656_s29 + $0xc8] sm:$0xff]  ;;  %v983_v37 = vld [vmem:[%s10656_s29 + $0xd0] sm:$0xff]  ;;  %v1020_v7 = vld [vmem:[%s10656_s29 + $0x1f8] sm:$0xff] }
 0x186   : > { %1640 = vmatpush1.bf16.msra.mxu1 %v1151_v4  ;;  %876 = vadd.xlane.f32.xlu1 %v875_v6  ;;  %v880_v11 = vadd.f32 %v879_v3, %v862_v62  ;;  %v1185_v28 = vunpack.c.h.s8.bf16 %v969_v10  ;;  %v1198_v31 = vunpack.c.l.s8.bf16 %v982_v22  ;;  %v1197_v38 = vunpack.c.l.s8.bf16 %v981_v32  ;;  %v995_v53 = vld [vmem:[%s10656_s29 + $0x130] sm:$0xff]  ;;  %v1018_v6 = vld [vmem:[%s10656_s29 + $0x1e8] sm:$0xff] }
 0x187   : > { %v865_v57 = vadd.f32 %v864_v44, %v850_v30  ;;  %1641 = vmatprep.subr.bf16.mxu1 %v1164_v63  ;;  %1538 = vmatpush1.bf16.msra.mxu0 %v1173_v14  ;;  %v1187_v30 = vunpack.c.h.s8.bf16 %v971_v13  ;;  %v1199_v39 = vunpack.c.l.s8.bf16 %v983_v37  ;;  %v1210_v40 = vunpack.c.h.s8.bf16 %v982_v22  ;;  %v1005_v63 = vld [vmem:[%s10656_s29 + $0x180] sm:$0xff]  ;;  %v1007_v1 = vld [vmem:[%s10656_s29 + $0x190] sm:$0xff]  ;;  %v1030_v22 = vld [vmem:[%s10656_s29 + $0x248] sm:$0xff] }
 0x188   : > { %1539 = vmatprep.subr.bf16.mxu0 %v1186_v20  ;;  %v1212_v44 = vunpack.c.h.s8.bf16 %v984_v27  ;;  %v1209_v48 = vunpack.c.h.s8.bf16 %v981_v32  ;;  %v1211_v49 = vunpack.c.h.s8.bf16 %v983_v37  ;;  %v1222_v50 = vunpack.c.l.s8.bf16 %v994_v46  ;;  %v1019_v13 = vld [vmem:[%s10656_s29 + $0x1f0] sm:$0xff]  ;;  %v1032_v27 = vld [vmem:[%s10656_s29 + $0x258] sm:$0xff]  ;;  %v1029_v32 = vld [vmem:[%s10656_s29 + $0x240] sm:$0xff] }
 0x189   : > { %866 = vadd.xlane.f32.xlu0 %v865_v57  ;;  %v1224_v52 = vunpack.c.l.s8.bf16 %v996_v47  ;;  %v1221_v54 = vunpack.c.l.s8.bf16 %v993_v51  ;;  %v1223_v55 = vunpack.c.l.s8.bf16 %v995_v53  ;;  %v1234_v56 = vunpack.c.h.s8.bf16 %v994_v46  ;;  %v1031_v37 = vld [vmem:[%s10656_s29 + $0x250] sm:$0xff]  ;;  %v1042_v46 = vld [vmem:[%s10656_s29 + $0x2a8] sm:$0xff] }
 0x18a   : > { %1642 = vmatpush1.bf16.msra.mxu1 %v1163_v8  ;;  %881 = vadd.xlane.f32.xlu1 %v880_v11  ;;  %v1236_v57 = vunpack.c.h.s8.bf16 %v996_v47  ;;  %v1233_v60 = vunpack.c.h.s8.bf16 %v993_v51  ;;  %v1235_v61 = vunpack.c.h.s8.bf16 %v995_v53  ;;  %v1246_v62 = vunpack.c.l.s8.bf16 %v1006_v58  ;;  %v1017_v11 = vld [vmem:[%s10656_s29 + $0x1e0] sm:$0xff]  ;;  %v1044_v47 = vld [vmem:[%s10656_s29 + $0x2b8] sm:$0xff]  ;;  %v1043_v53 = vld [vmem:[%s10656_s29 + $0x2b0] sm:$0xff] }
 0x18b   : > { %1643 = vmatprep.subr.bf16.mxu1 %v1176_v12  ;;  %1540 = vmatpush1.bf16.msra.mxu0 %v1185_v28  ;;  %v1248_v0 = vunpack.c.l.s8.bf16 %v1008_v59  ;;  %v1247_v3 = vunpack.c.l.s8.bf16 %v1007_v1  ;;  %v1258_v4 = vunpack.c.h.s8.bf16 %v1006_v58  ;;  %v1260_v5 = vunpack.c.h.s8.bf16 %v1008_v59  ;;  %v1041_v51 = vld [vmem:[%s10656_s29 + $0x2a0] sm:$0xff]  ;;  %v10838_v58 = vld [vmem:[%s10656_s29 + $0x308] sm:$0xff]  ;;  %v10841_v59 = vld [vmem:[%s10656_s29 + $0x318] sm:$0xff] }
 0x18c   : > { %1541 = vmatprep.subr.bf16.mxu0 %v1198_v31  ;;  %v1257_v8 = vunpack.c.h.s8.bf16 %v1005_v63  ;;  %v1259_v9 = vunpack.c.h.s8.bf16 %v1007_v1  ;;  %v1270_v10 = vunpack.c.l.s8.bf16 %v1018_v6  ;;  %v1272_v12 = vunpack.c.l.s8.bf16 %v1020_v7 }
 0x18d   : > { %871 = vadd.xlane.f32.xlu0 %v870_v2  ;;  %v1245_v2 = vunpack.c.l.s8.bf16 %v1005_v63  ;;  %v1269_v14 = vunpack.c.l.s8.bf16 %v1017_v11  ;;  %v1282_v20 = vunpack.c.h.s8.bf16 %v1018_v6  ;;  %v1281_v28 = vunpack.c.h.s8.bf16 %v1017_v11 }
 0x18e   : > { %1644 = vmatpush1.bf16.msra.mxu1 %v1175_v15  ;;  %v1271_v15 = vunpack.c.l.s8.bf16 %v1019_v13  ;;  %v1294_v31 = vunpack.c.l.s8.bf16 %v1030_v22  ;;  %v1344_v63 = vunpack.c.l.s8.bf16 %v10841_v59 }
 0x18f   : > { %1645 = vmatprep.subr.bf16.mxu1 %v1188_v21  ;;  %1542 = vmatpush1.bf16.msra.mxu0 %v1197_v38  ;;  %v1284_v21 = vunpack.c.h.s8.bf16 %v1020_v7  ;;  %v1293_v38 = vunpack.c.l.s8.bf16 %v1029_v32 }
 0x190   : > { %1543 = vmatprep.subr.bf16.mxu0 %v1210_v40  ;;  %v1306_v40 = vunpack.c.h.s8.bf16 %v1030_v22 }
 0x192   : > { %1646 = vmatpush1.bf16.msra.mxu1 %v1187_v30  ;;  %v1283_v30 = vunpack.c.h.s8.bf16 %v1019_v13 }
 0x193   : > { %1647 = vmatprep.subr.bf16.mxu1 %v1200_v36  ;;  %1544 = vmatpush1.bf16.msra.mxu0 %v1209_v48  ;;  %v1296_v36 = vunpack.c.l.s8.bf16 %v1032_v27  ;;  %v1305_v48 = vunpack.c.h.s8.bf16 %v1029_v32 }
 0x194   : > { %1545 = vmatprep.subr.bf16.mxu0 %v1222_v50  ;;  %v1318_v50 = vunpack.c.l.s8.bf16 %v1042_v46 }
 0x196   : > { %1648 = vmatpush1.bf16.msra.mxu1 %v1199_v39  ;;  %v1295_v39 = vunpack.c.l.s8.bf16 %v1031_v37 }
 0x197   : > { %1649 = vmatprep.subr.bf16.mxu1 %v1212_v44  ;;  %1546 = vmatpush1.bf16.msra.mxu0 %v1221_v54  ;;  %v1308_v44 = vunpack.c.h.s8.bf16 %v1032_v27  ;;  %v1317_v54 = vunpack.c.l.s8.bf16 %v1041_v51 }
 0x198   : > { %1547 = vmatprep.subr.bf16.mxu0 %v1234_v56  ;;  %v1330_v56 = vunpack.c.h.s8.bf16 %v1042_v46 }
 0x19a   : > { %1650 = vmatpush1.bf16.msra.mxu1 %v1211_v49  ;;  %v1307_v49 = vunpack.c.h.s8.bf16 %v1031_v37 }
 0x19b   : > { %1651 = vmatprep.subr.bf16.mxu1 %v1224_v52  ;;  %1548 = vmatpush1.bf16.msra.mxu0 %v1233_v60  ;;  %v1320_v52 = vunpack.c.l.s8.bf16 %v1044_v47  ;;  %v1329_v60 = vunpack.c.h.s8.bf16 %v1041_v51 }
 0x19c   : > { %1549 = vmatprep.subr.bf16.mxu0 %v1246_v62  ;;  %v1342_v62 = vunpack.c.l.s8.bf16 %v10838_v58 }
 0x19e   : > { %1652 = vmatpush1.bf16.msra.mxu1 %v1223_v55  ;;  %v1319_v55 = vunpack.c.l.s8.bf16 %v1043_v53 }
 0x19f   : > { %1653 = vmatprep.subr.bf16.mxu1 %v1236_v57  ;;  %1550 = vmatpush1.bf16.msra.mxu0 %v1245_v2  ;;  %v1332_v57 = vunpack.c.h.s8.bf16 %v1044_v47  ;;  %v913_v2 = vlaneseq }
 0x1a0   : > { %1551 = vmatprep.subr.bf16.mxu0 %v1258_v4 }
 0x1a2   : > { %1654 = vmatpush1.bf16.msra.mxu1 %v1235_v61  ;;  %v1331_v61 = vunpack.c.h.s8.bf16 %v1043_v53 }
 0x1a3   : > { %1655 = vmatprep.subr.bf16.mxu1 %v1248_v0  ;;  %1552 = vmatpush1.bf16.msra.mxu0 %v1257_v8 }
 0x1a4   : > { %1553 = vmatprep.subr.bf16.mxu0 %v1270_v10 }
 0x1a6   : > { %1656 = vmatpush1.bf16.msra.mxu1 %v1247_v3 }
 0x1a7   : > { %1657 = vmatprep.subr.bf16.mxu1 %v1260_v5  ;;  %1554 = vmatpush1.bf16.msra.mxu0 %v1269_v14 }
 0x1a8   : > { %1555 = vmatprep.subr.bf16.mxu0 %v1282_v20 }
 0x1aa   : > { %1658 = vmatpush1.bf16.msra.mxu1 %v1259_v9  ;;  %v10845_v9 = vshrl.u32 %v913_v2, 7  ;;  %v1356_v2 = vunpack.c.h.s8.bf16 %v10841_v59 }
 0x1ab   : > { %1659 = vmatprep.subr.bf16.mxu1 %v1272_v12  ;;  %1556 = vmatpush1.bf16.msra.mxu0 %v1281_v28 }
 0x1ac   : > { %1557 = vmatprep.subr.bf16.mxu0 %v1294_v31  ;;  %v10848_v14 = vsub.s32 2, %v10845_v9  ;;  %v10853_v20 = vsub.s32 1, %v10845_v9  ;;  %v10859_v22 = vsub.s32 3, %v10845_v9 }
 0x1ae   : > { %1660 = vmatpush1.bf16.msra.mxu1 %v1271_v15  ;;  %v846_v15 = vld [vmem:[%s629_s11] sm:$0xf] }
 0x1af   : > { %1661 = vmatprep.subr.bf16.mxu1 %v1284_v21  ;;  %1558 = vmatpush1.bf16.msra.mxu0 %v1293_v38  ;;  %v10856_v21 = vsub.s32 0, %v10845_v9  ;;  %v924_v27 = vrot.slane %v846_v15, %v10848_v14  ;;  %v920_v32 = vrot.slane %v846_v15, %v10853_v20  ;;  %v10880_v46 = vrot.slane %v846_v15, %v10859_v22 }
 0x1b0   : > { %1559 = vmatprep.subr.bf16.mxu0 %v1306_v40 }
 0x1b2   : > { %1662 = vmatpush1.bf16.msra.mxu1 %v1283_v30  ;;  %v10865_v30 = vld [vmem:[%s10656_s29 + $0x300] sm:$0xff] }
 0x1b3   : > { %1663 = vmatprep.subr.bf16.mxu1 %v1296_v36  ;;  %1560 = vmatpush1.bf16.msra.mxu0 %v1305_v48  ;;  %v10871_v36 = vld [vmem:[%s10656_s29 + $0x310] sm:$0xff] }
 0x1b4   : > { %1561 = vmatprep.subr.bf16.mxu0 %v1318_v50  ;;  %v1343_v48 = vunpack.c.l.s8.bf16 %v10871_v36 }
 0x1b6   : > { %1664 = vmatpush1.bf16.msra.mxu1 %v1295_v39  ;;  %v916_v39 = vrot.slane %v846_v15, %v10856_v21 }
 0x1b7   : > { %1665 = vmatprep.subr.bf16.mxu1 %v1308_v44  ;;  %1562 = vmatpush1.bf16.msra.mxu0 %v1317_v54  ;;  %v1341_v44 = vunpack.c.l.s8.bf16 %v10865_v30 }
 0x1b8   : > { %1563 = vmatprep.subr.bf16.mxu0 %v1330_v56 }
 0x1ba   : > { %1666 = vmatpush1.bf16.msra.mxu1 %v1307_v49 }
 0x1bb   : > { %1667 = vmatprep.subr.bf16.mxu1 %v1320_v52  ;;  %1564 = vmatpush1.bf16.msra.mxu0 %v1329_v60 }
 0x1bc   : > { %1586 = vmatprep.subr.bf16.mxu0 %v1342_v62 }
 0x1be   : > { %1668 = vmatpush1.bf16.msra.mxu1 %v1319_v55 }
 0x1bf   : > { %1669 = vmatprep.subr.bf16.mxu1 %v1332_v57 }
 0x1c2   : > { %1670 = vmatpush1.bf16.msra.mxu1 %v1331_v61 }
 0x1c3   : > { %1692 = vmatprep.subr.bf16.mxu1 %v1344_v63 }
 0x213   : > { %v877_v4 = vpop.xlane.xlu1 %876 }
 0x214   : > { %v886_v6 = vmul.f32 0.001953125, %v877_v4 }
 0x216   : > { %v867_v0 = vpop.xlane.xlu0 %866  ;;  %v890_v8 = vadd.f32 1e-06, %v886_v6 }
 0x217   : > { %v884_v1 = vmul.f32 0.001953125, %v867_v0  ;;  %v882_v11 = vpop.xlane.xlu1 %881  ;;  %v1354_v0 = vunpack.c.h.s8.bf16 %v10838_v58 }
 0x218   : > { %v887_v12 = vmul.f32 0.001953125, %v882_v11 }
 0x219   : > { %v888_v3 = vadd.f32 1e-06, %v884_v1 }
 0x21a   : > { %v872_v5 = vpop.xlane.xlu0 %871  ;;  %v891_v13 = vadd.f32 1e-06, %v887_v12  ;;  %v1065_v12 = vld [vmem:[%s10656_s29 + $0x360] sm:$0xff] }
 0x21b   : > { %9555 = vrsqrt.f32 %v888_v3  ;;  %v885_v7 = vmul.f32 0.001953125, %v872_v5 }
 0x21c   : > { %9557 = vrsqrt.f32 %v890_v8  ;;  %v1355_v8 = vunpack.c.h.s8.bf16 %v10871_v36 }
 0x21d   : > { %v889_v10 = vadd.f32 1e-06, %v885_v7  ;;  %v1353_v7 = vunpack.c.h.s8.bf16 %v10865_v30 }
 0x21f   : > { %9559 = vrsqrt.f32 %v889_v10 }
 0x220   : > { %9561 = vrsqrt.f32 %v891_v13  ;;  %v1067_v13 = vld [vmem:[%s10656_s29 + $0x370] sm:$0xff] }
 0x225   : > { %v10862_v28 = vpop.eup %9555 }
 0x226   : > { %v897_v31 = vmul.f32 %v10862_v28, %v10743_v17  ;;  %v898_v37 = vmul.f32 %v10862_v28, %v10745_v18  ;;  %v896_v38 = vmul.f32 %v10862_v28, %v10741_v16  ;;  %v9558_v40 = vpop.eup %9557  ;;  %v899_v15 = vmul.f32 %v10862_v28, %v10747_v19  ;;  %v1078_v28 = vld [vmem:[%s10656_s29 + $0x3c8] sm:$0xff] }
 0x227   : > { %v905_v49 = vmul.f32 %v9558_v40, %v10773_v33  ;;  %v907_v50 = vmul.f32 %v9558_v40, %v10777_v35  ;;  %v906_v18 = vmul.f32 %v9558_v40, %v10775_v34  ;;  %v904_v56 = vmul.f32 %v9558_v40, %v10767_v29 }
 0x228   : > { %v935_v47 = vmul.f32 %v924_v27, %v898_v37  ;;  %v934_v51 = vmul.f32 %v920_v32, %v897_v31  ;;  %v933_v54 = vmul.f32 %v916_v39, %v896_v38  ;;  %v1365_v31 = vunpack.c.l.s8.bf16 %v1065_v12  ;;  %v1080_v38 = vld [vmem:[%s10656_s29 + $0x3d8] sm:$0xff] }
 0x229   : > { %v9560_v17 = vpop.eup %9559  ;;  %v942_v55 = vmul.f32 %v920_v32, %v905_v49  ;;  %v943_v57 = vmul.f32 %v924_v27, %v906_v18  ;;  %v944_v35 = vmul.f32 %v10880_v46, %v907_v50  ;;  %v936_v36 = vmul.f32 %v10880_v46, %v899_v15 }
 0x22a   : > { %v901_v16 = vmul.f32 %v9560_v17, %v10757_v24  ;;  %v900_v52 = vmul.f32 %v9560_v17, %v10755_v23  ;;  %v902_v53 = vmul.f32 %v9560_v17, %v10759_v25  ;;  %v9562_v60 = vpop.eup %9561  ;;  %v903_v5 = vmul.f32 %v9560_v17, %v10761_v26  ;;  %v1077_v17 = vld [vmem:[%s10656_s29 + $0x3c0] sm:$0xff] }
 0x22b   : > { %v909_v24 = vmul.f32 %v9562_v60, %v10789_v42  ;;  %v908_v34 = vmul.f32 %v9562_v60, %v10787_v41  ;;  %v911_v23 = vmul.f32 %v9562_v60, %v10793_v45  ;;  %v910_v25 = vmul.f32 %v9562_v60, %v10791_v43  ;;  %v1066_v41 = vld [vmem:[%s10656_s29 + $0x368] sm:$0xff]  ;;  %v1068_v43 = vld [vmem:[%s10656_s29 + $0x378] sm:$0xff]  ;;  %v1091_v60 = vld [vmem:[%s10656_s29 + $0x430] sm:$0xff] }
 0x22c   : > { %v938_v61 = vmul.f32 %v920_v32, %v901_v16  ;;  %v937_v62 = vmul.f32 %v916_v39, %v900_v52  ;;  %v939_v33 = vmul.f32 %v924_v27, %v902_v53  ;;  %v941_v45 = vmul.f32 %v916_v39, %v904_v56  ;;  %v1092_v52 = vld [vmem:[%s10656_s29 + $0x438] sm:$0xff] }
 0x22d   : > { %v946_v3 = vmul.f32 %v920_v32, %v909_v24  ;;  %v948_v4 = vmul.f32 %v10880_v46, %v911_v23  ;;  %v947_v42 = vmul.f32 %v924_v27, %v910_v25  ;;  %v945_v59 = vmul.f32 %v916_v39, %v908_v34  ;;  %v1102_v24 = vld [vmem:[%s10656_s29 + $0x488] sm:$0xff]  ;;  %v1104_v34 = vld [vmem:[%s10656_s29 + $0x498] sm:$0xff] }
 0x22e   : > { %v10895_v63 = vpack.c.bf16 %v938_v61, %v934_v51  ;;  %v10897_v29 = vpack.c.bf16 %v937_v62, %v933_v54  ;;  %v10900_v1 = vpack.c.bf16 %v939_v33, %v935_v47  ;;  %v1366_v26 = vunpack.c.l.s8.bf16 %v1066_v41  ;;  %v1090_v51 = vld [vmem:[%s10656_s29 + $0x428] sm:$0xff] }
 0x22f   : > { %v10911_v58 = vpack.c.bf16 %v946_v3, %v942_v55  ;;  %v10913_v6 = vpack.c.bf16 %v948_v4, %v944_v35  ;;  %v10917_v10 = vpack.c.bf16 %v947_v42, %v943_v57  ;;  %v1368_v11 = vunpack.c.l.s8.bf16 %v1068_v43  ;;  %v1089_v57 = vld [vmem:[%s10656_s29 + $0x420] sm:$0xff]  ;;  %v1103_v4 = vld [vmem:[%s10656_s29 + $0x490] sm:$0xff] }
 0x230   : > { %1565 = vmatprep.mubr.bf16.mxu0 %v10895_v63  ;;  %1671 = vmatprep.mubr.bf16.mxu1 %v10895_v63  ;;  %v10925_v27 = vpack.c.bf16 %v945_v59, %v941_v45  ;;  %v940_v30 = vmul.f32 %v10880_v46, %v903_v5  ;;  %v1367_v32 = vunpack.c.l.s8.bf16 %v1067_v13  ;;  %v1378_v37 = vunpack.c.h.s8.bf16 %v1066_v41  ;;  %v1101_v3 = vld [vmem:[%s10656_s29 + $0x480] sm:$0xff]  ;;  %v1114_v5 = vld [vmem:[%s10656_s29 + $0x4e8] sm:$0xff]  ;;  %v1116_v59 = vld [vmem:[%s10656_s29 + $0x4f8] sm:$0xff] }
 0x231   : > { %1566 = vmatmul.mubr.bf16.vlgmr.msra.gmra.mrb[0].mxu0 %v10897_v29  ;;  %1672 = vmatmul.mubr.bf16.vlgmr.msra.gmra.mrb[0].mxu1 %v10897_v29  ;;  %v1380_v19 = vunpack.c.h.s8.bf16 %v1068_v43  ;;  %v1377_v40 = vunpack.c.h.s8.bf16 %v1065_v12  ;;  %v1390_v46 = vunpack.c.l.s8.bf16 %v1078_v28  ;;  %v1392_v47 = vunpack.c.l.s8.bf16 %v1080_v38  ;;  %v1113_v12 = vld [vmem:[%s10656_s29 + $0x4e0] sm:$0xff] }
 0x232   : > { %1587 = vmatpush1.bf16.msra.mxu0 %v1341_v44  ;;  %1693 = vmatpush1.bf16.msra.mxu1 %v1343_v48  ;;  %v10933_v39 = vpack.c.bf16 %v940_v30, %v936_v36  ;;  %v1379_v44 = vunpack.c.h.s8.bf16 %v1067_v13  ;;  %v1079_v48 = vld [vmem:[%s10656_s29 + $0x3d0] sm:$0xff]  ;;  %v1389_v49 = vunpack.c.l.s8.bf16 %v1077_v17  ;;  %v1402_v18 = vunpack.c.h.s8.bf16 %v1078_v28  ;;  %v1126_v36 = vld [vmem:[%s10656_s29 + $0x548] sm:$0xff] }
 0x233   : > { %1588 = vmatprep.subr.bf16.mxu0 %v1354_v0  ;;  %1694 = vmatprep.subr.bf16.mxu1 %v1356_v2  ;;  %v1391_v50 = vunpack.c.l.s8.bf16 %v1079_v48  ;;  %v1404_v16 = vunpack.c.h.s8.bf16 %v1080_v38  ;;  %v1401_v53 = vunpack.c.h.s8.bf16 %v1077_v17  ;;  %v1403_v54 = vunpack.c.h.s8.bf16 %v1079_v48  ;;  %v1115_v13 = vld [vmem:[%s10656_s29 + $0x4f0] sm:$0xff] }
 0x234   : > { %1575 = vmatprep.mubr.bf16.mxu0 %v10911_v58  ;;  %1681 = vmatprep.mubr.bf16.mxu1 %v10911_v58  ;;  %v1414_v55 = vunpack.c.l.s8.bf16 %v1090_v51  ;;  %v1416_v56 = vunpack.c.l.s8.bf16 %v1092_v52  ;;  %v1413_v61 = vunpack.c.l.s8.bf16 %v1089_v57  ;;  %v1415_v62 = vunpack.c.l.s8.bf16 %v1091_v60 }
 0x235   : > { %v1426_v33 = vunpack.c.h.s8.bf16 %v1090_v51  ;;  %v1428_v35 = vunpack.c.h.s8.bf16 %v1092_v52  ;;  %v1425_v23 = vunpack.c.h.s8.bf16 %v1089_v57  ;;  %v1427_v25 = vunpack.c.h.s8.bf16 %v1091_v60 }
 0x236   : > { %1589 = vmatpush1.bf16.msra.mxu0 %v1353_v7  ;;  %1695 = vmatpush1.bf16.msra.mxu1 %v1355_v8  ;;  %v1438_v0 = vunpack.c.l.s8.bf16 %v1102_v24  ;;  %v1440_v2 = vunpack.c.l.s8.bf16 %v1104_v34  ;;  %v1437_v42 = vunpack.c.l.s8.bf16 %v1101_v3  ;;  %v1439_v41 = vunpack.c.l.s8.bf16 %v1103_v4 }
 0x237   : > { %1590 = vmatprep.subr.bf16.mxu0 %v1366_v26  ;;  %1696 = vmatprep.subr.bf16.mxu1 %v1368_v11  ;;  %v1450_v43 = vunpack.c.h.s8.bf16 %v1102_v24  ;;  %v1452_v45 = vunpack.c.h.s8.bf16 %v1104_v34  ;;  %v1449_v7 = vunpack.c.h.s8.bf16 %v1101_v3  ;;  %v1451_v8 = vunpack.c.h.s8.bf16 %v1103_v4 }
 0x238   : > { %v1462_v26 = vunpack.c.l.s8.bf16 %v1114_v5  ;;  %v1464_v11 = vunpack.c.l.s8.bf16 %v1116_v59  ;;  %v1461_v15 = vunpack.c.l.s8.bf16 %v1113_v12  ;;  %v1463_v30 = vunpack.c.l.s8.bf16 %v1115_v13 }
 0x239   : > { %1576 = vmatmul.mubr.bf16.gmra.mrb[4].mxu0 %v10925_v27  ;;  %1682 = vmatmul.mubr.bf16.gmra.mrb[4].mxu1 %v10925_v27  ;;  %v1475_v28 = vunpack.c.h.s8.bf16 %v1115_v13  ;;  %v1486_v38 = vunpack.c.l.s8.bf16 %v1126_v36  ;;  %v1498_v48 = vunpack.c.h.s8.bf16 %v1126_v36 }
 0x23a   : > { %1591 = vmatpush1.bf16.msra.mxu0 %v1365_v31  ;;  %1697 = vmatpush1.bf16.msra.mxu1 %v1367_v32  ;;  %v1474_v31 = vunpack.c.h.s8.bf16 %v1114_v5  ;;  %v1476_v32 = vunpack.c.h.s8.bf16 %v1116_v59 }
 0x23b   : > { %1618 = vmatprep.mubr.bf16.mxu0 %v10933_v39  ;;  %1724 = vmatprep.mubr.bf16.mxu1 %v10933_v39 }
 0x23c   : > { %1592 = vmatprep.subr.bf16.mxu0 %v1378_v37  ;;  %1698 = vmatprep.subr.bf16.mxu1 %v1380_v19  ;;  %v1128_v37 = vld [vmem:[%s10656_s29 + $0x558] sm:$0xff]  ;;  %v1473_v19 = vunpack.c.h.s8.bf16 %v1113_v12 }
 0x23e   : > { %1593 = vmatpush1.bf16.msra.mxu0 %v1377_v40  ;;  %1699 = vmatpush1.bf16.msra.mxu1 %v1379_v44  ;;  %v1488_v40 = vunpack.c.l.s8.bf16 %v1128_v37  ;;  %v1125_v44 = vld [vmem:[%s10656_s29 + $0x540] sm:$0xff] }
 0x23f   : > { %1594 = vmatprep.subr.bf16.mxu0 %v1390_v46  ;;  %1700 = vmatprep.subr.bf16.mxu1 %v1392_v47  ;;  %v1127_v46 = vld [vmem:[%s10656_s29 + $0x550] sm:$0xff]  ;;  %v1485_v47 = vunpack.c.l.s8.bf16 %v1125_v44 }
 0x240   : > { %v1487_v17 = vunpack.c.l.s8.bf16 %v1127_v46  ;;  %v1499_v51 = vunpack.c.h.s8.bf16 %v1127_v46 }
 0x242   : > { %1595 = vmatpush1.bf16.msra.mxu0 %v1389_v49  ;;  %1701 = vmatpush1.bf16.msra.mxu1 %v1391_v50  ;;  %v1500_v49 = vunpack.c.h.s8.bf16 %v1128_v37  ;;  %v1138_v50 = vld [vmem:[%s10656_s29 + $0x5a8] sm:$0xff] }
 0x243   : > { %1596 = vmatprep.subr.bf16.mxu0 %v1402_v18  ;;  %1702 = vmatprep.subr.bf16.mxu1 %v1404_v16  ;;  %v1140_v18 = vld [vmem:[%s10656_s29 + $0x5b8] sm:$0xff]  ;;  %v1497_v16 = vunpack.c.h.s8.bf16 %v1125_v44  ;;  %v1510_v52 = vunpack.c.l.s8.bf16 %v1138_v50  ;;  %v1522_v60 = vunpack.c.h.s8.bf16 %v1138_v50 }
 0x246   : > { %1597 = vmatpush1.bf16.msra.mxu0 %v1401_v53  ;;  %1703 = vmatpush1.bf16.msra.mxu1 %v1403_v54  ;;  %v1512_v53 = vunpack.c.l.s8.bf16 %v1140_v18  ;;  %v1137_v54 = vld [vmem:[%s10656_s29 + $0x5a0] sm:$0xff] }
 0x247   : > { %1598 = vmatprep.subr.bf16.mxu0 %v1414_v55  ;;  %1704 = vmatprep.subr.bf16.mxu1 %v1416_v56  ;;  %v1139_v55 = vld [vmem:[%s10656_s29 + $0x5b0] sm:$0xff]  ;;  %v1509_v56 = vunpack.c.l.s8.bf16 %v1137_v54 }
 0x248   : > { %v1511_v57 = vunpack.c.l.s8.bf16 %v1139_v55  ;;  %v1523_v24 = vunpack.c.h.s8.bf16 %v1139_v55 }
 0x24a   : > { %1599 = vmatpush1.bf16.msra.mxu0 %v1413_v61  ;;  %1705 = vmatpush1.bf16.msra.mxu1 %v1415_v62  ;;  %v1524_v61 = vunpack.c.h.s8.bf16 %v1140_v18  ;;  %v962_v62 = vld [vmem:[%s10656_s29 + $0x28] sm:$0xff] }
 0x24b   : > { %1600 = vmatprep.subr.bf16.mxu0 %v1426_v33  ;;  %1706 = vmatprep.subr.bf16.mxu1 %v1428_v35  ;;  %v964_v33 = vld [vmem:[%s10656_s29 + $0x38] sm:$0xff]  ;;  %v1521_v35 = vunpack.c.h.s8.bf16 %v1137_v54  ;;  %v1154_v34 = vunpack.c.l.s8.bf16 %v962_v62  ;;  %v1166_v4 = vunpack.c.h.s8.bf16 %v962_v62 }
 0x24e   : > { %1601 = vmatpush1.bf16.msra.mxu0 %v1425_v23  ;;  %1707 = vmatpush1.bf16.msra.mxu1 %v1427_v25  ;;  %v1156_v23 = vunpack.c.l.s8.bf16 %v964_v33  ;;  %v961_v25 = vld [vmem:[%s10656_s29 + $0x20] sm:$0xff] }
 0x24f   : > { %1602 = vmatprep.subr.bf16.mxu0 %v1438_v0  ;;  %1708 = vmatprep.subr.bf16.mxu1 %v1440_v2  ;;  %v963_v0 = vld [vmem:[%s10656_s29 + $0x30] sm:$0xff]  ;;  %v1153_v2 = vunpack.c.l.s8.bf16 %v961_v25 }
 0x250   : > { %v1155_v3 = vunpack.c.l.s8.bf16 %v963_v0  ;;  %v1167_v5 = vunpack.c.h.s8.bf16 %v963_v0 }
 0x252   : > { %1603 = vmatpush1.bf16.msra.mxu0 %v1437_v42  ;;  %1709 = vmatpush1.bf16.msra.mxu1 %v1439_v41  ;;  %v1168_v42 = vunpack.c.h.s8.bf16 %v964_v33  ;;  %v974_v41 = vld [vmem:[%s10656_s29 + $0x88] sm:$0xff] }
 0x253   : > { %1604 = vmatprep.subr.bf16.mxu0 %v1450_v43  ;;  %1710 = vmatprep.subr.bf16.mxu1 %v1452_v45  ;;  %v976_v43 = vld [vmem:[%s10656_s29 + $0x98] sm:$0xff]  ;;  %v1165_v45 = vunpack.c.h.s8.bf16 %v961_v25  ;;  %v1178_v59 = vunpack.c.l.s8.bf16 %v974_v41  ;;  %v1190_v13 = vunpack.c.h.s8.bf16 %v974_v41 }
 0x256   : > { %1605 = vmatpush1.bf16.msra.mxu0 %v1449_v7  ;;  %1711 = vmatpush1.bf16.msra.mxu1 %v1451_v8  ;;  %v1180_v7 = vunpack.c.l.s8.bf16 %v976_v43  ;;  %v973_v8 = vld [vmem:[%s10656_s29 + $0x80] sm:$0xff] }
 0x257   : > { %1606 = vmatprep.subr.bf16.mxu0 %v1462_v26  ;;  %1712 = vmatprep.subr.bf16.mxu1 %v1464_v11  ;;  %v975_v26 = vld [vmem:[%s10656_s29 + $0x90] sm:$0xff]  ;;  %v1177_v11 = vunpack.c.l.s8.bf16 %v973_v8 }
 0x258   : > { %v1179_v12 = vunpack.c.l.s8.bf16 %v975_v26  ;;  %v1191_v36 = vunpack.c.h.s8.bf16 %v975_v26 }
 0x25a   : > { %1607 = vmatpush1.bf16.msra.mxu0 %v1461_v15  ;;  %1713 = vmatpush1.bf16.msra.mxu1 %v1463_v30  ;;  %v1192_v15 = vunpack.c.h.s8.bf16 %v976_v43  ;;  %v986_v30 = vld [vmem:[%s10656_s29 + $0xe8] sm:$0xff] }
 0x25b   : > { %1608 = vmatprep.subr.bf16.mxu0 %v1474_v31  ;;  %1714 = vmatprep.subr.bf16.mxu1 %v1476_v32  ;;  %v988_v31 = vld [vmem:[%s10656_s29 + $0xf8] sm:$0xff]  ;;  %v1189_v32 = vunpack.c.h.s8.bf16 %v973_v8  ;;  %v1202_v37 = vunpack.c.l.s8.bf16 %v986_v30  ;;  %v1214_v46 = vunpack.c.h.s8.bf16 %v986_v30 }
 0x25e   : > { %1609 = vmatpush1.bf16.msra.mxu0 %v1473_v19  ;;  %1715 = vmatpush1.bf16.msra.mxu1 %v1475_v28  ;;  %v1204_v19 = vunpack.c.l.s8.bf16 %v988_v31  ;;  %v985_v28 = vld [vmem:[%s10656_s29 + $0xe0] sm:$0xff] }
 0x25f   : > { %1610 = vmatprep.subr.bf16.mxu0 %v1486_v38  ;;  %1716 = vmatprep.subr.bf16.mxu1 %v1488_v40  ;;  %v987_v38 = vld [vmem:[%s10656_s29 + $0xf0] sm:$0xff]  ;;  %v1201_v40 = vunpack.c.l.s8.bf16 %v985_v28 }
 0x260   : > { %v1203_v44 = vunpack.c.l.s8.bf16 %v987_v38  ;;  %v1215_v50 = vunpack.c.h.s8.bf16 %v987_v38 }
 0x262   : > { %1611 = vmatpush1.bf16.msra.mxu0 %v1485_v47  ;;  %1717 = vmatpush1.bf16.msra.mxu1 %v1487_v17  ;;  %v1216_v47 = vunpack.c.h.s8.bf16 %v988_v31  ;;  %v998_v17 = vld [vmem:[%s10656_s29 + $0x148] sm:$0xff] }
 0x263   : > { %1612 = vmatprep.subr.bf16.mxu0 %v1498_v48  ;;  %1718 = vmatprep.subr.bf16.mxu1 %v1500_v49  ;;  %v1000_v48 = vld [vmem:[%s10656_s29 + $0x158] sm:$0xff]  ;;  %v1213_v49 = vunpack.c.h.s8.bf16 %v985_v28  ;;  %v1226_v18 = vunpack.c.l.s8.bf16 %v998_v17  ;;  %v1238_v55 = vunpack.c.h.s8.bf16 %v998_v17 }
 0x266   : > { %1613 = vmatpush1.bf16.msra.mxu0 %v1497_v16  ;;  %1719 = vmatpush1.bf16.msra.mxu1 %v1499_v51  ;;  %v1228_v16 = vunpack.c.l.s8.bf16 %v1000_v48  ;;  %v997_v51 = vld [vmem:[%s10656_s29 + $0x140] sm:$0xff] }
 0x267   : > { %1614 = vmatprep.subr.bf16.mxu0 %v1510_v52  ;;  %1720 = vmatprep.subr.bf16.mxu1 %v1512_v53  ;;  %v999_v52 = vld [vmem:[%s10656_s29 + $0x150] sm:$0xff]  ;;  %v1225_v53 = vunpack.c.l.s8.bf16 %v997_v51 }
 0x268   : > { %v1227_v54 = vunpack.c.l.s8.bf16 %v999_v52  ;;  %v1239_v62 = vunpack.c.h.s8.bf16 %v999_v52 }
 0x26a   : > { %1615 = vmatpush1.bf16.msra.mxu0 %v1509_v56  ;;  %1721 = vmatpush1.bf16.msra.mxu1 %v1511_v57  ;;  %v1240_v56 = vunpack.c.h.s8.bf16 %v1000_v48  ;;  %v1010_v57 = vld [vmem:[%s10656_s29 + $0x1a8] sm:$0xff] }
 0x26b   : > { %1616 = vmatprep.subr.bf16.mxu0 %v1522_v60  ;;  %1722 = vmatprep.subr.bf16.mxu1 %v1524_v61  ;;  %v1012_v60 = vld [vmem:[%s10656_s29 + $0x1b8] sm:$0xff]  ;;  %v1237_v61 = vunpack.c.h.s8.bf16 %v997_v51  ;;  %v1250_v33 = vunpack.c.l.s8.bf16 %v1010_v57  ;;  %v1262_v0 = vunpack.c.h.s8.bf16 %v1010_v57 }
 0x26e   : > { %1617 = vmatpush1.bf16.msra.mxu0 %v1521_v35  ;;  %1723 = vmatpush1.bf16.msra.mxu1 %v1523_v24  ;;  %v1252_v35 = vunpack.c.l.s8.bf16 %v1012_v60  ;;  %v1009_v24 = vld [vmem:[%s10656_s29 + $0x1a0] sm:$0xff] }
 0x26f   : > { %1745 = vmatprep.subr.bf16.mxu0 %v1154_v34  ;;  %1851 = vmatprep.subr.bf16.mxu1 %v1156_v23  ;;  %v1011_v34 = vld [vmem:[%s10656_s29 + $0x1b0] sm:$0xff]  ;;  %v1249_v23 = vunpack.c.l.s8.bf16 %v1009_v24 }
 0x270   : > { %v1251_v25 = vunpack.c.l.s8.bf16 %v1011_v34  ;;  %v1263_v41 = vunpack.c.h.s8.bf16 %v1011_v34 }
 0x271   : > { %1619 = vmatmul.mubr.bf16.vlgmr.msra.gmra.mrb[0].mxu0 %v10900_v1  ;;  %1725 = vmatmul.mubr.bf16.vlgmr.msra.gmra.mrb[0].mxu1 %v10900_v1 }
 0x272   : > { %1628 = vmatprep.mubr.bf16.mxu0 %v10913_v6  ;;  %1734 = vmatprep.mubr.bf16.mxu1 %v10913_v6 }
 0x273   : > { %1746 = vmatpush1.bf16.msra.mxu0 %v1153_v2  ;;  %1852 = vmatpush1.bf16.msra.mxu1 %v1155_v3  ;;  %v1264_v2 = vunpack.c.h.s8.bf16 %v1012_v60  ;;  %v1022_v3 = vld [vmem:[%s10656_s29 + $0x208] sm:$0xff] }
 0x274   : > { %1747 = vmatprep.subr.bf16.mxu0 %v1166_v4  ;;  %1853 = vmatprep.subr.bf16.mxu1 %v1168_v42  ;;  %v1024_v4 = vld [vmem:[%s10656_s29 + $0x218] sm:$0xff]  ;;  %v1261_v42 = vunpack.c.h.s8.bf16 %v1009_v24  ;;  %v1274_v43 = vunpack.c.l.s8.bf16 %v1022_v3  ;;  %v1286_v26 = vunpack.c.h.s8.bf16 %v1022_v3 }
 0x277   : > { %1748 = vmatpush1.bf16.msra.mxu0 %v1165_v45  ;;  %1854 = vmatpush1.bf16.msra.mxu1 %v1167_v5  ;;  %v1276_v45 = vunpack.c.l.s8.bf16 %v1024_v4  ;;  %v1021_v5 = vld [vmem:[%s10656_s29 + $0x200] sm:$0xff] }
 0x278   : > { %1749 = vmatprep.subr.bf16.mxu0 %v1178_v59  ;;  %1855 = vmatprep.subr.bf16.mxu1 %v1180_v7  ;;  %v1023_v59 = vld [vmem:[%s10656_s29 + $0x210] sm:$0xff]  ;;  %v1273_v7 = vunpack.c.l.s8.bf16 %v1021_v5 }
 0x279   : > { %1629 = vmatmul.mubr.bf16.gmra.mrb[4].mxu0 %v10917_v10  ;;  %1735 = vmatmul.mubr.bf16.gmra.mrb[4].mxu1 %v10917_v10  ;;  %v1275_v8 = vunpack.c.l.s8.bf16 %v1023_v59  ;;  %v1287_v30 = vunpack.c.h.s8.bf16 %v1023_v59 }
 0x27a   : > { %1777 = vmatprep.mubr.bf16.mxu0 %v10895_v63  ;;  %1883 = vmatprep.mubr.bf16.mxu1 %v10895_v63 }
 0x27b   : > { %1750 = vmatpush1.bf16.msra.mxu0 %v1177_v11  ;;  %1856 = vmatpush1.bf16.msra.mxu1 %v1179_v12  ;;  %v1288_v11 = vunpack.c.h.s8.bf16 %v1024_v4  ;;  %v1034_v12 = vld [vmem:[%s10656_s29 + $0x268] sm:$0xff] }
 0x27c   : > { %1751 = vmatprep.subr.bf16.mxu0 %v1190_v13  ;;  %1857 = vmatprep.subr.bf16.mxu1 %v1192_v15  ;;  %v1036_v13 = vld [vmem:[%s10656_s29 + $0x278] sm:$0xff]  ;;  %v1285_v15 = vunpack.c.h.s8.bf16 %v1021_v5  ;;  %v1298_v31 = vunpack.c.l.s8.bf16 %v1034_v12  ;;  %v1310_v38 = vunpack.c.h.s8.bf16 %v1034_v12 }
 0x27f   : > { %1752 = vmatpush1.bf16.msra.mxu0 %v1189_v32  ;;  %1858 = vmatpush1.bf16.msra.mxu1 %v1191_v36  ;;  %v1300_v32 = vunpack.c.l.s8.bf16 %v1036_v13  ;;  %v1033_v36 = vld [vmem:[%s10656_s29 + $0x260] sm:$0xff] }
 0x280   : > { %1753 = vmatprep.subr.bf16.mxu0 %v1202_v37  ;;  %1859 = vmatprep.subr.bf16.mxu1 %v1204_v19  ;;  %v1035_v37 = vld [vmem:[%s10656_s29 + $0x270] sm:$0xff]  ;;  %v1297_v19 = vunpack.c.l.s8.bf16 %v1033_v36 }
 0x281   : > { %v1299_v28 = vunpack.c.l.s8.bf16 %v1035_v37  ;;  %v1311_v17 = vunpack.c.h.s8.bf16 %v1035_v37 }
 0x283   : > { %1754 = vmatpush1.bf16.msra.mxu0 %v1201_v40  ;;  %1860 = vmatpush1.bf16.msra.mxu1 %v1203_v44  ;;  %v1312_v40 = vunpack.c.h.s8.bf16 %v1036_v13  ;;  %v1046_v44 = vld [vmem:[%s10656_s29 + $0x2c8] sm:$0xff] }
 0x284   : > { %1755 = vmatprep.subr.bf16.mxu0 %v1214_v46  ;;  %1861 = vmatprep.subr.bf16.mxu1 %v1216_v47  ;;  %v1048_v46 = vld [vmem:[%s10656_s29 + $0x2d8] sm:$0xff]  ;;  %v1309_v47 = vunpack.c.h.s8.bf16 %v1033_v36  ;;  %v1322_v48 = vunpack.c.l.s8.bf16 %v1046_v44  ;;  %v1334_v52 = vunpack.c.h.s8.bf16 %v1046_v44 }
 0x287   : > { %1756 = vmatpush1.bf16.msra.mxu0 %v1213_v49  ;;  %1862 = vmatpush1.bf16.msra.mxu1 %v1215_v50  ;;  %v1324_v49 = vunpack.c.l.s8.bf16 %v1048_v46  ;;  %v1045_v50 = vld [vmem:[%s10656_s29 + $0x2c0] sm:$0xff] }
 0x288   : > { %1757 = vmatprep.subr.bf16.mxu0 %v1226_v18  ;;  %1863 = vmatprep.subr.bf16.mxu1 %v1228_v16  ;;  %v1047_v18 = vld [vmem:[%s10656_s29 + $0x2d0] sm:$0xff]  ;;  %v1321_v16 = vunpack.c.l.s8.bf16 %v1045_v50 }
 0x289   : > { %v1323_v51 = vunpack.c.l.s8.bf16 %v1047_v18  ;;  %v1335_v57 = vunpack.c.h.s8.bf16 %v1047_v18 }
 0x28b   : > { %1758 = vmatpush1.bf16.msra.mxu0 %v1225_v53  ;;  %1864 = vmatpush1.bf16.msra.mxu1 %v1227_v54  ;;  %v1336_v53 = vunpack.c.h.s8.bf16 %v1048_v46  ;;  %v1058_v54 = vld [vmem:[%s10656_s29 + $0x328] sm:$0xff] }
 0x28c   : > { %1759 = vmatprep.subr.bf16.mxu0 %v1238_v55  ;;  %1865 = vmatprep.subr.bf16.mxu1 %v1240_v56  ;;  %v1060_v55 = vld [vmem:[%s10656_s29 + $0x338] sm:$0xff]  ;;  %v1333_v56 = vunpack.c.h.s8.bf16 %v1045_v50  ;;  %v1346_v60 = vunpack.c.l.s8.bf16 %v1058_v54  ;;  %v1358_v34 = vunpack.c.h.s8.bf16 %v1058_v54 }
 0x28f   : > { %1760 = vmatpush1.bf16.msra.mxu0 %v1237_v61  ;;  %1866 = vmatpush1.bf16.msra.mxu1 %v1239_v62  ;;  %v1348_v61 = vunpack.c.l.s8.bf16 %v1060_v55  ;;  %v1057_v62 = vld [vmem:[%s10656_s29 + $0x320] sm:$0xff] }
 0x290   : > { %1761 = vmatprep.subr.bf16.mxu0 %v1250_v33  ;;  %1867 = vmatprep.subr.bf16.mxu1 %v1252_v35  ;;  %v1059_v33 = vld [vmem:[%s10656_s29 + $0x330] sm:$0xff]  ;;  %v1345_v35 = vunpack.c.l.s8.bf16 %v1057_v62 }
 0x291   : > { %v1347_v24 = vunpack.c.l.s8.bf16 %v1059_v33  ;;  %v1359_v3 = vunpack.c.h.s8.bf16 %v1059_v33 }
 0x293   : > { %1762 = vmatpush1.bf16.msra.mxu0 %v1249_v23  ;;  %1868 = vmatpush1.bf16.msra.mxu1 %v1251_v25  ;;  %v1360_v23 = vunpack.c.h.s8.bf16 %v1060_v55  ;;  %v1070_v25 = vld [vmem:[%s10656_s29 + $0x388] sm:$0xff] }
 0x294   : > { %1763 = vmatprep.subr.bf16.mxu0 %v1262_v0  ;;  %1869 = vmatprep.subr.bf16.mxu1 %v1264_v2  ;;  %v1072_v0 = vld [vmem:[%s10656_s29 + $0x398] sm:$0xff]  ;;  %v1357_v2 = vunpack.c.h.s8.bf16 %v1057_v62  ;;  %v1370_v4 = vunpack.c.l.s8.bf16 %v1070_v25  ;;  %v1382_v59 = vunpack.c.h.s8.bf16 %v1070_v25 }
 0x297   : > { %1764 = vmatpush1.bf16.msra.mxu0 %v1261_v42  ;;  %1870 = vmatpush1.bf16.msra.mxu1 %v1263_v41  ;;  %v1069_v42 = vld [vmem:[%s10656_s29 + $0x380] sm:$0xff]  ;;  %v1372_v41 = vunpack.c.l.s8.bf16 %v1072_v0 }
 0x298   : > { %1765 = vmatprep.subr.bf16.mxu0 %v1274_v43  ;;  %1871 = vmatprep.subr.bf16.mxu1 %v1276_v45  ;;  %v1071_v43 = vld [vmem:[%s10656_s29 + $0x390] sm:$0xff]  ;;  %v1369_v45 = vunpack.c.l.s8.bf16 %v1069_v42 }
 0x299   : > { %v1371_v5 = vunpack.c.l.s8.bf16 %v1071_v43  ;;  %v1383_v12 = vunpack.c.h.s8.bf16 %v1071_v43 }
 0x29b   : > { %1766 = vmatpush1.bf16.msra.mxu0 %v1273_v7  ;;  %1872 = vmatpush1.bf16.msra.mxu1 %v1275_v8  ;;  %v1384_v7 = vunpack.c.h.s8.bf16 %v1072_v0  ;;  %v1082_v8 = vld [vmem:[%s10656_s29 + $0x3e8] sm:$0xff] }
 0x29c   : > { %1767 = vmatprep.subr.bf16.mxu0 %v1286_v26  ;;  %1873 = vmatprep.subr.bf16.mxu1 %v1288_v11  ;;  %v1084_v26 = vld [vmem:[%s10656_s29 + $0x3f8] sm:$0xff]  ;;  %v1381_v11 = vunpack.c.h.s8.bf16 %v1069_v42  ;;  %v1394_v13 = vunpack.c.l.s8.bf16 %v1082_v8  ;;  %v1406_v37 = vunpack.c.h.s8.bf16 %v1082_v8 }
 0x29f   : > { %1768 = vmatpush1.bf16.msra.mxu0 %v1285_v15  ;;  %1874 = vmatpush1.bf16.msra.mxu1 %v1287_v30  ;;  %v1081_v15 = vld [vmem:[%s10656_s29 + $0x3e0] sm:$0xff]  ;;  %v1396_v30 = vunpack.c.l.s8.bf16 %v1084_v26 }
 0x2a0   : > { %1769 = vmatprep.subr.bf16.mxu0 %v1298_v31  ;;  %1875 = vmatprep.subr.bf16.mxu1 %v1300_v32  ;;  %v1083_v31 = vld [vmem:[%s10656_s29 + $0x3f0] sm:$0xff]  ;;  %v1393_v32 = vunpack.c.l.s8.bf16 %v1081_v15 }
 0x2a1   : > { %v1395_v36 = vunpack.c.l.s8.bf16 %v1083_v31  ;;  %v1407_v44 = vunpack.c.h.s8.bf16 %v1083_v31 }
 0x2a3   : > { %1770 = vmatpush1.bf16.msra.mxu0 %v1297_v19  ;;  %1876 = vmatpush1.bf16.msra.mxu1 %v1299_v28  ;;  %v1408_v19 = vunpack.c.h.s8.bf16 %v1084_v26  ;;  %v1094_v28 = vld [vmem:[%s10656_s29 + $0x448] sm:$0xff] }
 0x2a4   : > { %1771 = vmatprep.subr.bf16.mxu0 %v1310_v38  ;;  %1877 = vmatprep.subr.bf16.mxu1 %v1312_v40  ;;  %v1096_v38 = vld [vmem:[%s10656_s29 + $0x458] sm:$0xff]  ;;  %v1405_v40 = vunpack.c.h.s8.bf16 %v1081_v15  ;;  %v1418_v46 = vunpack.c.l.s8.bf16 %v1094_v28  ;;  %v1430_v18 = vunpack.c.h.s8.bf16 %v1094_v28 }
 0x2a7   : > { %1772 = vmatpush1.bf16.msra.mxu0 %v1309_v47  ;;  %1878 = vmatpush1.bf16.msra.mxu1 %v1311_v17  ;;  %v1093_v47 = vld [vmem:[%s10656_s29 + $0x440] sm:$0xff]  ;;  %v1420_v17 = vunpack.c.l.s8.bf16 %v1096_v38 }
 0x2a8   : > { %1773 = vmatprep.subr.bf16.mxu0 %v1322_v48  ;;  %1879 = vmatprep.subr.bf16.mxu1 %v1324_v49  ;;  %v1095_v48 = vld [vmem:[%s10656_s29 + $0x450] sm:$0xff]  ;;  %v1417_v49 = vunpack.c.l.s8.bf16 %v1093_v47 }
 0x2a9   : > { %v1419_v50 = vunpack.c.l.s8.bf16 %v1095_v48  ;;  %v1431_v54 = vunpack.c.h.s8.bf16 %v1095_v48 }
 0x2ab   : > { %1774 = vmatpush1.bf16.msra.mxu0 %v1321_v16  ;;  %1880 = vmatpush1.bf16.msra.mxu1 %v1323_v51  ;;  %v1432_v16 = vunpack.c.h.s8.bf16 %v1096_v38  ;;  %v1106_v51 = vld [vmem:[%s10656_s29 + $0x4a8] sm:$0xff] }
 0x2ac   : > { %1775 = vmatprep.subr.bf16.mxu0 %v1334_v52  ;;  %1881 = vmatprep.subr.bf16.mxu1 %v1336_v53  ;;  %v1108_v52 = vld [vmem:[%s10656_s29 + $0x4b8] sm:$0xff]  ;;  %v1429_v53 = vunpack.c.h.s8.bf16 %v1093_v47  ;;  %v1442_v55 = vunpack.c.l.s8.bf16 %v1106_v51  ;;  %v1454_v33 = vunpack.c.h.s8.bf16 %v1106_v51 }
 0x2af   : > { %1776 = vmatpush1.bf16.msra.mxu0 %v1333_v56  ;;  %1882 = vmatpush1.bf16.msra.mxu1 %v1335_v57  ;;  %v1105_v56 = vld [vmem:[%s10656_s29 + $0x4a0] sm:$0xff]  ;;  %v1444_v57 = vunpack.c.l.s8.bf16 %v1108_v52 }
 0x2b0   : > { %1798 = vmatprep.subr.bf16.mxu0 %v1346_v60  ;;  %1904 = vmatprep.subr.bf16.mxu1 %v1348_v61  ;;  %v1107_v60 = vld [vmem:[%s10656_s29 + $0x4b0] sm:$0xff]  ;;  %v1441_v61 = vunpack.c.l.s8.bf16 %v1105_v56 }
 0x2b1   : > { %v1443_v62 = vunpack.c.l.s8.bf16 %v1107_v60  ;;  %v1455_v25 = vunpack.c.h.s8.bf16 %v1107_v60 }
 0x2b2   : > { %1778 = vmatmul.mubr.bf16.vlgmr.msra.gmra.mrb[8].mxu0 %v10897_v29  ;;  %1884 = vmatmul.mubr.bf16.vlgmr.msra.gmra.mrb[8].mxu1 %v10897_v29 }
 0x2b3   : > { %1787 = vmatprep.mubr.bf16.mxu0 %v10911_v58  ;;  %1799 = vmatpush1.bf16.msra.mxu0 %v1345_v35  ;;  %v1456_v35 = vunpack.c.h.s8.bf16 %v1108_v52 }
 0x2b4   : > { %1893 = vmatprep.mubr.bf16.mxu1 %v10911_v58  ;;  %1905 = vmatpush1.bf16.msra.mxu1 %v1347_v24  ;;  %v1118_v24 = vld [vmem:[%s10656_s29 + $0x508] sm:$0xff] }
 0x2b5   : > { %1800 = vmatprep.subr.bf16.mxu0 %v1358_v34  ;;  %1906 = vmatprep.subr.bf16.mxu1 %v1360_v23  ;;  %v1120_v34 = vld [vmem:[%s10656_s29 + $0x518] sm:$0xff]  ;;  %v1453_v23 = vunpack.c.h.s8.bf16 %v1105_v56  ;;  %v1466_v0 = vunpack.c.l.s8.bf16 %v1118_v24  ;;  %v1478_v43 = vunpack.c.h.s8.bf16 %v1118_v24 }
 0x2b7   : > { %1801 = vmatpush1.bf16.msra.mxu0 %v1357_v2  ;;  %v1117_v2 = vld [vmem:[%s10656_s29 + $0x500] sm:$0xff] }
 0x2b8   : > { %1907 = vmatpush1.bf16.msra.mxu1 %v1359_v3  ;;  %1802 = vmatprep.subr.bf16.mxu0 %v1370_v4  ;;  %v1468_v3 = vunpack.c.l.s8.bf16 %v1120_v34  ;;  %v1119_v4 = vld [vmem:[%s10656_s29 + $0x510] sm:$0xff]  ;;  %v1465_v42 = vunpack.c.l.s8.bf16 %v1117_v2 }
 0x2b9   : > { %1908 = vmatprep.subr.bf16.mxu1 %v1372_v41  ;;  %v1467_v41 = vunpack.c.l.s8.bf16 %v1119_v4  ;;  %v1479_v8 = vunpack.c.h.s8.bf16 %v1119_v4 }
 0x2ba   : > { %1788 = vmatmul.mubr.bf16.gmra.mrb[12].mxu0 %v10925_v27  ;;  %1894 = vmatmul.mubr.bf16.gmra.mrb[12].mxu1 %v10925_v27 }
 0x2bb   : > { %1803 = vmatpush1.bf16.msra.mxu0 %v1369_v45  ;;  %1830 = vmatprep.mubr.bf16.mxu0 %v10933_v39  ;;  %v1480_v45 = vunpack.c.h.s8.bf16 %v1120_v34 }
 0x2bc   : > { %1909 = vmatpush1.bf16.msra.mxu1 %v1371_v5  ;;  %1936 = vmatprep.mubr.bf16.mxu1 %v10933_v39  ;;  %v1130_v5 = vld [vmem:[%s10656_s29 + $0x568] sm:$0xff] }
 0x2bd   : > { %1804 = vmatprep.subr.bf16.mxu0 %v1382_v59  ;;  %1910 = vmatprep.subr.bf16.mxu1 %v1384_v7  ;;  %v1132_v59 = vld [vmem:[%s10656_s29 + $0x578] sm:$0xff]  ;;  %v1477_v7 = vunpack.c.h.s8.bf16 %v1117_v2  ;;  %v1490_v26 = vunpack.c.l.s8.bf16 %v1130_v5  ;;  %v1502_v31 = vunpack.c.h.s8.bf16 %v1130_v5 }
 0x2bf   : > { %1805 = vmatpush1.bf16.msra.mxu0 %v1381_v11  ;;  %v1129_v11 = vld [vmem:[%s10656_s29 + $0x560] sm:$0xff] }
 0x2c0   : > { %1911 = vmatpush1.bf16.msra.mxu1 %v1383_v12  ;;  %1806 = vmatprep.subr.bf16.mxu0 %v1394_v13  ;;  %v1492_v12 = vunpack.c.l.s8.bf16 %v1132_v59  ;;  %v1131_v13 = vld [vmem:[%s10656_s29 + $0x570] sm:$0xff]  ;;  %v1489_v15 = vunpack.c.l.s8.bf16 %v1129_v11 }
 0x2c1   : > { %1912 = vmatprep.subr.bf16.mxu1 %v1396_v30  ;;  %v1491_v30 = vunpack.c.l.s8.bf16 %v1131_v13  ;;  %v1503_v28 = vunpack.c.h.s8.bf16 %v1131_v13 }
 0x2c3   : > { %1807 = vmatpush1.bf16.msra.mxu0 %v1393_v32  ;;  %v1504_v32 = vunpack.c.h.s8.bf16 %v1132_v59 }
 0x2c4   : > { %1913 = vmatpush1.bf16.msra.mxu1 %v1395_v36  ;;  %1808 = vmatprep.subr.bf16.mxu0 %v1406_v37  ;;  %v1142_v36 = vld [vmem:[%s10656_s29 + $0x5c8] sm:$0xff]  ;;  %v1144_v37 = vld [vmem:[%s10656_s29 + $0x5d8] sm:$0xff] }
 0x2c5   : > { %1914 = vmatprep.subr.bf16.mxu1 %v1408_v19  ;;  %v1501_v19 = vunpack.c.h.s8.bf16 %v1129_v11  ;;  %v1514_v38 = vunpack.c.l.s8.bf16 %v1142_v36  ;;  %v1526_v48 = vunpack.c.h.s8.bf16 %v1142_v36 }
 0x2c7   : > { %1809 = vmatpush1.bf16.msra.mxu0 %v1405_v40  ;;  %v1141_v40 = vld [vmem:[%s10656_s29 + $0x5c0] sm:$0xff] }
 0x2c8   : > { %1915 = vmatpush1.bf16.msra.mxu1 %v1407_v44  ;;  %1810 = vmatprep.subr.bf16.mxu0 %v1418_v46  ;;  %v1516_v44 = vunpack.c.l.s8.bf16 %v1144_v37  ;;  %v1143_v46 = vld [vmem:[%s10656_s29 + $0x5d0] sm:$0xff]  ;;  %v1513_v47 = vunpack.c.l.s8.bf16 %v1141_v40 }
 0x2c9   : > { %1916 = vmatprep.subr.bf16.mxu1 %v1420_v17  ;;  %v1515_v17 = vunpack.c.l.s8.bf16 %v1143_v46  ;;  %v1527_v51 = vunpack.c.h.s8.bf16 %v1143_v46 }
 0x2cb   : > { %1811 = vmatpush1.bf16.msra.mxu0 %v1417_v49  ;;  %v1528_v49 = vunpack.c.h.s8.bf16 %v1144_v37  ;;  %v1001_v37 = vld [vmem:[%s10656_s29 + $0x160] sm:$0xff] }
 0x2cc   : > { %1917 = vmatpush1.bf16.msra.mxu1 %v1419_v50  ;;  %1812 = vmatprep.subr.bf16.mxu0 %v1430_v18  ;;  %v966_v50 = vld [vmem:[%s10656_s29 + $0x48] sm:$0xff]  ;;  %v968_v18 = vld [vmem:[%s10656_s29 + $0x58] sm:$0xff] }
 0x2cd   : > { %1918 = vmatprep.subr.bf16.mxu1 %v1432_v16  ;;  %v1525_v16 = vunpack.c.h.s8.bf16 %v1141_v40  ;;  %v1158_v52 = vunpack.c.l.s8.bf16 %v966_v50  ;;  %v1170_v60 = vunpack.c.h.s8.bf16 %v966_v50 }
 0x2cf   : > { %1813 = vmatpush1.bf16.msra.mxu0 %v1429_v53  ;;  %v1160_v53 = vunpack.c.l.s8.bf16 %v968_v18 }
 0x2d0   : > { %1919 = vmatpush1.bf16.msra.mxu1 %v1431_v54  ;;  %1814 = vmatprep.subr.bf16.mxu0 %v1442_v55  ;;  %v965_v54 = vld [vmem:[%s10656_s29 + $0x40] sm:$0xff]  ;;  %v967_v55 = vld [vmem:[%s10656_s29 + $0x50] sm:$0xff] }
 0x2d1   : > { %1920 = vmatprep.subr.bf16.mxu1 %v1444_v57  ;;  %v1157_v56 = vunpack.c.l.s8.bf16 %v965_v54  ;;  %v1159_v57 = vunpack.c.l.s8.bf16 %v967_v55  ;;  %v1171_v24 = vunpack.c.h.s8.bf16 %v967_v55 }
 0x2d3   : > { %1815 = vmatpush1.bf16.msra.mxu0 %v1441_v61  ;;  %v1172_v61 = vunpack.c.h.s8.bf16 %v968_v18  ;;  %v1013_v18 = vld [vmem:[%s10656_s29 + $0x1c0] sm:$0xff] }
 0x2d4   : > { %1921 = vmatpush1.bf16.msra.mxu1 %v1443_v62  ;;  %1816 = vmatprep.subr.bf16.mxu0 %v1454_v33  ;;  %v978_v62 = vld [vmem:[%s10656_s29 + $0xa8] sm:$0xff]  ;;  %v980_v33 = vld [vmem:[%s10656_s29 + $0xb8] sm:$0xff] }
 0x2d5   : > { %1922 = vmatprep.subr.bf16.mxu1 %v1456_v35  ;;  %v1169_v35 = vunpack.c.h.s8.bf16 %v965_v54  ;;  %v1182_v34 = vunpack.c.l.s8.bf16 %v978_v62  ;;  %v1194_v4 = vunpack.c.h.s8.bf16 %v978_v62 }
 0x2d7   : > { %1817 = vmatpush1.bf16.msra.mxu0 %v1453_v23  ;;  %v977_v23 = vld [vmem:[%s10656_s29 + $0xa0] sm:$0xff] }
 0x2d8   : > { %1923 = vmatpush1.bf16.msra.mxu1 %v1455_v25  ;;  %1818 = vmatprep.subr.bf16.mxu0 %v1466_v0  ;;  %v1184_v25 = vunpack.c.l.s8.bf16 %v980_v33  ;;  %v979_v0 = vld [vmem:[%s10656_s29 + $0xb0] sm:$0xff]  ;;  %v1181_v2 = vunpack.c.l.s8.bf16 %v977_v23 }
 0x2d9   : > { %1924 = vmatprep.subr.bf16.mxu1 %v1468_v3  ;;  %v1183_v3 = vunpack.c.l.s8.bf16 %v979_v0  ;;  %v1195_v5 = vunpack.c.h.s8.bf16 %v979_v0 }
 0x2db   : > { %1819 = vmatpush1.bf16.msra.mxu0 %v1465_v42  ;;  %v1196_v42 = vunpack.c.h.s8.bf16 %v980_v33  ;;  %v1025_v33 = vld [vmem:[%s10656_s29 + $0x220] sm:$0xff] }
 0x2dc   : > { %1925 = vmatpush1.bf16.msra.mxu1 %v1467_v41  ;;  %1820 = vmatprep.subr.bf16.mxu0 %v1478_v43  ;;  %v990_v41 = vld [vmem:[%s10656_s29 + $0x108] sm:$0xff]  ;;  %v992_v43 = vld [vmem:[%s10656_s29 + $0x118] sm:$0xff] }
 0x2dd   : > { %1926 = vmatprep.subr.bf16.mxu1 %v1480_v45  ;;  %v1193_v45 = vunpack.c.h.s8.bf16 %v977_v23  ;;  %v1206_v59 = vunpack.c.l.s8.bf16 %v990_v41  ;;  %v1218_v13 = vunpack.c.h.s8.bf16 %v990_v41 }
 0x2df   : > { %1821 = vmatpush1.bf16.msra.mxu0 %v1477_v7  ;;  %v989_v7 = vld [vmem:[%s10656_s29 + $0x100] sm:$0xff] }
 0x2e0   : > { %1927 = vmatpush1.bf16.msra.mxu1 %v1479_v8  ;;  %1822 = vmatprep.subr.bf16.mxu0 %v1490_v26  ;;  %v1208_v8 = vunpack.c.l.s8.bf16 %v992_v43  ;;  %v991_v26 = vld [vmem:[%s10656_s29 + $0x110] sm:$0xff]  ;;  %v1205_v11 = vunpack.c.l.s8.bf16 %v989_v7 }
 0x2e1   : > { %1928 = vmatprep.subr.bf16.mxu1 %v1492_v12  ;;  %v1207_v12 = vunpack.c.l.s8.bf16 %v991_v26 }
 0x2e3   : > { %1823 = vmatpush1.bf16.msra.mxu0 %v1489_v15  ;;  %v1002_v15 = vld [vmem:[%s10656_s29 + $0x168] sm:$0xff] }
 0x2e4   : > { %1929 = vmatpush1.bf16.msra.mxu1 %v1491_v30  ;;  %1824 = vmatprep.subr.bf16.mxu0 %v1502_v31  ;;  %v1004_v30 = vld [vmem:[%s10656_s29 + $0x178] sm:$0xff]  ;;  %v1217_v31 = vunpack.c.h.s8.bf16 %v989_v7  ;;  %v1230_v36 = vunpack.c.l.s8.bf16 %v1002_v15 }
 0x2e5   : > { %1930 = vmatprep.subr.bf16.mxu1 %v1504_v32  ;;  %v1219_v32 = vunpack.c.h.s8.bf16 %v991_v26  ;;  %v1244_v46 = vunpack.c.h.s8.bf16 %v1004_v30 }
 0x2e7   : > { %1825 = vmatpush1.bf16.msra.mxu0 %v1501_v19  ;;  %v1232_v19 = vunpack.c.l.s8.bf16 %v1004_v30  ;;  %v1049_v30 = vld [vmem:[%s10656_s29 + $0x2e0] sm:$0xff] }
 0x2e8   : > { %1931 = vmatpush1.bf16.msra.mxu1 %v1503_v28  ;;  %1826 = vmatprep.subr.bf16.mxu0 %v1514_v38  ;;  %v1003_v28 = vld [vmem:[%s10656_s29 + $0x170] sm:$0xff]  ;;  %v1229_v38 = vunpack.c.l.s8.bf16 %v1001_v37 }
 0x2e9   : > { %1932 = vmatprep.subr.bf16.mxu1 %v1516_v44  ;;  %v1231_v40 = vunpack.c.l.s8.bf16 %v1003_v28  ;;  %v1242_v44 = vunpack.c.h.s8.bf16 %v1002_v15 }
 0x2eb   : > { %1827 = vmatpush1.bf16.msra.mxu0 %v1513_v47  ;;  %v1014_v47 = vld [vmem:[%s10656_s29 + $0x1c8] sm:$0xff] }
 0x2ec   : > { %1933 = vmatpush1.bf16.msra.mxu1 %v1515_v17  ;;  %1828 = vmatprep.subr.bf16.mxu0 %v1526_v48  ;;  %v1016_v17 = vld [vmem:[%s10656_s29 + $0x1d8] sm:$0xff]  ;;  %v1241_v48 = vunpack.c.h.s8.bf16 %v1001_v37  ;;  %v1254_v50 = vunpack.c.l.s8.bf16 %v1014_v47  ;;  %v1266_v54 = vunpack.c.h.s8.bf16 %v1014_v47 }
 0x2ed   : > { %1934 = vmatprep.subr.bf16.mxu1 %v1528_v49  ;;  %v1243_v49 = vunpack.c.h.s8.bf16 %v1003_v28  ;;  %v1268_v55 = vunpack.c.h.s8.bf16 %v1016_v17 }
 0x2ef   : > { %1829 = vmatpush1.bf16.msra.mxu0 %v1525_v16  ;;  %v1256_v16 = vunpack.c.l.s8.bf16 %v1016_v17 }
 0x2f0   : > { %1935 = vmatpush1.bf16.msra.mxu1 %v1527_v51  ;;  %1957 = vmatprep.subr.bf16.mxu0 %v1158_v52  ;;  %v1015_v51 = vld [vmem:[%s10656_s29 + $0x1d0] sm:$0xff]  ;;  %v1253_v52 = vunpack.c.l.s8.bf16 %v1013_v18 }
 0x2f1   : > { %2063 = vmatprep.subr.bf16.mxu1 %v1160_v53  ;;  %v1255_v53 = vunpack.c.l.s8.bf16 %v1015_v51 }
 0x2f2   : > { %1831 = vmatmul.mubr.bf16.vlgmr.msra.gmra.mrb[8].mxu0 %v10900_v1 }
 0x2f3   : > { %1937 = vmatmul.mubr.bf16.vlgmr.msra.gmra.mrb[8].mxu1 %v10900_v1  ;;  %1840 = vmatprep.mubr.bf16.mxu0 %v10913_v6 }
 0x2f4   : > { %1946 = vmatprep.mubr.bf16.mxu1 %v10913_v6  ;;  %1958 = vmatpush1.bf16.msra.mxu0 %v1157_v56  ;;  %v1026_v56 = vld [vmem:[%s10656_s29 + $0x228] sm:$0xff] }
 0x2f5   : > { %2064 = vmatpush1.bf16.msra.mxu1 %v1159_v57  ;;  %1959 = vmatprep.subr.bf16.mxu0 %v1170_v60  ;;  %v1028_v57 = vld [vmem:[%s10656_s29 + $0x238] sm:$0xff]  ;;  %v1265_v60 = vunpack.c.h.s8.bf16 %v1013_v18  ;;  %v1278_v62 = vunpack.c.l.s8.bf16 %v1026_v56 }
 0x2f6   : > { %2065 = vmatprep.subr.bf16.mxu1 %v1172_v61  ;;  %v1267_v61 = vunpack.c.h.s8.bf16 %v1015_v51  ;;  %v1292_v0 = vunpack.c.h.s8.bf16 %v1028_v57 }
 0x2f8   : > { %1960 = vmatpush1.bf16.msra.mxu0 %v1169_v35  ;;  %v1280_v35 = vunpack.c.l.s8.bf16 %v1028_v57  ;;  %v1073_v57 = vld [vmem:[%s10656_s29 + $0x3a0] sm:$0xff] }
 0x2f9   : > { %2066 = vmatpush1.bf16.msra.mxu1 %v1171_v24  ;;  %1961 = vmatprep.subr.bf16.mxu0 %v1182_v34  ;;  %v1027_v24 = vld [vmem:[%s10656_s29 + $0x230] sm:$0xff]  ;;  %v1277_v34 = vunpack.c.l.s8.bf16 %v1025_v33 }
 0x2fa   : > { %1841 = vmatmul.mubr.bf16.gmra.mrb[12].mxu0 %v10917_v10  ;;  %2067 = vmatprep.subr.bf16.mxu1 %v1184_v25  ;;  %v1279_v23 = vunpack.c.l.s8.bf16 %v1027_v24  ;;  %v1290_v25 = vunpack.c.h.s8.bf16 %v1026_v56 }
 0x2fb   : > { %1947 = vmatmul.mubr.bf16.gmra.mrb[12].mxu1 %v10917_v10  ;;  %1989 = vmatprep.mubr.bf16.mxu0 %v10895_v63 }
 0x2fc   : > { %1962 = vmatpush1.bf16.msra.mxu0 %v1181_v2  ;;  %2095 = vmatprep.mubr.bf16.mxu1 %v10895_v63  ;;  %v1220_v63 = vunpack.c.h.s8.bf16 %v992_v43  ;;  %v1038_v2 = vld [vmem:[%s10656_s29 + $0x288] sm:$0xff]  ;;  %v1037_v43 = vld [vmem:[%s10656_s29 + $0x280] sm:$0xff] }
 0x2fd   : > { %2068 = vmatpush1.bf16.msra.mxu1 %v1183_v3  ;;  %1963 = vmatprep.subr.bf16.mxu0 %v1194_v4  ;;  %v1040_v3 = vld [vmem:[%s10656_s29 + $0x298] sm:$0xff]  ;;  %v1289_v4 = vunpack.c.h.s8.bf16 %v1025_v33  ;;  %v1302_v41 = vunpack.c.l.s8.bf16 %v1038_v2 }
 0x2fe   : > { %2069 = vmatprep.subr.bf16.mxu1 %v1196_v42  ;;  %v1291_v42 = vunpack.c.h.s8.bf16 %v1027_v24  ;;  %v1316_v26 = vunpack.c.h.s8.bf16 %v1040_v3  ;;  %v1088_v24 = vld [vmem:[%s10656_s29 + $0x418] sm:$0xff] }
 0x300   : > { %1964 = vmatpush1.bf16.msra.mxu0 %v1193_v45  ;;  %v1304_v45 = vunpack.c.l.s8.bf16 %v1040_v3  ;;  %v1087_v3 = vld [vmem:[%s10656_s29 + $0x410] sm:$0xff] }
 0x301   : > { %2070 = vmatpush1.bf16.msra.mxu1 %v1195_v5  ;;  %1965 = vmatprep.subr.bf16.mxu0 %v1206_v59  ;;  %v1039_v5 = vld [vmem:[%s10656_s29 + $0x290] sm:$0xff]  ;;  %v1301_v59 = vunpack.c.l.s8.bf16 %v1037_v43 }
 0x302   : > { %2071 = vmatprep.subr.bf16.mxu1 %v1208_v8  ;;  %v1303_v7 = vunpack.c.l.s8.bf16 %v1039_v5  ;;  %v1314_v8 = vunpack.c.h.s8.bf16 %v1038_v2  ;;  %v1400_v2 = vunpack.c.l.s8.bf16 %v1088_v24 }
 0x304   : > { %1966 = vmatpush1.bf16.msra.mxu0 %v1205_v11  ;;  %v1050_v11 = vld [vmem:[%s10656_s29 + $0x2e8] sm:$0xff] }
 0x305   : > { %2072 = vmatpush1.bf16.msra.mxu1 %v1207_v12  ;;  %1967 = vmatprep.subr.bf16.mxu0 %v1218_v13  ;;  %v1052_v12 = vld [vmem:[%s10656_s29 + $0x2f8] sm:$0xff]  ;;  %v1313_v13 = vunpack.c.h.s8.bf16 %v1037_v43  ;;  %v1326_v15 = vunpack.c.l.s8.bf16 %v1050_v11 }
 0x306   : > { %2073 = vmatprep.subr.bf16.mxu1 %v1220_v63  ;;  %v1315_v63 = vunpack.c.h.s8.bf16 %v1039_v5  ;;  %v1340_v28 = vunpack.c.h.s8.bf16 %v1052_v12  ;;  %v1098_v5 = vld [vmem:[%s10656_s29 + $0x468] sm:$0xff] }
 0x308   : > { %1968 = vmatpush1.bf16.msra.mxu0 %v1217_v31  ;;  %v1328_v31 = vunpack.c.l.s8.bf16 %v1052_v12 }
 0x309   : > { %2074 = vmatpush1.bf16.msra.mxu1 %v1219_v32  ;;  %1969 = vmatprep.subr.bf16.mxu0 %v1230_v36  ;;  %v1051_v32 = vld [vmem:[%s10656_s29 + $0x2f0] sm:$0xff]  ;;  %v1325_v36 = vunpack.c.l.s8.bf16 %v1049_v30 }
 0x30a   : > { %2075 = vmatprep.subr.bf16.mxu1 %v1232_v19  ;;  %v1327_v37 = vunpack.c.l.s8.bf16 %v1051_v32  ;;  %v1338_v19 = vunpack.c.h.s8.bf16 %v1050_v11 }
 0x30c   : > { %1970 = vmatpush1.bf16.msra.mxu0 %v1229_v38  ;;  %v1062_v38 = vld [vmem:[%s10656_s29 + $0x348] sm:$0xff] }
 0x30d   : > { %2076 = vmatpush1.bf16.msra.mxu1 %v1231_v40  ;;  %1971 = vmatprep.subr.bf16.mxu0 %v1242_v44  ;;  %v1064_v40 = vld [vmem:[%s10656_s29 + $0x358] sm:$0xff]  ;;  %v1337_v44 = vunpack.c.h.s8.bf16 %v1049_v30  ;;  %v1350_v47 = vunpack.c.l.s8.bf16 %v1062_v38 }
 0x30e   : > { %2077 = vmatprep.subr.bf16.mxu1 %v1244_v46  ;;  %v1339_v46 = vunpack.c.h.s8.bf16 %v1051_v32  ;;  %v1352_v17 = vunpack.c.l.s8.bf16 %v1064_v40  ;;  %v1364_v51 = vunpack.c.h.s8.bf16 %v1064_v40  ;;  %v1422_v32 = vunpack.c.l.s8.bf16 %v1098_v5 }
 0x310   : > { %1972 = vmatpush1.bf16.msra.mxu0 %v1241_v48  ;;  %v1061_v48 = vld [vmem:[%s10656_s29 + $0x340] sm:$0xff] }
 0x311   : > { %2078 = vmatpush1.bf16.msra.mxu1 %v1243_v49  ;;  %1973 = vmatprep.subr.bf16.mxu0 %v1254_v50  ;;  %v1063_v49 = vld [vmem:[%s10656_s29 + $0x350] sm:$0xff]  ;;  %v1349_v50 = vunpack.c.l.s8.bf16 %v1061_v48 }
 0x312   : > { %2079 = vmatprep.subr.bf16.mxu1 %v1256_v16  ;;  %v1351_v18 = vunpack.c.l.s8.bf16 %v1063_v49  ;;  %v1362_v16 = vunpack.c.h.s8.bf16 %v1062_v38 }
 0x314   : > { %1974 = vmatpush1.bf16.msra.mxu0 %v1253_v52  ;;  %v1074_v52 = vld [vmem:[%s10656_s29 + $0x3a8] sm:$0xff] }
 0x315   : > { %2080 = vmatpush1.bf16.msra.mxu1 %v1255_v53  ;;  %1975 = vmatprep.subr.bf16.mxu0 %v1266_v54  ;;  %v1076_v53 = vld [vmem:[%s10656_s29 + $0x3b8] sm:$0xff]  ;;  %v1361_v54 = vunpack.c.h.s8.bf16 %v1061_v48  ;;  %v1374_v56 = vunpack.c.l.s8.bf16 %v1074_v52  ;;  %v1386_v33 = vunpack.c.h.s8.bf16 %v1074_v52 }
 0x316   : > { %2081 = vmatprep.subr.bf16.mxu1 %v1268_v55  ;;  %v1363_v55 = vunpack.c.h.s8.bf16 %v1063_v49 }
 0x318   : > { %1976 = vmatpush1.bf16.msra.mxu0 %v1265_v60  ;;  %v1376_v60 = vunpack.c.l.s8.bf16 %v1076_v53 }
 0x319   : > { %2082 = vmatpush1.bf16.msra.mxu1 %v1267_v61  ;;  %1977 = vmatprep.subr.bf16.mxu0 %v1278_v62  ;;  %v1075_v61 = vld [vmem:[%s10656_s29 + $0x3b0] sm:$0xff]  ;;  %v1373_v62 = vunpack.c.l.s8.bf16 %v1073_v57 }
 0x31a   : > { %2083 = vmatprep.subr.bf16.mxu1 %v1280_v35  ;;  %v1086_v35 = vld [vmem:[%s10656_s29 + $0x408] sm:$0xff] }
 0x31c   : > { %1978 = vmatpush1.bf16.msra.mxu0 %v1277_v34  ;;  %v1385_v34 = vunpack.c.h.s8.bf16 %v1073_v57  ;;  %v1110_v57 = vld [vmem:[%s10656_s29 + $0x4c8] sm:$0xff] }
 0x31d   : > { %2084 = vmatpush1.bf16.msra.mxu1 %v1279_v23  ;;  %1979 = vmatprep.subr.bf16.mxu0 %v1290_v25  ;;  %v1387_v23 = vunpack.c.h.s8.bf16 %v1075_v61  ;;  %v1398_v25 = vunpack.c.l.s8.bf16 %v1086_v35 }
 0x31e   : > { %2085 = vmatprep.subr.bf16.mxu1 %v1292_v0  ;;  %v1085_v0 = vld [vmem:[%s10656_s29 + $0x400] sm:$0xff] }
 0x320   : > { %1980 = vmatpush1.bf16.msra.mxu0 %v1289_v4  ;;  %v11100_v4 = vld [vmem:[%s10659_s27] sm:$0xff] }
 0x321   : > { %2086 = vmatpush1.bf16.msra.mxu1 %v1291_v42  ;;  %1981 = vmatprep.subr.bf16.mxu0 %v1302_v41  ;;  %v1399_v42 = vunpack.c.l.s8.bf16 %v1087_v3  ;;  %v1410_v41 = vunpack.c.h.s8.bf16 %v1086_v35  ;;  %v11108_v43 = vrot.slane %v11100_v4, %v10848_v14  ;;  %v11118_v11 = vrot.slane %v11100_v4, %v10859_v22 }
 0x322   : > { %2087 = vmatprep.subr.bf16.mxu1 %v1304_v45  ;;  %v1412_v45 = vunpack.c.h.s8.bf16 %v1088_v24 }
 0x324   : > { %1982 = vmatpush1.bf16.msra.mxu0 %v1301_v59  ;;  %v1100_v59 = vld [vmem:[%s10656_s29 + $0x478] sm:$0xff] }
 0x325   : > { %2088 = vmatpush1.bf16.msra.mxu1 %v1303_v7  ;;  %1983 = vmatprep.subr.bf16.mxu0 %v1314_v8 }
 0x326   : > { %2089 = vmatprep.subr.bf16.mxu1 %v1316_v26  ;;  %v11114_v26 = vrot.slane %v11100_v4, %v10853_v20 }
 0x328   : > { %1984 = vmatpush1.bf16.msra.mxu0 %v1313_v13 }
 0x329   : > { %2090 = vmatpush1.bf16.msra.mxu1 %v1315_v63  ;;  %1985 = vmatprep.subr.bf16.mxu0 %v1326_v15  ;;  %v1409_v63 = vunpack.c.h.s8.bf16 %v1085_v0 }
 0x32a   : > { %2091 = vmatprep.subr.bf16.mxu1 %v1328_v31  ;;  %v1411_v31 = vunpack.c.h.s8.bf16 %v1087_v3 }
 0x32c   : > { %1986 = vmatpush1.bf16.msra.mxu0 %v1325_v36  ;;  %v1424_v36 = vunpack.c.l.s8.bf16 %v1100_v59 }
 0x32d   : > { %2092 = vmatpush1.bf16.msra.mxu1 %v1327_v37  ;;  %1987 = vmatprep.subr.bf16.mxu0 %v1338_v19  ;;  %v1097_v37 = vld [vmem:[%s10656_s29 + $0x460] sm:$0xff] }
 0x32e   : > { %2093 = vmatprep.subr.bf16.mxu1 %v1340_v28 }
 0x330   : > { %1988 = vmatpush1.bf16.msra.mxu0 %v1337_v44 }
 0x331   : > { %2094 = vmatpush1.bf16.msra.mxu1 %v1339_v46  ;;  %2010 = vmatprep.subr.bf16.mxu0 %v1350_v47  ;;  %v1099_v47 = vld [vmem:[%s10656_s29 + $0x470] sm:$0xff] }
 0x332   : > { %2116 = vmatprep.subr.bf16.mxu1 %v1352_v17 }
 0x333   : > { %1990 = vmatmul.mubr.bf16.vlgmr.msra.gmra.mrb[16].mxu0 %v10897_v29 }
 0x334   : > { %2096 = vmatmul.mubr.bf16.vlgmr.msra.gmra.mrb[16].mxu1 %v10897_v29  ;;  %1999 = vmatprep.mubr.bf16.mxu0 %v10911_v58  ;;  %v1375_v29 = vunpack.c.l.s8.bf16 %v1075_v61 }
 0x335   : > { %2011 = vmatpush1.bf16.msra.mxu0 %v1349_v50  ;;  %2105 = vmatprep.mubr.bf16.mxu1 %v10911_v58  ;;  %v1388_v58 = vunpack.c.h.s8.bf16 %v1076_v53 }
 0x336   : > { %2117 = vmatpush1.bf16.msra.mxu1 %v1351_v18  ;;  %2012 = vmatprep.subr.bf16.mxu0 %v1362_v16 }
 0x337   : > { %2118 = vmatprep.subr.bf16.mxu1 %v1364_v51  ;;  %v1421_v51 = vunpack.c.l.s8.bf16 %v1097_v37 }
 0x339   : > { %2013 = vmatpush1.bf16.msra.mxu0 %v1361_v54  ;;  %v1423_v54 = vunpack.c.l.s8.bf16 %v1099_v47 }
 0x33a   : > { %2119 = vmatpush1.bf16.msra.mxu1 %v1363_v55  ;;  %2014 = vmatprep.subr.bf16.mxu0 %v1374_v56  ;;  %v1434_v55 = vunpack.c.h.s8.bf16 %v1098_v5  ;;  %v1436_v56 = vunpack.c.h.s8.bf16 %v1100_v59  ;;  %v1111_v59 = vld [vmem:[%s10656_s29 + $0x4d0] sm:$0xff] }
 0x33b   : > { %2000 = vmatmul.mubr.bf16.gmra.mrb[20].mxu0 %v10925_v27  ;;  %2120 = vmatprep.subr.bf16.mxu1 %v1376_v60  ;;  %v1112_v60 = vld [vmem:[%s10656_s29 + $0x4d8] sm:$0xff] }
 0x33c   : > { %2106 = vmatmul.mubr.bf16.gmra.mrb[20].mxu1 %v10925_v27  ;;  %2042 = vmatprep.mubr.bf16.mxu0 %v10933_v39  ;;  %v1397_v27 = vunpack.c.l.s8.bf16 %v1085_v0  ;;  %v1448_v0 = vunpack.c.l.s8.bf16 %v1112_v60 }
 0x33d   : > { %2015 = vmatpush1.bf16.msra.mxu0 %v1373_v62  ;;  %2148 = vmatprep.mubr.bf16.mxu1 %v10933_v39  ;;  %v11104_v39 = vrot.slane %v11100_v4, %v10856_v21 }
 0x33e   : > { %2121 = vmatpush1.bf16.msra.mxu1 %v1375_v29  ;;  %2016 = vmatprep.subr.bf16.mxu0 %v1386_v33 }
 0x33f   : > { %2122 = vmatprep.subr.bf16.mxu1 %v1388_v58  ;;  %v1433_v58 = vunpack.c.h.s8.bf16 %v1097_v37  ;;  %v1459_v37 = vunpack.c.h.s8.bf16 %v1111_v59 }
 0x341   : > { %2017 = vmatpush1.bf16.msra.mxu0 %v1385_v34 }
 0x342   : > { %2123 = vmatpush1.bf16.msra.mxu1 %v1387_v23  ;;  %2018 = vmatprep.subr.bf16.mxu0 %v1398_v25  ;;  %v1435_v23 = vunpack.c.h.s8.bf16 %v1099_v47  ;;  %v1446_v25 = vunpack.c.l.s8.bf16 %v1110_v57 }
 0x343   : > { %2124 = vmatprep.subr.bf16.mxu1 %v1400_v2  ;;  %v1109_v2 = vld [vmem:[%s10656_s29 + $0x4c0] sm:$0xff] }
 0x344   : > { %v1620_v7 = vpop.f32.mrb[0].mxu0  ;;  %v1726_v8 = vpop.f32.mrb[0].mxu1 }
 0x345   : > { %2019 = vmatpush1.bf16.msra.mxu0 %v1397_v27  ;;  %v1622_v12 = vpop.f32.mrb[1].mxu0  ;;  %v1728_v13 = vpop.f32.mrb[1].mxu1  ;;  %v2233_v19 = vmul.f32 %v11104_v39, %v1620_v7  ;;  %v2235_v28 = vmul.f32 %v11108_v43, %v1726_v8 }
 0x346   : > { %2125 = vmatpush1.bf16.msra.mxu1 %v1399_v42  ;;  %2020 = vmatprep.subr.bf16.mxu0 %v1410_v41  ;;  %v1624_v15 = vpop.f32.mrb[2].mxu0  ;;  %v1730_v30 = vpop.f32.mrb[2].mxu1  ;;  %v2234_v17 = vmul.f32 %v11114_v26, %v1622_v12  ;;  %v2236_v48 = vmul.f32 %v11118_v11, %v1728_v13 }
 0x347   : > { %2126 = vmatprep.subr.bf16.mxu1 %v1412_v45  ;;  %v2245_v38 = vmul.f32 %v11104_v39, %v1624_v15  ;;  %v2247_v40 = vmul.f32 %v11108_v43, %v1730_v30  ;;  %v1626_v44 = vpop.f32.mrb[3].mxu0  ;;  %v1732_v46 = vpop.f32.mrb[3].mxu1  ;;  %v1445_v15 = vunpack.c.l.s8.bf16 %v1109_v2  ;;  %v1447_v30 = vunpack.c.l.s8.bf16 %v1111_v59 }
 0x348   : > { %v2246_v49 = vmul.f32 %v11114_v26, %v1626_v44  ;;  %v2248_v50 = vmul.f32 %v11118_v11, %v1732_v46  ;;  %v11183_v59 = vsub.s32 4, %v10845_v9 }
 0x349   : > { %v11130_v18 = vpack.c.bf16 %v2245_v38, %v2233_v19  ;;  %v11132_v16 = vpack.c.bf16 %v2247_v40, %v2235_v28  ;;  %2021 = vmatpush1.bf16.msra.mxu0 %v1409_v63  ;;  %v1121_v28 = vld [vmem:[%s10656_s29 + $0x520] sm:$0xff]  ;;  %v1123_v40 = vld [vmem:[%s10656_s29 + $0x530] sm:$0xff] }
 0x34a   : > { %2127 = vmatpush1.bf16.msra.mxu1 %v1411_v31  ;;  %v11134_v52 = vpack.c.bf16 %v2246_v49, %v2234_v17  ;;  %v11136_v53 = vpack.c.bf16 %v2248_v50, %v2236_v48  ;;  %2022 = vmatprep.subr.bf16.mxu0 %v1422_v32  ;;  %v1458_v31 = vunpack.c.h.s8.bf16 %v1110_v57  ;;  %v1122_v32 = vld [vmem:[%s10656_s29 + $0x528] sm:$0xff]  ;;  %v1469_v44 = vunpack.c.l.s8.bf16 %v1121_v28  ;;  %v1136_v49 = vld [vmem:[%s10656_s29 + $0x598] sm:$0xff]  ;;  %v1135_v57 = vld [vmem:[%s10656_s29 + $0x590] sm:$0xff] }
 0x34b   : > { %2128 = vmatprep.subr.bf16.mxu1 %v1424_v36  ;;  %v1457_v36 = vunpack.c.h.s8.bf16 %v1109_v2  ;;  %v1470_v19 = vunpack.c.l.s8.bf16 %v1122_v32  ;;  %v1471_v46 = vunpack.c.l.s8.bf16 %v1123_v40  ;;  %v1482_v47 = vunpack.c.h.s8.bf16 %v1122_v32  ;;  %v1134_v48 = vld [vmem:[%s10656_s29 + $0x588] sm:$0xff] }
 0x34c   : > { %v1630_v61 = vpop.f32.mrb[4].mxu0  ;;  %v1736_v62 = vpop.f32.mrb[4].mxu1  ;;  %v1481_v50 = vunpack.c.h.s8.bf16 %v1121_v28 }
 0x34d   : > { %2023 = vmatpush1.bf16.msra.mxu0 %v1421_v51  ;;  %v1632_v29 = vpop.f32.mrb[5].mxu0  ;;  %v1738_v33 = vpop.f32.mrb[5].mxu1  ;;  %v2257_v3 = vmul.f32 %v11104_v39, %v1630_v61  ;;  %v2259_v27 = vmul.f32 %v11108_v43, %v1736_v62  ;;  %v1483_v51 = vunpack.c.h.s8.bf16 %v1123_v40  ;;  %v1495_v61 = vunpack.c.l.s8.bf16 %v1135_v57 }
 0x34e   : > { %2129 = vmatpush1.bf16.msra.mxu1 %v1423_v54  ;;  %v2260_v35 = vmul.f32 %v11118_v11, %v1738_v33  ;;  %2024 = vmatprep.subr.bf16.mxu0 %v1434_v55  ;;  %v1634_v24 = vpop.f32.mrb[6].mxu0  ;;  %v1740_v34 = vpop.f32.mrb[6].mxu1  ;;  %v2258_v7 = vmul.f32 %v11114_v26, %v1632_v29  ;;  %v1494_v54 = vunpack.c.l.s8.bf16 %v1134_v48  ;;  %v1133_v55 = vld [vmem:[%s10656_s29 + $0x580] sm:$0xff]  ;;  %v1506_v62 = vunpack.c.h.s8.bf16 %v1134_v48  ;;  %v1146_v33 = vld [vmem:[%s10656_s29 + $0x5e8] sm:$0xff] }
 0x34f   : > { %2130 = vmatprep.subr.bf16.mxu1 %v1436_v56  ;;  %v2269_v42 = vmul.f32 %v11104_v39, %v1634_v24  ;;  %v2271_v41 = vmul.f32 %v11108_v43, %v1740_v34  ;;  %v1636_v45 = vpop.f32.mrb[7].mxu0  ;;  %v1742_v5 = vpop.f32.mrb[7].mxu1  ;;  %v1496_v56 = vunpack.c.l.s8.bf16 %v1136_v49  ;;  %v1508_v29 = vunpack.c.h.s8.bf16 %v1136_v49 }
 0x350   : > { %v2270_v8 = vmul.f32 %v11114_v26, %v1636_v45  ;;  %v2272_v12 = vmul.f32 %v11118_v11, %v1742_v5  ;;  %v1460_v26 = vunpack.c.h.s8.bf16 %v1112_v60  ;;  %v1124_v11 = vld [vmem:[%s10656_s29 + $0x538] sm:$0xff]  ;;  %v1493_v60 = vunpack.c.l.s8.bf16 %v1133_v55 }
 0x351   : > { %v11150_v13 = vpack.c.bf16 %v2269_v42, %v2257_v3  ;;  %v11152_v63 = vpack.c.bf16 %v2271_v41, %v2259_v27  ;;  %2025 = vmatpush1.bf16.msra.mxu0 %v1433_v58  ;;  %v1472_v38 = vunpack.c.l.s8.bf16 %v1124_v11  ;;  %v1484_v17 = vunpack.c.h.s8.bf16 %v1124_v11  ;;  %v1148_v58 = vld [vmem:[%s10656_s29 + $0x5f8] sm:$0xff] }
 0x352   : > { %2131 = vmatpush1.bf16.msra.mxu1 %v1435_v23  ;;  %v11154_v39 = vpack.c.bf16 %v2270_v8, %v2258_v7  ;;  %v11156_v43 = vpack.c.bf16 %v2272_v12, %v2260_v35  ;;  %2026 = vmatprep.subr.bf16.mxu0 %v1446_v25  ;;  %v1505_v35 = vunpack.c.h.s8.bf16 %v1133_v55  ;;  %v1507_v24 = vunpack.c.h.s8.bf16 %v1135_v57  ;;  %v1145_v23 = vld [vmem:[%s10656_s29 + $0x5e0] sm:$0xff] }
 0x353   : > { %2132 = vmatprep.subr.bf16.mxu1 %v1448_v0  ;;  %v1518_v34 = vunpack.c.l.s8.bf16 %v1146_v33  ;;  %v1520_v25 = vunpack.c.l.s8.bf16 %v1148_v58  ;;  %v1147_v0 = vld [vmem:[%s10656_s29 + $0x5f0] sm:$0xff]  ;;  %v1517_v2 = vunpack.c.l.s8.bf16 %v1145_v23  ;;  %v1530_v27 = vunpack.c.h.s8.bf16 %v1146_v33 }
 0x354   : > { %v1519_v3 = vunpack.c.l.s8.bf16 %v1147_v0  ;;  %v1532_v42 = vunpack.c.h.s8.bf16 %v1148_v58  ;;  %v1529_v41 = vunpack.c.h.s8.bf16 %v1145_v23  ;;  %v1531_v45 = vunpack.c.h.s8.bf16 %v1147_v0 }
 0x355   : > { %2027 = vmatpush1.bf16.msra.mxu0 %v1445_v15  ;;  %v10154_v5 = vmov 0.0   ;;  %v11189_v7 = vsub.s32 5, %v10845_v9 }
 0x356   : > { %2133 = vmatpush1.bf16.msra.mxu1 %v1447_v30  ;;  %2028 = vmatprep.subr.bf16.mxu0 %v1458_v31 }
 0x357   : > { %2134 = vmatprep.subr.bf16.mxu1 %v1460_v26  ;;  %v2196_v15 = vrot.slane %v11100_v4, %v11189_v7 }
 0x359   : > { %2029 = vmatpush1.bf16.msra.mxu0 %v1457_v36 }
 0x35a   : > { %2135 = vmatpush1.bf16.msra.mxu1 %v1459_v37  ;;  %2030 = vmatprep.subr.bf16.mxu0 %v1470_v19 }
 0x35b   : > { %2136 = vmatprep.subr.bf16.mxu1 %v1472_v38 }
 0x35d   : > { %2031 = vmatpush1.bf16.msra.mxu0 %v1469_v44 }
 0x35e   : > { %2137 = vmatpush1.bf16.msra.mxu1 %v1471_v46  ;;  %2032 = vmatprep.subr.bf16.mxu0 %v1482_v47 }
 0x35f   : > { %2138 = vmatprep.subr.bf16.mxu1 %v1484_v17 }
 0x361   : > { %2033 = vmatpush1.bf16.msra.mxu0 %v1481_v50 }
 0x362   : > { %2139 = vmatpush1.bf16.msra.mxu1 %v1483_v51  ;;  %2034 = vmatprep.subr.bf16.mxu0 %v1494_v54 }
 0x363   : > { %2140 = vmatprep.subr.bf16.mxu1 %v1496_v56 }
 0x365   : > { %2035 = vmatpush1.bf16.msra.mxu0 %v1493_v60 }
 0x366   : > { %2141 = vmatpush1.bf16.msra.mxu1 %v1495_v61  ;;  %2036 = vmatprep.subr.bf16.mxu0 %v1506_v62 }
 0x367   : > { %2142 = vmatprep.subr.bf16.mxu1 %v1508_v29 }
 0x369   : > { %2037 = vmatpush1.bf16.msra.mxu0 %v1505_v35 }
 0x36a   : > { %2143 = vmatpush1.bf16.msra.mxu1 %v1507_v24  ;;  %2038 = vmatprep.subr.bf16.mxu0 %v1518_v34 }
 0x36b   : > { %2144 = vmatprep.subr.bf16.mxu1 %v1520_v25 }
 0x36d   : > { %2039 = vmatpush1.bf16.msra.mxu0 %v1517_v2 }
 0x36e   : > { %2145 = vmatpush1.bf16.msra.mxu1 %v1519_v3  ;;  %2040 = vmatprep.subr.bf16.mxu0 %v1530_v27 }
 0x36f   : > { %2146 = vmatprep.subr.bf16.mxu1 %v1532_v42 }
 0x371   : > { %2041 = vmatpush1.bf16.msra.mxu0 %v1529_v41 }
 0x372   : > { %2147 = vmatpush1.bf16.msra.mxu1 %v1531_v45  ;;  %8964 = vmatprep.subr.bf16.mxu0 %v10154_v5  ;;  %v2170_v45 = vld [vmem:[%s10659_s27 + $0x8] sm:$0xf]  ;;  %s13095_s27 = sld [smem:[#allocation41_spill]] }
 0x373   : > { %8970 = vmatprep.subr.bf16.mxu1 %v10154_v5 }
 0x374   : > { %2043 = vmatmul.mubr.bf16.vlgmr.msra.gmra.mrb[16].mxu0 %v10900_v1 }
 0x375   : > { %2149 = vmatmul.mubr.bf16.vlgmr.msra.gmra.mrb[16].mxu1 %v10900_v1  ;;  %2052 = vmatprep.mubr.bf16.mxu0 %v10913_v6  ;;  %v11186_v1 = vsub.s32 6, %v10845_v9 }
 0x376   : > { %2158 = vmatprep.mubr.bf16.mxu1 %v10913_v6  ;;  %v11192_v6 = vsub.s32 7, %v10845_v9 }
 0x377   : > { %v2200_v12 = vrot.slane %v11100_v4, %v11186_v1 }
 0x378   : > { %v2204_v26 = vrot.slane %v11100_v4, %v11192_v6  ;;  %s13096_s24 = smov %s13095_s27 }
 0x37c   : > { %2053 = vmatmul.mubr.bf16.gmra.mrb[20].mxu0 %v10917_v10 }
 0x37d   : > { %2159 = vmatmul.mubr.bf16.gmra.mrb[20].mxu1 %v10917_v10  ;;  %8966 = vmatprep.mubr.msk.bf16.mxu0 %vm10155_vm0, %v10154_v5  ;;  %v2192_v10 = vrot.slane %v11100_v4, %v11183_v59 }
 0x37e   : > { %8972 = vmatprep.mubr.msk.bf16.mxu1 %vm10155_vm0, %v10154_v5 }
 0x3c5   : > { %v1832_v8 = vpop.f32.mrb[8].mxu0 }
 0x3c6   : > { %v1938_v30 = vpop.f32.mrb[8].mxu1  ;;  %v1834_v31 = vpop.f32.mrb[9].mxu0  ;;  %v2237_v36 = vmul.f32 %v2192_v10, %v1832_v8  ;;  %v2212_v8 = vrot.slane %v2170_v45, %v10853_v20 }
 0x3c7   : > { %v1940_v32 = vpop.f32.mrb[9].mxu1  ;;  %v1836_v11 = vpop.f32.mrb[10].mxu0  ;;  %v2239_v28 = vmul.f32 %v2200_v12, %v1938_v30  ;;  %v2238_v38 = vmul.f32 %v2196_v15, %v1834_v31 }
 0x3c8   : > { %v2249_v9 = vmul.f32 %v2192_v10, %v1836_v11  ;;  %v1942_v37 = vpop.f32.mrb[10].mxu1  ;;  %v1838_v19 = vpop.f32.mrb[11].mxu0  ;;  %v2240_v47 = vmul.f32 %v2204_v26, %v1940_v32 }
 0x3c9   : > { %v2251_v40 = vmul.f32 %v2200_v12, %v1942_v37  ;;  %v2250_v44 = vmul.f32 %v2196_v15, %v1838_v19  ;;  %v1944_v46 = vpop.f32.mrb[11].mxu1 }
 0x3ca   : > { %v11202_v17 = vpack.c.bf16 %v2249_v9, %v2237_v36  ;;  %v2252_v48 = vmul.f32 %v2204_v26, %v1944_v46 }
 0x3cb   : > { %v11204_v49 = vpack.c.bf16 %v2251_v40, %v2239_v28  ;;  %v11206_v50 = vpack.c.bf16 %v2250_v44, %v2238_v38 }
 0x3cc   : > { %v11208_v4 = vpack.c.bf16 %v2252_v48, %v2240_v47  ;;  %v2326_v51 = vsel %vm2321_vm1, %v11202_v17, 0 }
 0x3cd   : > { %v1842_v54 = vpop.f32.mrb[12].mxu0  ;;  %8965 = vmatpush3.bf16.xpose.msra.mxu0 %v2326_v51 }
 0x3ce   : > { %v1948_v55 = vpop.f32.mrb[12].mxu1  ;;  %v1844_v56 = vpop.f32.mrb[13].mxu0  ;;  %8976 = vmatprep.subr.bf16.mxu0 %v10154_v5  ;;  %v2261_v61 = vmul.f32 %v2192_v10, %v1842_v54 }
 0x3cf   : > { %v1950_v57 = vpop.f32.mrb[13].mxu1  ;;  %v1846_v60 = vpop.f32.mrb[14].mxu0  ;;  %v2263_v35 = vmul.f32 %v2200_v12, %v1948_v55  ;;  %v2262_v24 = vmul.f32 %v2196_v15, %v1844_v56 }
 0x3d0   : > { %v2264_v62 = vmul.f32 %v2204_v26, %v1950_v57  ;;  %v2273_v29 = vmul.f32 %v2192_v10, %v1846_v60  ;;  %v1952_v33 = vpop.f32.mrb[14].mxu1  ;;  %v1848_v58 = vpop.f32.mrb[15].mxu0  ;;  %v2216_v10 = vrot.slane %v2170_v45, %v10848_v14 }
 0x3d1   : > { %v2275_v34 = vmul.f32 %v2200_v12, %v1952_v33  ;;  %v2274_v23 = vmul.f32 %v2196_v15, %v1848_v58  ;;  %v1954_v25 = vpop.f32.mrb[15].mxu1  ;;  %v2208_v12 = vrot.slane %v2170_v45, %v10856_v21  ;;  %v2220_v15 = vrot.slane %v2170_v45, %v10859_v22 }
 0x3d2   : > { %v11213_v0 = vpack.c.bf16 %v2273_v29, %v2261_v61  ;;  %v2276_v2 = vmul.f32 %v2204_v26, %v1954_v25 }
 0x3d3   : > { %v11215_v3 = vpack.c.bf16 %v2275_v34, %v2263_v35  ;;  %v11217_v27 = vpack.c.bf16 %v2274_v23, %v2262_v24 }
 0x3d4   : > { %v11219_v42 = vpack.c.bf16 %v2276_v2, %v2264_v62  ;;  %8967 = vmatmul.mubr.msk.bf16.vlgmr.msra.gmra.mrb[24].mxu0 %vm2321_vm1, %v11130_v18  ;;  %v2373_v41 = vsel %vm2321_vm1, %v11213_v0, 0 }
 0x3d5   : > { %8971 = vmatpush3.bf16.xpose.msra.mxu1 %v2373_v41  ;;  %8978 = vmatprep.mubr.msk.bf16.mxu0 %vm10155_vm0, %v10154_v5 }
 0x3d6   : > { %8982 = vmatprep.subr.bf16.mxu1 %v10154_v5 }
 0x3dc   : > { %8973 = vmatmul.mubr.msk.bf16.vlgmr.msra.gmra.mrb[24].mxu1 %vm2321_vm1, %v11150_v13 }
 0x3dd   : > { %8984 = vmatprep.mubr.msk.bf16.mxu1 %vm10155_vm0, %v10154_v5 }
 0x447   : > { %v2044_v30 = vpop.f32.mrb[16].mxu0 }
 0x448   : > { %v2150_v31 = vpop.f32.mrb[16].mxu1  ;;  %v2046_v26 = vpop.f32.mrb[17].mxu0  ;;  %v2241_v37 = vmul.f32 %v2208_v12, %v2044_v30 }
 0x449   : > { %v2243_v32 = vmul.f32 %v2216_v10, %v2150_v31  ;;  %v2242_v11 = vmul.f32 %v2212_v8, %v2046_v26  ;;  %v2152_v36 = vpop.f32.mrb[17].mxu1  ;;  %v2048_v9 = vpop.f32.mrb[18].mxu0 }
 0x44a   : > { %v2244_v19 = vmul.f32 %v2220_v15, %v2152_v36  ;;  %v2253_v28 = vmul.f32 %v2208_v12, %v2048_v9  ;;  %v2154_v38 = vpop.f32.mrb[18].mxu1  ;;  %v2050_v40 = vpop.f32.mrb[19].mxu0 }
 0x44b   : > { %v2255_v44 = vmul.f32 %v2216_v10, %v2154_v38  ;;  %v2254_v46 = vmul.f32 %v2212_v8, %v2050_v40  ;;  %v2156_v47 = vpop.f32.mrb[19].mxu1 }
 0x44c   : > { %v11237_v48 = vpack.c.bf16 %v2253_v28, %v2241_v37  ;;  %v2256_v51 = vmul.f32 %v2220_v15, %v2156_v47 }
 0x44d   : > { %v11239_v54 = vpack.c.bf16 %v2255_v44, %v2243_v32  ;;  %v11241_v55 = vpack.c.bf16 %v2254_v46, %v2242_v11 }
 0x44e   : > { %v11243_v56 = vpack.c.bf16 %v2256_v51, %v2244_v19  ;;  %8977 = vmatpush3.bf16.msra.mxu0 %v11237_v48 }
 0x44f   : > { %v2054_v57 = vpop.f32.mrb[20].mxu0  ;;  %8988 = vmatprep.subr.bf16.mxu0 %v10154_v5 }
 0x450   : > { %v2160_v60 = vpop.f32.mrb[20].mxu1  ;;  %v2056_v61 = vpop.f32.mrb[21].mxu0  ;;  %v2265_v35 = vmul.f32 %v2208_v12, %v2054_v57 }
 0x451   : > { %v2267_v62 = vmul.f32 %v2216_v10, %v2160_v60  ;;  %v2266_v29 = vmul.f32 %v2212_v8, %v2056_v61  ;;  %v2162_v33 = vpop.f32.mrb[21].mxu1  ;;  %v2058_v58 = vpop.f32.mrb[22].mxu0 }
 0x452   : > { %v2268_v24 = vmul.f32 %v2220_v15, %v2162_v33  ;;  %v2277_v34 = vmul.f32 %v2208_v12, %v2058_v58  ;;  %v2164_v23 = vpop.f32.mrb[22].mxu1  ;;  %v2060_v25 = vpop.f32.mrb[23].mxu0  ;;  %v2305_v12 = vld [vmem:[%s13095_s27] sm:$0xff] }
 0x453   : > { %v2279_v2 = vmul.f32 %v2216_v10, %v2164_v23  ;;  %v2278_v41 = vmul.f32 %v2212_v8, %v2060_v25  ;;  %v2166_v45 = vpop.f32.mrb[23].mxu1  ;;  %v2306_v8 = vld [vmem:[%s13096_s24 + $0x8] sm:$0xff] }
 0x454   : > { %v11247_v30 = vpack.c.bf16 %v2277_v34, %v2265_v35  ;;  %v2280_v31 = vmul.f32 %v2220_v15, %v2166_v45 }
 0x455   : > { %v11249_v26 = vpack.c.bf16 %v2279_v2, %v2267_v62  ;;  %v11251_v32 = vpack.c.bf16 %v2278_v41, %v2266_v29 }
 0x456   : > { %v11253_v11 = vpack.c.bf16 %v2280_v31, %v2268_v24  ;;  %8983 = vmatpush3.bf16.msra.mxu1 %v11247_v30 }
 0x457   : > { %8994 = vmatprep.subr.bf16.mxu1 %v10154_v5 }
 0x4a7   : > { %v2362_v10 = vpop.f32.mrb[24].mxu0 }
 0x4a8   : > { %v2363_v15 = vadd.f32 %v2362_v10, %v2305_v12  ;;  %v8968_v36 = vpop.f32.mrb[25].mxu0 }
 0x4a9   : > { %v2365_v9 = vpop.f32.mrb[26].mxu0 }
 0x4aa   : > { %v2366_v37 = vadd.f32 %v2365_v9, %v2306_v8  ;;  %v8969_v19 = vpop.f32.mrb[27].mxu0  ;;  %v2417_v28 = vsel %vm2416_vm2, %v2363_v15, -inf }
 0x4ab   : > { %2418 = vmax.xlane.f32.xlu0 %v2417_v28 }
 0x4ac   : > { %v2420_v38 = vsel %vm2416_vm2, %v2366_v37, -inf }
 0x4ad   : > { %2421 = vmax.xlane.f32.xlu1 %v2420_v38 }
 0x4af   : > { %v2409_v40 = vpop.f32.mrb[24].mxu1 }
 0x4b0   : > { %v2410_v44 = vadd.f32 %v2409_v40, %v2305_v12  ;;  %v8974_v46 = vpop.f32.mrb[25].mxu1 }
 0x4b1   : > { %v2412_v47 = vpop.f32.mrb[26].mxu1 }
 0x4b2   : > { %v2413_v51 = vadd.f32 %v2412_v47, %v2306_v8  ;;  %v8975_v57 = vpop.f32.mrb[27].mxu1  ;;  %v2423_v60 = vsel %vm2416_vm2, %v2410_v44, -inf }
 0x4b3   : > { %2424 = vmax.xlane.f32.xlu0 %v2423_v60 }
 0x4b4   : > { %v2426_v61 = vsel %vm2416_vm2, %v2413_v51, -inf }
 0x4b5   : > { %2427 = vmax.xlane.f32.xlu1 %v2426_v61 }
 0x538   : > { %v2419_v62 = vpop.xlane.xlu0 %2418 }
 0x539   : > { %v2429_v29 = vsub.f32 %v2363_v15, %v2419_v62 }
 0x53a   : > { %v2422_v33 = vpop.xlane.xlu1 %2421 }
 0x53b   : > { %v2433_v58 = vmul.f32 1.442695, %v2429_v29  ;;  %v2430_v35 = vsub.f32 %v2366_v37, %v2422_v33 }
 0x53d   : > { %9563 = vpow2.f32 %v2433_v58  ;;  %v2435_v24 = vmul.f32 1.442695, %v2430_v35 }
 0x53f   : > { %9565 = vpow2.f32 %v2435_v24 }
 0x540   : > { %v2425_v45 = vpop.xlane.xlu0 %2424 }
 0x541   : > { %v2431_v12 = vsub.f32 %v2410_v44, %v2425_v45  ;;  %v2308_v45 = vld [vmem:[%s13096_s24 + $0x18] sm:$0xff] }
 0x542   : > { %v2428_v41 = vpop.xlane.xlu1 %2427 }
 0x543   : > { %v2432_v31 = vsub.f32 %v2413_v51, %v2428_v41  ;;  %v2437_v8 = vmul.f32 1.442695, %v2431_v12 }
 0x545   : > { %v2439_v10 = vmul.f32 1.442695, %v2432_v31 }
 0x547   : > { %v9564_v34 = vpop.eup %9563  ;;  %9567 = vpow2.f32 %v2439_v10 }
 0x548   : > { %v2441_v23 = vsel %vm2416_vm2, %v9564_v34, 0.0  ;;  %9569 = vpow2.f32 %v2437_v8 }
 0x549   : > { %v9566_v25 = vpop.eup %9565  ;;  %2442 = vadd.xlane.f32.xlu0 %v2441_v23 }
 0x54a   : > { %v2444_v2 = vsel %vm2416_vm2, %v9566_v25, 0.0 }
 0x54b   : > { %2445 = vadd.xlane.f32.xlu1 %v2444_v2  ;;  %v2307_v2 = vld [vmem:[%s13096_s24 + $0x10] sm:$0xff] }
 0x551   : > { %v9568_v15 = vpop.eup %9567 }
 0x552   : > { %v9570_v36 = vpop.eup %9569  ;;  %v2450_v9 = vsel %vm2416_vm2, %v9568_v15, 0.0 }
 0x553   : > { %v2447_v37 = vsel %vm2416_vm2, %v9570_v36, 0.0 }
 0x55c   : > { %2552 = vrot.lane.b32.xlu1 %v11130_v18, %s10156_s2 }
 0x55f   : > { %2555 = vrot.lane.b32.xlu0 %v11202_v17, %s10156_s2 }
 0x57e   : > { %2451 = vadd.xlane.f32.xlu0 %v2450_v9 }
 0x580   : > { %2448 = vadd.xlane.f32.xlu1 %v2447_v37 }
 0x591   : > { %2605 = vrot.lane.b32.xlu1 %v11150_v13, %s10156_s2 }
 0x594   : > { %2608 = vrot.lane.b32.xlu0 %v11213_v0, %s10156_s2 }
 0x5d6   : > { %v2443_v18 = vpop.xlane.xlu0 %2442 }
 0x5d7   : > { %9571 = vrcp.f32 %v2443_v18 }
 0x5d8   : > { %v2446_v17 = vpop.xlane.xlu1 %2445 }
 0x5d9   : > { %9573 = vrcp.f32 %v2446_v17 }
 0x5da   : > { %v2556_v44 = vpop.permute.xlu0 %2555 }
 0x5db   : > { %v2561_v47 = vsel %vm2321_vm1, %v2556_v44, 0 }
 0x5dc   : > { %v2553_v13 = vpop.permute.xlu1 %2552 }
 0x5e1   : > { %v9572_v19 = vpop.eup %9571 }
 0x5e2   : > { %v2457_v38 = vmul.f32 %v9572_v19, %v9564_v34 }
 0x5e3   : > { %v9574_v28 = vpop.eup %9573 }
 0x5e4   : > { %v2458_v40 = vmul.f32 %v9574_v28, %v9566_v25 }
 0x5e6   : > { %v2461_v46 = vpack.c.bf16 %v2458_v40, %v2457_v38 }
 0x5e8   : > { %8979 = vmatmul.mubr.msk.bf16.vlgmr.msra.gmra.mrb[28].mxu0 %vm2416_vm2, %v2461_v46 }
 0x5e9   : > { %8989 = vmatpush3.bf16.xpose.msra.mxu0 %v2561_v47  ;;  %8990 = vmatprep.mubr.msk.bf16.mxu0 %vm10155_vm0, %v10154_v5 }
 0x5ea   : > { %9000 = vmatprep.subr.bf16.mxu0 %v10154_v5 }
 0x5f0   : > { %8991 = vmatmul.mubr.msk.bf16.vlgmr.msra.gmra.mrb[32].mxu0 %vm2321_vm1, %v2553_v13 }
 0x5f1   : > { %9002 = vmatprep.mubr.msk.bf16.mxu0 %vm10155_vm0, %v10154_v5 }
 0x60b   : > { %v2452_v0 = vpop.xlane.xlu0 %2451 }
 0x60c   : > { %9575 = vrcp.f32 %v2452_v0 }
 0x60d   : > { %v2449_v51 = vpop.xlane.xlu1 %2448 }
 0x60e   : > { %9577 = vrcp.f32 %v2449_v51 }
 0x60f   : > { %v2609_v29 = vpop.permute.xlu0 %2608 }
 0x610   : > { %v2614_v58 = vsel %vm2321_vm1, %v2609_v29, 0 }
 0x611   : > { %v2606_v35 = vpop.permute.xlu1 %2605 }
 0x616   : > { %v9576_v57 = vpop.eup %9575 }
 0x617   : > { %v2460_v61 = vmul.f32 %v9576_v57, %v9568_v15 }
 0x618   : > { %v9578_v60 = vpop.eup %9577 }
 0x619   : > { %v2459_v62 = vmul.f32 %v9578_v60, %v9570_v36 }
 0x61b   : > { %v2462_v33 = vpack.c.bf16 %v2460_v61, %v2459_v62 }
 0x61d   : > { %8985 = vmatmul.mubr.msk.bf16.vlgmr.msra.gmra.mrb[28].mxu1 %vm2416_vm2, %v2462_v33 }
 0x61e   : > { %8995 = vmatpush3.bf16.xpose.msra.mxu1 %v2614_v58  ;;  %8996 = vmatprep.mubr.msk.bf16.mxu1 %vm10155_vm0, %v10154_v5 }
 0x61f   : > { %9006 = vmatprep.subr.bf16.mxu1 %v10154_v5 }
 0x625   : > { %8997 = vmatmul.mubr.msk.bf16.vlgmr.msra.gmra.mrb[32].mxu1 %vm2321_vm1, %v2606_v35 }
 0x626   : > { %9008 = vmatprep.mubr.msk.bf16.mxu1 %vm10155_vm0, %v10154_v5 }
 0x6bb   : > { %v11295_v24 = vpop.f32.mrb[28].mxu0 }
 0x6bc   : > { %v8980_v34 = vpop.f32.mrb[29].mxu0 }
 0x6bd   : > { %v11297_v23 = vpop.f32.mrb[30].mxu0 }
 0x6be   : > { %v8981_v25 = vpop.f32.mrb[31].mxu0 }
 0x6c3   : > { %v2597_v41 = vpop.f32.mrb[32].mxu0 }
 0x6c4   : > { %v2598_v31 = vadd.f32 %v2597_v41, %v2307_v2  ;;  %v8992_v12 = vpop.f32.mrb[33].mxu0 }
 0x6c5   : > { %v2600_v10 = vpop.f32.mrb[34].mxu0 }
 0x6c6   : > { %v2601_v8 = vadd.f32 %v2600_v10, %v2308_v45  ;;  %v8993_v15 = vpop.f32.mrb[35].mxu0  ;;  %v2657_v36 = vsel %vm2416_vm2, %v2598_v31, -inf }
 0x6c7   : > { %2658 = vmax.xlane.f32.xlu1 %v2657_v36 }
 0x6c8   : > { %v2660_v9 = vsel %vm2416_vm2, %v2601_v8, -inf }
 0x6c9   : > { %2661 = vmax.xlane.f32.xlu0 %v2660_v9 }
 0x6f0   : > { %v11307_v37 = vpop.f32.mrb[28].mxu1 }
 0x6f1   : > { %v8986_v18 = vpop.f32.mrb[29].mxu1 }
 0x6f2   : > { %v11309_v17 = vpop.f32.mrb[30].mxu1 }
 0x6f3   : > { %v8987_v19 = vpop.f32.mrb[31].mxu1 }
 0x6f8   : > { %v2650_v28 = vpop.f32.mrb[32].mxu1 }
 0x6f9   : > { %v2651_v38 = vadd.f32 %v2650_v28, %v2307_v2  ;;  %v8998_v40 = vpop.f32.mrb[33].mxu1 }
 0x6fa   : > { %v2653_v44 = vpop.f32.mrb[34].mxu1 }
 0x6fb   : > { %v2654_v46 = vadd.f32 %v2653_v44, %v2308_v45  ;;  %v8999_v47 = vpop.f32.mrb[35].mxu1  ;;  %v2663_v13 = vsel %vm2416_vm2, %v2651_v38, -inf }
 0x6fc   : > { %2664 = vmax.xlane.f32.xlu0 %v2663_v13 }
 0x6fd   : > { %v2666_v0 = vsel %vm2416_vm2, %v2654_v46, -inf }
 0x6fe   : > { %2667 = vmax.xlane.f32.xlu1 %v2666_v0 }
 0x754   : > { %v2659_v51 = vpop.xlane.xlu1 %2658 }
 0x755   : > { %v2669_v57 = vsub.f32 %v2598_v31, %v2659_v51 }
 0x756   : > { %v2662_v60 = vpop.xlane.xlu0 %2661 }
 0x757   : > { %v2673_v61 = vmul.f32 1.442695, %v2669_v57  ;;  %v2670_v62 = vsub.f32 %v2601_v8, %v2662_v60 }
 0x759   : > { %9579 = vpow2.f32 %v2673_v61  ;;  %v2675_v29 = vmul.f32 1.442695, %v2670_v62  ;;  %v2850_v62 = vsel %vm2321_vm1, %v11217_v27, 0 }
 0x75b   : > { %9581 = vpow2.f32 %v2675_v29 }
 0x763   : > { %v9580_v33 = vpop.eup %9579 }
 0x764   : > { %v2681_v58 = vsel %vm2416_vm2, %v9580_v33, 0.0 }
 0x765   : > { %v9582_v35 = vpop.eup %9581  ;;  %2682 = vadd.xlane.f32.xlu0 %v2681_v58 }
 0x766   : > { %v2684_v34 = vsel %vm2416_vm2, %v9582_v35, 0.0 }
 0x767   : > { %2685 = vadd.xlane.f32.xlu1 %v2684_v34 }
 0x77b   : > { %2704 = vrot.lane.b32.xlu0 %v11237_v48, %s10156_s2 }
 0x789   : > { %v2665_v25 = vpop.xlane.xlu0 %2664 }
 0x78a   : > { %v2671_v2 = vsub.f32 %v2651_v38, %v2665_v25  ;;  %v2309_v25 = vld [vmem:[%s13096_s24 + $0x20] sm:$0xff] }
 0x78b   : > { %v2668_v41 = vpop.xlane.xlu1 %2667 }
 0x78c   : > { %v2677_v45 = vmul.f32 1.442695, %v2671_v2  ;;  %v2672_v31 = vsub.f32 %v2654_v46, %v2668_v41  ;;  %v2803_v46 = vsel %vm2321_vm1, %v11206_v50, 0  ;;  %v2310_v41 = vld [vmem:[%s13096_s24 + $0x28] sm:$0xff] }
 0x78e   : > { %9583 = vpow2.f32 %v2677_v45  ;;  %v2679_v12 = vmul.f32 1.442695, %v2672_v31 }
 0x790   : > { %9585 = vpow2.f32 %v2679_v12 }
 0x798   : > { %v9584_v10 = vpop.eup %9583 }
 0x799   : > { %v2687_v8 = vsel %vm2416_vm2, %v9584_v10, 0.0 }
 0x79a   : > { %v9586_v15 = vpop.eup %9585  ;;  %2688 = vadd.xlane.f32.xlu1 %v2687_v8 }
 0x79b   : > { %v2690_v36 = vsel %vm2416_vm2, %v9586_v15, 0.0 }
 0x79e   : > { %2691 = vadd.xlane.f32.xlu1 %v2690_v36 }
 0x7af   : > { %2752 = vrot.lane.b32.xlu1 %v11247_v30, %s10156_s2 }
 0x7f2   : > { %v2683_v48 = vpop.xlane.xlu0 %2682 }
 0x7f3   : > { %9587 = vrcp.f32 %v2683_v48 }
 0x7f4   : > { %v2686_v9 = vpop.xlane.xlu1 %2685 }
 0x7f5   : > { %9589 = vrcp.f32 %v2686_v9 }
 0x7f6   : > { %v2705_v18 = vpop.permute.xlu0 %2704 }
 0x7f7   : > { %9001 = vmatpush3.bf16.msra.mxu0 %v2705_v18 }
 0x7f8   : > { %9012 = vmatprep.subr.bf16.mxu0 %v10154_v5 }
 0x7fd   : > { %v9588_v19 = vpop.eup %9587 }
 0x7fe   : > { %v2697_v38 = vmul.f32 %v9588_v19, %v9580_v33 }
 0x7ff   : > { %v9590_v28 = vpop.eup %9589 }
 0x800   : > { %v2698_v40 = vmul.f32 %v9590_v28, %v9582_v35 }
 0x802   : > { %v2701_v44 = vpack.c.bf16 %v2698_v40, %v2697_v38 }
 0x804   : > { %9003 = vmatmul.mubr.msk.bf16.vlgmr.msra.gmra.mrb[36].mxu0 %vm2416_vm2, %v2701_v44 }
 0x805   : > { %9013 = vmatpush3.bf16.xpose.msra.mxu0 %v2803_v46  ;;  %9014 = vmatprep.mubr.msk.bf16.mxu0 %vm10155_vm0, %v10154_v5 }
 0x806   : > { %9024 = vmatprep.subr.bf16.mxu0 %v10154_v5 }
 0x80c   : > { %9015 = vmatmul.mubr.msk.bf16.vlgmr.msra.gmra.mrb[40].mxu0 %vm2321_vm1, %v11134_v52 }
 0x80d   : > { %9025 = vmatpush3.bf16.msra.mxu0 %v11241_v55  ;;  %9026 = vmatprep.mubr.msk.bf16.mxu0 %vm10155_vm0, %v10154_v5 }
 0x80e   : > { %9036 = vmatprep.subr.bf16.mxu0 %v10154_v5 }
 0x827   : > { %v2689_v30 = vpop.xlane.xlu1 %2688 }
 0x828   : > { %9591 = vrcp.f32 %v2689_v30 }
 0x82b   : > { %v2692_v47 = vpop.xlane.xlu1 %2691 }
 0x82c   : > { %9593 = vrcp.f32 %v2692_v47 }
 0x82f   : > { %v2753_v13 = vpop.permute.xlu1 %2752 }
 0x830   : > { %9007 = vmatpush3.bf16.msra.mxu1 %v2753_v13 }
 0x831   : > { %9018 = vmatprep.subr.bf16.mxu1 %v10154_v5 }
 0x832   : > { %v9592_v0 = vpop.eup %9591 }
 0x833   : > { %v2699_v57 = vmul.f32 %v9592_v0, %v9584_v10 }
 0x836   : > { %v9594_v51 = vpop.eup %9593 }
 0x837   : > { %v2700_v60 = vmul.f32 %v9594_v51, %v9586_v15 }
 0x839   : > { %v2702_v61 = vpack.c.bf16 %v2700_v60, %v2699_v57 }
 0x83b   : > { %9009 = vmatmul.mubr.msk.bf16.vlgmr.msra.gmra.mrb[36].mxu1 %vm2416_vm2, %v2702_v61 }
 0x83c   : > { %9019 = vmatpush3.bf16.xpose.msra.mxu1 %v2850_v62  ;;  %9020 = vmatprep.mubr.msk.bf16.mxu1 %vm10155_vm0, %v10154_v5 }
 0x83d   : > { %9030 = vmatprep.subr.bf16.mxu1 %v10154_v5 }
 0x843   : > { %9021 = vmatmul.mubr.msk.bf16.vlgmr.msra.gmra.mrb[40].mxu1 %vm2321_vm1, %v11154_v39 }
 0x844   : > { %9031 = vmatpush3.bf16.msra.mxu1 %v11251_v32  ;;  %9032 = vmatprep.mubr.msk.bf16.mxu1 %vm10155_vm0, %v10154_v5 }
 0x845   : > { %9042 = vmatprep.subr.bf16.mxu1 %v10154_v5 }
 0x8d7   : > { %v11347_v29 = vpop.f32.mrb[36].mxu0 }
 0x8d8   : > { %v9004_v33 = vpop.f32.mrb[37].mxu0 }
 0x8d9   : > { %v11349_v58 = vpop.f32.mrb[38].mxu0 }
 0x8da   : > { %v9520_v35 = vpack.i.bf16 %v11349_v58, %v11347_v29  ;;  %v9005_v34 = vpop.f32.mrb[39].mxu0 }
 0x8df   : > { %v2839_v2 = vpop.f32.mrb[40].mxu0 }
 0x8e0   : > { %v2840_v45 = vadd.f32 %v2839_v2, %v2309_v25  ;;  %v9016_v31 = vpop.f32.mrb[41].mxu0 }
 0x8e1   : > { %v2842_v12 = vpop.f32.mrb[42].mxu0 }
 0x8e2   : > { %v2843_v10 = vadd.f32 %v2842_v12, %v2310_v41  ;;  %v9017_v8 = vpop.f32.mrb[43].mxu0  ;;  %v2893_v15 = vsel %vm2416_vm2, %v2840_v45, -inf }
 0x8e3   : > { %2894 = vmax.xlane.f32.xlu0 %v2893_v15 }
 0x8e4   : > { %v2896_v36 = vsel %vm2416_vm2, %v2843_v10, -inf }
 0x8e5   : > { %2897 = vmax.xlane.f32.xlu1 %v2896_v36 }
 0x90e   : > { %v11361_v48 = vpop.f32.mrb[36].mxu1 }
 0x90f   : > { %v9010_v9 = vpop.f32.mrb[37].mxu1 }
 0x910   : > { %v11363_v18 = vpop.f32.mrb[38].mxu1 }
 0x911   : > { %v9530_v19 = vpack.i.bf16 %v11363_v18, %v11361_v48  ;;  %v9011_v28 = vpop.f32.mrb[39].mxu1 }
 0x916   : > { %v2886_v38 = vpop.f32.mrb[40].mxu1 }
 0x917   : > { %v2887_v40 = vadd.f32 %v2886_v38, %v2309_v25  ;;  %v9022_v44 = vpop.f32.mrb[41].mxu1 }
 0x918   : > { %v2889_v46 = vpop.f32.mrb[42].mxu1 }
 0x919   : > { %v2890_v30 = vadd.f32 %v2889_v46, %v2310_v41  ;;  %v9023_v47 = vpop.f32.mrb[43].mxu1  ;;  %v2899_v13 = vsel %vm2416_vm2, %v2887_v40, -inf }
 0x91a   : > { %2900 = vmax.xlane.f32.xlu0 %v2899_v13 }
 0x91b   : > { %v2902_v0 = vsel %vm2416_vm2, %v2890_v30, -inf }
 0x91e   : > { %2903 = vmax.xlane.f32.xlu0 %v2902_v0 }
 0x970   : > { %v2895_v51 = vpop.xlane.xlu0 %2894 }
 0x971   : > { %v2905_v57 = vsub.f32 %v2840_v45, %v2895_v51 }
 0x972   : > { %v2898_v60 = vpop.xlane.xlu1 %2897 }
 0x973   : > { %v2909_v61 = vmul.f32 1.442695, %v2905_v57  ;;  %v2906_v62 = vsub.f32 %v2843_v10, %v2898_v60 }
 0x975   : > { %9595 = vpow2.f32 %v2909_v61  ;;  %v2911_v33 = vmul.f32 1.442695, %v2906_v62 }
 0x977   : > { %9597 = vpow2.f32 %v2911_v33 }
 0x97f   : > { %v9596_v34 = vpop.eup %9595 }
 0x980   : > { %v2917_v25 = vsel %vm2416_vm2, %v9596_v34, 0.0 }
 0x981   : > { %v9598_v2 = vpop.eup %9597  ;;  %2918 = vadd.xlane.f32.xlu0 %v2917_v25 }
 0x982   : > { %v2920_v41 = vsel %vm2416_vm2, %v9598_v2, 0.0 }
 0x983   : > { %2921 = vadd.xlane.f32.xlu1 %v2920_v41 }
 0x994   : > { %3028 = vrot.lane.b32.xlu1 %v11134_v52, %s10156_s2 }
 0x997   : > { %3031 = vrot.lane.b32.xlu0 %v11206_v50, %s10156_s2 }
 0x9a7   : > { %v2901_v45 = vpop.xlane.xlu0 %2900 }
 0x9a8   : > { %v2907_v31 = vsub.f32 %v2887_v40, %v2901_v45 }
 0x9aa   : > { %v2913_v12 = vmul.f32 1.442695, %v2907_v31 }
 0x9ab   : > { %v2904_v10 = vpop.xlane.xlu0 %2903 }
 0x9ac   : > { %9599 = vpow2.f32 %v2913_v12  ;;  %v2908_v8 = vsub.f32 %v2890_v30, %v2904_v10  ;;  %v2311_v10 = vld [vmem:[%s13096_s24 + $0x30] sm:$0xff] }
 0x9ae   : > { %v2915_v15 = vmul.f32 1.442695, %v2908_v8 }
 0x9b0   : > { %9601 = vpow2.f32 %v2915_v15  ;;  %v2312_v15 = vld [vmem:[%s13096_s24 + $0x38] sm:$0xff] }
 0x9b6   : > { %v9600_v36 = vpop.eup %9599 }
 0x9b7   : > { %v2923_v9 = vsel %vm2416_vm2, %v9600_v36, 0.0 }
 0x9b8   : > { %2924 = vadd.xlane.f32.xlu1 %v2923_v9 }
 0x9ba   : > { %v9602_v28 = vpop.eup %9601 }
 0x9bb   : > { %v2926_v38 = vsel %vm2416_vm2, %v9602_v28, 0.0 }
 0x9bc   : > { %2927 = vadd.xlane.f32.xlu0 %v2926_v38 }
 0x9c9   : > { %3081 = vrot.lane.b32.xlu1 %v11154_v39, %s10156_s2 }
 0x9d2   : > { %3084 = vrot.lane.b32.xlu0 %v11217_v27, %s10156_s2 }
 0xa0e   : > { %v2919_v52 = vpop.xlane.xlu0 %2918 }
 0xa0f   : > { %9603 = vrcp.f32 %v2919_v52 }
 0xa10   : > { %v2922_v50 = vpop.xlane.xlu1 %2921 }
 0xa11   : > { %9605 = vrcp.f32 %v2922_v50 }
 0xa12   : > { %v3032_v47 = vpop.permute.xlu0 %3031 }
 0xa13   : > { %v3037_v0 = vsel %vm2321_vm1, %v3032_v47, 0 }
 0xa14   : > { %v3029_v39 = vpop.permute.xlu1 %3028 }
 0xa19   : > { %v9604_v40 = vpop.eup %9603 }
 0xa1a   : > { %v2933_v46 = vmul.f32 %v9604_v40, %v9596_v34 }
 0xa1b   : > { %v9606_v44 = vpop.eup %9605 }
 0xa1c   : > { %v2934_v30 = vmul.f32 %v9606_v44, %v9598_v2 }
 0xa1e   : > { %v2937_v13 = vpack.c.bf16 %v2934_v30, %v2933_v46 }
 0xa20   : > { %9027 = vmatmul.mubr.msk.bf16.vlgmr.msra.gmra.mrb[44].mxu0 %vm2416_vm2, %v2937_v13 }
 0xa21   : > { %9037 = vmatpush3.bf16.xpose.msra.mxu0 %v3037_v0  ;;  %9038 = vmatprep.mubr.msk.bf16.mxu0 %vm10155_vm0, %v10154_v5 }
 0xa22   : > { %9048 = vmatprep.subr.bf16.mxu0 %v10154_v5 }
 0xa28   : > { %9039 = vmatmul.mubr.msk.bf16.vlgmr.msra.gmra.mrb[48].mxu0 %vm2321_vm1, %v3029_v39 }
 0xa29   : > { %9050 = vmatprep.mubr.msk.bf16.mxu0 %vm10155_vm0, %v10154_v5 }
 0xa45   : > { %v2925_v27 = vpop.xlane.xlu1 %2924 }
 0xa46   : > { %9607 = vrcp.f32 %v2925_v27 }
 0xa49   : > { %v2928_v51 = vpop.xlane.xlu0 %2927  ;;  %v3082_v2 = vpop.permute.xlu1 %3081 }
 0xa4a   : > { %9609 = vrcp.f32 %v2928_v51 }
 0xa4d   : > { %v3085_v33 = vpop.permute.xlu0 %3084 }
 0xa4e   : > { %v3090_v25 = vsel %vm2321_vm1, %v3085_v33, 0 }
 0xa50   : > { %v9608_v57 = vpop.eup %9607 }
 0xa51   : > { %v2935_v61 = vmul.f32 %v9608_v57, %v9600_v36 }
 0xa54   : > { %v9610_v60 = vpop.eup %9609 }
 0xa55   : > { %v2936_v62 = vmul.f32 %v9610_v60, %v9602_v28 }
 0xa57   : > { %v2938_v34 = vpack.c.bf16 %v2936_v62, %v2935_v61 }
 0xa59   : > { %9033 = vmatmul.mubr.msk.bf16.vlgmr.msra.gmra.mrb[44].mxu1 %vm2416_vm2, %v2938_v34 }
 0xa5a   : > { %9043 = vmatpush3.bf16.xpose.msra.mxu1 %v3090_v25  ;;  %9044 = vmatprep.mubr.msk.bf16.mxu1 %vm10155_vm0, %v10154_v5 }
 0xa5b   : > { %9054 = vmatprep.subr.bf16.mxu1 %v10154_v5 }
 0xa61   : > { %9045 = vmatmul.mubr.msk.bf16.vlgmr.msra.gmra.mrb[48].mxu1 %vm2321_vm1, %v3082_v2 }
 0xa62   : > { %9056 = vmatprep.mubr.msk.bf16.mxu1 %vm10155_vm0, %v10154_v5 }
 0xaf3   : > { %v11397_v41 = vpop.f32.mrb[44].mxu0 }
 0xaf4   : > { %v9028_v45 = vpop.f32.mrb[45].mxu0 }
 0xaf5   : > { %v11399_v31 = vpop.f32.mrb[46].mxu0 }
 0xaf6   : > { %v9029_v12 = vpop.f32.mrb[47].mxu0 }
 0xafb   : > { %v3073_v8 = vpop.f32.mrb[48].mxu0 }
 0xafc   : > { %v3074_v36 = vadd.f32 %v3073_v8, %v2311_v10  ;;  %v9040_v9 = vpop.f32.mrb[49].mxu0 }
 0xafd   : > { %v3076_v28 = vpop.f32.mrb[50].mxu0 }
 0xafe   : > { %v3077_v38 = vadd.f32 %v3076_v28, %v2312_v15  ;;  %v9041_v52 = vpop.f32.mrb[51].mxu0  ;;  %v3133_v50 = vsel %vm2416_vm2, %v3074_v36, -inf }
 0xaff   : > { %3134 = vmax.xlane.f32.xlu1 %v3133_v50 }
 0xb00   : > { %v3136_v40 = vsel %vm2416_vm2, %v3077_v38, -inf }
 0xb01   : > { %3137 = vmax.xlane.f32.xlu0 %v3136_v40 }
 0xb2c   : > { %v11409_v44 = vpop.f32.mrb[44].mxu1 }
 0xb2d   : > { %v9034_v46 = vpop.f32.mrb[45].mxu1 }
 0xb2e   : > { %v11411_v30 = vpop.f32.mrb[46].mxu1 }
 0xb2f   : > { %v9035_v47 = vpop.f32.mrb[47].mxu1 }
 0xb34   : > { %v3126_v13 = vpop.f32.mrb[48].mxu1 }
 0xb35   : > { %v3127_v0 = vadd.f32 %v3126_v13, %v2311_v10  ;;  %v9046_v39 = vpop.f32.mrb[49].mxu1 }
 0xb36   : > { %v3129_v27 = vpop.f32.mrb[50].mxu1 }
 0xb37   : > { %v3130_v51 = vadd.f32 %v3129_v27, %v2312_v15  ;;  %v9047_v57 = vpop.f32.mrb[51].mxu1  ;;  %v3139_v60 = vsel %vm2416_vm2, %v3127_v0, -inf }
 0xb38   : > { %3140 = vmax.xlane.f32.xlu0 %v3139_v60 }
 0xb39   : > { %v3142_v61 = vsel %vm2416_vm2, %v3130_v51, -inf }
 0xb3a   : > { %3143 = vmax.xlane.f32.xlu1 %v3142_v61 }
 0xb8c   : > { %v3135_v62 = vpop.xlane.xlu1 %3134 }
 0xb8d   : > { %v3145_v33 = vsub.f32 %v3074_v36, %v3135_v62  ;;  %v3279_v62 = vsel %vm2321_vm1, %v11204_v49, 0 }
 0xb8e   : > { %v3138_v34 = vpop.xlane.xlu0 %3137 }
 0xb8f   : > { %v3149_v25 = vmul.f32 1.442695, %v3145_v33  ;;  %v3146_v2 = vsub.f32 %v3077_v38, %v3138_v34 }
 0xb91   : > { %9611 = vpow2.f32 %v3149_v25  ;;  %v3151_v45 = vmul.f32 1.442695, %v3146_v2 }
 0xb93   : > { %9613 = vpow2.f32 %v3151_v45 }
 0xb9b   : > { %v9612_v12 = vpop.eup %9611 }
 0xb9c   : > { %v3157_v10 = vsel %vm2416_vm2, %v9612_v12, 0.0 }
 0xb9d   : > { %v9614_v8 = vpop.eup %9613  ;;  %3158 = vadd.xlane.f32.xlu0 %v3157_v10 }
 0xb9e   : > { %v3160_v15 = vsel %vm2416_vm2, %v9614_v8, 0.0 }
 0xb9f   : > { %3161 = vadd.xlane.f32.xlu1 %v3160_v15 }
 0xbb3   : > { %3180 = vrot.lane.b32.xlu0 %v11241_v55, %s10156_s2 }
 0xbc5   : > { %v3141_v9 = vpop.xlane.xlu0 %3140 }
 0xbc6   : > { %v3147_v28 = vsub.f32 %v3127_v0, %v3141_v9 }
 0xbc7   : > { %v3144_v36 = vpop.xlane.xlu1 %3143 }
 0xbc8   : > { %v3153_v52 = vmul.f32 1.442695, %v3147_v28  ;;  %v3148_v50 = vsub.f32 %v3130_v51, %v3144_v36 }
 0xbca   : > { %9615 = vpow2.f32 %v3153_v52  ;;  %v3155_v38 = vmul.f32 1.442695, %v3148_v50  ;;  %v2313_v50 = vld [vmem:[%s13096_s24 + $0x40] sm:$0xff] }
 0xbcc   : > { %9617 = vpow2.f32 %v3155_v38 }
 0xbd4   : > { %v9616_v40 = vpop.eup %9615 }
 0xbd5   : > { %v3163_v46 = vsel %vm2416_vm2, %v9616_v40, 0.0 }
 0xbd6   : > { %v9618_v47 = vpop.eup %9617  ;;  %3164 = vadd.xlane.f32.xlu1 %v3163_v46 }
 0xbd7   : > { %v3166_v13 = vsel %vm2416_vm2, %v9618_v47, 0.0 }
 0xbda   : > { %3167 = vadd.xlane.f32.xlu1 %v3166_v13 }
 0xbeb   : > { %3228 = vrot.lane.b32.xlu1 %v11251_v32, %s10156_s2 }
 0xc2a   : > { %v3159_v55 = vpop.xlane.xlu0 %3158 }
 0xc2b   : > { %9619 = vrcp.f32 %v3159_v55 }
 0xc2c   : > { %v3162_v0 = vpop.xlane.xlu1 %3161 }
 0xc2d   : > { %9621 = vrcp.f32 %v3162_v0 }
 0xc2e   : > { %v3181_v39 = vpop.permute.xlu0 %3180 }
 0xc2f   : > { %9049 = vmatpush3.bf16.msra.mxu0 %v3181_v39 }
 0xc30   : > { %9060 = vmatprep.subr.bf16.mxu0 %v10154_v5 }
 0xc35   : > { %v9620_v27 = vpop.eup %9619 }
 0xc36   : > { %v3173_v57 = vmul.f32 %v9620_v27, %v9612_v12 }
 0xc37   : > { %v9622_v51 = vpop.eup %9621 }
 0xc38   : > { %v3174_v60 = vmul.f32 %v9622_v51, %v9614_v8  ;;  %v3326_v8 = vsel %vm2321_vm1, %v11215_v3, 0 }
 0xc3a   : > { %v3177_v61 = vpack.c.bf16 %v3174_v60, %v3173_v57 }
 0xc3c   : > { %9051 = vmatmul.mubr.msk.bf16.vlgmr.msra.gmra.mrb[52].mxu0 %vm2416_vm2, %v3177_v61 }
 0xc3d   : > { %9061 = vmatpush3.bf16.xpose.msra.mxu0 %v3279_v62  ;;  %9062 = vmatprep.mubr.msk.bf16.mxu0 %vm10155_vm0, %v10154_v5 }
 0xc3e   : > { %9072 = vmatprep.subr.bf16.mxu0 %v10154_v5 }
 0xc44   : > { %9063 = vmatmul.mubr.msk.bf16.vlgmr.msra.gmra.mrb[56].mxu0 %vm2321_vm1, %v11132_v16 }
 0xc45   : > { %9073 = vmatpush3.bf16.msra.mxu0 %v11239_v54  ;;  %9074 = vmatprep.mubr.msk.bf16.mxu0 %vm10155_vm0, %v10154_v5 }
 0xc46   : > { %9084 = vmatprep.subr.bf16.mxu0 %v10154_v5 }
 0xc63   : > { %v3165_v32 = vpop.xlane.xlu1 %3164 }
 0xc64   : > { %9623 = vrcp.f32 %v3165_v32 }
 0xc67   : > { %v3168_v33 = vpop.xlane.xlu1 %3167 }
 0xc68   : > { %9625 = vrcp.f32 %v3168_v33 }
 0xc6b   : > { %v3229_v34 = vpop.permute.xlu1 %3228 }
 0xc6c   : > { %9055 = vmatpush3.bf16.msra.mxu1 %v3229_v34 }
 0xc6d   : > { %9066 = vmatprep.subr.bf16.mxu1 %v10154_v5 }
 0xc6e   : > { %v9624_v25 = vpop.eup %9623 }
 0xc6f   : > { %v3175_v45 = vmul.f32 %v9624_v25, %v9616_v40  ;;  %v2314_v40 = vld [vmem:[%s13096_s24 + $0x48] sm:$0xff] }
 0xc72   : > { %v9626_v2 = vpop.eup %9625 }
 0xc73   : > { %v3176_v12 = vmul.f32 %v9626_v2, %v9618_v47 }
 0xc75   : > { %v3178_v10 = vpack.c.bf16 %v3176_v12, %v3175_v45 }
 0xc77   : > { %9057 = vmatmul.mubr.msk.bf16.vlgmr.msra.gmra.mrb[52].mxu1 %vm2416_vm2, %v3178_v10 }
 0xc78   : > { %9067 = vmatpush3.bf16.xpose.msra.mxu1 %v3326_v8  ;;  %9068 = vmatprep.mubr.msk.bf16.mxu1 %vm10155_vm0, %v10154_v5 }
 0xc79   : > { %9078 = vmatprep.subr.bf16.mxu1 %v10154_v5 }
 0xc7f   : > { %9069 = vmatmul.mubr.msk.bf16.vlgmr.msra.gmra.mrb[56].mxu1 %vm2321_vm1, %v11152_v63 }
 0xc80   : > { %9079 = vmatpush3.bf16.msra.mxu1 %v11249_v26  ;;  %9080 = vmatprep.mubr.msk.bf16.mxu1 %vm10155_vm0, %v10154_v5 }
 0xc81   : > { %9090 = vmatprep.subr.bf16.mxu1 %v10154_v5 }
 0xd0f   : > { %v11449_v15 = vpop.f32.mrb[52].mxu0 }
 0xd10   : > { %v9052_v9 = vpop.f32.mrb[53].mxu0 }
 0xd11   : > { %v11451_v28 = vpop.f32.mrb[54].mxu0 }
 0xd12   : > { %v9515_v36 = vpack.i.bf16 %v11451_v28, %v11449_v15  ;;  %v9053_v52 = vpop.f32.mrb[55].mxu0 }
 0xd17   : > { %v3315_v38 = vpop.f32.mrb[56].mxu0 }
 0xd18   : > { %v3316_v46 = vadd.f32 %v3315_v38, %v2313_v50  ;;  %v9064_v47 = vpop.f32.mrb[57].mxu0 }
 0xd19   : > { %v3318_v13 = vpop.f32.mrb[58].mxu0 }
 0xd1a   : > { %v3319_v55 = vadd.f32 %v3318_v13, %v2314_v40  ;;  %v9065_v0 = vpop.f32.mrb[59].mxu0  ;;  %v3369_v39 = vsel %vm2416_vm2, %v3316_v46, -inf }
 0xd1b   : > { %3370 = vmax.xlane.f32.xlu0 %v3369_v39 }
 0xd1c   : > { %v3372_v27 = vsel %vm2416_vm2, %v3319_v55, -inf }
 0xd1d   : > { %3373 = vmax.xlane.f32.xlu1 %v3372_v27 }
 0xd4a   : > { %v11463_v51 = vpop.f32.mrb[52].mxu1 }
 0xd4b   : > { %v9058_v57 = vpop.f32.mrb[53].mxu1 }
 0xd4c   : > { %v11465_v60 = vpop.f32.mrb[54].mxu1 }
 0xd4d   : > { %v9525_v61 = vpack.i.bf16 %v11465_v60, %v11463_v51  ;;  %v9059_v62 = vpop.f32.mrb[55].mxu1 }
 0xd52   : > { %v3362_v32 = vpop.f32.mrb[56].mxu1 }
 0xd53   : > { %v3363_v33 = vadd.f32 %v3362_v32, %v2313_v50  ;;  %v9070_v34 = vpop.f32.mrb[57].mxu1 }
 0xd54   : > { %v3365_v25 = vpop.f32.mrb[58].mxu1 }
 0xd55   : > { %v3366_v2 = vadd.f32 %v3365_v25, %v2314_v40  ;;  %v9071_v45 = vpop.f32.mrb[59].mxu1  ;;  %v3375_v12 = vsel %vm2416_vm2, %v3363_v33, -inf }
 0xd56   : > { %3376 = vmax.xlane.f32.xlu0 %v3375_v12 }
 0xd57   : > { %v3378_v10 = vsel %vm2416_vm2, %v3366_v2, -inf }
 0xd5a   : > { %3379 = vmax.xlane.f32.xlu0 %v3378_v10 }
 0xda8   : > { %v3371_v8 = vpop.xlane.xlu0 %3370 }
 0xda9   : > { %v3381_v9 = vsub.f32 %v3316_v46, %v3371_v8 }
 0xdaa   : > { %v3374_v52 = vpop.xlane.xlu1 %3373 }
 0xdab   : > { %v3385_v38 = vmul.f32 1.442695, %v3381_v9  ;;  %v3382_v47 = vsub.f32 %v3319_v55, %v3374_v52 }
 0xdad   : > { %9627 = vpow2.f32 %v3385_v38  ;;  %v3387_v13 = vmul.f32 1.442695, %v3382_v47 }
 0xdaf   : > { %9629 = vpow2.f32 %v3387_v13 }
 0xdb7   : > { %v9628_v0 = vpop.eup %9627 }
 0xdb8   : > { %v3393_v50 = vsel %vm2416_vm2, %v9628_v0, 0.0 }
 0xdb9   : > { %v9630_v39 = vpop.eup %9629  ;;  %3394 = vadd.xlane.f32.xlu0 %v3393_v50 }
 0xdba   : > { %v3396_v40 = vsel %vm2416_vm2, %v9630_v39, 0.0 }
 0xdbb   : > { %3397 = vadd.xlane.f32.xlu1 %v3396_v40 }
 0xdcc   : > { %3504 = vrot.lane.b32.xlu1 %v11132_v16, %s10156_s2 }
 0xdcf   : > { %3507 = vrot.lane.b32.xlu0 %v11204_v49, %s10156_s2 }
 0xde3   : > { %v3377_v46 = vpop.xlane.xlu0 %3376 }
 0xde4   : > { %v3383_v27 = vsub.f32 %v3363_v33, %v3377_v46 }
 0xde6   : > { %v3389_v55 = vmul.f32 1.442695, %v3383_v27 }
 0xde7   : > { %v3380_v57 = vpop.xlane.xlu0 %3379 }
 0xde8   : > { %9631 = vpow2.f32 %v3389_v55  ;;  %v3384_v62 = vsub.f32 %v3366_v2, %v3380_v57 }
 0xdea   : > { %v3391_v32 = vmul.f32 1.442695, %v3384_v62 }
 0xdec   : > { %9633 = vpow2.f32 %v3391_v32 }
 0xdf2   : > { %v9632_v34 = vpop.eup %9631 }
 0xdf3   : > { %v3399_v25 = vsel %vm2416_vm2, %v9632_v34, 0.0 }
 0xdf4   : > { %3400 = vadd.xlane.f32.xlu1 %v3399_v25  ;;  %v2315_v25 = vld [vmem:[%s13096_s24 + $0x50] sm:$0xff] }
 0xdf6   : > { %v9634_v45 = vpop.eup %9633 }
 0xdf7   : > { %v3402_v12 = vsel %vm2416_vm2, %v9634_v45, 0.0 }
 0xdf8   : > { %3403 = vadd.xlane.f32.xlu0 %v3402_v12  ;;  %v2316_v12 = vld [vmem:[%s13096_s24 + $0x58] sm:$0xff] }
 0xe05   : > { %3557 = vrot.lane.b32.xlu1 %v11152_v63, %s10156_s2 }
 0xe0e   : > { %3560 = vrot.lane.b32.xlu0 %v11215_v3, %s10156_s2 }
 0xe46   : > { %v3395_v16 = vpop.xlane.xlu0 %3394 }
 0xe47   : > { %9635 = vrcp.f32 %v3395_v16 }
 0xe48   : > { %v3398_v49 = vpop.xlane.xlu1 %3397 }
 0xe49   : > { %9637 = vrcp.f32 %v3398_v49 }
 0xe4a   : > { %v3508_v9 = vpop.permute.xlu0 %3507 }
 0xe4b   : > { %v3513_v38 = vsel %vm2321_vm1, %v3508_v9, 0 }
 0xe4c   : > { %v3505_v63 = vpop.permute.xlu1 %3504 }
 0xe51   : > { %v9636_v33 = vpop.eup %9635 }
 0xe52   : > { %v3409_v10 = vmul.f32 %v9636_v33, %v9628_v0 }
 0xe53   : > { %v9638_v2 = vpop.eup %9637 }
 0xe54   : > { %v3410_v8 = vmul.f32 %v9638_v2, %v9630_v39 }
 0xe56   : > { %v3413_v52 = vpack.c.bf16 %v3410_v8, %v3409_v10 }
 0xe58   : > { %9075 = vmatmul.mubr.msk.bf16.vlgmr.msra.gmra.mrb[60].mxu0 %vm2416_vm2, %v3413_v52 }
 0xe59   : > { %9085 = vmatpush3.bf16.xpose.msra.mxu0 %v3513_v38  ;;  %9086 = vmatprep.mubr.msk.bf16.mxu0 %vm10155_vm0, %v10154_v5 }
 0xe5a   : > { %9096 = vmatprep.subr.bf16.mxu0 %v10154_v5 }
 0xe60   : > { %9087 = vmatmul.mubr.msk.bf16.vlgmr.msra.gmra.mrb[64].mxu0 %vm2321_vm1, %v3505_v63 }
 0xe61   : > { %9098 = vmatprep.mubr.msk.bf16.mxu0 %vm10155_vm0, %v10154_v5 }
 0xe81   : > { %v3401_v3 = vpop.xlane.xlu1 %3400 }
 0xe82   : > { %9639 = vrcp.f32 %v3401_v3 }
 0xe85   : > { %v3404_v47 = vpop.xlane.xlu0 %3403  ;;  %v3558_v55 = vpop.permute.xlu1 %3557 }
 0xe86   : > { %9641 = vrcp.f32 %v3404_v47 }
 0xe89   : > { %v3561_v40 = vpop.permute.xlu0 %3560 }
 0xe8a   : > { %v3566_v27 = vsel %vm2321_vm1, %v3561_v40, 0 }
 0xe8c   : > { %v9640_v13 = vpop.eup %9639 }
 0xe8d   : > { %v3411_v50 = vmul.f32 %v9640_v13, %v9632_v34 }
 0xe90   : > { %v9642_v0 = vpop.eup %9641 }
 0xe91   : > { %v3412_v39 = vmul.f32 %v9642_v0, %v9634_v45 }
 0xe93   : > { %v3414_v46 = vpack.c.bf16 %v3412_v39, %v3411_v50 }
 0xe95   : > { %9081 = vmatmul.mubr.msk.bf16.vlgmr.msra.gmra.mrb[60].mxu1 %vm2416_vm2, %v3414_v46 }
 0xe96   : > { %9091 = vmatpush3.bf16.xpose.msra.mxu1 %v3566_v27  ;;  %9092 = vmatprep.mubr.msk.bf16.mxu1 %vm10155_vm0, %v10154_v5 }
 0xe97   : > { %9102 = vmatprep.subr.bf16.mxu1 %v10154_v5 }
 0xe9d   : > { %9093 = vmatmul.mubr.msk.bf16.vlgmr.msra.gmra.mrb[64].mxu1 %vm2321_vm1, %v3558_v55 }
 0xe9e   : > { %9104 = vmatprep.mubr.msk.bf16.mxu1 %vm10155_vm0, %v10154_v5 }
 0xf2b   : > { %v11499_v57 = vpop.f32.mrb[60].mxu0 }
 0xf2c   : > { %v9076_v62 = vpop.f32.mrb[61].mxu0 }
 0xf2d   : > { %v11501_v32 = vpop.f32.mrb[62].mxu0 }
 0xf2e   : > { %v9077_v34 = vpop.f32.mrb[63].mxu0 }
 0xf33   : > { %v3549_v45 = vpop.f32.mrb[64].mxu0 }
 0xf34   : > { %v3550_v16 = vadd.f32 %v3549_v45, %v2315_v25  ;;  %v9088_v49 = vpop.f32.mrb[65].mxu0 }
 0xf35   : > { %v3552_v33 = vpop.f32.mrb[66].mxu0 }
 0xf36   : > { %v3553_v2 = vadd.f32 %v3552_v33, %v2316_v12  ;;  %v9089_v10 = vpop.f32.mrb[67].mxu0  ;;  %v3609_v8 = vsel %vm2416_vm2, %v3550_v16, -inf }
 0xf37   : > { %3610 = vmax.xlane.f32.xlu1 %v3609_v8 }
 0xf38   : > { %v3612_v9 = vsel %vm2416_vm2, %v3553_v2, -inf }
 0xf39   : > { %3613 = vmax.xlane.f32.xlu0 %v3612_v9 }
 0xf68   : > { %v11511_v52 = vpop.f32.mrb[60].mxu1 }
 0xf69   : > { %v9082_v38 = vpop.f32.mrb[61].mxu1 }
 0xf6a   : > { %v11513_v63 = vpop.f32.mrb[62].mxu1 }
 0xf6b   : > { %v9083_v3 = vpop.f32.mrb[63].mxu1 }
 0xf70   : > { %v3602_v47 = vpop.f32.mrb[64].mxu1 }
 0xf71   : > { %v3603_v13 = vadd.f32 %v3602_v47, %v2315_v25  ;;  %v9094_v0 = vpop.f32.mrb[65].mxu1 }
 0xf72   : > { %v3605_v50 = vpop.f32.mrb[66].mxu1 }
 0xf73   : > { %v3606_v39 = vadd.f32 %v3605_v50, %v2316_v12  ;;  %v9095_v40 = vpop.f32.mrb[67].mxu1  ;;  %v3615_v46 = vsel %vm2416_vm2, %v3603_v13, -inf }
 0xf74   : > { %3616 = vmax.xlane.f32.xlu0 %v3615_v46 }
 0xf75   : > { %v3618_v27 = vsel %vm2416_vm2, %v3606_v39, -inf }
 0xf76   : > { %3619 = vmax.xlane.f32.xlu1 %v3618_v27 }
 0xfc4   : > { %v3611_v55 = vpop.xlane.xlu1 %3610 }
 0xfc5   : > { %v3621_v62 = vsub.f32 %v3550_v16, %v3611_v55 }
 0xfc6   : > { %v3614_v34 = vpop.xlane.xlu0 %3613 }
 0xfc7   : > { %v3625_v45 = vmul.f32 1.442695, %v3621_v62  ;;  %v3622_v49 = vsub.f32 %v3553_v2, %v3614_v34 }
 0xfc9   : > { %9643 = vpow2.f32 %v3625_v45  ;;  %v3627_v33 = vmul.f32 1.442695, %v3622_v49  ;;  %v3755_v49 = vsel %vm2321_vm1, %v11208_v4, 0 }
 0xfcb   : > { %9645 = vpow2.f32 %v3627_v33 }
 0xfd3   : > { %v9644_v10 = vpop.eup %9643 }
 0xfd4   : > { %v3633_v25 = vsel %vm2416_vm2, %v9644_v10, 0.0 }
 0xfd5   : > { %v9646_v8 = vpop.eup %9645  ;;  %3634 = vadd.xlane.f32.xlu0 %v3633_v25 }
 0xfd6   : > { %v3636_v12 = vsel %vm2416_vm2, %v9646_v8, 0.0 }
 0xfd7   : > { %3637 = vadd.xlane.f32.xlu1 %v3636_v12 }
 0xfeb   : > { %3656 = vrot.lane.b32.xlu0 %v11239_v54, %s10156_s2 }
0x1001   : > { %v3617_v9 = vpop.xlane.xlu0 %3616 }
0x1002   : > { %v3623_v38 = vsub.f32 %v3603_v13, %v3617_v9 }
0x1003   : > { %v3620_v16 = vpop.xlane.xlu1 %3619 }
0x1004   : > { %v3629_v3 = vmul.f32 1.442695, %v3623_v38  ;;  %v3624_v47 = vsub.f32 %v3606_v39, %v3620_v16  ;;  %v3802_v16 = vsel %vm2321_vm1, %v11219_v42, 0 }
0x1006   : > { %9647 = vpow2.f32 %v3629_v3  ;;  %v3631_v2 = vmul.f32 1.442695, %v3624_v47 }
0x1008   : > { %9649 = vpow2.f32 %v3631_v2 }
0x1010   : > { %v9648_v0 = vpop.eup %9647 }
0x1011   : > { %v3639_v50 = vsel %vm2416_vm2, %v9648_v0, 0.0 }
0x1012   : > { %v9650_v40 = vpop.eup %9649  ;;  %3640 = vadd.xlane.f32.xlu1 %v3639_v50 }
0x1013   : > { %v3642_v46 = vsel %vm2416_vm2, %v9650_v40, 0.0 }
0x1016   : > { %3643 = vadd.xlane.f32.xlu1 %v3642_v46 }
0x1027   : > { %3704 = vrot.lane.b32.xlu1 %v11249_v26, %s10156_s2 }
0x1062   : > { %v3635_v54 = vpop.xlane.xlu0 %3634 }
0x1063   : > { %9651 = vrcp.f32 %v3635_v54  ;;  %v2318_v54 = vld [vmem:[%s13096_s24 + $0x68] sm:$0xff] }
0x1064   : > { %v3638_v13 = vpop.xlane.xlu1 %3637 }
0x1065   : > { %9653 = vrcp.f32 %v3638_v13 }
0x1066   : > { %v3657_v27 = vpop.permute.xlu0 %3656 }
0x1067   : > { %9097 = vmatpush3.bf16.msra.mxu0 %v3657_v27 }
0x1068   : > { %9108 = vmatprep.subr.bf16.mxu0 %v10154_v5 }
0x106d   : > { %v9652_v39 = vpop.eup %9651 }
0x106e   : > { %v3649_v62 = vmul.f32 %v9652_v39, %v9644_v10 }
0x106f   : > { %v9654_v55 = vpop.eup %9653 }
0x1070   : > { %v3650_v34 = vmul.f32 %v9654_v55, %v9646_v8 }
0x1072   : > { %v3653_v45 = vpack.c.bf16 %v3650_v34, %v3649_v62 }
0x1074   : > { %9099 = vmatmul.mubr.msk.bf16.vlgmr.msra.gmra.mrb[68].mxu0 %vm2416_vm2, %v3653_v45 }
0x1075   : > { %9109 = vmatpush3.bf16.xpose.msra.mxu0 %v3755_v49  ;;  %9110 = vmatprep.mubr.msk.bf16.mxu0 %vm10155_vm0, %v10154_v5 }
0x1076   : > { %9120 = vmatprep.subr.bf16.mxu0 %v10154_v5 }
0x107c   : > { %9111 = vmatmul.mubr.msk.bf16.vlgmr.msra.gmra.mrb[72].mxu0 %vm2321_vm1, %v11136_v53 }
0x107d   : > { %9121 = vmatpush3.bf16.msra.mxu0 %v11243_v56  ;;  %9122 = vmatprep.mubr.msk.bf16.mxu0 %vm10155_vm0, %v10154_v5 }
0x107e   : > { %9132 = vmatprep.subr.bf16.mxu0 %v10154_v5 }
0x109f   : > { %v3641_v26 = vpop.xlane.xlu1 %3640 }
0x10a0   : > { %9655 = vrcp.f32 %v3641_v26 }
0x10a3   : > { %v3644_v33 = vpop.xlane.xlu1 %3643 }
0x10a4   : > { %9657 = vrcp.f32 %v3644_v33 }
0x10a7   : > { %v3705_v10 = vpop.permute.xlu1 %3704 }
0x10a8   : > { %9103 = vmatpush3.bf16.msra.mxu1 %v3705_v10 }
0x10a9   : > { %9114 = vmatprep.subr.bf16.mxu1 %v10154_v5 }
0x10aa   : > { %v9656_v25 = vpop.eup %9655 }
0x10ab   : > { %v3651_v12 = vmul.f32 %v9656_v25, %v9648_v0 }
0x10ae   : > { %v9658_v8 = vpop.eup %9657 }
0x10af   : > { %v3652_v9 = vmul.f32 %v9658_v8, %v9650_v40  ;;  %v2317_v40 = vld [vmem:[%s13096_s24 + $0x60] sm:$0xff] }
0x10b1   : > { %v3654_v38 = vpack.c.bf16 %v3652_v9, %v3651_v12 }
0x10b3   : > { %9105 = vmatmul.mubr.msk.bf16.vlgmr.msra.gmra.mrb[68].mxu1 %vm2416_vm2, %v3654_v38 }
0x10b4   : > { %9115 = vmatpush3.bf16.xpose.msra.mxu1 %v3802_v16  ;;  %9116 = vmatprep.mubr.msk.bf16.mxu1 %vm10155_vm0, %v10154_v5 }
0x10b5   : > { %9126 = vmatprep.subr.bf16.mxu1 %v10154_v5 }
0x10bb   : > { %9117 = vmatmul.mubr.msk.bf16.vlgmr.msra.gmra.mrb[72].mxu1 %vm2321_vm1, %v11156_v43 }
0x10bc   : > { %9127 = vmatpush3.bf16.msra.mxu1 %v11253_v11  ;;  %9128 = vmatprep.mubr.msk.bf16.mxu1 %vm10155_vm0, %v10154_v5 }
0x10bd   : > { %9138 = vmatprep.subr.bf16.mxu1 %v10154_v5 }
0x1147   : > { %v11551_v3 = vpop.f32.mrb[68].mxu0 }
0x1148   : > { %v9100_v47 = vpop.f32.mrb[69].mxu0 }
0x1149   : > { %v11553_v2 = vpop.f32.mrb[70].mxu0 }
0x114a   : > { %v9540_v0 = vpack.i.bf16 %v11553_v2, %v11551_v3  ;;  %v9101_v50 = vpop.f32.mrb[71].mxu0 }
0x114f   : > { %v3791_v46 = vpop.f32.mrb[72].mxu0 }
0x1150   : > { %v3792_v13 = vadd.f32 %v3791_v46, %v2317_v40  ;;  %v9112_v27 = vpop.f32.mrb[73].mxu0 }
0x1151   : > { %v3794_v39 = vpop.f32.mrb[74].mxu0 }
0x1152   : > { %v3795_v55 = vadd.f32 %v3794_v39, %v2318_v54  ;;  %v9113_v62 = vpop.f32.mrb[75].mxu0  ;;  %v3845_v34 = vsel %vm2416_vm2, %v3792_v13, -inf }
0x1153   : > { %3846 = vmax.xlane.f32.xlu0 %v3845_v34 }
0x1154   : > { %v3848_v45 = vsel %vm2416_vm2, %v3795_v55, -inf }
0x1155   : > { %3849 = vmax.xlane.f32.xlu1 %v3848_v45 }
0x1186   : > { %v11565_v49 = vpop.f32.mrb[68].mxu1 }
0x1187   : > { %v9106_v26 = vpop.f32.mrb[69].mxu1 }
0x1188   : > { %v11567_v33 = vpop.f32.mrb[70].mxu1 }
0x1189   : > { %v9550_v10 = vpack.i.bf16 %v11567_v33, %v11565_v49  ;;  %v9107_v25 = vpop.f32.mrb[71].mxu1  ;;  %v4315_v49 = vld [vmem:[%s10665_s23] sm:$0xff] }
0x118e   : > { %v3838_v8 = vpop.f32.mrb[72].mxu1 }
0x118f   : > { %v3839_v12 = vadd.f32 %v3838_v8, %v2317_v40  ;;  %v9118_v9 = vpop.f32.mrb[73].mxu1 }
0x1190   : > { %v3841_v38 = vpop.f32.mrb[74].mxu1 }
0x1191   : > { %v3842_v16 = vadd.f32 %v3841_v38, %v2318_v54  ;;  %v9119_v47 = vpop.f32.mrb[75].mxu1  ;;  %v3851_v50 = vsel %vm2416_vm2, %v3839_v12, -inf }
0x1192   : > { %3852 = vmax.xlane.f32.xlu0 %v3851_v50 }
0x1193   : > { %v3854_v46 = vsel %vm2416_vm2, %v3842_v16, -inf }
0x1196   : > { %3855 = vmax.xlane.f32.xlu0 %v3854_v46 }
0x11e0   : > { %v3847_v27 = vpop.xlane.xlu0 %3846 }
0x11e1   : > { %v3857_v39 = vsub.f32 %v3792_v13, %v3847_v27 }
0x11e2   : > { %v3850_v62 = vpop.xlane.xlu1 %3849 }
0x11e3   : > { %v3861_v34 = vmul.f32 1.442695, %v3857_v39  ;;  %v3858_v45 = vsub.f32 %v3795_v55, %v3850_v62 }
0x11e5   : > { %9659 = vpow2.f32 %v3861_v34  ;;  %v3863_v26 = vmul.f32 1.442695, %v3858_v45 }
0x11e7   : > { %9661 = vpow2.f32 %v3863_v26 }
0x11ef   : > { %v9660_v25 = vpop.eup %9659 }
0x11f0   : > { %v3869_v40 = vsel %vm2416_vm2, %v9660_v25, 0.0 }
0x11f1   : > { %v9662_v8 = vpop.eup %9661  ;;  %3870 = vadd.xlane.f32.xlu0 %v3869_v40 }
0x11f2   : > { %v3872_v54 = vsel %vm2416_vm2, %v9662_v8, 0.0 }
0x11f3   : > { %3873 = vadd.xlane.f32.xlu1 %v3872_v54 }
0x1204   : > { %3980 = vrot.lane.b32.xlu1 %v11136_v53, %s10156_s2 }
0x1207   : > { %3983 = vrot.lane.b32.xlu0 %v11208_v4, %s10156_s2 }
0x121f   : > { %v3853_v13 = vpop.xlane.xlu0 %3852 }
0x1220   : > { %v3859_v9 = vsub.f32 %v3839_v12, %v3853_v13 }
0x1222   : > { %v3865_v55 = vmul.f32 1.442695, %v3859_v9 }
0x1223   : > { %v3856_v38 = vpop.xlane.xlu0 %3855 }
0x1224   : > { %9663 = vpow2.f32 %v3865_v55  ;;  %v3860_v47 = vsub.f32 %v3842_v16, %v3856_v38 }
0x1226   : > { %v3867_v50 = vmul.f32 1.442695, %v3860_v47 }
0x1228   : > { %9665 = vpow2.f32 %v3867_v50 }
0x122e   : > { %v9664_v46 = vpop.eup %9663 }
0x122f   : > { %v3875_v27 = vsel %vm2416_vm2, %v9664_v46, 0.0 }
0x1230   : > { %3876 = vadd.xlane.f32.xlu1 %v3875_v27 }
0x1232   : > { %v9666_v39 = vpop.eup %9665 }
0x1233   : > { %v3878_v62 = vsel %vm2416_vm2, %v9666_v39, 0.0 }
0x1234   : > { %3879 = vadd.xlane.f32.xlu0 %v3878_v62 }
0x1241   : > { %4033 = vrot.lane.b32.xlu1 %v11156_v43, %s10156_s2 }
0x124a   : > { %4036 = vrot.lane.b32.xlu0 %v11219_v42, %s10156_s2 }
0x127e   : > { %v3871_v53 = vpop.xlane.xlu0 %3870 }
0x127f   : > { %9667 = vrcp.f32 %v3871_v53 }
0x1280   : > { %v3874_v4 = vpop.xlane.xlu1 %3873 }
0x1281   : > { %9669 = vrcp.f32 %v3874_v4  ;;  %v2319_v4 = vld [vmem:[%s13096_s24 + $0x70] sm:$0xff] }
0x1282   : > { %v3984_v26 = vpop.permute.xlu0 %3983 }
0x1283   : > { %v3989_v54 = vsel %vm2321_vm1, %v3984_v26, 0 }
0x1284   : > { %v3981_v43 = vpop.permute.xlu1 %3980 }
0x1289   : > { %v9668_v12 = vpop.eup %9667 }
0x128a   : > { %v3885_v34 = vmul.f32 %v9668_v12, %v9660_v25 }
0x128b   : > { %v9670_v16 = vpop.eup %9669 }
0x128c   : > { %v3886_v45 = vmul.f32 %v9670_v16, %v9662_v8  ;;  %v2320_v16 = vld [vmem:[%s13096_s24 + $0x78] sm:$0xff] }
0x128e   : > { %v3889_v40 = vpack.c.bf16 %v3886_v45, %v3885_v34 }
0x1290   : > { %9123 = vmatmul.mubr.msk.bf16.vlgmr.msra.gmra.mrb[76].mxu0 %vm2416_vm2, %v3889_v40 }
0x1291   : > { %9133 = vmatpush3.bf16.xpose.msra.mxu0 %v3989_v54  ;;  %9134 = vmatprep.mubr.msk.bf16.mxu0 %vm10155_vm0, %v10154_v5 }
0x1292   : > { %9144 = vmatprep.subr.bf16.mxu0 %v10154_v5 }
0x1298   : > { %9135 = vmatmul.mubr.msk.bf16.vlgmr.msra.gmra.mrb[80].mxu0 %vm2321_vm1, %v3981_v43 }
0x1299   : > { %9146 = vmatprep.mubr.msk.bf16.mxu0 %vm10155_vm0, %v10154_v5 }
0x12bd   : > { %v3877_v42 = vpop.xlane.xlu1 %3876 }
0x12be   : > { %9671 = vrcp.f32 %v3877_v42 }
0x12c1   : > { %v3880_v25 = vpop.xlane.xlu0 %3879  ;;  %v4034_v27 = vpop.permute.xlu1 %4033 }
0x12c2   : > { %9673 = vrcp.f32 %v3880_v25 }
0x12c5   : > { %v4037_v38 = vpop.permute.xlu0 %4036 }
0x12c6   : > { %v4042_v50 = vsel %vm2321_vm1, %v4037_v38, 0 }
0x12c8   : > { %v9672_v8 = vpop.eup %9671 }
0x12c9   : > { %v3887_v9 = vmul.f32 %v9672_v8, %v9664_v46 }
0x12cc   : > { %v9674_v13 = vpop.eup %9673 }
0x12cd   : > { %v3888_v55 = vmul.f32 %v9674_v13, %v9666_v39 }
0x12cf   : > { %v3890_v47 = vpack.c.bf16 %v3888_v55, %v3887_v9 }
0x12d1   : > { %9129 = vmatmul.mubr.msk.bf16.vlgmr.msra.gmra.mrb[76].mxu1 %vm2416_vm2, %v3890_v47 }
0x12d2   : > { %9139 = vmatpush3.bf16.xpose.msra.mxu1 %v4042_v50  ;;  %9140 = vmatprep.mubr.msk.bf16.mxu1 %vm10155_vm0, %v10154_v5 }
0x12d3   : > { %9150 = vmatprep.subr.bf16.mxu1 %v10154_v5 }
0x12d9   : > { %9141 = vmatmul.mubr.msk.bf16.vlgmr.msra.gmra.mrb[80].mxu1 %vm2321_vm1, %v4034_v27 }
0x12da   : > { %9152 = vmatprep.mubr.msk.bf16.mxu1 %vm10155_vm0, %v10154_v5 }
0x1363   : > { %v11601_v46 = vpop.f32.mrb[76].mxu0 }
0x1364   : > { %v9124_v39 = vpop.f32.mrb[77].mxu0 }
0x1365   : > { %v11603_v62 = vpop.f32.mrb[78].mxu0 }
0x1366   : > { %v9125_v53 = vpop.f32.mrb[79].mxu0 }
0x136b   : > { %v4025_v12 = vpop.f32.mrb[80].mxu0 }
0x136c   : > { %v4026_v34 = vadd.f32 %v4025_v12, %v2319_v4  ;;  %v9136_v45 = vpop.f32.mrb[81].mxu0 }
0x136d   : > { %v4028_v26 = vpop.f32.mrb[82].mxu0 }
0x136e   : > { %v4029_v40 = vadd.f32 %v4028_v26, %v2320_v16  ;;  %v9137_v5 = vpop.f32.mrb[83].mxu0  ;;  %v4085_v54 = vsel %vm2416_vm2, %v4026_v34, -inf }
0x136f   : > { %4086 = vmax.xlane.f32.xlu1 %v4085_v54 }
0x1370   : > { %v4088_v43 = vsel %vm2416_vm2, %v4029_v40, -inf }
0x1371   : > { %4089 = vmax.xlane.f32.xlu0 %v4088_v43 }
0x13a4   : > { %v11613_v42 = vpop.f32.mrb[76].mxu1 }
0x13a5   : > { %v9130_v25 = vpop.f32.mrb[77].mxu1 }
0x13a6   : > { %v11615_v8 = vpop.f32.mrb[78].mxu1 }
0x13a7   : > { %v9131_v13 = vpop.f32.mrb[79].mxu1 }
0x13ac   : > { %v4078_v9 = vpop.f32.mrb[80].mxu1 }
0x13ad   : > { %v4079_v55 = vadd.f32 %v4078_v9, %v2319_v4  ;;  %v9142_v38 = vpop.f32.mrb[81].mxu1 }
0x13ae   : > { %v4081_v47 = vpop.f32.mrb[82].mxu1 }
0x13af   : > { %v4082_v50 = vadd.f32 %v4081_v47, %v2320_v16  ;;  %v9143_v27 = vpop.f32.mrb[83].mxu1  ;;  %v4091_v39 = vsel %vm2416_vm2, %v4079_v55, -inf }
0x13b0   : > { %4092 = vmax.xlane.f32.xlu0 %v4091_v39 }
0x13b1   : > { %v4094_v53 = vsel %vm2416_vm2, %v4082_v50, -inf }
0x13b2   : > { %4095 = vmax.xlane.f32.xlu1 %v4094_v53  ;;  %v4379_v53 = vunpack.c.l.s8.bf16 %v4315_v49 }
0x13fc   : > { %v4087_v12 = vpop.xlane.xlu1 %4086 }
0x13fd   : > { %v4097_v45 = vsub.f32 %v4026_v34, %v4087_v12 }
0x13fe   : > { %v4090_v26 = vpop.xlane.xlu0 %4089 }
0x13ff   : > { %v4101_v5 = vmul.f32 1.442695, %v4097_v45  ;;  %v4098_v54 = vsub.f32 %v4029_v40, %v4090_v26 }
0x1401   : > { %9675 = vpow2.f32 %v4101_v5  ;;  %v4103_v43 = vmul.f32 1.442695, %v4098_v54  ;;  %v4320_v5 = vld [vmem:[%s10665_s23 + $0x28] sm:$0xff]  ;;  %v4383_v54 = vunpack.c.h.s8.bf16 %v4315_v49 }
0x1403   : > { %9677 = vpow2.f32 %v4103_v43  ;;  %v4388_v43 = vunpack.c.l.s8.bf16 %v4320_v5 }
0x140b   : > { %v9676_v25 = vpop.eup %9675 }
0x140c   : > { %v4109_v4 = vsel %vm2416_vm2, %v9676_v25, 0.0 }
0x140d   : > { %v9678_v13 = vpop.eup %9677  ;;  %4110 = vadd.xlane.f32.xlu0 %v4109_v4  ;;  %v4324_v4 = vld [vmem:[%s10665_s23 + $0x48] sm:$0xff] }
0x140e   : > { %v4112_v16 = vsel %vm2416_vm2, %v9678_v13, 0.0 }
0x140f   : > { %4113 = vadd.xlane.f32.xlu1 %v4112_v16  ;;  %v4396_v16 = vunpack.c.l.s8.bf16 %v4324_v4 }
0x1423   : > { %4132 = vrot.lane.b32.xlu0 %v11243_v56, %s10156_s2 }
0x1427   : > { %9516 = vrot.lane.b32.xlu0 %v9515_v36, %s10156_s2 }
0x142b   : > { %9526 = vrot.lane.b32.xlu0 %v9525_v61, %s10156_s2 }
0x143d   : > { %v4093_v34 = vpop.xlane.xlu0 %4092 }
0x143e   : > { %v4099_v40 = vsub.f32 %v4079_v55, %v4093_v34  ;;  %v4323_v34 = vld [vmem:[%s10665_s23 + $0x40] sm:$0xff] }
0x143f   : > { %v4096_v9 = vpop.xlane.xlu1 %4095 }
0x1440   : > { %v4105_v38 = vmul.f32 1.442695, %v4099_v40  ;;  %v4100_v47 = vsub.f32 %v4082_v50, %v4096_v9  ;;  %v4395_v40 = vunpack.c.l.s8.bf16 %v4323_v34  ;;  %v4400_v9 = vunpack.c.h.s8.bf16 %v4324_v4 }
0x1442   : > { %9679 = vpow2.f32 %v4105_v38  ;;  %v4107_v27 = vmul.f32 1.442695, %v4100_v47  ;;  %v4328_v38 = vld [vmem:[%s10665_s23 + $0x68] sm:$0xff]  ;;  %v4399_v47 = vunpack.c.h.s8.bf16 %v4323_v34 }
0x1444   : > { %9681 = vpow2.f32 %v4107_v27  ;;  %v4404_v27 = vunpack.c.l.s8.bf16 %v4328_v38 }
0x144c   : > { %v11631_v56 = vpop.eup %9679 }
0x144d   : > { %v4115_v15 = vsel %vm2416_vm2, %v11631_v56, 0.0 }
0x144e   : > { %v11635_v28 = vpop.eup %9681  ;;  %4116 = vadd.xlane.f32.xlu1 %v4115_v15  ;;  %v4327_v15 = vld [vmem:[%s10665_s23 + $0x60] sm:$0xff] }
0x144f   : > { %v4118_v36 = vsel %vm2416_vm2, %v11635_v28, 0.0 }
0x1452   : > { %4119 = vadd.xlane.f32.xlu1 %v4118_v36  ;;  %v4403_v36 = vunpack.c.l.s8.bf16 %v4327_v15 }
0x1463   : > { %4180 = vrot.lane.b32.xlu1 %v11253_v11, %s10156_s2  ;;  %v4316_v11 = vld [vmem:[%s10665_s23 + $0x8] sm:$0xff] }
0x1464   : > { %v4380_v58 = vunpack.c.l.s8.bf16 %v4316_v11 }
0x1467   : > { %9521 = vrot.lane.b32.xlu1 %v9520_v35, %s10156_s2 }
0x146b   : > { %9531 = vrot.lane.b32.xlu1 %v9530_v19, %s10156_s2 }
0x146f   : > { %9541 = vrot.lane.b32.xlu1 %v9540_v0, %s10156_s2 }
0x1473   : > { %9551 = vrot.lane.b32.xlu1 %v9550_v10, %s10156_s2 }
0x149a   : > { %v4111_v51 = vpop.xlane.xlu0 %4110 }
0x149b   : > { %9683 = vrcp.f32 %v4111_v51  ;;  %v4332_v51 = vld [vmem:[%s10665_s23 + $0x88] sm:$0xff] }
0x149c   : > { %v4114_v29 = vpop.xlane.xlu1 %4113 }
0x149d   : > { %9685 = vrcp.f32 %v4114_v29  ;;  %v4407_v29 = vunpack.c.h.s8.bf16 %v4327_v15 }
0x149e   : > { %v4133_v35 = vpop.permute.xlu0 %4132 }
0x149f   : > { %9145 = vmatpush3.bf16.msra.mxu0 %v4133_v35  ;;  %v4331_v35 = vld [vmem:[%s10665_s23 + $0x80] sm:$0xff] }
0x14a0   : > { %4507 = vmatprep.subr.bf16.mxu0 %v4380_v58  ;;  %v4412_v58 = vunpack.c.l.s8.bf16 %v4332_v51 }
0x14a2   : > { %v9517_v48 = vpop.permute.xlu0 %9516 }
0x14a3   : > { %v9519_v18 = vunpack.i.h.bf16 %v9517_v48  ;;  %v9518_v19 = vunpack.i.l.bf16 %v9517_v48  ;;  %v4411_v48 = vunpack.c.l.s8.bf16 %v4331_v35 }
0x14a5   : > { %v9684_v60 = vpop.eup %9683  ;;  %v4295_v61 = vsel %vm2321_vm1, %v11397_v41, %v9518_v19  ;;  %v4296_v3 = vsel %vm2321_vm1, %v11399_v31, %v9519_v18  ;;  %v4384_v31 = vunpack.c.h.s8.bf16 %v4316_v11  ;;  %v4408_v11 = vunpack.c.h.s8.bf16 %v4328_v38  ;;  %v4336_v19 = vld [vmem:[%s10665_s23 + $0xa8] sm:$0xff]  ;;  %v4317_v38 = vld [vmem:[%s10665_s23 + $0x10] sm:$0xff] }
0x14a6   : > { %v9527_v2 = vpop.permute.xlu0 %9526  ;;  %v11662_v0 = vpack.c.bf16 %v4296_v3, %v4295_v61  ;;  %v4125_v50 = vmul.f32 %v9684_v60, %v9676_v25  ;;  %v4416_v18 = vunpack.c.h.s8.bf16 %v4332_v51  ;;  %v4415_v60 = vunpack.c.h.s8.bf16 %v4331_v35  ;;  %v4335_v3 = vld [vmem:[%s10665_s23 + $0xa0] sm:$0xff] }
0x14a7   : > { %v9686_v33 = vpop.eup %9685  ;;  %v9529_v10 = vunpack.i.h.bf16 %v9527_v2  ;;  %v9528_v55 = vunpack.i.l.bf16 %v9527_v2  ;;  %v4420_v61 = vunpack.c.l.s8.bf16 %v4336_v19  ;;  %v4419_v2 = vunpack.c.l.s8.bf16 %v4335_v3 }
0x14a8   : > { %v4126_v39 = vmul.f32 %v9686_v33, %v9678_v13  ;;  %v4424_v49 = vunpack.c.h.s8.bf16 %v4336_v19  ;;  %v4340_v33 = vld [vmem:[%s10665_s23 + $0xc8] sm:$0xff] }
0x14a9   : > { %v4297_v12 = vsel %vm2321_vm1, %v11409_v44, %v9528_v55  ;;  %v4298_v41 = vsel %vm2321_vm1, %v11411_v30, %v9529_v10  ;;  %v4319_v44 = vld [vmem:[%s10665_s23 + $0x20] sm:$0xff]  ;;  %v4392_v30 = vunpack.c.h.s8.bf16 %v4320_v5  ;;  %v4423_v10 = vunpack.c.h.s8.bf16 %v4335_v3 }
0x14aa   : > { %v4129_v45 = vpack.c.bf16 %v4126_v39, %v4125_v50  ;;  %v11669_v26 = vpack.c.bf16 %v4298_v41, %v4297_v12  ;;  %v4387_v25 = vunpack.c.l.s8.bf16 %v4319_v44  ;;  %v4391_v13 = vunpack.c.h.s8.bf16 %v4319_v44  ;;  %v4339_v50 = vld [vmem:[%s10665_s23 + $0xc0] sm:$0xff]  ;;  %v4344_v41 = vld [vmem:[%s10665_s23 + $0xe8] sm:$0xff] }
0x14ab   : > { %v4428_v55 = vunpack.c.l.s8.bf16 %v4340_v33  ;;  %v4427_v39 = vunpack.c.l.s8.bf16 %v4339_v50  ;;  %v4343_v5 = vld [vmem:[%s10665_s23 + $0xe0] sm:$0xff] }
0x14ac   : > { %9147 = vmatmul.mubr.msk.bf16.vlgmr.msra.gmra.mrb[84].mxu0 %vm2416_vm2, %v4129_v45  ;;  %v4431_v45 = vunpack.c.h.s8.bf16 %v4339_v50  ;;  %v4435_v44 = vunpack.c.l.s8.bf16 %v4343_v5 }
0x14ad   : > { %4539 = vmatprep.mubr.bf16.mxu0 %v11662_v0  ;;  %4508 = vmatpush1.bf16.msra.mxu0 %v4379_v53  ;;  %v4432_v53 = vunpack.c.h.s8.bf16 %v4340_v33  ;;  %v4321_v33 = vld [vmem:[%s10665_s23 + $0x30] sm:$0xff] }
0x14ae   : > { %4509 = vmatprep.subr.bf16.mxu0 %v4384_v31  ;;  %v4436_v31 = vunpack.c.l.s8.bf16 %v4344_v41 }
0x14b1   : > { %4510 = vmatpush1.bf16.msra.mxu0 %v4383_v54  ;;  %v4318_v54 = vld [vmem:[%s10665_s23 + $0x18] sm:$0xff] }
0x14b2   : > { %4511 = vmatprep.subr.bf16.mxu0 %v4388_v43  ;;  %v4386_v19 = vunpack.c.h.s8.bf16 %v4318_v54 }
0x14b5   : > { %4512 = vmatpush1.bf16.msra.mxu0 %v4387_v25  ;;  %v4382_v25 = vunpack.c.l.s8.bf16 %v4318_v54 }
0x14b6   : > { %4513 = vmatprep.subr.bf16.mxu0 %v4392_v30  ;;  %v4440_v30 = vunpack.c.h.s8.bf16 %v4344_v41 }
0x14b9   : > { %4514 = vmatpush1.bf16.msra.mxu0 %v4391_v13  ;;  %v4439_v13 = vunpack.c.h.s8.bf16 %v4343_v5  ;;  %v4325_v5 = vld [vmem:[%s10665_s23 + $0x50] sm:$0xff] }
0x14ba   : > { %4515 = vmatprep.subr.bf16.mxu0 %v4396_v16  ;;  %v4397_v54 = vunpack.c.l.s8.bf16 %v4325_v5 }
0x14bd   : > { %4516 = vmatpush1.bf16.msra.mxu0 %v4395_v40 }
0x14be   : > { %4517 = vmatprep.subr.bf16.mxu0 %v4400_v9 }
0x14c1   : > { %4518 = vmatpush1.bf16.msra.mxu0 %v4399_v47 }
0x14c2   : > { %4519 = vmatprep.subr.bf16.mxu0 %v4404_v27 }
0x14c5   : > { %4520 = vmatpush1.bf16.msra.mxu0 %v4403_v36 }
0x14c6   : > { %4521 = vmatprep.subr.bf16.mxu0 %v4408_v11 }
0x14c9   : > { %4522 = vmatpush1.bf16.msra.mxu0 %v4407_v29 }
0x14ca   : > { %4523 = vmatprep.subr.bf16.mxu0 %v4412_v58 }
0x14cd   : > { %4524 = vmatpush1.bf16.msra.mxu0 %v4411_v48  ;;  %v4381_v48 = vunpack.c.l.s8.bf16 %v4317_v38 }
0x14ce   : > { %4525 = vmatprep.subr.bf16.mxu0 %v4416_v18 }
0x14d1   : > { %4526 = vmatpush1.bf16.msra.mxu0 %v4415_v60 }
0x14d2   : > { %4527 = vmatprep.subr.bf16.mxu0 %v4420_v61 }
0x14d5   : > { %4528 = vmatpush1.bf16.msra.mxu0 %v4419_v2  ;;  %v4385_v2 = vunpack.c.h.s8.bf16 %v4317_v38  ;;  %v4334_v38 = vld [vmem:[%s10665_s23 + $0x98] sm:$0xff] }
0x14d6   : > { %4529 = vmatprep.subr.bf16.mxu0 %v4424_v49 }
0x14d9   : > { %4530 = vmatpush1.bf16.msra.mxu0 %v4423_v10 }
0x14da   : > { %4531 = vmatprep.subr.bf16.mxu0 %v4428_v55 }
0x14db   : > { %v4117_v12 = vpop.xlane.xlu1 %4116 }
0x14dc   : > { %9687 = vrcp.f32 %v4117_v12  ;;  %v4326_v12 = vld [vmem:[%s10665_s23 + $0x58] sm:$0xff] }
0x14dd   : > { %4532 = vmatpush1.bf16.msra.mxu0 %v4427_v39 }
0x14de   : > { %4533 = vmatprep.subr.bf16.mxu0 %v4432_v53  ;;  %v4389_v53 = vunpack.c.l.s8.bf16 %v4321_v33 }
0x14df   : > { %v4120_v43 = vpop.xlane.xlu1 %4119 }
0x14e0   : > { %9689 = vrcp.f32 %v4120_v43  ;;  %v4402_v43 = vunpack.c.h.s8.bf16 %v4326_v12 }
0x14e1   : > { %4534 = vmatpush1.bf16.msra.mxu0 %v4431_v45  ;;  %v4393_v45 = vunpack.c.h.s8.bf16 %v4321_v33 }
0x14e2   : > { %4535 = vmatprep.subr.bf16.mxu0 %v4436_v31  ;;  %v4398_v31 = vunpack.c.l.s8.bf16 %v4326_v12 }
0x14e3   : > { %v4181_v4 = vpop.permute.xlu1 %4180 }
0x14e4   : > { %9151 = vmatpush3.bf16.msra.mxu1 %v4181_v4  ;;  %v4348_v4 = vld [vmem:[%s10665_s23 + $0x108] sm:$0xff] }
0x14e5   : > { %4536 = vmatpush1.bf16.msra.mxu0 %v4435_v44  ;;  %4613 = vmatprep.subr.bf16.mxu1 %v4382_v25  ;;  %v4330_v44 = vld [vmem:[%s10665_s23 + $0x78] sm:$0xff]  ;;  %v4329_v25 = vld [vmem:[%s10665_s23 + $0x70] sm:$0xff] }
0x14e6   : > { %4537 = vmatprep.subr.bf16.mxu0 %v4440_v30  ;;  %v9688_v34 = vpop.eup %9687  ;;  %v4405_v30 = vunpack.c.l.s8.bf16 %v4329_v25 }
0x14e7   : > { %v9522_v16 = vpop.permute.xlu1 %9521  ;;  %v4127_v36 = vmul.f32 %v9688_v34, %v11631_v56  ;;  %v4322_v56 = vld [vmem:[%s10665_s23 + $0x38] sm:$0xff]  ;;  %v4444_v34 = vunpack.c.l.s8.bf16 %v4348_v4 }
0x14e8   : > { %v9524_v40 = vunpack.i.h.bf16 %v9522_v16  ;;  %v9523_v9 = vunpack.i.l.bf16 %v9522_v16  ;;  %v4390_v49 = vunpack.c.l.s8.bf16 %v4322_v56  ;;  %v4410_v16 = vunpack.c.h.s8.bf16 %v4330_v44 }
0x14e9   : > { %4538 = vmatpush1.bf16.msra.mxu0 %v4439_v13  ;;  %v11728_v13 = vld [vmem:[%s10665_s23 + $0x100] sm:$0xff] }
0x14ea   : > { %v9690_v47 = vpop.eup %9689  ;;  %v4292_v27 = vsel %vm2321_vm1, %v11297_v23, %v9524_v40  ;;  %v4291_v15 = vsel %vm2321_vm1, %v11295_v24, %v9523_v9  ;;  %v4443_v40 = vunpack.c.l.s8.bf16 %v11728_v13  ;;  %v4448_v9 = vunpack.c.h.s8.bf16 %v4348_v4  ;;  %4560 = vmatprep.subr.bf16.mxu0 %v4444_v34 }
0x14eb   : > { %v4128_v11 = vmul.f32 %v9690_v47, %v11635_v28  ;;  %v11695_v51 = vpack.c.bf16 %v4292_v27, %v4291_v15  ;;  %v9532_v29 = vpop.permute.xlu1 %9531  ;;  %v4409_v47 = vunpack.c.h.s8.bf16 %v4329_v25  ;;  %v4414_v27 = vunpack.c.l.s8.bf16 %v4334_v38  ;;  %v4333_v15 = vld [vmem:[%s10665_s23 + $0x90] sm:$0xff] }
0x14ec   : > { %v9534_v58 = vunpack.i.h.bf16 %v9532_v29  ;;  %v9533_v35 = vunpack.i.l.bf16 %v9532_v29  ;;  %v4338_v29 = vld [vmem:[%s10665_s23 + $0xb8] sm:$0xff] }
0x14ed   : > { %4540 = vmatmul.mubr.bf16.vlgmr.msra.gmra.mrb[88].mxu0 %v11695_v51  ;;  %v4130_v18 = vpack.c.bf16 %v4128_v11, %v4127_v36  ;;  %v4413_v36 = vunpack.c.l.s8.bf16 %v4333_v15  ;;  %v4418_v11 = vunpack.c.h.s8.bf16 %v4334_v38 }
0x14ee   : > { %4549 = vmatprep.mubr.bf16.mxu0 %v11669_v26  ;;  %v4293_v24 = vsel %vm2321_vm1, %v11307_v37, %v9533_v35  ;;  %v4294_v23 = vsel %vm2321_vm1, %v11309_v17, %v9534_v58  ;;  %4561 = vmatpush1.bf16.msra.mxu0 %v4443_v40  ;;  %v4417_v58 = vunpack.c.h.s8.bf16 %v4333_v15  ;;  %v4422_v35 = vunpack.c.l.s8.bf16 %v4338_v29  ;;  %v4355_v40 = vld [vmem:[%s10665_s23 + $0x140] sm:$0xff] }
0x14ef   : > { %9153 = vmatmul.mubr.msk.bf16.vlgmr.msra.gmra.mrb[84].mxu1 %vm2416_vm2, %v4130_v18  ;;  %v9542_v28 = vpop.permute.xlu1 %9541  ;;  %v11705_v60 = vpack.c.bf16 %v4294_v23, %v4293_v24  ;;  %4562 = vmatprep.subr.bf16.mxu0 %v4448_v9  ;;  %v4342_v24 = vld [vmem:[%s10665_s23 + $0xd8] sm:$0xff]  ;;  %v4357_v9 = vld [vmem:[%s10665_s23 + $0x150] sm:$0xff]  ;;  %v4459_v38 = vunpack.c.l.s8.bf16 %v4355_v40 }
0x14f0   : > { %4614 = vmatpush1.bf16.msra.mxu1 %v4381_v48  ;;  %v9544_v61 = vunpack.i.h.bf16 %v9542_v28  ;;  %v9543_v3 = vunpack.i.l.bf16 %v9542_v28  ;;  %4645 = vmatprep.mubr.bf16.mxu1 %v11662_v0  ;;  %v4394_v0 = vunpack.c.h.s8.bf16 %v4322_v56  ;;  %v4337_v48 = vld [vmem:[%s10665_s23 + $0xb0] sm:$0xff]  ;;  %v4430_v56 = vunpack.c.l.s8.bf16 %v4342_v24 }
0x14f1   : > { %4615 = vmatprep.subr.bf16.mxu1 %v4386_v19  ;;  %v4421_v18 = vunpack.c.l.s8.bf16 %v4337_v48  ;;  %v4426_v19 = vunpack.c.h.s8.bf16 %v4338_v29  ;;  %v4425_v23 = vunpack.c.h.s8.bf16 %v4337_v48  ;;  %v4341_v28 = vld [vmem:[%s10665_s23 + $0xd0] sm:$0xff]  ;;  %v4463_v29 = vunpack.c.h.s8.bf16 %v4355_v40 }
0x14f2   : > { %v4300_v37 = vsel %vm2321_vm1, %v11501_v32, %v9544_v61  ;;  %v4299_v17 = vsel %vm2321_vm1, %v11499_v57, %v9543_v3  ;;  %v4429_v61 = vunpack.c.l.s8.bf16 %v4341_v28  ;;  %v4434_v3 = vunpack.c.h.s8.bf16 %v4342_v24 }
0x14f3   : > { %v11713_v10 = vpack.c.bf16 %v4300_v37, %v4299_v17  ;;  %v9552_v55 = vpop.permute.xlu1 %9551  ;;  %v4345_v37 = vld [vmem:[%s10665_s23 + $0xf0] sm:$0xff] }
0x14f4   : > { %4616 = vmatpush1.bf16.msra.mxu1 %v4385_v2  ;;  %v9554_v50 = vunpack.i.h.bf16 %v9552_v55  ;;  %v9553_v39 = vunpack.i.l.bf16 %v9552_v55  ;;  %v4346_v2 = vld [vmem:[%s10665_s23 + $0xf8] sm:$0xff]  ;;  %v4437_v17 = vunpack.c.l.s8.bf16 %v4345_v37 }
0x14f5   : > { %4550 = vmatmul.mubr.bf16.gmra.mrb[92].mxu0 %v11705_v60  ;;  %4617 = vmatprep.subr.bf16.mxu1 %v4390_v49  ;;  %v4433_v49 = vunpack.c.h.s8.bf16 %v4341_v28  ;;  %v4438_v33 = vunpack.c.l.s8.bf16 %v4346_v2  ;;  %v4442_v55 = vunpack.c.h.s8.bf16 %v4346_v2 }
0x14f6   : > { %v4301_v32 = vsel %vm2321_vm1, %v11511_v52, %v9553_v39  ;;  %v4302_v57 = vsel %vm2321_vm1, %v11513_v63, %v9554_v50  ;;  %v4401_v52 = vunpack.c.h.s8.bf16 %v4325_v5  ;;  %v4406_v63 = vunpack.c.l.s8.bf16 %v4330_v44  ;;  %v4350_v50 = vld [vmem:[%s10665_s23 + $0x118] sm:$0xff] }
0x14f7   : > { %v11721_v41 = vpack.c.bf16 %v4302_v57, %v4301_v32  ;;  %v4441_v39 = vunpack.c.h.s8.bf16 %v4345_v37  ;;  %v4450_v32 = vunpack.c.h.s8.bf16 %v4350_v50  ;;  %v4447_v57 = vunpack.c.h.s8.bf16 %v11728_v13  ;;  %v4354_v5 = vld [vmem:[%s10665_s23 + $0x138] sm:$0xff] }
0x14f8   : > { %4618 = vmatpush1.bf16.msra.mxu1 %v4389_v53  ;;  %v4446_v53 = vunpack.c.l.s8.bf16 %v4350_v50  ;;  %v4454_v44 = vunpack.c.l.s8.bf16 %v4354_v5  ;;  %v4458_v25 = vunpack.c.h.s8.bf16 %v4354_v5 }
0x14f9   : > { %4619 = vmatprep.subr.bf16.mxu1 %v4394_v0  ;;  %v4349_v0 = vld [vmem:[%s10665_s23 + $0x110] sm:$0xff]  ;;  %4563 = vmatpush1.bf16.msra.mxu0 %v4447_v57 }
0x14fa   : > { %v4445_v12 = vunpack.c.l.s8.bf16 %v4349_v0 }
0x14fc   : > { %4620 = vmatpush1.bf16.msra.mxu1 %v4393_v45  ;;  %v4449_v45 = vunpack.c.h.s8.bf16 %v4349_v0 }
0x14fd   : > { %4621 = vmatprep.subr.bf16.mxu1 %v4398_v31  ;;  %v4352_v31 = vld [vmem:[%s10665_s23 + $0x128] sm:$0xff] }
0x1500   : > { %4622 = vmatpush1.bf16.msra.mxu1 %v4397_v54  ;;  %v4351_v54 = vld [vmem:[%s10665_s23 + $0x120] sm:$0xff] }
0x1501   : > { %4623 = vmatprep.subr.bf16.mxu1 %v4402_v43  ;;  %v4452_v43 = vunpack.c.l.s8.bf16 %v4352_v31  ;;  %v4455_v4 = vunpack.c.h.s8.bf16 %v4351_v54 }
0x1503   : > { %4564 = vmatprep.subr.bf16.mxu0 %v4452_v43  ;;  %v4369_v43 = vld [vmem:[%s10665_s23 + $0x1b0] sm:$0xff] }
0x1504   : > { %4624 = vmatpush1.bf16.msra.mxu1 %v4401_v52  ;;  %v4451_v52 = vunpack.c.l.s8.bf16 %v4351_v54  ;;  %v4367_v54 = vld [vmem:[%s10665_s23 + $0x1a0] sm:$0xff] }
0x1505   : > { %4625 = vmatprep.subr.bf16.mxu1 %v4406_v63  ;;  %v4456_v63 = vunpack.c.h.s8.bf16 %v4352_v31 }
0x1506   : > { %4565 = vmatpush1.bf16.msra.mxu0 %v4451_v52  ;;  %v4485_v52 = vunpack.c.l.s8.bf16 %v4369_v43 }
0x1507   : > { %4566 = vmatprep.subr.bf16.mxu0 %v4456_v63  ;;  %v4372_v63 = vld [vmem:[%s10665_s23 + $0x1c8] sm:$0xff] }
0x1508   : > { %4626 = vmatpush1.bf16.msra.mxu1 %v4405_v30  ;;  %v4356_v30 = vld [vmem:[%s10665_s23 + $0x148] sm:$0xff] }
0x1509   : > { %4627 = vmatprep.subr.bf16.mxu1 %v4410_v16  ;;  %v4460_v16 = vunpack.c.l.s8.bf16 %v4356_v30 }
0x150a   : > { %4567 = vmatpush1.bf16.msra.mxu0 %v4455_v4  ;;  %v4492_v4 = vunpack.c.l.s8.bf16 %v4372_v63 }
0x150b   : > { %4568 = vmatprep.subr.bf16.mxu0 %v4460_v16  ;;  %v4371_v16 = vld [vmem:[%s10665_s23 + $0x1c0] sm:$0xff] }
0x150c   : > { %4628 = vmatpush1.bf16.msra.mxu1 %v4409_v47  ;;  %v4461_v47 = vunpack.c.l.s8.bf16 %v4357_v9  ;;  %v4491_v40 = vunpack.c.l.s8.bf16 %v4371_v16 }
0x150d   : > { %4629 = vmatprep.subr.bf16.mxu1 %v4414_v27  ;;  %v4464_v27 = vunpack.c.h.s8.bf16 %v4356_v30  ;;  %v4487_v30 = vunpack.c.h.s8.bf16 %v4367_v54 }
0x150e   : > { %4569 = vmatpush1.bf16.msra.mxu0 %v4459_v38  ;;  %v4496_v38 = vunpack.c.h.s8.bf16 %v4372_v63 }
0x150f   : > { %4570 = vmatprep.subr.bf16.mxu0 %v4464_v27  ;;  %v4376_v27 = vld [vmem:[%s10665_s23 + $0x1e8] sm:$0xff] }
0x1510   : > { %4630 = vmatpush1.bf16.msra.mxu1 %v4413_v36  ;;  %v4360_v36 = vld [vmem:[%s10665_s23 + $0x168] sm:$0xff] }
0x1511   : > { %4631 = vmatprep.subr.bf16.mxu1 %v4418_v11  ;;  %v4362_v11 = vld [vmem:[%s10665_s23 + $0x178] sm:$0xff] }
0x1512   : > { %v4470_v48 = vunpack.c.l.s8.bf16 %v4362_v11  ;;  %4571 = vmatpush1.bf16.msra.mxu0 %v4463_v29  ;;  %v4474_v28 = vunpack.c.h.s8.bf16 %v4362_v11  ;;  %v4500_v29 = vunpack.c.l.s8.bf16 %v4376_v27 }
0x1514   : > { %4632 = vmatpush1.bf16.msra.mxu1 %v4417_v58  ;;  %v4465_v58 = vunpack.c.h.s8.bf16 %v4357_v9 }
0x1515   : > { %4633 = vmatprep.subr.bf16.mxu1 %v4422_v35  ;;  %v4468_v35 = vunpack.c.l.s8.bf16 %v4360_v36 }
0x1517   : > { %4572 = vmatprep.subr.bf16.mxu0 %v4468_v35  ;;  %v4375_v35 = vld [vmem:[%s10665_s23 + $0x1e0] sm:$0xff] }
0x1518   : > { %4634 = vmatpush1.bf16.msra.mxu1 %v4421_v18  ;;  %v4359_v18 = vld [vmem:[%s10665_s23 + $0x160] sm:$0xff] }
0x1519   : > { %4635 = vmatprep.subr.bf16.mxu1 %v4426_v19  ;;  %v4361_v19 = vld [vmem:[%s10665_s23 + $0x170] sm:$0xff]  ;;  %v4467_v24 = vunpack.c.l.s8.bf16 %v4359_v18  ;;  %v4471_v2 = vunpack.c.h.s8.bf16 %v4359_v18  ;;  %v4499_v18 = vunpack.c.l.s8.bf16 %v4375_v35 }
0x151b   : > { %4573 = vmatpush1.bf16.msra.mxu0 %v4467_v24  ;;  %v4504_v24 = vunpack.c.h.s8.bf16 %v4376_v27 }
0x151c   : > { %4636 = vmatpush1.bf16.msra.mxu1 %v4425_v23  ;;  %v4469_v23 = vunpack.c.l.s8.bf16 %v4361_v19 }
0x151d   : > { %4637 = vmatprep.subr.bf16.mxu1 %v4430_v56  ;;  %v4472_v56 = vunpack.c.h.s8.bf16 %v4360_v36  ;;  %v4495_v36 = vunpack.c.h.s8.bf16 %v4371_v16 }
0x151f   : > { %4574 = vmatprep.subr.bf16.mxu0 %v4472_v56  ;;  %v4503_v56 = vunpack.c.h.s8.bf16 %v4375_v35 }
0x1520   : > { %4638 = vmatpush1.bf16.msra.mxu1 %v4429_v61  ;;  %v4364_v61 = vld [vmem:[%s10665_s23 + $0x188] sm:$0xff]  ;;  %4575 = vmatpush1.bf16.msra.mxu0 %v4471_v2 }
0x1521   : > { %4639 = vmatprep.subr.bf16.mxu1 %v4434_v3  ;;  %v4366_v3 = vld [vmem:[%s10665_s23 + $0x198] sm:$0xff] }
0x1522   : > { %v4478_v37 = vunpack.c.l.s8.bf16 %v4366_v3  ;;  %v4482_v0 = vunpack.c.h.s8.bf16 %v4366_v3 }
0x1524   : > { %4640 = vmatpush1.bf16.msra.mxu1 %v4433_v49  ;;  %v4473_v49 = vunpack.c.h.s8.bf16 %v4361_v19 }
0x1525   : > { %4641 = vmatprep.subr.bf16.mxu1 %v4438_v33  ;;  %v4476_v33 = vunpack.c.l.s8.bf16 %v4364_v61 }
0x1527   : > { %4576 = vmatprep.subr.bf16.mxu0 %v4476_v33 }
0x1528   : > { %4642 = vmatpush1.bf16.msra.mxu1 %v4437_v17  ;;  %v4363_v17 = vld [vmem:[%s10665_s23 + $0x180] sm:$0xff] }
0x1529   : > { %4643 = vmatprep.subr.bf16.mxu1 %v4442_v55  ;;  %v4365_v55 = vld [vmem:[%s10665_s23 + $0x190] sm:$0xff]  ;;  %v4475_v50 = vunpack.c.l.s8.bf16 %v4363_v17  ;;  %v4479_v57 = vunpack.c.h.s8.bf16 %v4363_v17 }
0x152b   : > { %4577 = vmatpush1.bf16.msra.mxu0 %v4475_v50 }
0x152c   : > { %4644 = vmatpush1.bf16.msra.mxu1 %v4441_v39  ;;  %v4477_v39 = vunpack.c.l.s8.bf16 %v4365_v55 }
0x152d   : > { %4666 = vmatprep.subr.bf16.mxu1 %v4446_v53  ;;  %v4480_v53 = vunpack.c.h.s8.bf16 %v4364_v61 }
0x152f   : > { %4646 = vmatmul.mubr.bf16.vlgmr.msra.gmra.mrb[88].mxu1 %v11695_v51  ;;  %v4353_v51 = vld [vmem:[%s10665_s23 + $0x130] sm:$0xff]  ;;  %4578 = vmatprep.subr.bf16.mxu0 %v4480_v53 }
0x1530   : > { %4655 = vmatprep.mubr.bf16.mxu1 %v11669_v26  ;;  %4667 = vmatpush1.bf16.msra.mxu1 %v4445_v12  ;;  %v4453_v26 = vunpack.c.l.s8.bf16 %v4353_v51  ;;  %v4457_v13 = vunpack.c.h.s8.bf16 %v4353_v51  ;;  %v4368_v12 = vld [vmem:[%s10665_s23 + $0x1a8] sm:$0xff] }
0x1531   : > { %4668 = vmatprep.subr.bf16.mxu1 %v4450_v32  ;;  %v4370_v32 = vld [vmem:[%s10665_s23 + $0x1b8] sm:$0xff]  ;;  %v4484_v31 = vunpack.c.l.s8.bf16 %v4368_v12  ;;  %4579 = vmatpush1.bf16.msra.mxu0 %v4479_v57  ;;  %v4488_v51 = vunpack.c.h.s8.bf16 %v4368_v12 }
0x1532   : > { %v4486_v5 = vunpack.c.l.s8.bf16 %v4370_v32 }
0x1533   : > { %4580 = vmatprep.subr.bf16.mxu0 %v4484_v31 }
0x1534   : > { %4669 = vmatpush1.bf16.msra.mxu1 %v4449_v45  ;;  %v4481_v45 = vunpack.c.h.s8.bf16 %v4365_v55 }
0x1535   : > { %4670 = vmatprep.subr.bf16.mxu1 %v4454_v44  ;;  %v4483_v44 = vunpack.c.l.s8.bf16 %v4367_v54 }
0x1537   : > { %4656 = vmatmul.mubr.bf16.gmra.mrb[92].mxu1 %v11705_v60  ;;  %v4358_v60 = vld [vmem:[%s10665_s23 + $0x158] sm:$0xff]  ;;  %4581 = vmatpush1.bf16.msra.mxu0 %v4483_v44  ;;  %v4886_v44 = vld [vmem:[%s10675_s5 + $0x18] sm:$0xff] }
0x1538   : > { %4671 = vmatpush1.bf16.msra.mxu1 %v4453_v26  ;;  %v4462_v34 = vunpack.c.l.s8.bf16 %v4358_v60  ;;  %v4466_v15 = vunpack.c.h.s8.bf16 %v4358_v60  ;;  %v4490_v26 = vunpack.c.h.s8.bf16 %v4370_v32  ;;  %v4489_v60 = vunpack.c.h.s8.bf16 %v4369_v43  ;;  %4582 = vmatprep.subr.bf16.mxu0 %v4488_v51 }
0x1539   : > { %4672 = vmatprep.subr.bf16.mxu1 %v4458_v25  ;;  %v4374_v25 = vld [vmem:[%s10665_s23 + $0x1d8] sm:$0xff] }
0x153b   : > { %4583 = vmatpush1.bf16.msra.mxu0 %v4487_v30  ;;  %v5158_v30 = vunpack.c.h.s8.bf16 %v4886_v44 }
0x153c   : > { %4673 = vmatpush1.bf16.msra.mxu1 %v4457_v13  ;;  %v4494_v13 = vunpack.c.l.s8.bf16 %v4374_v25  ;;  %4584 = vmatprep.subr.bf16.mxu0 %v4492_v4  ;;  %v4902_v4 = vld [vmem:[%s10675_s5 + $0x98] sm:$0xff] }
0x153d   : > { %4674 = vmatprep.subr.bf16.mxu1 %v4462_v34  ;;  %v4373_v34 = vld [vmem:[%s10665_s23 + $0x1d0] sm:$0xff] }
0x153e   : > { %v4493_v9 = vunpack.c.l.s8.bf16 %v4373_v34  ;;  %v4497_v11 = vunpack.c.h.s8.bf16 %v4373_v34  ;;  %v5174_v34 = vunpack.c.l.s8.bf16 %v4902_v4 }
0x153f   : > { %4585 = vmatpush1.bf16.msra.mxu0 %v4491_v40  ;;  %v4899_v40 = vld [vmem:[%s10675_s5 + $0x80] sm:$0xff] }
0x1540   : > { %4675 = vmatpush1.bf16.msra.mxu1 %v4461_v47  ;;  %v4498_v47 = vunpack.c.h.s8.bf16 %v4374_v25  ;;  %4586 = vmatprep.subr.bf16.mxu0 %v4496_v38  ;;  %v4885_v25 = vld [vmem:[%s10675_s5 + $0x10] sm:$0xff]  ;;  %v5171_v38 = vunpack.c.l.s8.bf16 %v4899_v40 }
0x1541   : > { %4676 = vmatprep.subr.bf16.mxu1 %v4466_v15  ;;  %v4378_v15 = vld [vmem:[%s10665_s23 + $0x1f8] sm:$0xff] }
0x1543   : > { %4587 = vmatpush1.bf16.msra.mxu0 %v4495_v36  ;;  %v4916_v36 = vld [vmem:[%s10675_s5 + $0x108] sm:$0xff] }
0x1544   : > { %4677 = vmatpush1.bf16.msra.mxu1 %v4465_v58  ;;  %v4502_v58 = vunpack.c.l.s8.bf16 %v4378_v15  ;;  %4588 = vmatprep.subr.bf16.mxu0 %v4500_v29  ;;  %v5187_v29 = vunpack.c.h.s8.bf16 %v4899_v40  ;;  %v5204_v35 = vunpack.c.l.s8.bf16 %v4916_v36 }
0x1545   : > { %4678 = vmatprep.subr.bf16.mxu1 %v4470_v48  ;;  %v4377_v48 = vld [vmem:[%s10665_s23 + $0x1f0] sm:$0xff] }
0x1546   : > { %v4501_v19 = vunpack.c.l.s8.bf16 %v4377_v48 }
0x1547   : > { %4589 = vmatpush1.bf16.msra.mxu0 %v4499_v18  ;;  %v4915_v18 = vld [vmem:[%s10675_s5 + $0x100] sm:$0xff] }
0x1548   : > { %4679 = vmatpush1.bf16.msra.mxu1 %v4469_v23  ;;  %v4506_v23 = vunpack.c.h.s8.bf16 %v4378_v15  ;;  %4590 = vmatprep.subr.bf16.mxu0 %v4504_v24  ;;  %v5190_v15 = vunpack.c.h.s8.bf16 %v4902_v4  ;;  %v5203_v24 = vunpack.c.l.s8.bf16 %v4915_v18 }
0x1549   : > { %4680 = vmatprep.subr.bf16.mxu1 %v4474_v28  ;;  %v4505_v28 = vunpack.c.h.s8.bf16 %v4377_v48 }
0x154b   : > { %4591 = vmatpush1.bf16.msra.mxu0 %v4503_v56  ;;  %v5220_v56 = vunpack.c.h.s8.bf16 %v4916_v36 }
0x154c   : > { %4681 = vmatpush1.bf16.msra.mxu1 %v4473_v49 }
0x154d   : > { %4682 = vmatprep.subr.bf16.mxu1 %v4478_v37 }
0x1550   : > { %4683 = vmatpush1.bf16.msra.mxu1 %v4477_v39 }
0x1551   : > { %4684 = vmatprep.subr.bf16.mxu1 %v4482_v0 }
0x1554   : > { %4685 = vmatpush1.bf16.msra.mxu1 %v4481_v45 }
0x1555   : > { %4686 = vmatprep.subr.bf16.mxu1 %v4486_v5 }
0x1558   : > { %4687 = vmatpush1.bf16.msra.mxu1 %v4485_v52  ;;  %v4883_v52 = vld [vmem:[%s10675_s5] sm:$0xff] }
0x1559   : > { %4688 = vmatprep.subr.bf16.mxu1 %v4490_v26  ;;  %v5142_v26 = vunpack.c.l.s8.bf16 %v4886_v44  ;;  %v5139_v63 = vunpack.c.l.s8.bf16 %v4883_v52 }
0x155c   : > { %4689 = vmatpush1.bf16.msra.mxu1 %v4489_v60  ;;  %v4900_v60 = vld [vmem:[%s10675_s5 + $0x88] sm:$0xff] }
0x155d   : > { %4690 = vmatprep.subr.bf16.mxu1 %v4494_v13  ;;  %v5155_v13 = vunpack.c.h.s8.bf16 %v4883_v52  ;;  %v5172_v16 = vunpack.c.l.s8.bf16 %v4900_v60  ;;  %v5188_v27 = vunpack.c.h.s8.bf16 %v4900_v60 }
0x1560   : > { %4691 = vmatpush1.bf16.msra.mxu1 %v4493_v9  ;;  %v4901_v9 = vld [vmem:[%s10675_s5 + $0x90] sm:$0xff] }
0x1561   : > { %4692 = vmatprep.subr.bf16.mxu1 %v4498_v47  ;;  %v5173_v47 = vunpack.c.l.s8.bf16 %v4901_v9 }
0x1564   : > { %4693 = vmatpush1.bf16.msra.mxu1 %v4497_v11  ;;  %v4918_v11 = vld [vmem:[%s10675_s5 + $0x118] sm:$0xff] }
0x1565   : > { %4694 = vmatprep.subr.bf16.mxu1 %v4502_v58  ;;  %v5189_v58 = vunpack.c.h.s8.bf16 %v4901_v9  ;;  %v5206_v48 = vunpack.c.l.s8.bf16 %v4918_v11 }
0x1568   : > { %4695 = vmatpush1.bf16.msra.mxu1 %v4501_v19  ;;  %v4917_v19 = vld [vmem:[%s10675_s5 + $0x110] sm:$0xff] }
0x1569   : > { %4696 = vmatprep.subr.bf16.mxu1 %v4506_v23  ;;  %v5205_v23 = vunpack.c.l.s8.bf16 %v4917_v19 }
0x156c   : > { %4697 = vmatpush1.bf16.msra.mxu1 %v4505_v28  ;;  %v5222_v28 = vunpack.c.h.s8.bf16 %v4918_v11 }
0x156d   : > { %5757 = vmatprep.subr.bf16.mxu1 %v5142_v26  ;;  %v4719_v26 = vld [vmem:[%s665_s15] sm:$0xf] }
0x157f   : > { %v4172_v61 = vpop.f32.mrb[84].mxu0 }
0x1580   : > { %v9148_v3 = vpop.f32.mrb[85].mxu0 }
0x1581   : > { %v4175_v2 = vpop.f32.mrb[86].mxu0  ;;  %v4934_v3 = vld [vmem:[%s10675_s5 + $0x198] sm:$0xff] }
0x1582   : > { %v9535_v49 = vpack.i.bf16 %v4175_v2, %v4172_v61  ;;  %v9149_v33 = vpop.f32.mrb[87].mxu0  ;;  %v4932_v61 = vld [vmem:[%s10675_s5 + $0x188] sm:$0xff]  ;;  %v5219_v2 = vunpack.c.h.s8.bf16 %v4915_v18 }
0x1583   : > { %v5236_v33 = vunpack.c.l.s8.bf16 %v4932_v61 }
0x1584   : > { %9536 = vrot.lane.b32.xlu0 %v9535_v49, %s10156_s2  ;;  %v5221_v49 = vunpack.c.h.s8.bf16 %v4917_v19 }
0x15c2   : > { %v4220_v37 = vpop.f32.mrb[84].mxu1 }
0x15c3   : > { %v9154_v17 = vpop.f32.mrb[85].mxu1 }
0x15c4   : > { %v4223_v55 = vpop.f32.mrb[86].mxu1  ;;  %v4931_v17 = vld [vmem:[%s10675_s5 + $0x180] sm:$0xff] }
0x15c5   : > { %v9545_v50 = vpack.i.bf16 %v4223_v55, %v4220_v37  ;;  %v9155_v39 = vpop.f32.mrb[87].mxu1  ;;  %v5238_v37 = vunpack.c.l.s8.bf16 %v4934_v3  ;;  %v4933_v55 = vld [vmem:[%s10675_s5 + $0x190] sm:$0xff] }
0x15c6   : > { %v5237_v39 = vunpack.c.l.s8.bf16 %v4933_v55 }
0x15c7   : > { %9546 = vrot.lane.b32.xlu0 %v9545_v50, %s10156_s2  ;;  %v5235_v50 = vunpack.c.l.s8.bf16 %v4931_v17 }
0x15f6   : > { %v9537_v53 = vpop.permute.xlu0 %9536 }
0x15f7   : > { %v9539_v0 = vunpack.i.h.bf16 %v9537_v53  ;;  %v9538_v12 = vunpack.i.l.bf16 %v9537_v53  ;;  %v5252_v53 = vunpack.c.h.s8.bf16 %v4932_v61 }
0x15f9   : > { %v4303_v32 = vsel %vm2321_vm1, %v11601_v46, %v9538_v12  ;;  %v4304_v57 = vsel %vm2321_vm1, %v11603_v62, %v9539_v0  ;;  %v5254_v0 = vunpack.c.h.s8.bf16 %v4934_v3  ;;  %v4948_v12 = vld [vmem:[%s10675_s5 + $0x208] sm:$0xff] }
0x15fa   : > { %v4310_v45 = vpack.c.bf16 %v4304_v57, %v4303_v32  ;;  %v4950_v32 = vld [vmem:[%s10675_s5 + $0x218] sm:$0xff]  ;;  %v5251_v57 = vunpack.c.h.s8.bf16 %v4931_v17  ;;  %v9703_v3 = vld [vmem:[#allocation2 + $0x18] sm:$0xff] }
0x15fb   : > { %v5286_v44 = vunpack.c.h.s8.bf16 %v4950_v32 }
0x15fc   : > { %4592 = vmatprep.mubr.bf16.mxu0 %v4310_v45  ;;  %4698 = vmatprep.mubr.bf16.mxu1 %v4310_v45  ;;  %v5253_v45 = vunpack.c.h.s8.bf16 %v4933_v55 }
0x15fd   : > { %4593 = vmatmul.mubr.bf16.vlgmr.msra.gmra.mrb[88].mxu0 %v11713_v10  ;;  %4699 = vmatmul.mubr.bf16.vlgmr.msra.gmra.mrb[88].mxu1 %v11713_v10  ;;  %v4884_v10 = vld [vmem:[%s10675_s5 + $0x8] sm:$0xff] }
0x15fe   : > { %v5140_v51 = vunpack.c.l.s8.bf16 %v4884_v10 }
0x1600   : > { %5651 = vmatprep.subr.bf16.mxu0 %v5140_v51 }
0x1601   : > { %5652 = vmatpush1.bf16.msra.mxu0 %v5139_v63  ;;  %v11810_v63 = vrot.slane %v4719_v26, %v10856_v21 }
0x1639   : > { %v9547_v31 = vpop.permute.xlu0 %9546 }
0x163a   : > { %v9549_v5 = vunpack.i.h.bf16 %v9547_v31  ;;  %v9548_v54 = vunpack.i.l.bf16 %v9547_v31  ;;  %v5268_v31 = vunpack.c.l.s8.bf16 %v4948_v12 }
0x163c   : > { %v4305_v46 = vsel %vm2321_vm1, %v11613_v42, %v9548_v54  ;;  %v4306_v62 = vsel %vm2321_vm1, %v11615_v8, %v9549_v5  ;;  %v5156_v42 = vunpack.c.h.s8.bf16 %v4884_v10  ;;  %v5141_v8 = vunpack.c.l.s8.bf16 %v4885_v25  ;;  %v4947_v54 = vld [vmem:[%s10675_s5 + $0x200] sm:$0xff] }
0x163d   : > { %v4314_v43 = vpack.c.bf16 %v4306_v62, %v4305_v46  ;;  %v5270_v5 = vunpack.c.l.s8.bf16 %v4950_v32  ;;  %v4949_v46 = vld [vmem:[%s10675_s5 + $0x210] sm:$0xff]  ;;  %v5267_v62 = vunpack.c.l.s8.bf16 %v4947_v54  ;;  %v5284_v10 = vunpack.c.h.s8.bf16 %v4948_v12 }
0x163e   : > { %5758 = vmatpush1.bf16.msra.mxu1 %v5141_v8  ;;  %5653 = vmatprep.subr.bf16.mxu0 %v5156_v42  ;;  %v5283_v52 = vunpack.c.h.s8.bf16 %v4947_v54  ;;  %v5285_v51 = vunpack.c.h.s8.bf16 %v4949_v46  ;;  %v11816_v42 = vrot.slane %v4719_v26, %v10853_v20  ;;  %v11819_v8 = vrot.slane %v4719_v26, %v10859_v22 }
0x163f   : > { %4602 = vmatprep.mubr.bf16.mxu0 %v4314_v43  ;;  %4708 = vmatprep.mubr.bf16.mxu1 %v4314_v43  ;;  %v5269_v43 = vunpack.c.l.s8.bf16 %v4949_v46 }
0x1640   : > { %4603 = vmatmul.mubr.bf16.gmra.mrb[92].mxu0 %v11721_v41  ;;  %4709 = vmatmul.mubr.bf16.gmra.mrb[92].mxu1 %v11721_v41  ;;  %v5157_v41 = vunpack.c.h.s8.bf16 %v4885_v25  ;;  %v11813_v25 = vrot.slane %v4719_v26, %v10848_v14  ;;  %v4965_v26 = vld [vmem:[%s10675_s5 + $0x290] sm:$0xff] }
0x1641   : > { %5759 = vmatprep.subr.bf16.mxu1 %v5158_v30  ;;  %5654 = vmatpush1.bf16.msra.mxu0 %v5155_v13 }
0x1642   : > { %5760 = vmatpush1.bf16.msra.mxu1 %v5157_v41  ;;  %5655 = vmatprep.subr.bf16.mxu0 %v5172_v16 }
0x1643   : > { %5761 = vmatprep.subr.bf16.mxu1 %v5174_v34 }
0x1645   : > { %5656 = vmatpush1.bf16.msra.mxu0 %v5171_v38 }
0x1646   : > { %5762 = vmatpush1.bf16.msra.mxu1 %v5173_v47  ;;  %5657 = vmatprep.subr.bf16.mxu0 %v5188_v27  ;;  %v9699_v47 = vld [vmem:[#allocation2] sm:$0xff] }
0x1647   : > { %5763 = vmatprep.subr.bf16.mxu1 %v5190_v15 }
0x1649   : > { %5658 = vmatpush1.bf16.msra.mxu0 %v5187_v29 }
0x164a   : > { %5764 = vmatpush1.bf16.msra.mxu1 %v5189_v58  ;;  %5659 = vmatprep.subr.bf16.mxu0 %v5204_v35  ;;  %v9700_v58 = vld [vmem:[#allocation2 + $0x10] sm:$0xff] }
0x164b   : > { %5765 = vmatprep.subr.bf16.mxu1 %v5206_v48  ;;  %v9701_v48 = vld [vmem:[#allocation2 + $0x8] sm:$0xff] }
0x164d   : > { %5660 = vmatpush1.bf16.msra.mxu0 %v5203_v24 }
0x164e   : > { %5766 = vmatpush1.bf16.msra.mxu1 %v5205_v23  ;;  %5661 = vmatprep.subr.bf16.mxu0 %v5220_v56  ;;  %v9702_v56 = vld [vmem:[#allocation2 + $0x20] sm:$0xff] }
0x164f   : > { %5767 = vmatprep.subr.bf16.mxu1 %v5222_v28 }
0x1651   : > { %5662 = vmatpush1.bf16.msra.mxu0 %v5219_v2 }
0x1652   : > { %5768 = vmatpush1.bf16.msra.mxu1 %v5221_v49  ;;  %5663 = vmatprep.subr.bf16.mxu0 %v5236_v33  ;;  %v9704_v49 = vld [vmem:[#allocation2 + $0x30] sm:$0xff] }
0x1653   : > { %5769 = vmatprep.subr.bf16.mxu1 %v5238_v37  ;;  %v9705_v37 = vld [vmem:[#allocation2 + $0x28] sm:$0xff] }
0x1655   : > { %5664 = vmatpush1.bf16.msra.mxu0 %v5235_v50 }
0x1656   : > { %5770 = vmatpush1.bf16.msra.mxu1 %v5237_v39  ;;  %5665 = vmatprep.subr.bf16.mxu0 %v5252_v53  ;;  %v9706_v53 = vld [vmem:[#allocation2 + $0x38] sm:$0xff] }
0x1657   : > { %5771 = vmatprep.subr.bf16.mxu1 %v5254_v0 }
0x1659   : > { %5666 = vmatpush1.bf16.msra.mxu0 %v5251_v57 }
0x165a   : > { %5772 = vmatpush1.bf16.msra.mxu1 %v5253_v45  ;;  %5667 = vmatprep.subr.bf16.mxu0 %v5268_v31 }
0x165b   : > { %5773 = vmatprep.subr.bf16.mxu1 %v5270_v5 }
0x165d   : > { %5668 = vmatpush1.bf16.msra.mxu0 %v5267_v62 }
0x165e   : > { %5774 = vmatpush1.bf16.msra.mxu1 %v5269_v43  ;;  %5669 = vmatprep.subr.bf16.mxu0 %v5284_v10  ;;  %v4964_v43 = vld [vmem:[%s10675_s5 + $0x288] sm:$0xff]  ;;  %v4966_v10 = vld [vmem:[%s10675_s5 + $0x298] sm:$0xff] }
0x165f   : > { %5775 = vmatprep.subr.bf16.mxu1 %v5286_v44  ;;  %v5300_v44 = vunpack.c.l.s8.bf16 %v4964_v43 }
0x1661   : > { %5670 = vmatpush1.bf16.msra.mxu0 %v5283_v52  ;;  %v5302_v52 = vunpack.c.l.s8.bf16 %v4966_v10 }
0x1662   : > { %5776 = vmatpush1.bf16.msra.mxu1 %v5285_v51  ;;  %v4963_v51 = vld [vmem:[%s10675_s5 + $0x280] sm:$0xff]  ;;  %5671 = vmatprep.subr.bf16.mxu0 %v5300_v44 }
0x1663   : > { %5777 = vmatprep.subr.bf16.mxu1 %v5302_v52 }
0x16d0   : > { %v4594_v30 = vpop.f32.mrb[88].mxu0  ;;  %v4700_v60 = vpop.f32.mrb[88].mxu1 }
0x16d1   : > { %v4741_v4 = vmul.f32 %v11810_v63, %v4594_v30  ;;  %v4743_v13 = vmul.f32 %v11813_v25, %v4700_v60  ;;  %v4596_v41 = vpop.f32.mrb[89].mxu0  ;;  %v4702_v16 = vpop.f32.mrb[89].mxu1  ;;  %v5299_v30 = vunpack.c.l.s8.bf16 %v4963_v51  ;;  %v5301_v60 = vunpack.c.l.s8.bf16 %v4965_v26 }
0x16d2   : > { %v4742_v34 = vmul.f32 %v11816_v42, %v4596_v41  ;;  %v4744_v40 = vmul.f32 %v11819_v8, %v4702_v16  ;;  %v4598_v9 = vpop.f32.mrb[90].mxu0  ;;  %v4704_v38 = vpop.f32.mrb[90].mxu1  ;;  %v5315_v41 = vunpack.c.h.s8.bf16 %v4963_v51  ;;  %v5317_v16 = vunpack.c.h.s8.bf16 %v4965_v26 }
0x16d3   : > { %v11825_v27 = vadd.f32 %v9699_v47, %v4741_v4  ;;  %v4745_v15 = vmul.f32 %v11810_v63, %v4598_v9  ;;  %v4747_v36 = vmul.f32 %v11813_v25, %v4704_v38  ;;  %v4600_v11 = vpop.f32.mrb[91].mxu0  ;;  %v4706_v29 = vpop.f32.mrb[91].mxu1  ;;  %v11829_v35 = vadd.f32 %v9700_v58, %v4743_v13  ;;  %5672 = vmatpush1.bf16.msra.mxu0 %v5299_v30  ;;  %v4979_v9 = vld [vmem:[%s10675_s5 + $0x300] sm:$0xff]  ;;  %v9707_v30 = vld [vmem:[#allocation2 + $0x40] sm:$0xff] }
0x16d4   : > { %v11831_v18 = vadd.f32 %v9701_v48, %v4742_v34  ;;  %v4746_v19 = vmul.f32 %v11816_v42, %v4600_v11  ;;  %v4748_v24 = vmul.f32 %v11819_v8, %v4706_v29  ;;  %v11841_v2 = vadd.f32 %v9703_v3, %v4744_v40  ;;  %5778 = vmatpush1.bf16.msra.mxu1 %v5301_v60  ;;  %v4980_v34 = vld [vmem:[%s10675_s5 + $0x308] sm:$0xff]  ;;  %v4982_v40 = vld [vmem:[%s10675_s5 + $0x318] sm:$0xff]  ;;  %v4995_v3 = vld [vmem:[%s10675_s5 + $0x380] sm:$0xff] }
0x16d5   : > { %v4774_v23 = vmul.f32 %v11825_v27, %v11825_v27  ;;  %v11837_v28 = vadd.f32 %v9702_v56, %v4745_v15  ;;  %v11843_v33 = vadd.f32 %v9704_v49, %v4747_v36  ;;  %v4776_v50 = vmul.f32 %v11829_v35, %v11829_v35  ;;  %v4981_v15 = vld [vmem:[%s10675_s5 + $0x310] sm:$0xff]  ;;  %v4996_v48 = vld [vmem:[%s10675_s5 + $0x388] sm:$0xff] }
0x16d6   : > { %v4775_v61 = vmul.f32 %v11831_v18, %v11831_v18  ;;  %v11845_v17 = vadd.f32 %v9705_v37, %v4746_v19  ;;  %v11853_v0 = vadd.f32 %v9706_v53, %v4748_v24  ;;  %v4777_v57 = vmul.f32 %v11841_v2, %v11841_v2  ;;  %v4998_v19 = vld [vmem:[%s10675_s5 + $0x398] sm:$0xff]  ;;  %v4997_v49 = vld [vmem:[%s10675_s5 + $0x390] sm:$0xff] }
0x16d7   : > { %v4778_v55 = vmul.f32 %v11837_v28, %v11837_v28  ;;  %v4780_v32 = vmul.f32 %v11843_v33, %v11843_v33  ;;  %v5316_v4 = vunpack.c.h.s8.bf16 %v4964_v43  ;;  %v5318_v13 = vunpack.c.h.s8.bf16 %v4966_v10 }
0x16d8   : > { %v4779_v39 = vmul.f32 %v11845_v17, %v11845_v17  ;;  %v4790_v12 = vadd.f32 %v4775_v61, %v4774_v23  ;;  %v4781_v54 = vmul.f32 %v11853_v0, %v11853_v0  ;;  %v5332_v38 = vunpack.c.l.s8.bf16 %v4980_v34 }
0x16d9   : > { %5673 = vmatprep.subr.bf16.mxu0 %v5316_v4  ;;  %5779 = vmatprep.subr.bf16.mxu1 %v5318_v13  ;;  %v5334_v47 = vunpack.c.l.s8.bf16 %v4982_v40  ;;  %v5331_v36 = vunpack.c.l.s8.bf16 %v4979_v9  ;;  %v5333_v11 = vunpack.c.l.s8.bf16 %v4981_v15  ;;  %v5348_v29 = vunpack.c.h.s8.bf16 %v4980_v34  ;;  %v9708_v34 = vld [vmem:[#allocation2 + $0x50] sm:$0xff] }
0x16da   : > { %v4791_v45 = vadd.f32 %v4790_v12, %v4776_v50  ;;  %v4795_v31 = vadd.f32 %v4779_v39, %v4778_v55  ;;  %5674 = vmatpush1.bf16.msra.mxu0 %v5315_v41  ;;  %5780 = vmatpush1.bf16.msra.mxu1 %v5317_v16  ;;  %v5350_v58 = vunpack.c.h.s8.bf16 %v4982_v40  ;;  %v5347_v24 = vunpack.c.h.s8.bf16 %v4979_v9  ;;  %v9709_v9 = vld [vmem:[#allocation2 + $0x48] sm:$0xff] }
0x16db   : > { %5675 = vmatprep.subr.bf16.mxu0 %v5332_v38  ;;  %5781 = vmatprep.subr.bf16.mxu1 %v5334_v47  ;;  %v5349_v23 = vunpack.c.h.s8.bf16 %v4981_v15  ;;  %v5364_v56 = vunpack.c.l.s8.bf16 %v4996_v48  ;;  %v5366_v61 = vunpack.c.l.s8.bf16 %v4998_v19  ;;  %v5363_v37 = vunpack.c.l.s8.bf16 %v4995_v3 }
0x16dc   : > { %v4792_v5 = vadd.f32 %v4791_v45, %v4777_v57  ;;  %v4796_v46 = vadd.f32 %v4795_v31, %v4780_v32  ;;  %v5365_v55 = vunpack.c.l.s8.bf16 %v4997_v49  ;;  %v5380_v50 = vunpack.c.h.s8.bf16 %v4996_v48  ;;  %v11874_v32 = vld [vmem:[%s10675_s5 + $0x408] sm:$0xff]  ;;  %v11877_v57 = vld [vmem:[%s10675_s5 + $0x418] sm:$0xff] }
0x16dd   : > { %v5382_v39 = vunpack.c.h.s8.bf16 %v4998_v19  ;;  %v5379_v53 = vunpack.c.h.s8.bf16 %v4995_v3  ;;  %v5381_v12 = vunpack.c.h.s8.bf16 %v4997_v49  ;;  %v5396_v45 = vunpack.c.l.s8.bf16 %v11874_v32  ;;  %v9712_v48 = vld [vmem:[#allocation2 + $0x70] sm:$0xff]  ;;  %v9714_v3 = vld [vmem:[#allocation2 + $0x78] sm:$0xff] }
0x16de   : > { %4793 = vadd.xlane.f32.xlu0 %v4792_v5  ;;  %v4797_v62 = vadd.f32 %v4796_v46, %v4781_v54  ;;  %5676 = vmatpush1.bf16.msra.mxu0 %v5331_v36  ;;  %v5398_v31 = vunpack.c.l.s8.bf16 %v11877_v57  ;;  %v9710_v36 = vld [vmem:[#allocation2 + $0x60] sm:$0xff] }
0x16df   : > { %5782 = vmatpush1.bf16.msra.mxu1 %v5333_v11  ;;  %5677 = vmatprep.subr.bf16.mxu0 %v5348_v29  ;;  %v9711_v29 = vld [vmem:[#allocation2 + $0x58] sm:$0xff] }
0x16e0   : > { %4798 = vadd.xlane.f32.xlu1 %v4797_v62  ;;  %5783 = vmatprep.subr.bf16.mxu1 %v5350_v58 }
0x16e2   : > { %5678 = vmatpush1.bf16.msra.mxu0 %v5347_v24  ;;  %v9713_v24 = vld [vmem:[#allocation2 + $0x68] sm:$0xff] }
0x16e3   : > { %5784 = vmatpush1.bf16.msra.mxu1 %v5349_v23  ;;  %5679 = vmatprep.subr.bf16.mxu0 %v5364_v56 }
0x16e4   : > { %5785 = vmatprep.subr.bf16.mxu1 %v5366_v61 }
0x16e6   : > { %5680 = vmatpush1.bf16.msra.mxu0 %v5363_v37 }
0x16e7   : > { %5786 = vmatpush1.bf16.msra.mxu1 %v5365_v55  ;;  %5681 = vmatprep.subr.bf16.mxu0 %v5380_v50 }
0x16e8   : > { %5787 = vmatprep.subr.bf16.mxu1 %v5382_v39 }
0x16ea   : > { %5682 = vmatpush1.bf16.msra.mxu0 %v5379_v53 }
0x16eb   : > { %5788 = vmatpush1.bf16.msra.mxu1 %v5381_v12  ;;  %5704 = vmatprep.subr.bf16.mxu0 %v5396_v45 }
0x16ec   : > { %5810 = vmatprep.subr.bf16.mxu1 %v5398_v31 }
0x1713   : > { %v4604_v5 = vpop.f32.mrb[92].mxu0  ;;  %v4710_v54 = vpop.f32.mrb[92].mxu1 }
0x1714   : > { %v4749_v46 = vmul.f32 %v11810_v63, %v4604_v5  ;;  %v4751_v62 = vmul.f32 %v11813_v25, %v4710_v54  ;;  %v4606_v43 = vpop.f32.mrb[93].mxu0  ;;  %v4712_v10 = vpop.f32.mrb[93].mxu1 }
0x1715   : > { %v4750_v44 = vmul.f32 %v11816_v42, %v4606_v43  ;;  %v4752_v52 = vmul.f32 %v11819_v8, %v4712_v10  ;;  %v4608_v51 = vpop.f32.mrb[94].mxu0  ;;  %v4714_v26 = vpop.f32.mrb[94].mxu1 }
0x1716   : > { %v11885_v60 = vadd.f32 %v9707_v30, %v4749_v46  ;;  %v4753_v4 = vmul.f32 %v11810_v63, %v4608_v51  ;;  %v4755_v13 = vmul.f32 %v11813_v25, %v4714_v26  ;;  %v4610_v41 = vpop.f32.mrb[95].mxu0  ;;  %v4716_v16 = vpop.f32.mrb[95].mxu1  ;;  %v11889_v40 = vadd.f32 %v9708_v34, %v4751_v62 }
0x1717   : > { %v11891_v38 = vadd.f32 %v9709_v9, %v4750_v44  ;;  %v4754_v47 = vmul.f32 %v11816_v42, %v4610_v41  ;;  %v4756_v63 = vmul.f32 %v11819_v8, %v4716_v16  ;;  %v11901_v58 = vadd.f32 %v9711_v29, %v4752_v52  ;;  %v4773_v44 = vld [vmem:[%s674_s22] sm:$0xf] }
0x1718   : > { %13097 = vst [vmem:[#allocation32_spill] sm:$0xff] %v11885_v60  ;;  %13098 = vst [vmem:[#allocation33_spill] sm:$0xff] %v11889_v40  ;;  %v4782_v15 = vmul.f32 %v11885_v60, %v11885_v60  ;;  %v11896_v11 = vadd.f32 %v9710_v36, %v4753_v4  ;;  %v11903_v19 = vadd.f32 %v9712_v48, %v4755_v13  ;;  %v5011_v36 = vld [vmem:[%s10675_s5 + $0x400] sm:$0xff] }
0x1719   : > { %13099 = vst [vmem:[#allocation34_spill] sm:$0xff] %v11891_v38  ;;  %v4783_v25 = vmul.f32 %v11891_v38, %v11891_v38  ;;  %13101 = vst [vmem:[#allocation36_spill] sm:$0xff] %v11901_v58  ;;  %v11905_v23 = vadd.f32 %v9713_v24, %v4754_v47  ;;  %v4784_v56 = vmul.f32 %v11889_v40, %v11889_v40 }
0x171a   : > { %13100 = vst [vmem:[#allocation35_spill] sm:$0xff] %v11896_v11  ;;  %13102 = vst [vmem:[#allocation37_spill] sm:$0xff] %v11903_v19  ;;  %v4786_v42 = vmul.f32 %v11896_v11, %v11896_v11  ;;  %v11913_v49 = vadd.f32 %v9714_v3, %v4756_v63  ;;  %v4788_v37 = vmul.f32 %v11903_v19, %v11903_v19  ;;  %v5013_v63 = vld [vmem:[%s10675_s5 + $0x410] sm:$0xff] }
0x171b   : > { %13103 = vst [vmem:[#allocation38_spill] sm:$0xff] %v11905_v23  ;;  %v4787_v8 = vmul.f32 %v11905_v23, %v11905_v23  ;;  %v4800_v61 = vadd.f32 %v4783_v25, %v4782_v15  ;;  %v4785_v55 = vmul.f32 %v11901_v58, %v11901_v58  ;;  %v11924_v51 = vrot.slane %v4773_v44, %v10853_v20 }
0x171c   : > { %13104 = vst [vmem:[#allocation39_spill] sm:$0xff] %v11913_v49  ;;  %v4789_v45 = vmul.f32 %v11913_v49, %v11913_v49  ;;  %v11927_v26 = vrot.slane %v4773_v44, %v10856_v21  ;;  %v11930_v30 = vrot.slane %v4773_v44, %v10859_v22  ;;  %v11933_v4 = vrot.slane %v4773_v44, %v10848_v14  ;;  %v5029_v44 = vld [vmem:[%s10675_s5 + $0x490] sm:$0xff] }
0x171d   : > { %v4801_v50 = vadd.f32 %v4800_v61, %v4784_v56  ;;  %v4805_v39 = vadd.f32 %v4787_v8, %v4786_v42 }
0x171f   : > { %v4802_v53 = vadd.f32 %v4801_v50, %v4785_v55  ;;  %v4806_v12 = vadd.f32 %v4805_v39, %v4788_v37  ;;  %v5395_v39 = vunpack.c.l.s8.bf16 %v5011_v36 }
0x1721   : > { %4803 = vadd.xlane.f32.xlu0 %v4802_v53  ;;  %v4807_v31 = vadd.f32 %v4806_v12, %v4789_v45  ;;  %v5397_v53 = vunpack.c.l.s8.bf16 %v5013_v63  ;;  %v5412_v12 = vunpack.c.h.s8.bf16 %v11874_v32  ;;  %v5414_v45 = vunpack.c.h.s8.bf16 %v11877_v57 }
0x1722   : > { %v5411_v32 = vunpack.c.h.s8.bf16 %v5011_v36  ;;  %v5413_v57 = vunpack.c.h.s8.bf16 %v5013_v63 }
0x1725   : > { %4808 = vadd.xlane.f32.xlu0 %v4807_v31 }
0x176b   : > { %v4794_v5 = vpop.xlane.xlu0 %4793 }
0x176c   : > { %v4810_v54 = vmul.f32 0.001953125, %v4794_v5 }
0x176d   : > { %v4799_v46 = vpop.xlane.xlu1 %4798 }
0x176e   : > { %v4814_v62 = vadd.f32 1e-06, %v4810_v54  ;;  %v4811_v43 = vmul.f32 0.001953125, %v4799_v46  ;;  %v5028_v54 = vld [vmem:[%s10675_s5 + $0x488] sm:$0xff]  ;;  %v5030_v46 = vld [vmem:[%s10675_s5 + $0x498] sm:$0xff] }
0x1770   : > { %9691 = vrsqrt.f32 %v4814_v62  ;;  %v4815_v10 = vadd.f32 1e-06, %v4811_v43  ;;  %v5428_v62 = vunpack.c.l.s8.bf16 %v5028_v54  ;;  %v5430_v43 = vunpack.c.l.s8.bf16 %v5030_v46 }
0x1772   : > { %9693 = vrsqrt.f32 %v4815_v10  ;;  %v5027_v10 = vld [vmem:[%s10675_s5 + $0x480] sm:$0xff] }
0x177a   : > { %v9692_v52 = vpop.eup %9691 }
0x177b   : > { %v4823_v13 = vmul.f32 %v9692_v52, %v11831_v18  ;;  %v4822_v41 = vmul.f32 %v9692_v52, %v11825_v27  ;;  %v4825_v16 = vmul.f32 %v9692_v52, %v11841_v2  ;;  %v4824_v34 = vmul.f32 %v9692_v52, %v11829_v35 }
0x177c   : > { %v9694_v9 = vpop.eup %9693  ;;  %v5427_v52 = vunpack.c.l.s8.bf16 %v5027_v10 }
0x177d   : > { %v4827_v47 = vmul.f32 %v9694_v9, %v11845_v17  ;;  %v4826_v15 = vmul.f32 %v9694_v9, %v11837_v28  ;;  %v4829_v25 = vmul.f32 %v9694_v9, %v11853_v0  ;;  %v4862_v29 = vmul.f32 %v11930_v30, %v4825_v16 }
0x177e   : > { %v4828_v48 = vmul.f32 %v9694_v9, %v11843_v33  ;;  %v4861_v24 = vmul.f32 %v11933_v4, %v4824_v34  ;;  %v4860_v42 = vmul.f32 %v11924_v51, %v4823_v13  ;;  %v4859_v8 = vmul.f32 %v11927_v26, %v4822_v41  ;;  %v5044_v34 = vld [vmem:[%s10675_s5 + $0x508] sm:$0xff]  ;;  %v5046_v9 = vld [vmem:[%s10675_s5 + $0x518] sm:$0xff] }
0x177f   : > { %v4864_v56 = vmul.f32 %v11924_v51, %v4827_v47  ;;  %v4863_v61 = vmul.f32 %v11927_v26, %v4826_v15  ;;  %v4866_v3 = vmul.f32 %v11930_v30, %v4829_v25  ;;  %v5429_v13 = vunpack.c.l.s8.bf16 %v5029_v44  ;;  %v5043_v25 = vld [vmem:[%s10675_s5 + $0x500] sm:$0xff] }
0x1780   : > { %v4865_v37 = vmul.f32 %v11933_v4, %v4828_v48  ;;  %v5444_v41 = vunpack.c.h.s8.bf16 %v5028_v54  ;;  %v5446_v16 = vunpack.c.h.s8.bf16 %v5030_v46  ;;  %v5443_v47 = vunpack.c.h.s8.bf16 %v5027_v10 }
0x1781   : > { %v11953_v55 = vpack.c.bf16 %v4864_v56, %v4860_v42  ;;  %v11955_v50 = vpack.c.bf16 %v4863_v61, %v4859_v8  ;;  %v11959_v31 = vpack.c.bf16 %v4866_v3, %v4862_v29  ;;  %v5445_v15 = vunpack.c.h.s8.bf16 %v5029_v44  ;;  %v5045_v29 = vld [vmem:[%s10675_s5 + $0x510] sm:$0xff]  ;;  %v5060_v8 = vld [vmem:[%s10675_s5 + $0x588] sm:$0xff]  ;;  %v5062_v61 = vld [vmem:[%s10675_s5 + $0x598] sm:$0xff] }
0x1782   : > { %v11961_v5 = vpack.c.bf16 %v4865_v37, %v4861_v24  ;;  %v5460_v36 = vunpack.c.l.s8.bf16 %v5044_v34  ;;  %v5462_v63 = vunpack.c.l.s8.bf16 %v5046_v9  ;;  %v5459_v48 = vunpack.c.l.s8.bf16 %v5043_v25 }
0x1783   : > { %5683 = vmatprep.mubr.bf16.mxu0 %v11953_v55  ;;  %5789 = vmatprep.mubr.bf16.mxu1 %v11953_v55  ;;  %v5461_v24 = vunpack.c.l.s8.bf16 %v5045_v29  ;;  %v5476_v42 = vunpack.c.h.s8.bf16 %v5044_v34  ;;  %v5478_v56 = vunpack.c.h.s8.bf16 %v5046_v9  ;;  %v5475_v3 = vunpack.c.h.s8.bf16 %v5043_v25 }
0x1784   : > { %5684 = vmatmul.mubr.bf16.vlgmr.msra.gmra.mrb[96].mxu0 %v11955_v50  ;;  %5790 = vmatmul.mubr.bf16.vlgmr.msra.gmra.mrb[96].mxu1 %v11955_v50  ;;  %v5477_v37 = vunpack.c.h.s8.bf16 %v5045_v29 }
0x1785   : > { %5705 = vmatpush1.bf16.msra.mxu0 %v5395_v39  ;;  %5811 = vmatpush1.bf16.msra.mxu1 %v5397_v53  ;;  %v5492_v39 = vunpack.c.l.s8.bf16 %v5060_v8  ;;  %v5494_v53 = vunpack.c.l.s8.bf16 %v5062_v61 }
0x1786   : > { %5706 = vmatprep.subr.bf16.mxu0 %v5412_v12  ;;  %5812 = vmatprep.subr.bf16.mxu1 %v5414_v45  ;;  %v5059_v12 = vld [vmem:[%s10675_s5 + $0x580] sm:$0xff]  ;;  %v5061_v45 = vld [vmem:[%s10675_s5 + $0x590] sm:$0xff] }
0x1787   : > { %v5491_v54 = vunpack.c.l.s8.bf16 %v5059_v12  ;;  %v5493_v46 = vunpack.c.l.s8.bf16 %v5061_v45  ;;  %v5507_v10 = vunpack.c.h.s8.bf16 %v5059_v12  ;;  %v5509_v44 = vunpack.c.h.s8.bf16 %v5061_v45 }
0x1789   : > { %5707 = vmatpush1.bf16.msra.mxu0 %v5411_v32  ;;  %5813 = vmatpush1.bf16.msra.mxu1 %v5413_v57  ;;  %v5508_v32 = vunpack.c.h.s8.bf16 %v5060_v8  ;;  %v5510_v57 = vunpack.c.h.s8.bf16 %v5062_v61 }
0x178a   : > { %5708 = vmatprep.subr.bf16.mxu0 %v5428_v62  ;;  %5814 = vmatprep.subr.bf16.mxu1 %v5430_v43  ;;  %v5076_v62 = vld [vmem:[%s10675_s5 + $0x608] sm:$0xff]  ;;  %v5078_v43 = vld [vmem:[%s10675_s5 + $0x618] sm:$0xff] }
0x178d   : > { %5709 = vmatpush1.bf16.msra.mxu0 %v5427_v52  ;;  %5815 = vmatpush1.bf16.msra.mxu1 %v5429_v13  ;;  %v5524_v52 = vunpack.c.l.s8.bf16 %v5076_v62  ;;  %v5526_v13 = vunpack.c.l.s8.bf16 %v5078_v43 }
0x178e   : > { %5710 = vmatprep.subr.bf16.mxu0 %v5444_v41  ;;  %5816 = vmatprep.subr.bf16.mxu1 %v5446_v16  ;;  %v5075_v41 = vld [vmem:[%s10675_s5 + $0x600] sm:$0xff]  ;;  %v5077_v16 = vld [vmem:[%s10675_s5 + $0x610] sm:$0xff] }
0x178f   : > { %v5523_v34 = vunpack.c.l.s8.bf16 %v5075_v41  ;;  %v5525_v9 = vunpack.c.l.s8.bf16 %v5077_v16  ;;  %v5539_v25 = vunpack.c.h.s8.bf16 %v5075_v41  ;;  %v5541_v29 = vunpack.c.h.s8.bf16 %v5077_v16 }
0x1791   : > { %5711 = vmatpush1.bf16.msra.mxu0 %v5443_v47  ;;  %5817 = vmatpush1.bf16.msra.mxu1 %v5445_v15  ;;  %v5540_v47 = vunpack.c.h.s8.bf16 %v5076_v62  ;;  %v5542_v15 = vunpack.c.h.s8.bf16 %v5078_v43  ;;  %v5109_v62 = vld [vmem:[%s10675_s5 + $0x710] sm:$0xff] }
0x1792   : > { %5712 = vmatprep.subr.bf16.mxu0 %v5460_v36  ;;  %5818 = vmatprep.subr.bf16.mxu1 %v5462_v63  ;;  %v5092_v36 = vld [vmem:[%s10675_s5 + $0x688] sm:$0xff]  ;;  %v5094_v63 = vld [vmem:[%s10675_s5 + $0x698] sm:$0xff] }
0x1795   : > { %5713 = vmatpush1.bf16.msra.mxu0 %v5459_v48  ;;  %5819 = vmatpush1.bf16.msra.mxu1 %v5461_v24  ;;  %v5556_v48 = vunpack.c.l.s8.bf16 %v5092_v36  ;;  %v5558_v24 = vunpack.c.l.s8.bf16 %v5094_v63 }
0x1796   : > { %5714 = vmatprep.subr.bf16.mxu0 %v5476_v42  ;;  %5820 = vmatprep.subr.bf16.mxu1 %v5478_v56  ;;  %v5091_v42 = vld [vmem:[%s10675_s5 + $0x680] sm:$0xff]  ;;  %v5093_v56 = vld [vmem:[%s10675_s5 + $0x690] sm:$0xff] }
0x1797   : > { %v5555_v8 = vunpack.c.l.s8.bf16 %v5091_v42  ;;  %v5557_v61 = vunpack.c.l.s8.bf16 %v5093_v56  ;;  %v5571_v12 = vunpack.c.h.s8.bf16 %v5091_v42  ;;  %v5573_v45 = vunpack.c.h.s8.bf16 %v5093_v56 }
0x1799   : > { %5715 = vmatpush1.bf16.msra.mxu0 %v5475_v3  ;;  %5821 = vmatpush1.bf16.msra.mxu1 %v5477_v37  ;;  %v5572_v3 = vunpack.c.h.s8.bf16 %v5092_v36  ;;  %v5574_v37 = vunpack.c.h.s8.bf16 %v5094_v63  ;;  %v5605_v63 = vunpack.c.h.s8.bf16 %v5109_v62 }
0x179a   : > { %5716 = vmatprep.subr.bf16.mxu0 %v5492_v39  ;;  %5822 = vmatprep.subr.bf16.mxu1 %v5494_v53  ;;  %v5108_v39 = vld [vmem:[%s10675_s5 + $0x708] sm:$0xff]  ;;  %v5110_v53 = vld [vmem:[%s10675_s5 + $0x718] sm:$0xff] }
0x179b   : > { %v5604_v41 = vunpack.c.h.s8.bf16 %v5108_v39  ;;  %v5606_v16 = vunpack.c.h.s8.bf16 %v5110_v53 }
0x179d   : > { %5717 = vmatpush1.bf16.msra.mxu0 %v5491_v54  ;;  %5823 = vmatpush1.bf16.msra.mxu1 %v5493_v46  ;;  %v5588_v46 = vunpack.c.l.s8.bf16 %v5108_v39 }
0x179e   : > { %5718 = vmatprep.subr.bf16.mxu0 %v5508_v32  ;;  %5824 = vmatprep.subr.bf16.mxu1 %v5510_v57  ;;  %v5590_v32 = vunpack.c.l.s8.bf16 %v5110_v53  ;;  %v5107_v57 = vld [vmem:[%s10675_s5 + $0x700] sm:$0xff] }
0x179f   : > { %v5603_v36 = vunpack.c.h.s8.bf16 %v5107_v57 }
0x17a1   : > { %5719 = vmatpush1.bf16.msra.mxu0 %v5507_v10  ;;  %5825 = vmatpush1.bf16.msra.mxu1 %v5509_v44  ;;  %v5587_v44 = vunpack.c.l.s8.bf16 %v5107_v57 }
0x17a2   : > { %5720 = vmatprep.subr.bf16.mxu0 %v5524_v52  ;;  %5826 = vmatprep.subr.bf16.mxu1 %v5526_v13  ;;  %v5589_v52 = vunpack.c.l.s8.bf16 %v5109_v62 }
0x17a5   : > { %5721 = vmatpush1.bf16.msra.mxu0 %v5523_v34  ;;  %5827 = vmatpush1.bf16.msra.mxu1 %v5525_v9  ;;  %v5124_v9 = vld [vmem:[%s10675_s5 + $0x788] sm:$0xff] }
0x17a6   : > { %5722 = vmatprep.subr.bf16.mxu0 %v5540_v47  ;;  %5828 = vmatprep.subr.bf16.mxu1 %v5542_v15  ;;  %v5126_v47 = vld [vmem:[%s10675_s5 + $0x798] sm:$0xff] }
0x17a9   : > { %5723 = vmatpush1.bf16.msra.mxu0 %v5539_v25  ;;  %5829 = vmatpush1.bf16.msra.mxu1 %v5541_v29  ;;  %v5620_v25 = vunpack.c.l.s8.bf16 %v5124_v9  ;;  %v5622_v29 = vunpack.c.l.s8.bf16 %v5126_v47 }
0x17aa   : > { %5724 = vmatprep.subr.bf16.mxu0 %v5556_v48  ;;  %5830 = vmatprep.subr.bf16.mxu1 %v5558_v24  ;;  %v5123_v48 = vld [vmem:[%s10675_s5 + $0x780] sm:$0xff]  ;;  %v5125_v24 = vld [vmem:[%s10675_s5 + $0x790] sm:$0xff] }
0x17ab   : > { %v5619_v42 = vunpack.c.l.s8.bf16 %v5123_v48  ;;  %v5621_v56 = vunpack.c.l.s8.bf16 %v5125_v24  ;;  %v5635_v53 = vunpack.c.h.s8.bf16 %v5123_v48 }
0x17ad   : > { %5725 = vmatpush1.bf16.msra.mxu0 %v5555_v8  ;;  %5831 = vmatpush1.bf16.msra.mxu1 %v5557_v61  ;;  %v5636_v8 = vunpack.c.h.s8.bf16 %v5124_v9  ;;  %v5638_v61 = vunpack.c.h.s8.bf16 %v5126_v47 }
0x17ae   : > { %v4804_v54 = vpop.xlane.xlu0 %4803  ;;  %5726 = vmatprep.subr.bf16.mxu0 %v5572_v3  ;;  %5832 = vmatprep.subr.bf16.mxu1 %v5574_v37  ;;  %v4888_v3 = vld [vmem:[%s10675_s5 + $0x28] sm:$0xff]  ;;  %v4890_v37 = vld [vmem:[%s10675_s5 + $0x38] sm:$0xff] }
0x17af   : > { %v4812_v43 = vmul.f32 0.001953125, %v4804_v54  ;;  %v5146_v54 = vunpack.c.l.s8.bf16 %v4890_v37  ;;  %v5162_v48 = vunpack.c.h.s8.bf16 %v4890_v37 }
0x17b1   : > { %v4816_v10 = vadd.f32 1e-06, %v4812_v43  ;;  %5727 = vmatpush1.bf16.msra.mxu0 %v5571_v12  ;;  %5833 = vmatpush1.bf16.msra.mxu1 %v5573_v45  ;;  %v5637_v12 = vunpack.c.h.s8.bf16 %v5125_v24  ;;  %v5144_v45 = vunpack.c.l.s8.bf16 %v4888_v3  ;;  %v4904_v24 = vld [vmem:[%s10675_s5 + $0xa8] sm:$0xff] }
0x17b2   : > { %v4809_v13 = vpop.xlane.xlu0 %4808  ;;  %5728 = vmatprep.subr.bf16.mxu0 %v5588_v46  ;;  %5834 = vmatprep.subr.bf16.mxu1 %v5590_v32 }
0x17b3   : > { %9695 = vrsqrt.f32 %v4816_v10  ;;  %v4813_v34 = vmul.f32 0.001953125, %v4809_v13 }
0x17b5   : > { %v4817_v15 = vadd.f32 1e-06, %v4813_v34  ;;  %5729 = vmatpush1.bf16.msra.mxu0 %v5587_v44  ;;  %5835 = vmatpush1.bf16.msra.mxu1 %v5589_v52  ;;  %v4889_v34 = vld [vmem:[%s10675_s5 + $0x30] sm:$0xff] }
0x17b6   : > { %5730 = vmatprep.subr.bf16.mxu0 %v5604_v41  ;;  %5836 = vmatprep.subr.bf16.mxu1 %v5606_v16 }
0x17b7   : > { %9697 = vrsqrt.f32 %v4817_v15 }
0x17b9   : > { %5731 = vmatpush1.bf16.msra.mxu0 %v5603_v36  ;;  %5837 = vmatpush1.bf16.msra.mxu1 %v5605_v63  ;;  %v5145_v36 = vunpack.c.l.s8.bf16 %v4889_v34 }
0x17ba   : > { %5732 = vmatprep.subr.bf16.mxu0 %v5620_v25  ;;  %5838 = vmatprep.subr.bf16.mxu1 %v5622_v29  ;;  %v5160_v29 = vunpack.c.h.s8.bf16 %v4888_v3  ;;  %v5176_v3 = vunpack.c.l.s8.bf16 %v4904_v24 }
0x17bd   : > { %v9696_v39 = vpop.eup %9695  ;;  %5733 = vmatpush1.bf16.msra.mxu0 %v5619_v42  ;;  %5839 = vmatpush1.bf16.msra.mxu1 %v5621_v56  ;;  %v4906_v42 = vld [vmem:[%s10675_s5 + $0xb8] sm:$0xff] }
0x17be   : > { %5734 = vmatprep.subr.bf16.mxu0 %v5636_v8  ;;  %5840 = vmatprep.subr.bf16.mxu1 %v5638_v61  ;;  %v4831_v46 = vmul.f32 %v9696_v39, %v11891_v38  ;;  %v4830_v32 = vmul.f32 %v9696_v39, %v11885_v60  ;;  %v4833_v9 = vmul.f32 %v9696_v39, %v11901_v58  ;;  %v5178_v37 = vunpack.c.l.s8.bf16 %v4906_v42 }
0x17bf   : > { %v4832_v8 = vmul.f32 %v9696_v39, %v11889_v40 }
0x17c0   : > { %v4868_v10 = vmul.f32 %v11924_v51, %v4831_v46  ;;  %v4867_v52 = vmul.f32 %v11927_v26, %v4830_v32  ;;  %v4870_v63 = vmul.f32 %v11930_v30, %v4833_v9 }
0x17c1   : > { %v9698_v57 = vpop.eup %9697  ;;  %5735 = vmatpush1.bf16.msra.mxu0 %v5635_v53  ;;  %5841 = vmatpush1.bf16.msra.mxu1 %v5637_v12  ;;  %v4903_v12 = vld [vmem:[%s10675_s5 + $0xa0] sm:$0xff]  ;;  %v4869_v39 = vmul.f32 %v11933_v4, %v4832_v8  ;;  %v4937_v8 = vld [vmem:[%s10675_s5 + $0x1b0] sm:$0xff] }
0x17c2   : > { %v4835_v62 = vmul.f32 %v9698_v57, %v11905_v23  ;;  %v4834_v43 = vmul.f32 %v9698_v57, %v11896_v11  ;;  %5863 = vmatprep.subr.bf16.mxu0 %v5144_v45  ;;  %5969 = vmatprep.subr.bf16.mxu1 %v5146_v54  ;;  %v4836_v25 = vmul.f32 %v9698_v57, %v11903_v19  ;;  %v4905_v45 = vld [vmem:[%s10675_s5 + $0xb0] sm:$0xff]  ;;  %v5175_v54 = vunpack.c.l.s8.bf16 %v4903_v12 }
0x17c3   : > { %v5177_v46 = vunpack.c.l.s8.bf16 %v4905_v45 }
0x17c4   : > { %v4872_v44 = vmul.f32 %v11924_v51, %v4835_v62  ;;  %v4871_v13 = vmul.f32 %v11927_v26, %v4834_v43  ;;  %v4837_v51 = vmul.f32 %v9698_v57, %v11913_v49  ;;  %v4887_v26 = vld [vmem:[%s10675_s5 + $0x20] sm:$0xff]  ;;  %v4873_v53 = vmul.f32 %v11933_v4, %v4836_v25  ;;  %v4920_v43 = vld [vmem:[%s10675_s5 + $0x128] sm:$0xff] }
0x17c5   : > { %v5143_v15 = vunpack.c.l.s8.bf16 %v4887_v26  ;;  %v5159_v61 = vunpack.c.h.s8.bf16 %v4887_v26  ;;  %v5192_v57 = vunpack.c.h.s8.bf16 %v4904_v24  ;;  %v5194_v62 = vunpack.c.h.s8.bf16 %v4906_v42  ;;  %v4921_v26 = vld [vmem:[%s10675_s5 + $0x130] sm:$0xff]  ;;  %v4935_v42 = vld [vmem:[%s10675_s5 + $0x1a0] sm:$0xff] }
0x17c6   : > { %v12005_v41 = vpack.c.bf16 %v4872_v44, %v4868_v10  ;;  %v12007_v16 = vpack.c.bf16 %v4871_v13, %v4867_v52  ;;  %v4874_v47 = vmul.f32 %v11930_v30, %v4837_v51  ;;  %v5161_v30 = vunpack.c.h.s8.bf16 %v4889_v34  ;;  %v4922_v10 = vld [vmem:[%s10675_s5 + $0x138] sm:$0xff]  ;;  %v4919_v51 = vld [vmem:[%s10675_s5 + $0x120] sm:$0xff] }
0x17c7   : > { %v12035_v32 = vpack.c.bf16 %v4873_v53, %v4869_v39  ;;  %v5191_v4 = vunpack.c.h.s8.bf16 %v4903_v12  ;;  %v5193_v44 = vunpack.c.h.s8.bf16 %v4905_v45  ;;  %v5208_v52 = vunpack.c.l.s8.bf16 %v4920_v43  ;;  %v4952_v53 = vld [vmem:[%s10675_s5 + $0x228] sm:$0xff]  ;;  %v4954_v12 = vld [vmem:[%s10675_s5 + $0x238] sm:$0xff] }
0x17c8   : > { %5693 = vmatprep.mubr.bf16.mxu0 %v12005_v41  ;;  %5799 = vmatprep.mubr.bf16.mxu1 %v12005_v41  ;;  %v12026_v56 = vpack.c.bf16 %v4874_v47, %v4870_v63  ;;  %v5210_v13 = vunpack.c.l.s8.bf16 %v4922_v10  ;;  %v5207_v34 = vunpack.c.l.s8.bf16 %v4919_v51  ;;  %v5209_v9 = vunpack.c.l.s8.bf16 %v4921_v26  ;;  %v4938_v63 = vld [vmem:[%s10675_s5 + $0x1b8] sm:$0xff] }
0x17c9   : > { %5694 = vmatmul.mubr.bf16.gmra.mrb[100].mxu0 %v12007_v16  ;;  %5800 = vmatmul.mubr.bf16.gmra.mrb[100].mxu1 %v12007_v16  ;;  %v5224_v47 = vunpack.c.h.s8.bf16 %v4920_v43  ;;  %v5223_v25 = vunpack.c.h.s8.bf16 %v4919_v51  ;;  %v5242_v24 = vunpack.c.l.s8.bf16 %v4938_v63  ;;  %v5255_v45 = vunpack.c.h.s8.bf16 %v4935_v42 }
0x17ca   : > { %5736 = vmatprep.mubr.bf16.mxu0 %v11959_v31  ;;  %5842 = vmatprep.mubr.bf16.mxu1 %v11959_v31  ;;  %v5257_v39 = vunpack.c.h.s8.bf16 %v4937_v8 }
0x17d1   : > { %5737 = vmatmul.mubr.bf16.vlgmr.msra.gmra.mrb[96].mxu0 %v11961_v5  ;;  %5843 = vmatmul.mubr.bf16.vlgmr.msra.gmra.mrb[96].mxu1 %v11961_v5 }
0x17d2   : > { %5864 = vmatpush1.bf16.msra.mxu0 %v5143_v15  ;;  %5970 = vmatpush1.bf16.msra.mxu1 %v5145_v36  ;;  %v5226_v15 = vunpack.c.h.s8.bf16 %v4922_v10  ;;  %v4936_v36 = vld [vmem:[%s10675_s5 + $0x1a8] sm:$0xff] }
0x17d3   : > { %5746 = vmatprep.mubr.bf16.mxu0 %v12026_v56  ;;  %5852 = vmatprep.mubr.bf16.mxu1 %v12026_v56 }
0x17d4   : > { %5865 = vmatprep.subr.bf16.mxu0 %v5160_v29  ;;  %5971 = vmatprep.subr.bf16.mxu1 %v5162_v48  ;;  %v5225_v29 = vunpack.c.h.s8.bf16 %v4921_v26  ;;  %v5240_v48 = vunpack.c.l.s8.bf16 %v4936_v36 }
0x17d6   : > { %5866 = vmatpush1.bf16.msra.mxu0 %v5159_v61  ;;  %5972 = vmatpush1.bf16.msra.mxu1 %v5161_v30  ;;  %v5239_v61 = vunpack.c.l.s8.bf16 %v4935_v42  ;;  %v5241_v30 = vunpack.c.l.s8.bf16 %v4937_v8 }
0x17d7   : > { %5867 = vmatprep.subr.bf16.mxu0 %v5176_v3  ;;  %5973 = vmatprep.subr.bf16.mxu1 %v5178_v37  ;;  %v5256_v3 = vunpack.c.h.s8.bf16 %v4936_v36  ;;  %v5258_v37 = vunpack.c.h.s8.bf16 %v4938_v63 }
0x17d9   : > { %5747 = vmatmul.mubr.bf16.gmra.mrb[100].mxu0 %v12035_v32  ;;  %5853 = vmatmul.mubr.bf16.gmra.mrb[100].mxu1 %v12035_v32 }
0x17da   : > { %5868 = vmatpush1.bf16.msra.mxu0 %v5175_v54  ;;  %5974 = vmatpush1.bf16.msra.mxu1 %v5177_v46  ;;  %v5272_v54 = vunpack.c.l.s8.bf16 %v4952_v53  ;;  %v5274_v46 = vunpack.c.l.s8.bf16 %v4954_v12 }
0x17db   : > { %5895 = vmatprep.mubr.bf16.mxu0 %v11953_v55  ;;  %6001 = vmatprep.mubr.bf16.mxu1 %v11953_v55 }
0x17dc   : > { %5869 = vmatprep.subr.bf16.mxu0 %v5192_v57  ;;  %5975 = vmatprep.subr.bf16.mxu1 %v5194_v62  ;;  %v4951_v57 = vld [vmem:[%s10675_s5 + $0x220] sm:$0xff]  ;;  %v4953_v62 = vld [vmem:[%s10675_s5 + $0x230] sm:$0xff] }
0x17dd   : > { %v5271_v43 = vunpack.c.l.s8.bf16 %v4951_v57  ;;  %v5273_v10 = vunpack.c.l.s8.bf16 %v4953_v62  ;;  %v5287_v51 = vunpack.c.h.s8.bf16 %v4951_v57  ;;  %v5289_v26 = vunpack.c.h.s8.bf16 %v4953_v62 }
0x17de   : > { %5870 = vmatpush1.bf16.msra.mxu0 %v5191_v4  ;;  %5976 = vmatpush1.bf16.msra.mxu1 %v5193_v44  ;;  %v5288_v4 = vunpack.c.h.s8.bf16 %v4952_v53  ;;  %v5290_v44 = vunpack.c.h.s8.bf16 %v4954_v12 }
0x17df   : > { %5871 = vmatprep.subr.bf16.mxu0 %v5208_v52  ;;  %5977 = vmatprep.subr.bf16.mxu1 %v5210_v13  ;;  %v4968_v52 = vld [vmem:[%s10675_s5 + $0x2a8] sm:$0xff]  ;;  %v4970_v13 = vld [vmem:[%s10675_s5 + $0x2b8] sm:$0xff] }
0x17e2   : > { %5872 = vmatpush1.bf16.msra.mxu0 %v5207_v34  ;;  %5978 = vmatpush1.bf16.msra.mxu1 %v5209_v9  ;;  %v5304_v34 = vunpack.c.l.s8.bf16 %v4968_v52  ;;  %v5306_v9 = vunpack.c.l.s8.bf16 %v4970_v13 }
0x17e3   : > { %5873 = vmatprep.subr.bf16.mxu0 %v5224_v47  ;;  %5979 = vmatprep.subr.bf16.mxu1 %v5226_v15  ;;  %v4967_v47 = vld [vmem:[%s10675_s5 + $0x2a0] sm:$0xff]  ;;  %v4969_v15 = vld [vmem:[%s10675_s5 + $0x2b0] sm:$0xff] }
0x17e4   : > { %v5303_v36 = vunpack.c.l.s8.bf16 %v4967_v47  ;;  %v5305_v63 = vunpack.c.l.s8.bf16 %v4969_v15  ;;  %v5319_v42 = vunpack.c.h.s8.bf16 %v4967_v47  ;;  %v5321_v8 = vunpack.c.h.s8.bf16 %v4969_v15 }
0x17e6   : > { %5874 = vmatpush1.bf16.msra.mxu0 %v5223_v25  ;;  %5980 = vmatpush1.bf16.msra.mxu1 %v5225_v29  ;;  %v5320_v25 = vunpack.c.h.s8.bf16 %v4968_v52  ;;  %v5322_v29 = vunpack.c.h.s8.bf16 %v4970_v13 }
0x17e7   : > { %5875 = vmatprep.subr.bf16.mxu0 %v5240_v48  ;;  %5981 = vmatprep.subr.bf16.mxu1 %v5242_v24  ;;  %v4984_v48 = vld [vmem:[%s10675_s5 + $0x328] sm:$0xff]  ;;  %v4986_v24 = vld [vmem:[%s10675_s5 + $0x338] sm:$0xff] }
0x17ea   : > { %5876 = vmatpush1.bf16.msra.mxu0 %v5239_v61  ;;  %5982 = vmatpush1.bf16.msra.mxu1 %v5241_v30  ;;  %v5336_v61 = vunpack.c.l.s8.bf16 %v4984_v48  ;;  %v5338_v30 = vunpack.c.l.s8.bf16 %v4986_v24 }
0x17eb   : > { %5877 = vmatprep.subr.bf16.mxu0 %v5256_v3  ;;  %5983 = vmatprep.subr.bf16.mxu1 %v5258_v37  ;;  %v4983_v3 = vld [vmem:[%s10675_s5 + $0x320] sm:$0xff]  ;;  %v4985_v37 = vld [vmem:[%s10675_s5 + $0x330] sm:$0xff] }
0x17ec   : > { %v5335_v53 = vunpack.c.l.s8.bf16 %v4983_v3  ;;  %v5337_v12 = vunpack.c.l.s8.bf16 %v4985_v37  ;;  %v5351_v57 = vunpack.c.h.s8.bf16 %v4983_v3  ;;  %v5353_v62 = vunpack.c.h.s8.bf16 %v4985_v37 }
0x17ee   : > { %5878 = vmatpush1.bf16.msra.mxu0 %v5255_v45  ;;  %5984 = vmatpush1.bf16.msra.mxu1 %v5257_v39  ;;  %v5352_v45 = vunpack.c.h.s8.bf16 %v4984_v48  ;;  %v5354_v39 = vunpack.c.h.s8.bf16 %v4986_v24 }
0x17ef   : > { %5879 = vmatprep.subr.bf16.mxu0 %v5272_v54  ;;  %5985 = vmatprep.subr.bf16.mxu1 %v5274_v46  ;;  %v5000_v54 = vld [vmem:[%s10675_s5 + $0x3a8] sm:$0xff]  ;;  %v5002_v46 = vld [vmem:[%s10675_s5 + $0x3b8] sm:$0xff] }
0x17f2   : > { %5880 = vmatpush1.bf16.msra.mxu0 %v5271_v43  ;;  %5986 = vmatpush1.bf16.msra.mxu1 %v5273_v10  ;;  %v5368_v43 = vunpack.c.l.s8.bf16 %v5000_v54  ;;  %v5370_v10 = vunpack.c.l.s8.bf16 %v5002_v46 }
0x17f3   : > { %5881 = vmatprep.subr.bf16.mxu0 %v5288_v4  ;;  %5987 = vmatprep.subr.bf16.mxu1 %v5290_v44  ;;  %v4999_v4 = vld [vmem:[%s10675_s5 + $0x3a0] sm:$0xff]  ;;  %v5001_v44 = vld [vmem:[%s10675_s5 + $0x3b0] sm:$0xff] }
0x17f4   : > { %v5367_v52 = vunpack.c.l.s8.bf16 %v4999_v4  ;;  %v5369_v13 = vunpack.c.l.s8.bf16 %v5001_v44  ;;  %v5383_v47 = vunpack.c.h.s8.bf16 %v4999_v4  ;;  %v5385_v15 = vunpack.c.h.s8.bf16 %v5001_v44 }
0x17f6   : > { %5882 = vmatpush1.bf16.msra.mxu0 %v5287_v51  ;;  %5988 = vmatpush1.bf16.msra.mxu1 %v5289_v26  ;;  %v5384_v51 = vunpack.c.h.s8.bf16 %v5000_v54  ;;  %v5386_v26 = vunpack.c.h.s8.bf16 %v5002_v46 }
0x17f7   : > { %5883 = vmatprep.subr.bf16.mxu0 %v5304_v34  ;;  %5989 = vmatprep.subr.bf16.mxu1 %v5306_v9  ;;  %v5016_v34 = vld [vmem:[%s10675_s5 + $0x428] sm:$0xff]  ;;  %v5018_v9 = vld [vmem:[%s10675_s5 + $0x438] sm:$0xff] }
0x17fa   : > { %5884 = vmatpush1.bf16.msra.mxu0 %v5303_v36  ;;  %5990 = vmatpush1.bf16.msra.mxu1 %v5305_v63  ;;  %v5400_v36 = vunpack.c.l.s8.bf16 %v5016_v34  ;;  %v5402_v63 = vunpack.c.l.s8.bf16 %v5018_v9 }
0x17fb   : > { %5885 = vmatprep.subr.bf16.mxu0 %v5320_v25  ;;  %5991 = vmatprep.subr.bf16.mxu1 %v5322_v29  ;;  %v5015_v25 = vld [vmem:[%s10675_s5 + $0x420] sm:$0xff]  ;;  %v5017_v29 = vld [vmem:[%s10675_s5 + $0x430] sm:$0xff] }
0x17fc   : > { %v5399_v48 = vunpack.c.l.s8.bf16 %v5015_v25  ;;  %v5401_v24 = vunpack.c.l.s8.bf16 %v5017_v29  ;;  %v5415_v3 = vunpack.c.h.s8.bf16 %v5015_v25  ;;  %v5417_v37 = vunpack.c.h.s8.bf16 %v5017_v29 }
0x17fe   : > { %5886 = vmatpush1.bf16.msra.mxu0 %v5319_v42  ;;  %5992 = vmatpush1.bf16.msra.mxu1 %v5321_v8  ;;  %v5416_v42 = vunpack.c.h.s8.bf16 %v5016_v34  ;;  %v5418_v8 = vunpack.c.h.s8.bf16 %v5018_v9 }
0x17ff   : > { %5887 = vmatprep.subr.bf16.mxu0 %v5336_v61  ;;  %5993 = vmatprep.subr.bf16.mxu1 %v5338_v30  ;;  %v5032_v61 = vld [vmem:[%s10675_s5 + $0x4a8] sm:$0xff]  ;;  %v5034_v30 = vld [vmem:[%s10675_s5 + $0x4b8] sm:$0xff] }
0x1802   : > { %5888 = vmatpush1.bf16.msra.mxu0 %v5335_v53  ;;  %5994 = vmatpush1.bf16.msra.mxu1 %v5337_v12  ;;  %v5432_v53 = vunpack.c.l.s8.bf16 %v5032_v61  ;;  %v5031_v12 = vld [vmem:[%s10675_s5 + $0x4a0] sm:$0xff] }
0x1803   : > { %5889 = vmatprep.subr.bf16.mxu0 %v5352_v45  ;;  %5995 = vmatprep.subr.bf16.mxu1 %v5354_v39  ;;  %v5434_v45 = vunpack.c.l.s8.bf16 %v5034_v30  ;;  %v5033_v39 = vld [vmem:[%s10675_s5 + $0x4b0] sm:$0xff]  ;;  %v5431_v54 = vunpack.c.l.s8.bf16 %v5031_v12  ;;  %v5447_v4 = vunpack.c.h.s8.bf16 %v5031_v12  ;;  %v5082_v12 = vld [vmem:[%s10675_s5 + $0x638] sm:$0xff] }
0x1804   : > { %v5433_v46 = vunpack.c.l.s8.bf16 %v5033_v39  ;;  %v5449_v44 = vunpack.c.h.s8.bf16 %v5033_v39 }
0x1806   : > { %5890 = vmatpush1.bf16.msra.mxu0 %v5351_v57  ;;  %5996 = vmatpush1.bf16.msra.mxu1 %v5353_v62  ;;  %v5448_v57 = vunpack.c.h.s8.bf16 %v5032_v61  ;;  %v5450_v62 = vunpack.c.h.s8.bf16 %v5034_v30 }
0x1807   : > { %5891 = vmatprep.subr.bf16.mxu0 %v5368_v43  ;;  %5997 = vmatprep.subr.bf16.mxu1 %v5370_v10  ;;  %v5048_v43 = vld [vmem:[%s10675_s5 + $0x528] sm:$0xff]  ;;  %v5050_v10 = vld [vmem:[%s10675_s5 + $0x538] sm:$0xff] }
0x180a   : > { %5892 = vmatpush1.bf16.msra.mxu0 %v5367_v52  ;;  %5998 = vmatpush1.bf16.msra.mxu1 %v5369_v13  ;;  %v5464_v52 = vunpack.c.l.s8.bf16 %v5048_v43  ;;  %v5047_v13 = vld [vmem:[%s10675_s5 + $0x520] sm:$0xff] }
0x180b   : > { %5893 = vmatprep.subr.bf16.mxu0 %v5384_v51  ;;  %5999 = vmatprep.subr.bf16.mxu1 %v5386_v26  ;;  %v5466_v51 = vunpack.c.l.s8.bf16 %v5050_v10  ;;  %v5049_v26 = vld [vmem:[%s10675_s5 + $0x530] sm:$0xff]  ;;  %v5463_v34 = vunpack.c.l.s8.bf16 %v5047_v13  ;;  %v5479_v25 = vunpack.c.h.s8.bf16 %v5047_v13  ;;  %v5098_v13 = vld [vmem:[%s10675_s5 + $0x6b8] sm:$0xff] }
0x180c   : > { %v5465_v9 = vunpack.c.l.s8.bf16 %v5049_v26  ;;  %v5481_v29 = vunpack.c.h.s8.bf16 %v5049_v26 }
0x180e   : > { %5894 = vmatpush1.bf16.msra.mxu0 %v5383_v47  ;;  %6000 = vmatpush1.bf16.msra.mxu1 %v5385_v15  ;;  %v5480_v47 = vunpack.c.h.s8.bf16 %v5048_v43  ;;  %v5482_v15 = vunpack.c.h.s8.bf16 %v5050_v10 }
0x180f   : > { %5916 = vmatprep.subr.bf16.mxu0 %v5400_v36  ;;  %6022 = vmatprep.subr.bf16.mxu1 %v5402_v63  ;;  %v5064_v36 = vld [vmem:[%s10675_s5 + $0x5a8] sm:$0xff]  ;;  %v5066_v63 = vld [vmem:[%s10675_s5 + $0x5b8] sm:$0xff] }
0x1811   : > { %5896 = vmatmul.mubr.bf16.vlgmr.msra.gmra.mrb[104].mxu0 %v11955_v50  ;;  %6002 = vmatmul.mubr.bf16.vlgmr.msra.gmra.mrb[104].mxu1 %v11955_v50 }
0x1812   : > { %5905 = vmatprep.mubr.bf16.mxu0 %v12005_v41  ;;  %5917 = vmatpush1.bf16.msra.mxu0 %v5399_v48  ;;  %v5496_v48 = vunpack.c.l.s8.bf16 %v5064_v36 }
0x1813   : > { %6011 = vmatprep.mubr.bf16.mxu1 %v12005_v41  ;;  %6023 = vmatpush1.bf16.msra.mxu1 %v5401_v24  ;;  %v5063_v24 = vld [vmem:[%s10675_s5 + $0x5a0] sm:$0xff] }
0x1814   : > { %5918 = vmatprep.subr.bf16.mxu0 %v5416_v42  ;;  %6024 = vmatprep.subr.bf16.mxu1 %v5418_v8  ;;  %v5498_v42 = vunpack.c.l.s8.bf16 %v5066_v63  ;;  %v5065_v8 = vld [vmem:[%s10675_s5 + $0x5b0] sm:$0xff]  ;;  %v5495_v61 = vunpack.c.l.s8.bf16 %v5063_v24 }
0x1815   : > { %v5497_v30 = vunpack.c.l.s8.bf16 %v5065_v8  ;;  %v5513_v39 = vunpack.c.h.s8.bf16 %v5065_v8 }
0x1816   : > { %5919 = vmatpush1.bf16.msra.mxu0 %v5415_v3  ;;  %v5512_v3 = vunpack.c.h.s8.bf16 %v5064_v36 }
0x1817   : > { %6025 = vmatpush1.bf16.msra.mxu1 %v5417_v37  ;;  %5920 = vmatprep.subr.bf16.mxu0 %v5432_v53  ;;  %v5514_v37 = vunpack.c.h.s8.bf16 %v5066_v63  ;;  %v5080_v53 = vld [vmem:[%s10675_s5 + $0x628] sm:$0xff] }
0x1818   : > { %6026 = vmatprep.subr.bf16.mxu1 %v5434_v45  ;;  %v5511_v45 = vunpack.c.h.s8.bf16 %v5063_v24  ;;  %v5114_v24 = vld [vmem:[%s10675_s5 + $0x738] sm:$0xff] }
0x1819   : > { %5906 = vmatmul.mubr.bf16.gmra.mrb[108].mxu0 %v12007_v16  ;;  %6012 = vmatmul.mubr.bf16.gmra.mrb[108].mxu1 %v12007_v16 }
0x181a   : > { %5921 = vmatpush1.bf16.msra.mxu0 %v5431_v54  ;;  %5948 = vmatprep.mubr.bf16.mxu0 %v11959_v31  ;;  %v5528_v54 = vunpack.c.l.s8.bf16 %v5080_v53 }
0x181b   : > { %6027 = vmatpush1.bf16.msra.mxu1 %v5433_v46  ;;  %6054 = vmatprep.mubr.bf16.mxu1 %v11959_v31  ;;  %v5079_v46 = vld [vmem:[%s10675_s5 + $0x620] sm:$0xff] }
0x181c   : > { %5922 = vmatprep.subr.bf16.mxu0 %v5448_v57  ;;  %6028 = vmatprep.subr.bf16.mxu1 %v5450_v62  ;;  %v5530_v57 = vunpack.c.l.s8.bf16 %v5082_v12  ;;  %v5081_v62 = vld [vmem:[%s10675_s5 + $0x630] sm:$0xff]  ;;  %v5527_v43 = vunpack.c.l.s8.bf16 %v5079_v46 }
0x181d   : > { %v5529_v10 = vunpack.c.l.s8.bf16 %v5081_v62  ;;  %v5545_v26 = vunpack.c.h.s8.bf16 %v5081_v62 }
0x181e   : > { %5923 = vmatpush1.bf16.msra.mxu0 %v5447_v4  ;;  %v5544_v4 = vunpack.c.h.s8.bf16 %v5080_v53 }
0x181f   : > { %6029 = vmatpush1.bf16.msra.mxu1 %v5449_v44  ;;  %5924 = vmatprep.subr.bf16.mxu0 %v5464_v52  ;;  %v5546_v44 = vunpack.c.h.s8.bf16 %v5082_v12  ;;  %v5096_v52 = vld [vmem:[%s10675_s5 + $0x6a8] sm:$0xff] }
0x1820   : > { %6030 = vmatprep.subr.bf16.mxu1 %v5466_v51  ;;  %v5543_v51 = vunpack.c.h.s8.bf16 %v5079_v46  ;;  %v5130_v46 = vld [vmem:[%s10675_s5 + $0x7b8] sm:$0xff] }
0x1822   : > { %5925 = vmatpush1.bf16.msra.mxu0 %v5463_v34  ;;  %v5560_v34 = vunpack.c.l.s8.bf16 %v5096_v52 }
0x1823   : > { %6031 = vmatpush1.bf16.msra.mxu1 %v5465_v9  ;;  %5926 = vmatprep.subr.bf16.mxu0 %v5480_v47  ;;  %v5095_v9 = vld [vmem:[%s10675_s5 + $0x6a0] sm:$0xff]  ;;  %v5562_v47 = vunpack.c.l.s8.bf16 %v5098_v13 }
0x1824   : > { %6032 = vmatprep.subr.bf16.mxu1 %v5482_v15  ;;  %v5097_v15 = vld [vmem:[%s10675_s5 + $0x6b0] sm:$0xff]  ;;  %v5559_v36 = vunpack.c.l.s8.bf16 %v5095_v9 }
0x1825   : > { %v5561_v63 = vunpack.c.l.s8.bf16 %v5097_v15  ;;  %v5577_v8 = vunpack.c.h.s8.bf16 %v5097_v15 }
0x1826   : > { %5927 = vmatpush1.bf16.msra.mxu0 %v5479_v25  ;;  %v5576_v25 = vunpack.c.h.s8.bf16 %v5096_v52 }
0x1827   : > { %6033 = vmatpush1.bf16.msra.mxu1 %v5481_v29  ;;  %5928 = vmatprep.subr.bf16.mxu0 %v5496_v48  ;;  %v5578_v29 = vunpack.c.h.s8.bf16 %v5098_v13  ;;  %v5112_v48 = vld [vmem:[%s10675_s5 + $0x728] sm:$0xff] }
0x1828   : > { %6034 = vmatprep.subr.bf16.mxu1 %v5498_v42  ;;  %v5575_v42 = vunpack.c.h.s8.bf16 %v5095_v9  ;;  %v4894_v9 = vld [vmem:[%s10675_s5 + $0x58] sm:$0xff] }
0x182a   : > { %5929 = vmatpush1.bf16.msra.mxu0 %v5495_v61  ;;  %v5592_v61 = vunpack.c.l.s8.bf16 %v5112_v48 }
0x182b   : > { %6035 = vmatpush1.bf16.msra.mxu1 %v5497_v30  ;;  %5930 = vmatprep.subr.bf16.mxu0 %v5512_v3  ;;  %v5111_v30 = vld [vmem:[%s10675_s5 + $0x720] sm:$0xff]  ;;  %v5594_v3 = vunpack.c.l.s8.bf16 %v5114_v24 }
0x182c   : > { %6036 = vmatprep.subr.bf16.mxu1 %v5514_v37  ;;  %v5113_v37 = vld [vmem:[%s10675_s5 + $0x730] sm:$0xff]  ;;  %v5591_v53 = vunpack.c.l.s8.bf16 %v5111_v30 }
0x182d   : > { %v5593_v12 = vunpack.c.l.s8.bf16 %v5113_v37  ;;  %v5609_v62 = vunpack.c.h.s8.bf16 %v5113_v37 }
0x182e   : > { %5931 = vmatpush1.bf16.msra.mxu0 %v5511_v45  ;;  %v5608_v45 = vunpack.c.h.s8.bf16 %v5112_v48 }
0x182f   : > { %6037 = vmatpush1.bf16.msra.mxu1 %v5513_v39  ;;  %5932 = vmatprep.subr.bf16.mxu0 %v5528_v54  ;;  %v5610_v39 = vunpack.c.h.s8.bf16 %v5114_v24  ;;  %v5128_v54 = vld [vmem:[%s10675_s5 + $0x7a8] sm:$0xff] }
0x1830   : > { %6038 = vmatprep.subr.bf16.mxu1 %v5530_v57  ;;  %v5607_v57 = vunpack.c.h.s8.bf16 %v5111_v30  ;;  %v4910_v30 = vld [vmem:[%s10675_s5 + $0xd8] sm:$0xff] }
0x1832   : > { %5933 = vmatpush1.bf16.msra.mxu0 %v5527_v43  ;;  %v5624_v43 = vunpack.c.l.s8.bf16 %v5128_v54 }
0x1833   : > { %6039 = vmatpush1.bf16.msra.mxu1 %v5529_v10  ;;  %5934 = vmatprep.subr.bf16.mxu0 %v5544_v4  ;;  %v5127_v10 = vld [vmem:[%s10675_s5 + $0x7a0] sm:$0xff]  ;;  %v5626_v4 = vunpack.c.l.s8.bf16 %v5130_v46 }
0x1834   : > { %6040 = vmatprep.subr.bf16.mxu1 %v5546_v44  ;;  %v5129_v44 = vld [vmem:[%s10675_s5 + $0x7b0] sm:$0xff]  ;;  %v5623_v52 = vunpack.c.l.s8.bf16 %v5127_v10 }
0x1835   : > { %v5625_v13 = vunpack.c.l.s8.bf16 %v5129_v44  ;;  %v5641_v15 = vunpack.c.h.s8.bf16 %v5129_v44 }
0x1836   : > { %5935 = vmatpush1.bf16.msra.mxu0 %v5543_v51  ;;  %v5640_v51 = vunpack.c.h.s8.bf16 %v5128_v54 }
0x1837   : > { %6041 = vmatpush1.bf16.msra.mxu1 %v5545_v26  ;;  %5936 = vmatprep.subr.bf16.mxu0 %v5560_v34  ;;  %v5642_v26 = vunpack.c.h.s8.bf16 %v5130_v46  ;;  %v4892_v34 = vld [vmem:[%s10675_s5 + $0x48] sm:$0xff] }
0x1838   : > { %6042 = vmatprep.subr.bf16.mxu1 %v5562_v47  ;;  %v5639_v47 = vunpack.c.h.s8.bf16 %v5127_v10  ;;  %v4926_v10 = vld [vmem:[%s10675_s5 + $0x158] sm:$0xff] }
0x183a   : > { %5937 = vmatpush1.bf16.msra.mxu0 %v5559_v36  ;;  %v5148_v36 = vunpack.c.l.s8.bf16 %v4892_v34 }
0x183b   : > { %6043 = vmatpush1.bf16.msra.mxu1 %v5561_v63  ;;  %5938 = vmatprep.subr.bf16.mxu0 %v5576_v25  ;;  %v5150_v63 = vunpack.c.l.s8.bf16 %v4894_v9  ;;  %v4891_v25 = vld [vmem:[%s10675_s5 + $0x40] sm:$0xff] }
0x183c   : > { %6044 = vmatprep.subr.bf16.mxu1 %v5578_v29  ;;  %v4893_v29 = vld [vmem:[%s10675_s5 + $0x50] sm:$0xff]  ;;  %v5147_v48 = vunpack.c.l.s8.bf16 %v4891_v25 }
0x183d   : > { %v5149_v24 = vunpack.c.l.s8.bf16 %v4893_v29  ;;  %v5165_v37 = vunpack.c.h.s8.bf16 %v4893_v29 }
0x183e   : > { %5939 = vmatpush1.bf16.msra.mxu0 %v5575_v42  ;;  %v5164_v42 = vunpack.c.h.s8.bf16 %v4892_v34 }
0x183f   : > { %6045 = vmatpush1.bf16.msra.mxu1 %v5577_v8  ;;  %5940 = vmatprep.subr.bf16.mxu0 %v5592_v61  ;;  %v5166_v8 = vunpack.c.h.s8.bf16 %v4894_v9  ;;  %v4908_v61 = vld [vmem:[%s10675_s5 + $0xc8] sm:$0xff] }
0x1840   : > { %6046 = vmatprep.subr.bf16.mxu1 %v5594_v3  ;;  %v5163_v3 = vunpack.c.h.s8.bf16 %v4891_v25 }
0x1842   : > { %5941 = vmatpush1.bf16.msra.mxu0 %v5591_v53  ;;  %v5180_v53 = vunpack.c.l.s8.bf16 %v4908_v61 }
0x1843   : > { %6047 = vmatpush1.bf16.msra.mxu1 %v5593_v12  ;;  %5942 = vmatprep.subr.bf16.mxu0 %v5608_v45  ;;  %v4907_v12 = vld [vmem:[%s10675_s5 + $0xc0] sm:$0xff]  ;;  %v5182_v45 = vunpack.c.l.s8.bf16 %v4910_v30 }
0x1844   : > { %6048 = vmatprep.subr.bf16.mxu1 %v5610_v39  ;;  %v4909_v39 = vld [vmem:[%s10675_s5 + $0xd0] sm:$0xff]  ;;  %v5179_v54 = vunpack.c.l.s8.bf16 %v4907_v12 }
0x1845   : > { %v5181_v46 = vunpack.c.l.s8.bf16 %v4909_v39  ;;  %v5197_v44 = vunpack.c.h.s8.bf16 %v4909_v39 }
0x1846   : > { %5943 = vmatpush1.bf16.msra.mxu0 %v5607_v57  ;;  %v5196_v57 = vunpack.c.h.s8.bf16 %v4908_v61 }
0x1847   : > { %6049 = vmatpush1.bf16.msra.mxu1 %v5609_v62  ;;  %5944 = vmatprep.subr.bf16.mxu0 %v5624_v43  ;;  %v5198_v62 = vunpack.c.h.s8.bf16 %v4910_v30  ;;  %v4924_v43 = vld [vmem:[%s10675_s5 + $0x148] sm:$0xff] }
0x1848   : > { %6050 = vmatprep.subr.bf16.mxu1 %v5626_v4  ;;  %v5195_v4 = vunpack.c.h.s8.bf16 %v4907_v12  ;;  %v4958_v12 = vld [vmem:[%s10675_s5 + $0x258] sm:$0xff] }
0x184a   : > { %5945 = vmatpush1.bf16.msra.mxu0 %v5623_v52  ;;  %v5212_v52 = vunpack.c.l.s8.bf16 %v4924_v43 }
0x184b   : > { %6051 = vmatpush1.bf16.msra.mxu1 %v5625_v13  ;;  %5946 = vmatprep.subr.bf16.mxu0 %v5640_v51  ;;  %v4923_v13 = vld [vmem:[%s10675_s5 + $0x140] sm:$0xff]  ;;  %v5214_v51 = vunpack.c.l.s8.bf16 %v4926_v10 }
0x184c   : > { %6052 = vmatprep.subr.bf16.mxu1 %v5642_v26  ;;  %v4925_v26 = vld [vmem:[%s10675_s5 + $0x150] sm:$0xff]  ;;  %v5211_v34 = vunpack.c.l.s8.bf16 %v4923_v13  ;;  %v5227_v25 = vunpack.c.h.s8.bf16 %v4923_v13  ;;  %v4974_v13 = vld [vmem:[%s10675_s5 + $0x2d8] sm:$0xff] }
0x184d   : > { %v5213_v9 = vunpack.c.l.s8.bf16 %v4925_v26  ;;  %v5229_v29 = vunpack.c.h.s8.bf16 %v4925_v26 }
0x184e   : > { %5947 = vmatpush1.bf16.msra.mxu0 %v5639_v47  ;;  %v5228_v47 = vunpack.c.h.s8.bf16 %v4924_v43 }
0x184f   : > { %6053 = vmatpush1.bf16.msra.mxu1 %v5641_v15  ;;  %6075 = vmatprep.subr.bf16.mxu0 %v5148_v36  ;;  %v5230_v15 = vunpack.c.h.s8.bf16 %v4926_v10  ;;  %v4940_v36 = vld [vmem:[%s10675_s5 + $0x1c8] sm:$0xff] }
0x1850   : > { %6181 = vmatprep.subr.bf16.mxu1 %v5150_v63  ;;  %v4942_v63 = vld [vmem:[%s10675_s5 + $0x1d8] sm:$0xff] }
0x1851   : > { %5949 = vmatmul.mubr.bf16.vlgmr.msra.gmra.mrb[104].mxu0 %v11961_v5 }
0x1852   : > { %6055 = vmatmul.mubr.bf16.vlgmr.msra.gmra.mrb[104].mxu1 %v11961_v5  ;;  %5958 = vmatprep.mubr.bf16.mxu0 %v12026_v56 }
0x1853   : > { %6064 = vmatprep.mubr.bf16.mxu1 %v12026_v56  ;;  %6076 = vmatpush1.bf16.msra.mxu0 %v5147_v48  ;;  %v5244_v48 = vunpack.c.l.s8.bf16 %v4940_v36 }
0x1854   : > { %6182 = vmatpush1.bf16.msra.mxu1 %v5149_v24  ;;  %6077 = vmatprep.subr.bf16.mxu0 %v5164_v42  ;;  %v4939_v24 = vld [vmem:[%s10675_s5 + $0x1c0] sm:$0xff]  ;;  %v5246_v42 = vunpack.c.l.s8.bf16 %v4942_v63 }
0x1855   : > { %6183 = vmatprep.subr.bf16.mxu1 %v5166_v8  ;;  %v4941_v8 = vld [vmem:[%s10675_s5 + $0x1d0] sm:$0xff]  ;;  %v5243_v61 = vunpack.c.l.s8.bf16 %v4939_v24 }
0x1856   : > { %v5245_v30 = vunpack.c.l.s8.bf16 %v4941_v8  ;;  %v5261_v39 = vunpack.c.h.s8.bf16 %v4941_v8 }
0x1857   : > { %6078 = vmatpush1.bf16.msra.mxu0 %v5163_v3  ;;  %v5260_v3 = vunpack.c.h.s8.bf16 %v4940_v36 }
0x1858   : > { %6184 = vmatpush1.bf16.msra.mxu1 %v5165_v37  ;;  %6079 = vmatprep.subr.bf16.mxu0 %v5180_v53  ;;  %v5262_v37 = vunpack.c.h.s8.bf16 %v4942_v63  ;;  %v4956_v53 = vld [vmem:[%s10675_s5 + $0x248] sm:$0xff] }
0x1859   : > { %5959 = vmatmul.mubr.bf16.gmra.mrb[108].mxu0 %v12035_v32  ;;  %6185 = vmatprep.subr.bf16.mxu1 %v5182_v45  ;;  %v5259_v45 = vunpack.c.h.s8.bf16 %v4939_v24  ;;  %v4990_v24 = vld [vmem:[%s10675_s5 + $0x358] sm:$0xff] }
0x185a   : > { %6065 = vmatmul.mubr.bf16.gmra.mrb[108].mxu1 %v12035_v32  ;;  %6107 = vmatprep.mubr.bf16.mxu0 %v11953_v55 }
0x185b   : > { %6080 = vmatpush1.bf16.msra.mxu0 %v5179_v54  ;;  %6213 = vmatprep.mubr.bf16.mxu1 %v11953_v55  ;;  %v5276_v54 = vunpack.c.l.s8.bf16 %v4956_v53 }
0x185c   : > { %6186 = vmatpush1.bf16.msra.mxu1 %v5181_v46  ;;  %6081 = vmatprep.subr.bf16.mxu0 %v5196_v57  ;;  %v4955_v46 = vld [vmem:[%s10675_s5 + $0x240] sm:$0xff]  ;;  %v5278_v57 = vunpack.c.l.s8.bf16 %v4958_v12 }
0x185d   : > { %6187 = vmatprep.subr.bf16.mxu1 %v5198_v62  ;;  %v4957_v62 = vld [vmem:[%s10675_s5 + $0x250] sm:$0xff]  ;;  %v5275_v43 = vunpack.c.l.s8.bf16 %v4955_v46 }
0x185e   : > { %v5277_v10 = vunpack.c.l.s8.bf16 %v4957_v62  ;;  %v5293_v26 = vunpack.c.h.s8.bf16 %v4957_v62 }
0x185f   : > { %6082 = vmatpush1.bf16.msra.mxu0 %v5195_v4  ;;  %v5292_v4 = vunpack.c.h.s8.bf16 %v4956_v53 }
0x1860   : > { %6188 = vmatpush1.bf16.msra.mxu1 %v5197_v44  ;;  %6083 = vmatprep.subr.bf16.mxu0 %v5212_v52  ;;  %v5294_v44 = vunpack.c.h.s8.bf16 %v4958_v12  ;;  %v4972_v52 = vld [vmem:[%s10675_s5 + $0x2c8] sm:$0xff] }
0x1861   : > { %6189 = vmatprep.subr.bf16.mxu1 %v5214_v51  ;;  %v5291_v51 = vunpack.c.h.s8.bf16 %v4955_v46  ;;  %v5006_v46 = vld [vmem:[%s10675_s5 + $0x3d8] sm:$0xff] }
0x1863   : > { %6084 = vmatpush1.bf16.msra.mxu0 %v5211_v34  ;;  %v5308_v34 = vunpack.c.l.s8.bf16 %v4972_v52 }
0x1864   : > { %6190 = vmatpush1.bf16.msra.mxu1 %v5213_v9  ;;  %6085 = vmatprep.subr.bf16.mxu0 %v5228_v47  ;;  %v4971_v9 = vld [vmem:[%s10675_s5 + $0x2c0] sm:$0xff]  ;;  %v5310_v47 = vunpack.c.l.s8.bf16 %v4974_v13 }
0x1865   : > { %6191 = vmatprep.subr.bf16.mxu1 %v5230_v15  ;;  %v4973_v15 = vld [vmem:[%s10675_s5 + $0x2d0] sm:$0xff]  ;;  %v5307_v36 = vunpack.c.l.s8.bf16 %v4971_v9 }
0x1866   : > { %v5309_v63 = vunpack.c.l.s8.bf16 %v4973_v15  ;;  %v5325_v8 = vunpack.c.h.s8.bf16 %v4973_v15 }
0x1867   : > { %6086 = vmatpush1.bf16.msra.mxu0 %v5227_v25  ;;  %v5324_v25 = vunpack.c.h.s8.bf16 %v4972_v52 }
0x1868   : > { %6192 = vmatpush1.bf16.msra.mxu1 %v5229_v29  ;;  %6087 = vmatprep.subr.bf16.mxu0 %v5244_v48  ;;  %v5326_v29 = vunpack.c.h.s8.bf16 %v4974_v13  ;;  %v4988_v48 = vld [vmem:[%s10675_s5 + $0x348] sm:$0xff] }
0x1869   : > { %6193 = vmatprep.subr.bf16.mxu1 %v5246_v42  ;;  %v5323_v42 = vunpack.c.h.s8.bf16 %v4971_v9  ;;  %v5022_v9 = vld [vmem:[%s10675_s5 + $0x458] sm:$0xff] }
0x186b   : > { %6088 = vmatpush1.bf16.msra.mxu0 %v5243_v61  ;;  %v5340_v61 = vunpack.c.l.s8.bf16 %v4988_v48 }
0x186c   : > { %6194 = vmatpush1.bf16.msra.mxu1 %v5245_v30  ;;  %6089 = vmatprep.subr.bf16.mxu0 %v5260_v3  ;;  %v4987_v30 = vld [vmem:[%s10675_s5 + $0x340] sm:$0xff]  ;;  %v5342_v3 = vunpack.c.l.s8.bf16 %v4990_v24 }
0x186d   : > { %6195 = vmatprep.subr.bf16.mxu1 %v5262_v37  ;;  %v4989_v37 = vld [vmem:[%s10675_s5 + $0x350] sm:$0xff]  ;;  %v5339_v53 = vunpack.c.l.s8.bf16 %v4987_v30 }
0x186e   : > { %v5341_v12 = vunpack.c.l.s8.bf16 %v4989_v37  ;;  %v5357_v62 = vunpack.c.h.s8.bf16 %v4989_v37 }
0x186f   : > { %6090 = vmatpush1.bf16.msra.mxu0 %v5259_v45  ;;  %v5356_v45 = vunpack.c.h.s8.bf16 %v4988_v48 }
0x1870   : > { %6196 = vmatpush1.bf16.msra.mxu1 %v5261_v39  ;;  %6091 = vmatprep.subr.bf16.mxu0 %v5276_v54  ;;  %v5358_v39 = vunpack.c.h.s8.bf16 %v4990_v24  ;;  %v5004_v54 = vld [vmem:[%s10675_s5 + $0x3c8] sm:$0xff] }
0x1871   : > { %6197 = vmatprep.subr.bf16.mxu1 %v5278_v57  ;;  %v5355_v57 = vunpack.c.h.s8.bf16 %v4987_v30  ;;  %v5038_v30 = vld [vmem:[%s10675_s5 + $0x4d8] sm:$0xff] }
0x1873   : > { %6092 = vmatpush1.bf16.msra.mxu0 %v5275_v43  ;;  %v5372_v43 = vunpack.c.l.s8.bf16 %v5004_v54 }
0x1874   : > { %6198 = vmatpush1.bf16.msra.mxu1 %v5277_v10  ;;  %6093 = vmatprep.subr.bf16.mxu0 %v5292_v4  ;;  %v5003_v10 = vld [vmem:[%s10675_s5 + $0x3c0] sm:$0xff]  ;;  %v5374_v4 = vunpack.c.l.s8.bf16 %v5006_v46 }
0x1875   : > { %6199 = vmatprep.subr.bf16.mxu1 %v5294_v44  ;;  %v5005_v44 = vld [vmem:[%s10675_s5 + $0x3d0] sm:$0xff]  ;;  %v5371_v52 = vunpack.c.l.s8.bf16 %v5003_v10 }
0x1876   : > { %v5373_v13 = vunpack.c.l.s8.bf16 %v5005_v44  ;;  %v5389_v15 = vunpack.c.h.s8.bf16 %v5005_v44 }
0x1877   : > { %6094 = vmatpush1.bf16.msra.mxu0 %v5291_v51  ;;  %v5388_v51 = vunpack.c.h.s8.bf16 %v5004_v54 }
0x1878   : > { %6200 = vmatpush1.bf16.msra.mxu1 %v5293_v26  ;;  %6095 = vmatprep.subr.bf16.mxu0 %v5308_v34  ;;  %v5390_v26 = vunpack.c.h.s8.bf16 %v5006_v46  ;;  %v5020_v34 = vld [vmem:[%s10675_s5 + $0x448] sm:$0xff] }
0x1879   : > { %6201 = vmatprep.subr.bf16.mxu1 %v5310_v47  ;;  %v5387_v47 = vunpack.c.h.s8.bf16 %v5003_v10  ;;  %v5054_v10 = vld [vmem:[%s10675_s5 + $0x558] sm:$0xff] }
0x187b   : > { %6096 = vmatpush1.bf16.msra.mxu0 %v5307_v36  ;;  %v5404_v36 = vunpack.c.l.s8.bf16 %v5020_v34 }
0x187c   : > { %6202 = vmatpush1.bf16.msra.mxu1 %v5309_v63  ;;  %6097 = vmatprep.subr.bf16.mxu0 %v5324_v25  ;;  %v5406_v63 = vunpack.c.l.s8.bf16 %v5022_v9  ;;  %v5019_v25 = vld [vmem:[%s10675_s5 + $0x440] sm:$0xff] }
0x187d   : > { %6203 = vmatprep.subr.bf16.mxu1 %v5326_v29  ;;  %v5021_v29 = vld [vmem:[%s10675_s5 + $0x450] sm:$0xff]  ;;  %v5403_v48 = vunpack.c.l.s8.bf16 %v5019_v25 }
0x187e   : > { %v5405_v24 = vunpack.c.l.s8.bf16 %v5021_v29  ;;  %v5421_v37 = vunpack.c.h.s8.bf16 %v5021_v29 }
0x187f   : > { %6098 = vmatpush1.bf16.msra.mxu0 %v5323_v42  ;;  %v5420_v42 = vunpack.c.h.s8.bf16 %v5020_v34  ;;  %v12166_v34 = vld [vmem:[%s10681_s19] sm:$0xff] }
0x1880   : > { %6204 = vmatpush1.bf16.msra.mxu1 %v5325_v8  ;;  %6099 = vmatprep.subr.bf16.mxu0 %v5340_v61  ;;  %v5422_v8 = vunpack.c.h.s8.bf16 %v5022_v9  ;;  %v5036_v61 = vld [vmem:[%s10675_s5 + $0x4c8] sm:$0xff]  ;;  %v12178_v29 = vrot.slane %v12166_v34, %v10853_v20 }
0x1881   : > { %6205 = vmatprep.subr.bf16.mxu1 %v5342_v3  ;;  %v5419_v3 = vunpack.c.h.s8.bf16 %v5019_v25  ;;  %v5486_v25 = vunpack.c.h.s8.bf16 %v5054_v10 }
0x1883   : > { %6100 = vmatpush1.bf16.msra.mxu0 %v5339_v53  ;;  %v5436_v53 = vunpack.c.l.s8.bf16 %v5036_v61 }
0x1884   : > { %6206 = vmatpush1.bf16.msra.mxu1 %v5341_v12  ;;  %6101 = vmatprep.subr.bf16.mxu0 %v5356_v45  ;;  %v5035_v12 = vld [vmem:[%s10675_s5 + $0x4c0] sm:$0xff]  ;;  %v5438_v45 = vunpack.c.l.s8.bf16 %v5038_v30 }
0x1885   : > { %6207 = vmatprep.subr.bf16.mxu1 %v5358_v39  ;;  %v5037_v39 = vld [vmem:[%s10675_s5 + $0x4d0] sm:$0xff]  ;;  %v5435_v54 = vunpack.c.l.s8.bf16 %v5035_v12 }
0x1886   : > { %v5437_v46 = vunpack.c.l.s8.bf16 %v5037_v39  ;;  %v5453_v44 = vunpack.c.h.s8.bf16 %v5037_v39 }
0x1887   : > { %6102 = vmatpush1.bf16.msra.mxu0 %v5355_v57  ;;  %v5452_v57 = vunpack.c.h.s8.bf16 %v5036_v61 }
0x1888   : > { %6208 = vmatpush1.bf16.msra.mxu1 %v5357_v62  ;;  %6103 = vmatprep.subr.bf16.mxu0 %v5372_v43  ;;  %v5454_v62 = vunpack.c.h.s8.bf16 %v5038_v30  ;;  %v5052_v43 = vld [vmem:[%s10675_s5 + $0x548] sm:$0xff] }
0x1889   : > { %6209 = vmatprep.subr.bf16.mxu1 %v5374_v4  ;;  %v5451_v4 = vunpack.c.h.s8.bf16 %v5035_v12 }
0x188b   : > { %6104 = vmatpush1.bf16.msra.mxu0 %v5371_v52  ;;  %v5468_v52 = vunpack.c.l.s8.bf16 %v5052_v43 }
0x188c   : > { %6210 = vmatpush1.bf16.msra.mxu1 %v5373_v13  ;;  %6105 = vmatprep.subr.bf16.mxu0 %v5388_v51  ;;  %v5051_v13 = vld [vmem:[%s10675_s5 + $0x540] sm:$0xff]  ;;  %v5470_v51 = vunpack.c.l.s8.bf16 %v5054_v10 }
0x188d   : > { %6211 = vmatprep.subr.bf16.mxu1 %v5390_v26  ;;  %v5053_v26 = vld [vmem:[%s10675_s5 + $0x550] sm:$0xff]  ;;  %v5467_v9 = vunpack.c.l.s8.bf16 %v5051_v13  ;;  %v5483_v30 = vunpack.c.h.s8.bf16 %v5051_v13 }
0x188f   : > { %6106 = vmatpush1.bf16.msra.mxu0 %v5387_v47  ;;  %v5469_v47 = vunpack.c.l.s8.bf16 %v5053_v26 }
0x1890   : > { %6212 = vmatpush1.bf16.msra.mxu1 %v5389_v15  ;;  %6128 = vmatprep.subr.bf16.mxu0 %v5404_v36  ;;  %v12170_v15 = vrot.slane %v12166_v34, %v10856_v21  ;;  %v12174_v36 = vrot.slane %v12166_v34, %v10848_v14 }
0x1891   : > { %6234 = vmatprep.subr.bf16.mxu1 %v5406_v63  ;;  %v5484_v63 = vunpack.c.h.s8.bf16 %v5052_v43 }
0x1892   : > { %6108 = vmatmul.mubr.bf16.vlgmr.msra.gmra.mrb[112].mxu0 %v11955_v50 }
0x1893   : > { %6214 = vmatmul.mubr.bf16.vlgmr.msra.gmra.mrb[112].mxu1 %v11955_v50  ;;  %6117 = vmatprep.mubr.bf16.mxu0 %v12005_v41 }
0x1894   : > { %6129 = vmatpush1.bf16.msra.mxu0 %v5403_v48  ;;  %6223 = vmatprep.mubr.bf16.mxu1 %v12005_v41  ;;  %v12182_v48 = vrot.slane %v12166_v34, %v10859_v22 }
0x1895   : > { %6235 = vmatpush1.bf16.msra.mxu1 %v5405_v24  ;;  %6130 = vmatprep.subr.bf16.mxu0 %v5420_v42  ;;  %v5068_v24 = vld [vmem:[%s10675_s5 + $0x5c8] sm:$0xff]  ;;  %v12186_v42 = vld [vmem:[%s10675_s5 + $0x5d8] sm:$0xff] }
0x1896   : > { %6236 = vmatprep.subr.bf16.mxu1 %v5422_v8 }
0x1898   : > { %6131 = vmatpush1.bf16.msra.mxu0 %v5419_v3  ;;  %v12189_v3 = vld [vmem:[%s10675_s5 + $0x5c0] sm:$0xff] }
0x1899   : > { %6237 = vmatpush1.bf16.msra.mxu1 %v5421_v37  ;;  %6132 = vmatprep.subr.bf16.mxu0 %v5436_v53  ;;  %v12192_v37 = vld [vmem:[%s10675_s5 + $0x5d0] sm:$0xff] }
0x189a   : > { %6118 = vmatmul.mubr.bf16.gmra.mrb[116].mxu0 %v12007_v16  ;;  %6238 = vmatprep.subr.bf16.mxu1 %v5438_v45 }
0x189b   : > { %6224 = vmatmul.mubr.bf16.gmra.mrb[116].mxu1 %v12007_v16  ;;  %6160 = vmatprep.mubr.bf16.mxu0 %v11959_v31 }
0x189c   : > { %6133 = vmatpush1.bf16.msra.mxu0 %v5435_v54  ;;  %6266 = vmatprep.mubr.bf16.mxu1 %v11959_v31  ;;  %v5485_v54 = vunpack.c.h.s8.bf16 %v5053_v26  ;;  %v5501_v26 = vunpack.c.l.s8.bf16 %v12192_v37 }
0x189d   : > { %6239 = vmatpush1.bf16.msra.mxu1 %v5437_v46  ;;  %6134 = vmatprep.subr.bf16.mxu0 %v5452_v57  ;;  %v5500_v46 = vunpack.c.l.s8.bf16 %v5068_v24 }
0x189e   : > { %6240 = vmatprep.subr.bf16.mxu1 %v5454_v62 }
0x18a0   : > { %6135 = vmatpush1.bf16.msra.mxu0 %v5451_v4  ;;  %v5502_v4 = vunpack.c.l.s8.bf16 %v12186_v42 }
0x18a1   : > { %6241 = vmatpush1.bf16.msra.mxu1 %v5453_v44  ;;  %6136 = vmatprep.subr.bf16.mxu0 %v5468_v52 }
0x18a2   : > { %6242 = vmatprep.subr.bf16.mxu1 %v5470_v51 }
0x18a4   : > { %6137 = vmatpush1.bf16.msra.mxu0 %v5467_v9  ;;  %v5738_v8 = vpop.f32.mrb[96].mxu0  ;;  %v5844_v61 = vpop.f32.mrb[96].mxu1  ;;  %v5499_v9 = vunpack.c.l.s8.bf16 %v12189_v3 }
0x18a5   : > { %6243 = vmatpush1.bf16.msra.mxu1 %v5469_v47  ;;  %v6583_v53 = vmul.f32 %v12170_v15, %v5738_v8  ;;  %v6585_v12 = vmul.f32 %v12174_v36, %v5844_v61  ;;  %6138 = vmatprep.subr.bf16.mxu0 %v5484_v63  ;;  %v5740_v45 = vpop.f32.mrb[97].mxu0  ;;  %v5846_v39 = vpop.f32.mrb[97].mxu1  ;;  %v5518_v8 = vunpack.c.h.s8.bf16 %v12186_v42 }
0x18a6   : > { %6244 = vmatprep.subr.bf16.mxu1 %v5486_v25  ;;  %v6584_v57 = vmul.f32 %v12178_v29, %v5740_v45  ;;  %v6586_v62 = vmul.f32 %v12182_v48, %v5846_v39  ;;  %v5742_v43 = vpop.f32.mrb[98].mxu0  ;;  %v5848_v10 = vpop.f32.mrb[98].mxu1  ;;  %v5516_v25 = vunpack.c.h.s8.bf16 %v5068_v24 }
0x18a7   : > { %v6599_v44 = vmul.f32 %v12170_v15, %v5742_v43  ;;  %v6601_v52 = vmul.f32 %v12174_v36, %v5848_v10  ;;  %v5744_v13 = vpop.f32.mrb[99].mxu0  ;;  %v5850_v51 = vpop.f32.mrb[99].mxu1  ;;  %v6647_v61 = vmax.f32 %v6583_v53, 0.0  ;;  %v6649_v45 = vmax.f32 %v6585_v12, 0.0 }
0x18a8   : > { %6139 = vmatpush1.bf16.msra.mxu0 %v5483_v30  ;;  %v6600_v47 = vmul.f32 %v12178_v29, %v5744_v13  ;;  %v6602_v63 = vmul.f32 %v12182_v48, %v5850_v51  ;;  %v6648_v10 = vmax.f32 %v6584_v57, 0.0  ;;  %v6650_v49 = vmax.f32 %v6586_v62, 0.0  ;;  %v5084_v13 = vld [vmem:[%s10675_s5 + $0x648] sm:$0xff]  ;;  %v5086_v51 = vld [vmem:[%s10675_s5 + $0x658] sm:$0xff]  ;;  %v5083_v57 = vld [vmem:[%s10675_s5 + $0x640] sm:$0xff] }
0x18a9   : > { %6245 = vmatpush1.bf16.msra.mxu1 %v5485_v54  ;;  %v6663_v39 = vmax.f32 %v6599_v44, 0.0  ;;  %v6665_v43 = vmax.f32 %v6601_v52, 0.0  ;;  %6140 = vmatprep.subr.bf16.mxu0 %v5500_v46  ;;  %v5515_v46 = vunpack.c.h.s8.bf16 %v12189_v3  ;;  %v5085_v62 = vld [vmem:[%s10675_s5 + $0x650] sm:$0xff] }
0x18aa   : > { %v6664_v30 = vmax.f32 %v6600_v47, 0.0  ;;  %v6666_v23 = vmax.f32 %v6602_v63, 0.0  ;;  %6246 = vmatprep.subr.bf16.mxu1 %v5502_v4  ;;  %v5517_v63 = vunpack.c.h.s8.bf16 %v12192_v37 }
0x18ab   : > { %v12207_v19 = vpack.c.bf16 %v6663_v39, %v6647_v61  ;;  %v12209_v24 = vpack.c.bf16 %v6665_v43, %v6649_v45  ;;  %v5532_v61 = vunpack.c.l.s8.bf16 %v5084_v13  ;;  %v5534_v45 = vunpack.c.l.s8.bf16 %v5086_v51 }
0x18ac   : > { %v12212_v42 = vpack.c.bf16 %v6664_v30, %v6648_v10  ;;  %v12214_v53 = vpack.c.bf16 %v6666_v23, %v6650_v49  ;;  %6141 = vmatpush1.bf16.msra.mxu0 %v5499_v9  ;;  %v5748_v12 = vpop.f32.mrb[100].mxu0  ;;  %v5854_v54 = vpop.f32.mrb[100].mxu1  ;;  %v5533_v30 = vunpack.c.l.s8.bf16 %v5085_v62 }
0x18ad   : > { %6247 = vmatpush1.bf16.msra.mxu1 %v5501_v26  ;;  %v6615_v4 = vmul.f32 %v12170_v15, %v5748_v12  ;;  %v6617_v44 = vmul.f32 %v12174_v36, %v5854_v54  ;;  %6142 = vmatprep.subr.bf16.mxu0 %v5516_v25  ;;  %v5750_v52 = vpop.f32.mrb[101].mxu0  ;;  %v5856_v47 = vpop.f32.mrb[101].mxu1  ;;  %v5531_v25 = vunpack.c.l.s8.bf16 %v5083_v57  ;;  %v5548_v12 = vunpack.c.h.s8.bf16 %v5084_v13  ;;  %v5102_v13 = vld [vmem:[%s10675_s5 + $0x6d8] sm:$0xff] }
0x18ae   : > { %6248 = vmatprep.subr.bf16.mxu1 %v5518_v8  ;;  %v6616_v23 = vmul.f32 %v12178_v29, %v5750_v52  ;;  %v6618_v49 = vmul.f32 %v12182_v48, %v5856_v47  ;;  %v5752_v9 = vpop.f32.mrb[102].mxu0  ;;  %v5858_v3 = vpop.f32.mrb[102].mxu1  ;;  %v5550_v54 = vunpack.c.h.s8.bf16 %v5086_v51 }
0x18af   : > { %v6631_v26 = vmul.f32 %v12170_v15, %v5752_v9  ;;  %v6633_v39 = vmul.f32 %v12174_v36, %v5858_v3  ;;  %v5754_v43 = vpop.f32.mrb[103].mxu0  ;;  %v5860_v10 = vpop.f32.mrb[103].mxu1  ;;  %v6679_v52 = vmax.f32 %v6615_v4, 0.0  ;;  %v6681_v47 = vmax.f32 %v6617_v44, 0.0 }
0x18b0   : > { %6143 = vmatpush1.bf16.msra.mxu0 %v5515_v46  ;;  %v6632_v37 = vmul.f32 %v12178_v29, %v5754_v43  ;;  %v6634_v8 = vmul.f32 %v12182_v48, %v5860_v10  ;;  %v6680_v36 = vmax.f32 %v6616_v23, 0.0  ;;  %v6682_v9 = vmax.f32 %v6618_v49, 0.0  ;;  %v5100_v46 = vld [vmem:[%s10675_s5 + $0x6c8] sm:$0xff]  ;;  %v5099_v23 = vld [vmem:[%s10675_s5 + $0x6c0] sm:$0xff]  ;;  %v5118_v43 = vld [vmem:[%s10675_s5 + $0x758] sm:$0xff] }
0x18b1   : > { %6249 = vmatpush1.bf16.msra.mxu1 %v5517_v63  ;;  %v6695_v11 = vmax.f32 %v6631_v26, 0.0  ;;  %v6697_v15 = vmax.f32 %v6633_v39, 0.0  ;;  %6144 = vmatprep.subr.bf16.mxu0 %v5532_v61  ;;  %v5547_v44 = vunpack.c.h.s8.bf16 %v5083_v57  ;;  %v5549_v63 = vunpack.c.h.s8.bf16 %v5085_v62  ;;  %v5116_v39 = vld [vmem:[%s10675_s5 + $0x748] sm:$0xff] }
0x18b2   : > { %v6696_v3 = vmax.f32 %v6632_v37, 0.0  ;;  %v6698_v58 = vmax.f32 %v6634_v8, 0.0  ;;  %6250 = vmatprep.subr.bf16.mxu1 %v5534_v45  ;;  %v5564_v61 = vunpack.c.l.s8.bf16 %v5100_v46  ;;  %v5566_v49 = vunpack.c.l.s8.bf16 %v5102_v13  ;;  %v5117_v8 = vld [vmem:[%s10675_s5 + $0x750] sm:$0xff] }
0x18b3   : > { %v12229_v29 = vpack.c.bf16 %v6695_v11, %v6679_v52  ;;  %v12231_v48 = vpack.c.bf16 %v6697_v15, %v6681_v47  ;;  %v5101_v11 = vld [vmem:[%s10675_s5 + $0x6d0] sm:$0xff]  ;;  %v5563_v45 = vunpack.c.l.s8.bf16 %v5099_v23  ;;  %v5580_v26 = vunpack.c.h.s8.bf16 %v5100_v46  ;;  %v5132_v15 = vld [vmem:[%s10675_s5 + $0x7c8] sm:$0xff] }
0x18b4   : > { %v12234_v51 = vpack.c.bf16 %v6696_v3, %v6680_v36  ;;  %v12236_v4 = vpack.c.bf16 %v6698_v58, %v6682_v9  ;;  %6145 = vmatpush1.bf16.msra.mxu0 %v5531_v25  ;;  %v5565_v58 = vunpack.c.l.s8.bf16 %v5101_v11  ;;  %v5582_v57 = vunpack.c.h.s8.bf16 %v5102_v13  ;;  %v5134_v36 = vld [vmem:[%s10675_s5 + $0x7d8] sm:$0xff]  ;;  %v5131_v13 = vld [vmem:[%s10675_s5 + $0x7c0] sm:$0xff] }
0x18b5   : > { %6251 = vmatpush1.bf16.msra.mxu1 %v5533_v30  ;;  %6146 = vmatprep.subr.bf16.mxu0 %v5548_v12  ;;  %v5579_v10 = vunpack.c.h.s8.bf16 %v5099_v23  ;;  %v5581_v62 = vunpack.c.h.s8.bf16 %v5101_v11  ;;  %v5596_v25 = vunpack.c.l.s8.bf16 %v5116_v39  ;;  %v5115_v30 = vld [vmem:[%s10675_s5 + $0x740] sm:$0xff]  ;;  %v5598_v37 = vunpack.c.l.s8.bf16 %v5118_v43 }
0x18b6   : > { %6252 = vmatprep.subr.bf16.mxu1 %v5550_v54  ;;  %v5595_v12 = vunpack.c.l.s8.bf16 %v5115_v30  ;;  %v5597_v54 = vunpack.c.l.s8.bf16 %v5117_v8  ;;  %v5612_v52 = vunpack.c.h.s8.bf16 %v5116_v39  ;;  %v5614_v47 = vunpack.c.h.s8.bf16 %v5118_v43 }
0x18b7   : > { %v5611_v9 = vunpack.c.h.s8.bf16 %v5115_v30  ;;  %v5613_v3 = vunpack.c.h.s8.bf16 %v5117_v8  ;;  %v5628_v46 = vunpack.c.l.s8.bf16 %v5132_v15  ;;  %v5646_v11 = vunpack.c.h.s8.bf16 %v5134_v36 }
0x18b8   : > { %6147 = vmatpush1.bf16.msra.mxu0 %v5547_v44  ;;  %v5630_v44 = vunpack.c.l.s8.bf16 %v5134_v36  ;;  %v4911_v36 = vld [vmem:[%s10675_s5 + $0xe0] sm:$0xff] }
0x18b9   : > { %6253 = vmatpush1.bf16.msra.mxu1 %v5549_v63  ;;  %6148 = vmatprep.subr.bf16.mxu0 %v5564_v61  ;;  %v5133_v63 = vld [vmem:[%s10675_s5 + $0x7d0] sm:$0xff]  ;;  %v5627_v61 = vunpack.c.l.s8.bf16 %v5131_v13 }
0x18ba   : > { %6254 = vmatprep.subr.bf16.mxu1 %v5566_v49  ;;  %v5629_v23 = vunpack.c.l.s8.bf16 %v5133_v63  ;;  %v5644_v49 = vunpack.c.h.s8.bf16 %v5132_v15 }
0x18bc   : > { %6149 = vmatpush1.bf16.msra.mxu0 %v5563_v45  ;;  %v4896_v45 = vld [vmem:[%s10675_s5 + $0x68] sm:$0xff] }
0x18bd   : > { %6255 = vmatpush1.bf16.msra.mxu1 %v5565_v58  ;;  %6150 = vmatprep.subr.bf16.mxu0 %v5580_v26  ;;  %v4898_v58 = vld [vmem:[%s10675_s5 + $0x78] sm:$0xff]  ;;  %v5643_v26 = vunpack.c.h.s8.bf16 %v5131_v13  ;;  %v5152_v39 = vunpack.c.l.s8.bf16 %v4896_v45 }
0x18be   : > { %6256 = vmatprep.subr.bf16.mxu1 %v5582_v57  ;;  %v5645_v57 = vunpack.c.h.s8.bf16 %v5133_v63  ;;  %v5154_v43 = vunpack.c.l.s8.bf16 %v4898_v58  ;;  %v5170_v8 = vunpack.c.h.s8.bf16 %v4898_v58  ;;  %v4927_v58 = vld [vmem:[%s10675_s5 + $0x160] sm:$0xff] }
0x18c0   : > { %6151 = vmatpush1.bf16.msra.mxu0 %v5579_v10  ;;  %v4895_v10 = vld [vmem:[%s10675_s5 + $0x60] sm:$0xff] }
0x18c1   : > { %6257 = vmatpush1.bf16.msra.mxu1 %v5581_v62  ;;  %6152 = vmatprep.subr.bf16.mxu0 %v5596_v25  ;;  %v4897_v62 = vld [vmem:[%s10675_s5 + $0x70] sm:$0xff]  ;;  %v5151_v25 = vunpack.c.l.s8.bf16 %v4895_v10 }
0x18c2   : > { %6258 = vmatprep.subr.bf16.mxu1 %v5598_v37  ;;  %v5153_v30 = vunpack.c.l.s8.bf16 %v4897_v62  ;;  %v5168_v37 = vunpack.c.h.s8.bf16 %v4896_v45 }
0x18c4   : > { %6153 = vmatpush1.bf16.msra.mxu0 %v5595_v12  ;;  %v4912_v12 = vld [vmem:[%s10675_s5 + $0xe8] sm:$0xff] }
0x18c5   : > { %6259 = vmatpush1.bf16.msra.mxu1 %v5597_v54  ;;  %6154 = vmatprep.subr.bf16.mxu0 %v5612_v52  ;;  %v4914_v54 = vld [vmem:[%s10675_s5 + $0xf8] sm:$0xff]  ;;  %v5167_v52 = vunpack.c.h.s8.bf16 %v4895_v10  ;;  %v5184_v15 = vunpack.c.l.s8.bf16 %v4912_v12 }
0x18c6   : > { %6260 = vmatprep.subr.bf16.mxu1 %v5614_v47  ;;  %v5169_v47 = vunpack.c.h.s8.bf16 %v4897_v62  ;;  %v5202_v63 = vunpack.c.h.s8.bf16 %v4914_v54  ;;  %v4944_v62 = vld [vmem:[%s10675_s5 + $0x1e8] sm:$0xff] }
0x18c8   : > { %6155 = vmatpush1.bf16.msra.mxu0 %v5611_v9  ;;  %v5186_v9 = vunpack.c.l.s8.bf16 %v4914_v54 }
0x18c9   : > { %6261 = vmatpush1.bf16.msra.mxu1 %v5613_v3  ;;  %6156 = vmatprep.subr.bf16.mxu0 %v5628_v46  ;;  %v4913_v3 = vld [vmem:[%s10675_s5 + $0xf0] sm:$0xff]  ;;  %v5183_v46 = vunpack.c.l.s8.bf16 %v4911_v36 }
0x18ca   : > { %6262 = vmatprep.subr.bf16.mxu1 %v5630_v44  ;;  %v5185_v13 = vunpack.c.l.s8.bf16 %v4913_v3  ;;  %v5200_v44 = vunpack.c.h.s8.bf16 %v4912_v12  ;;  %v4943_v12 = vld [vmem:[%s10675_s5 + $0x1e0] sm:$0xff] }
0x18cc   : > { %6157 = vmatpush1.bf16.msra.mxu0 %v5627_v61  ;;  %v4928_v61 = vld [vmem:[%s10675_s5 + $0x168] sm:$0xff] }
0x18cd   : > { %6263 = vmatpush1.bf16.msra.mxu1 %v5629_v23  ;;  %6158 = vmatprep.subr.bf16.mxu0 %v5644_v49  ;;  %v4930_v23 = vld [vmem:[%s10675_s5 + $0x178] sm:$0xff]  ;;  %v5199_v49 = vunpack.c.h.s8.bf16 %v4911_v36  ;;  %v5216_v45 = vunpack.c.l.s8.bf16 %v4928_v61  ;;  %v5232_v10 = vunpack.c.h.s8.bf16 %v4928_v61  ;;  %v5264_v36 = vunpack.c.h.s8.bf16 %v4944_v62  ;;  %v4959_v61 = vld [vmem:[%s10675_s5 + $0x260] sm:$0xff] }
0x18ce   : > { %6264 = vmatprep.subr.bf16.mxu1 %v5646_v11  ;;  %v5201_v11 = vunpack.c.h.s8.bf16 %v4913_v3  ;;  %v4960_v3 = vld [vmem:[%s10675_s5 + $0x268] sm:$0xff] }
0x18d0   : > { %6159 = vmatpush1.bf16.msra.mxu0 %v5643_v26  ;;  %v5218_v26 = vunpack.c.l.s8.bf16 %v4930_v23 }
0x18d1   : > { %6265 = vmatpush1.bf16.msra.mxu1 %v5645_v57  ;;  %6287 = vmatprep.subr.bf16.mxu0 %v5152_v39  ;;  %v4929_v57 = vld [vmem:[%s10675_s5 + $0x170] sm:$0xff]  ;;  %v5215_v39 = vunpack.c.l.s8.bf16 %v4927_v58 }
0x18d2   : > { %6393 = vmatprep.subr.bf16.mxu1 %v5154_v43  ;;  %v5217_v43 = vunpack.c.l.s8.bf16 %v4929_v57 }
0x18d3   : > { %6161 = vmatmul.mubr.bf16.vlgmr.msra.gmra.mrb[112].mxu0 %v11961_v5 }
0x18d4   : > { %6267 = vmatmul.mubr.bf16.vlgmr.msra.gmra.mrb[112].mxu1 %v11961_v5  ;;  %6170 = vmatprep.mubr.bf16.mxu0 %v12026_v56 }
0x18d5   : > { %6276 = vmatprep.mubr.bf16.mxu1 %v12026_v56  ;;  %6288 = vmatpush1.bf16.msra.mxu0 %v5151_v25  ;;  %v4946_v25 = vld [vmem:[%s10675_s5 + $0x1f8] sm:$0xff] }
0x18d6   : > { %6394 = vmatpush1.bf16.msra.mxu1 %v5153_v30  ;;  %6289 = vmatprep.subr.bf16.mxu0 %v5168_v37  ;;  %v5231_v30 = vunpack.c.h.s8.bf16 %v4927_v58  ;;  %v5233_v37 = vunpack.c.h.s8.bf16 %v4929_v57  ;;  %v5250_v54 = vunpack.c.l.s8.bf16 %v4946_v25  ;;  %v5296_v58 = vunpack.c.h.s8.bf16 %v4960_v3  ;;  %v4976_v57 = vld [vmem:[%s10675_s5 + $0x2e8] sm:$0xff] }
0x18d7   : > { %6395 = vmatprep.subr.bf16.mxu1 %v5170_v8  ;;  %v5248_v8 = vunpack.c.l.s8.bf16 %v4944_v62  ;;  %v4975_v62 = vld [vmem:[%s10675_s5 + $0x2e0] sm:$0xff] }
0x18d9   : > { %6290 = vmatpush1.bf16.msra.mxu0 %v5167_v52  ;;  %v4945_v52 = vld [vmem:[%s10675_s5 + $0x1f0] sm:$0xff] }
0x18da   : > { %6396 = vmatpush1.bf16.msra.mxu1 %v5169_v47  ;;  %6291 = vmatprep.subr.bf16.mxu0 %v5184_v15  ;;  %v5247_v47 = vunpack.c.l.s8.bf16 %v4943_v12  ;;  %v5249_v15 = vunpack.c.l.s8.bf16 %v4945_v52 }
0x18db   : > { %6171 = vmatmul.mubr.bf16.gmra.mrb[116].mxu0 %v12035_v32  ;;  %6397 = vmatprep.subr.bf16.mxu1 %v5186_v9  ;;  %v5266_v9 = vunpack.c.h.s8.bf16 %v4946_v25 }
0x18dc   : > { %6277 = vmatmul.mubr.bf16.gmra.mrb[116].mxu1 %v12035_v32  ;;  %6319 = vmatprep.mubr.bf16.mxu0 %v11953_v55 }
0x18dd   : > { %6292 = vmatpush1.bf16.msra.mxu0 %v5183_v46  ;;  %6425 = vmatprep.mubr.bf16.mxu1 %v11953_v55  ;;  %v5234_v55 = vunpack.c.h.s8.bf16 %v4930_v23  ;;  %v4962_v46 = vld [vmem:[%s10675_s5 + $0x278] sm:$0xff] }
0x18de   : > { %6398 = vmatpush1.bf16.msra.mxu1 %v5185_v13  ;;  %6293 = vmatprep.subr.bf16.mxu0 %v5200_v44  ;;  %v5263_v13 = vunpack.c.h.s8.bf16 %v4943_v12  ;;  %v5265_v44 = vunpack.c.h.s8.bf16 %v4945_v52  ;;  %v5282_v23 = vunpack.c.l.s8.bf16 %v4962_v46  ;;  %v5328_v12 = vunpack.c.h.s8.bf16 %v4976_v57  ;;  %v4992_v52 = vld [vmem:[%s10675_s5 + $0x368] sm:$0xff] }
0x18df   : > { %6399 = vmatprep.subr.bf16.mxu1 %v5202_v63  ;;  %v5280_v63 = vunpack.c.l.s8.bf16 %v4960_v3  ;;  %v4991_v3 = vld [vmem:[%s10675_s5 + $0x360] sm:$0xff] }
0x18e1   : > { %6294 = vmatpush1.bf16.msra.mxu0 %v5199_v49  ;;  %v4961_v49 = vld [vmem:[%s10675_s5 + $0x270] sm:$0xff] }
0x18e2   : > { %6400 = vmatpush1.bf16.msra.mxu1 %v5201_v11  ;;  %6295 = vmatprep.subr.bf16.mxu0 %v5216_v45  ;;  %v5279_v11 = vunpack.c.l.s8.bf16 %v4959_v61  ;;  %v5281_v45 = vunpack.c.l.s8.bf16 %v4961_v49 }
0x18e3   : > { %6401 = vmatprep.subr.bf16.mxu1 %v5218_v26  ;;  %v5298_v26 = vunpack.c.h.s8.bf16 %v4962_v46 }
0x18e5   : > { %6296 = vmatpush1.bf16.msra.mxu0 %v5215_v39  ;;  %v4978_v39 = vld [vmem:[%s10675_s5 + $0x2f8] sm:$0xff] }
0x18e6   : > { %6402 = vmatpush1.bf16.msra.mxu1 %v5217_v43  ;;  %6297 = vmatprep.subr.bf16.mxu0 %v5232_v10  ;;  %v5295_v43 = vunpack.c.h.s8.bf16 %v4959_v61  ;;  %v5297_v10 = vunpack.c.h.s8.bf16 %v4961_v49  ;;  %v5314_v25 = vunpack.c.l.s8.bf16 %v4978_v39  ;;  %v5360_v61 = vunpack.c.h.s8.bf16 %v4992_v52  ;;  %v5008_v49 = vld [vmem:[%s10675_s5 + $0x3e8] sm:$0xff] }
0x18e7   : > { %6403 = vmatprep.subr.bf16.mxu1 %v5234_v55  ;;  %v5312_v55 = vunpack.c.l.s8.bf16 %v4976_v57  ;;  %v5007_v57 = vld [vmem:[%s10675_s5 + $0x3e0] sm:$0xff] }
0x18e9   : > { %6298 = vmatpush1.bf16.msra.mxu0 %v5231_v30  ;;  %v4977_v30 = vld [vmem:[%s10675_s5 + $0x2f0] sm:$0xff] }
0x18ea   : > { %6404 = vmatpush1.bf16.msra.mxu1 %v5233_v37  ;;  %6299 = vmatprep.subr.bf16.mxu0 %v5248_v8  ;;  %v5311_v37 = vunpack.c.l.s8.bf16 %v4975_v62  ;;  %v5313_v8 = vunpack.c.l.s8.bf16 %v4977_v30 }
0x18eb   : > { %6405 = vmatprep.subr.bf16.mxu1 %v5250_v54  ;;  %v5330_v54 = vunpack.c.h.s8.bf16 %v4978_v39 }
0x18ed   : > { %6300 = vmatpush1.bf16.msra.mxu0 %v5247_v47  ;;  %v4994_v47 = vld [vmem:[%s10675_s5 + $0x378] sm:$0xff] }
0x18ee   : > { %6406 = vmatpush1.bf16.msra.mxu1 %v5249_v15  ;;  %6301 = vmatprep.subr.bf16.mxu0 %v5264_v36  ;;  %v5327_v15 = vunpack.c.h.s8.bf16 %v4975_v62  ;;  %v5329_v36 = vunpack.c.h.s8.bf16 %v4977_v30  ;;  %v5346_v46 = vunpack.c.l.s8.bf16 %v4994_v47  ;;  %v5392_v62 = vunpack.c.h.s8.bf16 %v5008_v49  ;;  %v5024_v30 = vld [vmem:[%s10675_s5 + $0x468] sm:$0xff] }
0x18ef   : > { %6407 = vmatprep.subr.bf16.mxu1 %v5266_v9  ;;  %v5344_v9 = vunpack.c.l.s8.bf16 %v4992_v52 }
0x18f1   : > { %6302 = vmatpush1.bf16.msra.mxu0 %v5263_v13  ;;  %v4993_v13 = vld [vmem:[%s10675_s5 + $0x370] sm:$0xff] }
0x18f2   : > { %6408 = vmatpush1.bf16.msra.mxu1 %v5265_v44  ;;  %6303 = vmatprep.subr.bf16.mxu0 %v5280_v63  ;;  %v5343_v44 = vunpack.c.l.s8.bf16 %v4991_v3  ;;  %v5345_v63 = vunpack.c.l.s8.bf16 %v4993_v13 }
0x18f3   : > { %6409 = vmatprep.subr.bf16.mxu1 %v5282_v23  ;;  %v5362_v23 = vunpack.c.h.s8.bf16 %v4994_v47  ;;  %v5023_v47 = vld [vmem:[%s10675_s5 + $0x460] sm:$0xff] }
0x18f5   : > { %6304 = vmatpush1.bf16.msra.mxu0 %v5279_v11  ;;  %v5010_v11 = vld [vmem:[%s10675_s5 + $0x3f8] sm:$0xff] }
0x18f6   : > { %6410 = vmatpush1.bf16.msra.mxu1 %v5281_v45  ;;  %6305 = vmatprep.subr.bf16.mxu0 %v5296_v58  ;;  %v5359_v45 = vunpack.c.h.s8.bf16 %v4991_v3  ;;  %v5361_v58 = vunpack.c.h.s8.bf16 %v4993_v13  ;;  %v5378_v39 = vunpack.c.l.s8.bf16 %v5010_v11  ;;  %v5424_v3 = vunpack.c.h.s8.bf16 %v5024_v30  ;;  %v5040_v13 = vld [vmem:[%s10675_s5 + $0x4e8] sm:$0xff] }
0x18f7   : > { %6411 = vmatprep.subr.bf16.mxu1 %v5298_v26  ;;  %v5376_v26 = vunpack.c.l.s8.bf16 %v5008_v49  ;;  %v5039_v49 = vld [vmem:[%s10675_s5 + $0x4e0] sm:$0xff] }
0x18f9   : > { %6306 = vmatpush1.bf16.msra.mxu0 %v5295_v43  ;;  %v5009_v43 = vld [vmem:[%s10675_s5 + $0x3f0] sm:$0xff] }
0x18fa   : > { %6412 = vmatpush1.bf16.msra.mxu1 %v5297_v10  ;;  %6307 = vmatprep.subr.bf16.mxu0 %v5312_v55  ;;  %v5375_v10 = vunpack.c.l.s8.bf16 %v5007_v57  ;;  %v5377_v55 = vunpack.c.l.s8.bf16 %v5009_v43 }
0x18fb   : > { %6413 = vmatprep.subr.bf16.mxu1 %v5314_v25  ;;  %v5394_v25 = vunpack.c.h.s8.bf16 %v5010_v11 }
0x18fd   : > { %6308 = vmatpush1.bf16.msra.mxu0 %v5311_v37  ;;  %v5026_v37 = vld [vmem:[%s10675_s5 + $0x478] sm:$0xff] }
0x18fe   : > { %6414 = vmatpush1.bf16.msra.mxu1 %v5313_v8  ;;  %6309 = vmatprep.subr.bf16.mxu0 %v5328_v12  ;;  %v5391_v8 = vunpack.c.h.s8.bf16 %v5007_v57  ;;  %v5393_v12 = vunpack.c.h.s8.bf16 %v5009_v43  ;;  %v5410_v52 = vunpack.c.l.s8.bf16 %v5026_v37  ;;  %v5056_v57 = vld [vmem:[%s10675_s5 + $0x568] sm:$0xff]  ;;  %v5455_v43 = vunpack.c.h.s8.bf16 %v5039_v49 }
0x18ff   : > { %6415 = vmatprep.subr.bf16.mxu1 %v5330_v54  ;;  %v5408_v54 = vunpack.c.l.s8.bf16 %v5024_v30  ;;  %v5057_v30 = vld [vmem:[%s10675_s5 + $0x570] sm:$0xff] }
0x1901   : > { %6310 = vmatpush1.bf16.msra.mxu0 %v5327_v15  ;;  %v5025_v15 = vld [vmem:[%s10675_s5 + $0x470] sm:$0xff] }
0x1902   : > { %6416 = vmatpush1.bf16.msra.mxu1 %v5329_v36  ;;  %6311 = vmatprep.subr.bf16.mxu0 %v5344_v9  ;;  %v5407_v36 = vunpack.c.l.s8.bf16 %v5023_v47  ;;  %v5409_v9 = vunpack.c.l.s8.bf16 %v5025_v15 }
0x1903   : > { %6417 = vmatprep.subr.bf16.mxu1 %v5346_v46  ;;  %v5426_v46 = vunpack.c.h.s8.bf16 %v5026_v37  ;;  %v12310_v37 = vrot.slane %v12166_v34, %v11183_v59 }
0x1905   : > { %6312 = vmatpush1.bf16.msra.mxu0 %v5343_v44  ;;  %v5042_v44 = vld [vmem:[%s10675_s5 + $0x4f8] sm:$0xff] }
0x1906   : > { %6418 = vmatpush1.bf16.msra.mxu1 %v5345_v63  ;;  %6313 = vmatprep.subr.bf16.mxu0 %v5360_v61  ;;  %v5423_v63 = vunpack.c.h.s8.bf16 %v5023_v47  ;;  %v5425_v61 = vunpack.c.h.s8.bf16 %v5025_v15  ;;  %v5442_v11 = vunpack.c.l.s8.bf16 %v5042_v44 }
0x1907   : > { %6419 = vmatprep.subr.bf16.mxu1 %v5362_v23  ;;  %v5440_v23 = vunpack.c.l.s8.bf16 %v5040_v13 }
0x1909   : > { %6314 = vmatpush1.bf16.msra.mxu0 %v5359_v45  ;;  %v5041_v45 = vld [vmem:[%s10675_s5 + $0x4f0] sm:$0xff] }
0x190a   : > { %6420 = vmatpush1.bf16.msra.mxu1 %v5361_v58  ;;  %6315 = vmatprep.subr.bf16.mxu0 %v5376_v26  ;;  %v5439_v58 = vunpack.c.l.s8.bf16 %v5039_v49  ;;  %v5456_v26 = vunpack.c.h.s8.bf16 %v5040_v13  ;;  %v12329_v13 = vld [vmem:[%s10675_s5 + $0x5f8] sm:$0xff] }
0x190b   : > { %6421 = vmatprep.subr.bf16.mxu1 %v5378_v39  ;;  %v5058_v39 = vld [vmem:[%s10675_s5 + $0x578] sm:$0xff] }
0x190c   : > { %v5490_v15 = vunpack.c.h.s8.bf16 %v5058_v39 }
0x190d   : > { %6316 = vmatpush1.bf16.msra.mxu0 %v5375_v10  ;;  %v5457_v10 = vunpack.c.h.s8.bf16 %v5041_v45 }
0x190e   : > { %6422 = vmatpush1.bf16.msra.mxu1 %v5377_v55  ;;  %6317 = vmatprep.subr.bf16.mxu0 %v5392_v62  ;;  %v5472_v55 = vunpack.c.l.s8.bf16 %v5056_v57  ;;  %v5055_v62 = vld [vmem:[%s10675_s5 + $0x560] sm:$0xff] }
0x190f   : > { %6423 = vmatprep.subr.bf16.mxu1 %v5394_v25  ;;  %v5474_v25 = vunpack.c.l.s8.bf16 %v5058_v39  ;;  %v5487_v49 = vunpack.c.h.s8.bf16 %v5055_v62 }
0x1911   : > { %6318 = vmatpush1.bf16.msra.mxu0 %v5391_v8  ;;  %v12318_v8 = vrot.slane %v12166_v34, %v11189_v7 }
0x1912   : > { %6424 = vmatpush1.bf16.msra.mxu1 %v5393_v12  ;;  %6340 = vmatprep.subr.bf16.mxu0 %v5408_v54  ;;  %v5473_v12 = vunpack.c.l.s8.bf16 %v5057_v30  ;;  %v12322_v54 = vrot.slane %v12166_v34, %v11192_v6 }
0x1913   : > { %6446 = vmatprep.subr.bf16.mxu1 %v5410_v52  ;;  %v5488_v52 = vunpack.c.h.s8.bf16 %v5056_v57 }
0x1914   : > { %6320 = vmatmul.mubr.bf16.vlgmr.msra.gmra.mrb[120].mxu0 %v11955_v50 }
0x1915   : > { %6426 = vmatmul.mubr.bf16.vlgmr.msra.gmra.mrb[120].mxu1 %v11955_v50  ;;  %6329 = vmatprep.mubr.bf16.mxu0 %v12005_v41  ;;  %v5441_v50 = vunpack.c.l.s8.bf16 %v5041_v45 }
0x1916   : > { %6341 = vmatpush1.bf16.msra.mxu0 %v5407_v36  ;;  %6435 = vmatprep.mubr.bf16.mxu1 %v12005_v41  ;;  %v5458_v41 = vunpack.c.h.s8.bf16 %v5042_v44  ;;  %v12325_v36 = vld [vmem:[%s10675_s5 + $0x5e8] sm:$0xff]  ;;  %v12332_v44 = vld [vmem:[%s10675_s5 + $0x5e0] sm:$0xff] }
0x1917   : > { %6447 = vmatpush1.bf16.msra.mxu1 %v5409_v9  ;;  %6342 = vmatprep.subr.bf16.mxu0 %v5424_v3  ;;  %v5504_v57 = vunpack.c.l.s8.bf16 %v12325_v36 }
0x1918   : > { %6448 = vmatprep.subr.bf16.mxu1 %v5426_v46 }
0x191a   : > { %6343 = vmatpush1.bf16.msra.mxu0 %v5423_v63 }
0x191b   : > { %6449 = vmatpush1.bf16.msra.mxu1 %v5425_v61  ;;  %6344 = vmatprep.subr.bf16.mxu0 %v5440_v23 }
0x191c   : > { %6330 = vmatmul.mubr.bf16.gmra.mrb[124].mxu0 %v12007_v16  ;;  %6450 = vmatprep.subr.bf16.mxu1 %v5442_v11  ;;  %v12337_v11 = vld [vmem:[%s10675_s5 + $0x5f0] sm:$0xff] }
0x191d   : > { %6436 = vmatmul.mubr.bf16.gmra.mrb[124].mxu1 %v12007_v16  ;;  %6372 = vmatprep.mubr.bf16.mxu0 %v11959_v31  ;;  %v5471_v16 = vunpack.c.l.s8.bf16 %v5055_v62  ;;  %v5503_v62 = vunpack.c.l.s8.bf16 %v12332_v44 }
0x191e   : > { %6345 = vmatpush1.bf16.msra.mxu0 %v5439_v58  ;;  %6478 = vmatprep.mubr.bf16.mxu1 %v11959_v31  ;;  %v12314_v31 = vrot.slane %v12166_v34, %v11186_v1 }
0x191f   : > { %6451 = vmatpush1.bf16.msra.mxu1 %v5441_v50  ;;  %6346 = vmatprep.subr.bf16.mxu0 %v5456_v26  ;;  %v5489_v26 = vunpack.c.h.s8.bf16 %v5057_v30 }
0x1920   : > { %6452 = vmatprep.subr.bf16.mxu1 %v5458_v41 }
0x1922   : > { %6347 = vmatpush1.bf16.msra.mxu0 %v5455_v43 }
0x1923   : > { %6453 = vmatpush1.bf16.msra.mxu1 %v5457_v10  ;;  %6348 = vmatprep.subr.bf16.mxu0 %v5472_v55  ;;  %v5506_v55 = vunpack.c.l.s8.bf16 %v12329_v13 }
0x1924   : > { %6454 = vmatprep.subr.bf16.mxu1 %v5474_v25  ;;  %v5950_v47 = vpop.f32.mrb[104].mxu0 }
0x1925   : > { %v6587_v9 = vmul.f32 %v12310_v37, %v5950_v47  ;;  %v6056_v3 = vpop.f32.mrb[104].mxu1  ;;  %v5952_v46 = vpop.f32.mrb[105].mxu0 }
0x1926   : > { %6349 = vmatpush1.bf16.msra.mxu0 %v5471_v16  ;;  %v6589_v63 = vmul.f32 %v12314_v31, %v6056_v3  ;;  %v6588_v34 = vmul.f32 %v12318_v8, %v5952_v46  ;;  %v6058_v61 = vpop.f32.mrb[105].mxu1  ;;  %v5954_v23 = vpop.f32.mrb[106].mxu0 }
0x1927   : > { %6455 = vmatpush1.bf16.msra.mxu1 %v5473_v12  ;;  %v6590_v45 = vmul.f32 %v12322_v54, %v6058_v61  ;;  %6350 = vmatprep.subr.bf16.mxu0 %v5488_v52  ;;  %v6603_v58 = vmul.f32 %v12310_v37, %v5954_v23  ;;  %v6060_v50 = vpop.f32.mrb[106].mxu1  ;;  %v5956_v41 = vpop.f32.mrb[107].mxu0  ;;  %v6651_v25 = vmax.f32 %v6587_v9, 0.0  ;;  %v5505_v52 = vunpack.c.l.s8.bf16 %v12337_v11 }
0x1928   : > { %6456 = vmatprep.subr.bf16.mxu1 %v5490_v15  ;;  %v6605_v39 = vmul.f32 %v12314_v31, %v6060_v50  ;;  %v6604_v43 = vmul.f32 %v12318_v8, %v5956_v41  ;;  %v6062_v10 = vpop.f32.mrb[107].mxu1  ;;  %v6653_v30 = vmax.f32 %v6589_v63, 0.0  ;;  %v6652_v47 = vmax.f32 %v6588_v34, 0.0 }
0x1929   : > { %v6667_v16 = vmax.f32 %v6603_v58, 0.0  ;;  %v6606_v12 = vmul.f32 %v12322_v54, %v6062_v10  ;;  %v6654_v46 = vmax.f32 %v6590_v45, 0.0  ;;  %v5520_v9 = vunpack.c.h.s8.bf16 %v12325_v36 }
0x192a   : > { %v6669_v3 = vmax.f32 %v6605_v39, 0.0  ;;  %6351 = vmatpush1.bf16.msra.mxu0 %v5487_v49  ;;  %v6668_v15 = vmax.f32 %v6604_v43, 0.0  ;;  %v5522_v34 = vunpack.c.h.s8.bf16 %v12329_v13  ;;  %v5088_v49 = vld [vmem:[%s10675_s5 + $0x668] sm:$0xff]  ;;  %v5090_v43 = vld [vmem:[%s10675_s5 + $0x678] sm:$0xff] }
0x192b   : > { %v12348_v61 = vpack.c.bf16 %v6667_v16, %v6651_v25  ;;  %6457 = vmatpush1.bf16.msra.mxu1 %v5489_v26  ;;  %v6670_v23 = vmax.f32 %v6606_v12, 0.0  ;;  %6352 = vmatprep.subr.bf16.mxu0 %v5504_v57  ;;  %v5087_v57 = vld [vmem:[%s10675_s5 + $0x660] sm:$0xff]  ;;  %v5519_v16 = vunpack.c.h.s8.bf16 %v12332_v44  ;;  %v5089_v12 = vld [vmem:[%s10675_s5 + $0x670] sm:$0xff] }
0x192c   : > { %v12351_v58 = vpack.c.bf16 %v6669_v3, %v6653_v30  ;;  %v12353_v50 = vpack.c.bf16 %v6668_v15, %v6652_v47  ;;  %6458 = vmatprep.subr.bf16.mxu1 %v5506_v55  ;;  %v5960_v63 = vpop.f32.mrb[108].mxu0  ;;  %v5521_v3 = vunpack.c.h.s8.bf16 %v12337_v11  ;;  %v5535_v44 = vunpack.c.l.s8.bf16 %v5087_v57 }
0x192d   : > { %v12357_v45 = vpack.c.bf16 %v6670_v23, %v6654_v46  ;;  %v6619_v41 = vmul.f32 %v12310_v37, %v5960_v63  ;;  %v6066_v39 = vpop.f32.mrb[108].mxu1  ;;  %v5962_v26 = vpop.f32.mrb[109].mxu0 }
0x192e   : > { %6353 = vmatpush1.bf16.msra.mxu0 %v5503_v62  ;;  %v6621_v36 = vmul.f32 %v12314_v31, %v6066_v39  ;;  %v6620_v10 = vmul.f32 %v12318_v8, %v5962_v26  ;;  %v6068_v25 = vpop.f32.mrb[109].mxu1  ;;  %v5964_v55 = vpop.f32.mrb[110].mxu0  ;;  %v5536_v62 = vunpack.c.l.s8.bf16 %v5088_v49  ;;  %v5538_v39 = vunpack.c.l.s8.bf16 %v5090_v43 }
0x192f   : > { %6459 = vmatpush1.bf16.msra.mxu1 %v5505_v52  ;;  %v6622_v13 = vmul.f32 %v12322_v54, %v6068_v25  ;;  %6354 = vmatprep.subr.bf16.mxu0 %v5520_v9  ;;  %v6635_v30 = vmul.f32 %v12310_v37, %v5964_v55  ;;  %v6070_v47 = vpop.f32.mrb[110].mxu1  ;;  %v5966_v15 = vpop.f32.mrb[111].mxu0  ;;  %v6683_v26 = vmax.f32 %v6619_v41, 0.0  ;;  %v5537_v9 = vunpack.c.l.s8.bf16 %v5089_v12 }
0x1930   : > { %6460 = vmatprep.subr.bf16.mxu1 %v5522_v34  ;;  %v6637_v46 = vmul.f32 %v12314_v31, %v6070_v47  ;;  %v6636_v23 = vmul.f32 %v12318_v8, %v5966_v15  ;;  %v6072_v63 = vpop.f32.mrb[111].mxu1  ;;  %v6685_v37 = vmax.f32 %v6621_v36, 0.0  ;;  %v6684_v55 = vmax.f32 %v6620_v10, 0.0  ;;  %v5104_v10 = vld [vmem:[%s10675_s5 + $0x6e8] sm:$0xff] }
0x1931   : > { %v6699_v52 = vmax.f32 %v6635_v30, 0.0  ;;  %v6638_v25 = vmul.f32 %v12322_v54, %v6072_v63  ;;  %v6686_v34 = vmax.f32 %v6622_v13, 0.0  ;;  %v5552_v8 = vunpack.c.h.s8.bf16 %v5088_v49  ;;  %v5103_v49 = vld [vmem:[%s10675_s5 + $0x6e0] sm:$0xff]  ;;  %v5122_v63 = vld [vmem:[%s10675_s5 + $0x778] sm:$0xff] }
0x1932   : > { %v6701_v11 = vmax.f32 %v6637_v46, 0.0  ;;  %6355 = vmatpush1.bf16.msra.mxu0 %v5519_v16  ;;  %v6700_v38 = vmax.f32 %v6636_v23, 0.0  ;;  %v5554_v36 = vunpack.c.h.s8.bf16 %v5090_v43  ;;  %v5106_v16 = vld [vmem:[%s10675_s5 + $0x6f8] sm:$0xff]  ;;  %v5551_v13 = vunpack.c.h.s8.bf16 %v5087_v57  ;;  %v5120_v23 = vld [vmem:[%s10675_s5 + $0x768] sm:$0xff] }
0x1933   : > { %v12372_v40 = vpack.c.bf16 %v6699_v52, %v6683_v26  ;;  %6461 = vmatpush1.bf16.msra.mxu1 %v5521_v3  ;;  %v6702_v31 = vmax.f32 %v6638_v25, 0.0  ;;  %6356 = vmatprep.subr.bf16.mxu0 %v5536_v62  ;;  %v5553_v47 = vunpack.c.h.s8.bf16 %v5089_v12  ;;  %v5568_v3 = vunpack.c.l.s8.bf16 %v5104_v10  ;;  %v5105_v62 = vld [vmem:[%s10675_s5 + $0x6f0] sm:$0xff]  ;;  %v5119_v26 = vld [vmem:[%s10675_s5 + $0x760] sm:$0xff] }
0x1934   : > { %v12374_v41 = vpack.c.bf16 %v6701_v11, %v6685_v37  ;;  %v12376_v54 = vpack.c.bf16 %v6700_v38, %v6684_v55  ;;  %6462 = vmatprep.subr.bf16.mxu1 %v5538_v39  ;;  %v5570_v15 = vunpack.c.l.s8.bf16 %v5106_v16  ;;  %v5567_v38 = vunpack.c.l.s8.bf16 %v5103_v49  ;;  %v5121_v25 = vld [vmem:[%s10675_s5 + $0x770] sm:$0xff] }
0x1935   : > { %v12379_v30 = vpack.c.bf16 %v6702_v31, %v6686_v34  ;;  %v5569_v43 = vunpack.c.l.s8.bf16 %v5105_v62  ;;  %v5584_v46 = vunpack.c.h.s8.bf16 %v5104_v10  ;;  %v5586_v57 = vunpack.c.h.s8.bf16 %v5106_v16  ;;  %v5136_v34 = vld [vmem:[%s10675_s5 + $0x7e8] sm:$0xff]  ;;  %v5138_v31 = vld [vmem:[%s10675_s5 + $0x7f8] sm:$0xff]  ;;  %v5135_v16 = vld [vmem:[%s10675_s5 + $0x7e0] sm:$0xff] }
0x1936   : > { %6357 = vmatpush1.bf16.msra.mxu0 %v5535_v44  ;;  %v5583_v39 = vunpack.c.h.s8.bf16 %v5103_v49  ;;  %v5585_v12 = vunpack.c.h.s8.bf16 %v5105_v62  ;;  %v5600_v44 = vunpack.c.l.s8.bf16 %v5120_v23  ;;  %v5602_v52 = vunpack.c.l.s8.bf16 %v5122_v63 }
0x1937   : > { %6463 = vmatpush1.bf16.msra.mxu1 %v5537_v9  ;;  %6358 = vmatprep.subr.bf16.mxu0 %v5552_v8  ;;  %v5599_v9 = vunpack.c.l.s8.bf16 %v5119_v26  ;;  %v5601_v37 = vunpack.c.l.s8.bf16 %v5121_v25  ;;  %v5616_v55 = vunpack.c.h.s8.bf16 %v5120_v23  ;;  %v5618_v11 = vunpack.c.h.s8.bf16 %v5122_v63 }
0x1938   : > { %6464 = vmatprep.subr.bf16.mxu1 %v5554_v36  ;;  %v5615_v8 = vunpack.c.h.s8.bf16 %v5119_v26  ;;  %v5617_v36 = vunpack.c.h.s8.bf16 %v5121_v25  ;;  %v5632_v10 = vunpack.c.l.s8.bf16 %v5136_v34  ;;  %v5650_v62 = vunpack.c.h.s8.bf16 %v5138_v31 }
0x193a   : > { %6359 = vmatpush1.bf16.msra.mxu0 %v5551_v13  ;;  %v5634_v13 = vunpack.c.l.s8.bf16 %v5138_v31  ;;  %v6747_v31 = vld [vmem:[%s10684_s28 + $0x20] sm:$0xff] }
0x193b   : > { %6465 = vmatpush1.bf16.msra.mxu1 %v5553_v47  ;;  %6360 = vmatprep.subr.bf16.mxu0 %v5568_v3  ;;  %v5137_v47 = vld [vmem:[%s10675_s5 + $0x7f0] sm:$0xff]  ;;  %v5631_v3 = vunpack.c.l.s8.bf16 %v5135_v16 }
0x193c   : > { %6466 = vmatprep.subr.bf16.mxu1 %v5570_v15  ;;  %v5633_v49 = vunpack.c.l.s8.bf16 %v5137_v47  ;;  %v5648_v15 = vunpack.c.h.s8.bf16 %v5136_v34 }
0x193e   : > { %6361 = vmatpush1.bf16.msra.mxu0 %v5567_v38  ;;  %v6744_v38 = vld [vmem:[%s10684_s28 + $0x8] sm:$0xff] }
0x193f   : > { %6467 = vmatpush1.bf16.msra.mxu1 %v5569_v43  ;;  %6362 = vmatprep.subr.bf16.mxu0 %v5584_v46  ;;  %v6746_v43 = vld [vmem:[%s10684_s28 + $0x18] sm:$0xff]  ;;  %v5647_v46 = vunpack.c.h.s8.bf16 %v5135_v16  ;;  %v7000_v23 = vunpack.c.l.s8.bf16 %v6744_v38 }
0x1940   : > { %6468 = vmatprep.subr.bf16.mxu1 %v5586_v57  ;;  %v5649_v57 = vunpack.c.h.s8.bf16 %v5137_v47  ;;  %v7002_v63 = vunpack.c.l.s8.bf16 %v6746_v43  ;;  %v7006_v25 = vunpack.c.h.s8.bf16 %v6746_v43  ;;  %v6754_v47 = vld [vmem:[%s10684_s28 + $0x58] sm:$0xff]  ;;  %v6753_v43 = vld [vmem:[%s10684_s28 + $0x50] sm:$0xff] }
0x1942   : > { %6363 = vmatpush1.bf16.msra.mxu0 %v5583_v39  ;;  %v6743_v39 = vld [vmem:[%s10684_s28] sm:$0xff] }
0x1943   : > { %6469 = vmatpush1.bf16.msra.mxu1 %v5585_v12  ;;  %6364 = vmatprep.subr.bf16.mxu0 %v5600_v44  ;;  %v6745_v12 = vld [vmem:[%s10684_s28 + $0x10] sm:$0xff]  ;;  %v6999_v44 = vunpack.c.l.s8.bf16 %v6743_v39 }
0x1944   : > { %6470 = vmatprep.subr.bf16.mxu1 %v5602_v52  ;;  %v7001_v26 = vunpack.c.l.s8.bf16 %v6745_v12  ;;  %v7004_v52 = vunpack.c.h.s8.bf16 %v6744_v38  ;;  %v7018_v38 = vunpack.c.l.s8.bf16 %v6754_v47 }
0x1946   : > { %6365 = vmatpush1.bf16.msra.mxu0 %v5599_v9  ;;  %v6748_v9 = vld [vmem:[%s10684_s28 + $0x28] sm:$0xff] }
0x1947   : > { %6471 = vmatpush1.bf16.msra.mxu1 %v5601_v37  ;;  %6366 = vmatprep.subr.bf16.mxu0 %v5616_v55  ;;  %v6750_v37 = vld [vmem:[%s10684_s28 + $0x38] sm:$0xff]  ;;  %v7003_v55 = vunpack.c.h.s8.bf16 %v6743_v39  ;;  %v7008_v34 = vunpack.c.l.s8.bf16 %v6748_v9  ;;  %v7012_v16 = vunpack.c.h.s8.bf16 %v6748_v9 }
0x1948   : > { %6472 = vmatprep.subr.bf16.mxu1 %v5618_v11  ;;  %v7005_v11 = vunpack.c.h.s8.bf16 %v6745_v12  ;;  %v7021_v12 = vunpack.c.h.s8.bf16 %v6753_v43 }
0x194a   : > { %6367 = vmatpush1.bf16.msra.mxu0 %v5615_v8  ;;  %v7010_v8 = vunpack.c.l.s8.bf16 %v6750_v37 }
0x194b   : > { %6473 = vmatpush1.bf16.msra.mxu1 %v5617_v36  ;;  %6368 = vmatprep.subr.bf16.mxu0 %v5632_v10  ;;  %v6749_v36 = vld [vmem:[%s10684_s28 + $0x30] sm:$0xff]  ;;  %v7007_v10 = vunpack.c.l.s8.bf16 %v6747_v31 }
0x194c   : > { %6474 = vmatprep.subr.bf16.mxu1 %v5634_v13  ;;  %v6752_v13 = vld [vmem:[%s10684_s28 + $0x48] sm:$0xff] }
0x194e   : > { %6369 = vmatpush1.bf16.msra.mxu0 %v5631_v3  ;;  %v7011_v3 = vunpack.c.h.s8.bf16 %v6747_v31  ;;  %v6762_v31 = vld [vmem:[%s10684_s28 + $0x98] sm:$0xff] }
0x194f   : > { %6475 = vmatpush1.bf16.msra.mxu1 %v5633_v49  ;;  %6370 = vmatprep.subr.bf16.mxu0 %v5648_v15  ;;  %v7013_v49 = vunpack.c.h.s8.bf16 %v6749_v36  ;;  %v7016_v15 = vunpack.c.l.s8.bf16 %v6752_v13 }
0x1950   : > { %6476 = vmatprep.subr.bf16.mxu1 %v5650_v62  ;;  %v6751_v62 = vld [vmem:[%s10684_s28 + $0x40] sm:$0xff] }
0x1951   : > { %v7019_v39 = vunpack.c.h.s8.bf16 %v6751_v62 }
0x1952   : > { %6371 = vmatpush1.bf16.msra.mxu0 %v5647_v46  ;;  %v7017_v46 = vunpack.c.l.s8.bf16 %v6753_v43 }
0x1953   : > { %6477 = vmatpush1.bf16.msra.mxu1 %v5649_v57  ;;  %7511 = vmatprep.subr.bf16.mxu0 %v7000_v23  ;;  %v7020_v57 = vunpack.c.h.s8.bf16 %v6752_v13  ;;  %v6756_v23 = vld [vmem:[%s10684_s28 + $0x68] sm:$0xff] }
0x1954   : > { %7935 = vmatprep.subr.bf16.mxu1 %v7002_v63  ;;  %v6758_v63 = vld [vmem:[%s10684_s28 + $0x78] sm:$0xff] }
0x1955   : > { %6373 = vmatmul.mubr.bf16.vlgmr.msra.gmra.mrb[120].mxu0 %v11961_v5 }
0x1956   : > { %6479 = vmatmul.mubr.bf16.vlgmr.msra.gmra.mrb[120].mxu1 %v11961_v5  ;;  %6382 = vmatprep.mubr.bf16.mxu0 %v12026_v56  ;;  %v7009_v5 = vunpack.c.l.s8.bf16 %v6749_v36 }
0x1957   : > { %6488 = vmatprep.mubr.bf16.mxu1 %v12026_v56  ;;  %7512 = vmatpush1.bf16.msra.mxu0 %v6999_v44  ;;  %v7014_v56 = vunpack.c.h.s8.bf16 %v6750_v37  ;;  %v7024_v44 = vunpack.c.l.s8.bf16 %v6756_v23 }
0x1958   : > { %7936 = vmatpush1.bf16.msra.mxu1 %v7001_v26  ;;  %7513 = vmatprep.subr.bf16.mxu0 %v7004_v52  ;;  %v6755_v26 = vld [vmem:[%s10684_s28 + $0x60] sm:$0xff]  ;;  %v7026_v52 = vunpack.c.l.s8.bf16 %v6758_v63 }
0x1959   : > { %7937 = vmatprep.subr.bf16.mxu1 %v7006_v25  ;;  %v6757_v25 = vld [vmem:[%s10684_s28 + $0x70] sm:$0xff]  ;;  %v7023_v9 = vunpack.c.l.s8.bf16 %v6755_v26 }
0x195a   : > { %v7025_v37 = vunpack.c.l.s8.bf16 %v6757_v25  ;;  %v7029_v36 = vunpack.c.h.s8.bf16 %v6757_v25 }
0x195b   : > { %7514 = vmatpush1.bf16.msra.mxu0 %v7003_v55  ;;  %v7028_v55 = vunpack.c.h.s8.bf16 %v6756_v23 }
0x195c   : > { %7938 = vmatpush1.bf16.msra.mxu1 %v7005_v11  ;;  %7515 = vmatprep.subr.bf16.mxu0 %v7008_v34  ;;  %v7030_v11 = vunpack.c.h.s8.bf16 %v6758_v63  ;;  %v6760_v34 = vld [vmem:[%s10684_s28 + $0x88] sm:$0xff] }
0x195d   : > { %6383 = vmatmul.mubr.bf16.gmra.mrb[124].mxu0 %v12035_v32  ;;  %7939 = vmatprep.subr.bf16.mxu1 %v7010_v8  ;;  %v7027_v8 = vunpack.c.h.s8.bf16 %v6755_v26  ;;  %v6770_v26 = vld [vmem:[%s10684_s28 + $0xd8] sm:$0xff] }
0x195e   : > { %6489 = vmatmul.mubr.bf16.gmra.mrb[124].mxu1 %v12035_v32  ;;  %7543 = vmatprep.mubr.bf16.mxu0 %v12212_v42  ;;  %v7015_v32 = vunpack.c.l.s8.bf16 %v6751_v62  ;;  %v6766_v62 = vld [vmem:[%s10684_s28 + $0xb8] sm:$0xff] }
0x195f   : > { %7516 = vmatpush1.bf16.msra.mxu0 %v7007_v10  ;;  %7967 = vmatprep.mubr.bf16.mxu1 %v12212_v42  ;;  %v7022_v42 = vunpack.c.h.s8.bf16 %v6754_v47  ;;  %v7032_v10 = vunpack.c.l.s8.bf16 %v6760_v34 }
0x1960   : > { %7940 = vmatpush1.bf16.msra.mxu1 %v7009_v5  ;;  %7517 = vmatprep.subr.bf16.mxu0 %v7012_v16  ;;  %v6759_v5 = vld [vmem:[%s10684_s28 + $0x80] sm:$0xff]  ;;  %v7034_v16 = vunpack.c.l.s8.bf16 %v6762_v31 }
0x1961   : > { %7941 = vmatprep.subr.bf16.mxu1 %v7014_v56  ;;  %v6761_v56 = vld [vmem:[%s10684_s28 + $0x90] sm:$0xff]  ;;  %v7031_v13 = vunpack.c.l.s8.bf16 %v6759_v5 }
0x1962   : > { %v7033_v47 = vunpack.c.l.s8.bf16 %v6761_v56  ;;  %v7037_v43 = vunpack.c.h.s8.bf16 %v6761_v56 }
0x1963   : > { %7518 = vmatpush1.bf16.msra.mxu0 %v7011_v3  ;;  %v7036_v3 = vunpack.c.h.s8.bf16 %v6760_v34 }
0x1964   : > { %7942 = vmatpush1.bf16.msra.mxu1 %v7013_v49  ;;  %7519 = vmatprep.subr.bf16.mxu0 %v7016_v15  ;;  %v7038_v49 = vunpack.c.h.s8.bf16 %v6762_v31  ;;  %v6764_v15 = vld [vmem:[%s10684_s28 + $0xa8] sm:$0xff] }
0x1965   : > { %7943 = vmatprep.subr.bf16.mxu1 %v7018_v38  ;;  %v7035_v38 = vunpack.c.h.s8.bf16 %v6759_v5  ;;  %v6774_v5 = vld [vmem:[%s10684_s28 + $0xf8] sm:$0xff] }
0x1967   : > { %7520 = vmatpush1.bf16.msra.mxu0 %v7015_v32  ;;  %v7040_v32 = vunpack.c.l.s8.bf16 %v6764_v15 }
0x1968   : > { %7944 = vmatpush1.bf16.msra.mxu1 %v7017_v46  ;;  %7521 = vmatprep.subr.bf16.mxu0 %v7020_v57  ;;  %v6763_v46 = vld [vmem:[%s10684_s28 + $0xa0] sm:$0xff]  ;;  %v7042_v57 = vunpack.c.l.s8.bf16 %v6766_v62 }
0x1969   : > { %7945 = vmatprep.subr.bf16.mxu1 %v7022_v42  ;;  %v6765_v42 = vld [vmem:[%s10684_s28 + $0xb0] sm:$0xff]  ;;  %v7039_v23 = vunpack.c.l.s8.bf16 %v6763_v46 }
0x196a   : > { %v7041_v63 = vunpack.c.l.s8.bf16 %v6765_v42  ;;  %v7045_v25 = vunpack.c.h.s8.bf16 %v6765_v42 }
0x196b   : > { %7522 = vmatpush1.bf16.msra.mxu0 %v7019_v39  ;;  %v7044_v39 = vunpack.c.h.s8.bf16 %v6764_v15 }
0x196c   : > { %7946 = vmatpush1.bf16.msra.mxu1 %v7021_v12  ;;  %7523 = vmatprep.subr.bf16.mxu0 %v7024_v44  ;;  %v7046_v12 = vunpack.c.h.s8.bf16 %v6766_v62  ;;  %v6768_v44 = vld [vmem:[%s10684_s28 + $0xc8] sm:$0xff] }
0x196d   : > { %7947 = vmatprep.subr.bf16.mxu1 %v7026_v52  ;;  %v7043_v52 = vunpack.c.h.s8.bf16 %v6763_v46  ;;  %v6778_v46 = vld [vmem:[%s10684_s28 + $0x118] sm:$0xff] }
0x196f   : > { %7524 = vmatpush1.bf16.msra.mxu0 %v7023_v9  ;;  %v7048_v9 = vunpack.c.l.s8.bf16 %v6768_v44 }
0x1970   : > { %7948 = vmatpush1.bf16.msra.mxu1 %v7025_v37  ;;  %7525 = vmatprep.subr.bf16.mxu0 %v7028_v55  ;;  %v6767_v37 = vld [vmem:[%s10684_s28 + $0xc0] sm:$0xff]  ;;  %v7050_v55 = vunpack.c.l.s8.bf16 %v6770_v26 }
0x1971   : > { %7949 = vmatprep.subr.bf16.mxu1 %v7030_v11  ;;  %v6769_v11 = vld [vmem:[%s10684_s28 + $0xd0] sm:$0xff]  ;;  %v7047_v34 = vunpack.c.l.s8.bf16 %v6767_v37 }
0x1972   : > { %v7049_v31 = vunpack.c.l.s8.bf16 %v6769_v11  ;;  %v7053_v56 = vunpack.c.h.s8.bf16 %v6769_v11 }
0x1973   : > { %7526 = vmatpush1.bf16.msra.mxu0 %v7027_v8  ;;  %v7052_v8 = vunpack.c.h.s8.bf16 %v6768_v44 }
0x1974   : > { %7950 = vmatpush1.bf16.msra.mxu1 %v7029_v36  ;;  %7527 = vmatprep.subr.bf16.mxu0 %v7032_v10  ;;  %v7054_v36 = vunpack.c.h.s8.bf16 %v6770_v26  ;;  %v6772_v10 = vld [vmem:[%s10684_s28 + $0xe8] sm:$0xff] }
0x1975   : > { %7951 = vmatprep.subr.bf16.mxu1 %v7034_v16  ;;  %v7051_v16 = vunpack.c.h.s8.bf16 %v6767_v37  ;;  %v6782_v37 = vld [vmem:[%s10684_s28 + $0x138] sm:$0xff] }
0x1977   : > { %7528 = vmatpush1.bf16.msra.mxu0 %v7031_v13  ;;  %v7056_v13 = vunpack.c.l.s8.bf16 %v6772_v10 }
0x1978   : > { %7952 = vmatpush1.bf16.msra.mxu1 %v7033_v47  ;;  %7529 = vmatprep.subr.bf16.mxu0 %v7036_v3  ;;  %v6771_v47 = vld [vmem:[%s10684_s28 + $0xe0] sm:$0xff]  ;;  %v7058_v3 = vunpack.c.l.s8.bf16 %v6774_v5 }
0x1979   : > { %7953 = vmatprep.subr.bf16.mxu1 %v7038_v49  ;;  %v6773_v49 = vld [vmem:[%s10684_s28 + $0xf0] sm:$0xff]  ;;  %v7055_v15 = vunpack.c.l.s8.bf16 %v6771_v47 }
0x197a   : > { %v7057_v62 = vunpack.c.l.s8.bf16 %v6773_v49  ;;  %v7061_v42 = vunpack.c.h.s8.bf16 %v6773_v49 }
0x197b   : > { %7530 = vmatpush1.bf16.msra.mxu0 %v7035_v38  ;;  %v7060_v38 = vunpack.c.h.s8.bf16 %v6772_v10 }
0x197c   : > { %7954 = vmatpush1.bf16.msra.mxu1 %v7037_v43  ;;  %7531 = vmatprep.subr.bf16.mxu0 %v7040_v32  ;;  %v7062_v43 = vunpack.c.h.s8.bf16 %v6774_v5  ;;  %v6776_v32 = vld [vmem:[%s10684_s28 + $0x108] sm:$0xff] }
0x197d   : > { %7955 = vmatprep.subr.bf16.mxu1 %v7042_v57  ;;  %v7059_v57 = vunpack.c.h.s8.bf16 %v6771_v47  ;;  %v12451_v47 = vld [vmem:[%s10681_s19 + $0x8] sm:$0xff] }
0x197f   : > { %7532 = vmatpush1.bf16.msra.mxu0 %v7039_v23  ;;  %v7064_v23 = vunpack.c.l.s8.bf16 %v6776_v32 }
0x1980   : > { %7956 = vmatpush1.bf16.msra.mxu1 %v7041_v63  ;;  %7533 = vmatprep.subr.bf16.mxu0 %v7044_v39  ;;  %v7066_v63 = vunpack.c.l.s8.bf16 %v6778_v46  ;;  %v6775_v39 = vld [vmem:[%s10684_s28 + $0x100] sm:$0xff] }
0x1981   : > { %7957 = vmatprep.subr.bf16.mxu1 %v7046_v12  ;;  %v6777_v12 = vld [vmem:[%s10684_s28 + $0x110] sm:$0xff]  ;;  %v7063_v44 = vunpack.c.l.s8.bf16 %v6775_v39 }
0x1982   : > { %v7065_v26 = vunpack.c.l.s8.bf16 %v6777_v12  ;;  %v7069_v11 = vunpack.c.h.s8.bf16 %v6777_v12 }
0x1983   : > { %7534 = vmatpush1.bf16.msra.mxu0 %v7043_v52  ;;  %v7068_v52 = vunpack.c.h.s8.bf16 %v6776_v32  ;;  %v12465_v32 = vrot.slane %v12451_v47, %v10853_v20 }
0x1984   : > { %7958 = vmatpush1.bf16.msra.mxu1 %v7045_v25  ;;  %7535 = vmatprep.subr.bf16.mxu0 %v7048_v9  ;;  %v7070_v25 = vunpack.c.h.s8.bf16 %v6778_v46  ;;  %v6780_v9 = vld [vmem:[%s10684_s28 + $0x128] sm:$0xff] }
0x1985   : > { %7959 = vmatprep.subr.bf16.mxu1 %v7050_v55  ;;  %v7067_v55 = vunpack.c.h.s8.bf16 %v6775_v39  ;;  %v7076_v5 = vunpack.c.h.s8.bf16 %v6780_v9  ;;  %v12472_v39 = vld [vmem:[%s10684_s28 + $0x168] sm:$0xff] }
0x1987   : > { %7536 = vmatpush1.bf16.msra.mxu0 %v7047_v34  ;;  %v7072_v34 = vunpack.c.l.s8.bf16 %v6780_v9 }
0x1988   : > { %7960 = vmatpush1.bf16.msra.mxu1 %v7049_v31  ;;  %7537 = vmatprep.subr.bf16.mxu0 %v7052_v8  ;;  %v6779_v31 = vld [vmem:[%s10684_s28 + $0x120] sm:$0xff]  ;;  %v7074_v8 = vunpack.c.l.s8.bf16 %v6782_v37 }
0x1989   : > { %7961 = vmatprep.subr.bf16.mxu1 %v7054_v36  ;;  %v6781_v36 = vld [vmem:[%s10684_s28 + $0x130] sm:$0xff] }
0x198a   : > { %v7073_v10 = vunpack.c.l.s8.bf16 %v6781_v36 }
0x198b   : > { %7538 = vmatpush1.bf16.msra.mxu0 %v7051_v16  ;;  %v6784_v16 = vld [vmem:[%s10684_s28 + $0x148] sm:$0xff] }
0x198c   : > { %7962 = vmatpush1.bf16.msra.mxu1 %v7053_v56  ;;  %7539 = vmatprep.subr.bf16.mxu0 %v7056_v13  ;;  %v6786_v56 = vld [vmem:[%s10684_s28 + $0x158] sm:$0xff]  ;;  %v7075_v13 = vunpack.c.h.s8.bf16 %v6779_v31  ;;  %v7080_v49 = vunpack.c.l.s8.bf16 %v6784_v16 }
0x198d   : > { %7963 = vmatprep.subr.bf16.mxu1 %v7058_v3  ;;  %v7077_v3 = vunpack.c.h.s8.bf16 %v6781_v36 }
0x198f   : > { %7540 = vmatpush1.bf16.msra.mxu0 %v7055_v15  ;;  %v6783_v15 = vld [vmem:[%s10684_s28 + $0x140] sm:$0xff] }
0x1990   : > { %7964 = vmatpush1.bf16.msra.mxu1 %v7057_v62  ;;  %7541 = vmatprep.subr.bf16.mxu0 %v7060_v38  ;;  %v7082_v62 = vunpack.c.l.s8.bf16 %v6786_v56  ;;  %v6785_v38 = vld [vmem:[%s10684_s28 + $0x150] sm:$0xff] }
0x1991   : > { %7965 = vmatprep.subr.bf16.mxu1 %v7062_v43  ;;  %v7079_v43 = vunpack.c.l.s8.bf16 %v6783_v15  ;;  %v7081_v46 = vunpack.c.l.s8.bf16 %v6785_v38 }
0x1993   : > { %7542 = vmatpush1.bf16.msra.mxu0 %v7059_v57  ;;  %v12469_v57 = vrot.slane %v12451_v47, %v10859_v22 }
0x1994   : > { %7966 = vmatpush1.bf16.msra.mxu1 %v7061_v42  ;;  %7564 = vmatprep.subr.bf16.mxu0 %v7064_v23  ;;  %v7084_v42 = vunpack.c.h.s8.bf16 %v6784_v16 }
0x1995   : > { %7988 = vmatprep.subr.bf16.mxu1 %v7066_v63  ;;  %v7086_v63 = vunpack.c.h.s8.bf16 %v6786_v56 }
0x1996   : > { %7544 = vmatmul.mubr.bf16.vlgmr.msra.gmra.mrb[128].mxu0 %v12207_v19 }
0x1997   : > { %7968 = vmatmul.mubr.bf16.vlgmr.msra.gmra.mrb[128].mxu1 %v12207_v19  ;;  %7553 = vmatprep.mubr.bf16.mxu0 %v12234_v51  ;;  %v7071_v19 = vunpack.c.l.s8.bf16 %v6779_v31  ;;  %v12484_v31 = vld [vmem:[%s10684_s28 + $0x170] sm:$0xff] }
0x1998   : > { %7565 = vmatpush1.bf16.msra.mxu0 %v7063_v44  ;;  %7977 = vmatprep.mubr.bf16.mxu1 %v12234_v51  ;;  %v7078_v51 = vunpack.c.h.s8.bf16 %v6782_v37 }
0x1999   : > { %7989 = vmatpush1.bf16.msra.mxu1 %v7065_v26  ;;  %7566 = vmatprep.subr.bf16.mxu0 %v7068_v52  ;;  %v12476_v52 = vld [vmem:[%s10684_s28 + $0x178] sm:$0xff] }
0x199a   : > { %7990 = vmatprep.subr.bf16.mxu1 %v7070_v25  ;;  %v12479_v25 = vld [vmem:[%s10684_s28 + $0x160] sm:$0xff] }
0x199c   : > { %7567 = vmatpush1.bf16.msra.mxu0 %v7067_v55 }
0x199d   : > { %7991 = vmatpush1.bf16.msra.mxu1 %v7069_v11  ;;  %7568 = vmatprep.subr.bf16.mxu0 %v7072_v34  ;;  %v7083_v34 = vunpack.c.h.s8.bf16 %v6783_v15 }
0x199e   : > { %7554 = vmatmul.mubr.bf16.gmra.mrb[132].mxu0 %v12229_v29  ;;  %7992 = vmatprep.subr.bf16.mxu1 %v7074_v8 }
0x199f   : > { %7978 = vmatmul.mubr.bf16.gmra.mrb[132].mxu1 %v12229_v29  ;;  %7596 = vmatprep.mubr.bf16.mxu0 %v12214_v53  ;;  %v12457_v29 = vrot.slane %v12451_v47, %v10856_v21 }
0x19a0   : > { %7569 = vmatpush1.bf16.msra.mxu0 %v7071_v19  ;;  %8020 = vmatprep.mubr.bf16.mxu1 %v12214_v53  ;;  %v12461_v53 = vrot.slane %v12451_v47, %v10848_v14 }
0x19a1   : > { %7993 = vmatpush1.bf16.msra.mxu1 %v7073_v10  ;;  %7570 = vmatprep.subr.bf16.mxu0 %v7076_v5  ;;  %v7085_v10 = vunpack.c.h.s8.bf16 %v6785_v38 }
0x19a2   : > { %7994 = vmatprep.subr.bf16.mxu1 %v7078_v51  ;;  %v7088_v51 = vunpack.c.l.s8.bf16 %v12472_v39 }
0x19a4   : > { %7571 = vmatpush1.bf16.msra.mxu0 %v7075_v13 }
0x19a5   : > { %7995 = vmatpush1.bf16.msra.mxu1 %v7077_v3  ;;  %7572 = vmatprep.subr.bf16.mxu0 %v7080_v49  ;;  %v7090_v3 = vunpack.c.l.s8.bf16 %v12476_v52  ;;  %v7087_v49 = vunpack.c.l.s8.bf16 %v12479_v25 }
0x19a6   : > { %7996 = vmatprep.subr.bf16.mxu1 %v7082_v62  ;;  %v6162_v23 = vpop.f32.mrb[112].mxu0 }
0x19a7   : > { %v6591_v12 = vmul.f32 %v12457_v29, %v6162_v23  ;;  %v6268_v44 = vpop.f32.mrb[112].mxu1  ;;  %v6164_v26 = vpop.f32.mrb[113].mxu0 }
0x19a8   : > { %7573 = vmatpush1.bf16.msra.mxu0 %v7079_v43  ;;  %v6593_v9 = vmul.f32 %v12461_v53, %v6268_v44  ;;  %v6592_v37 = vmul.f32 %v12465_v32, %v6164_v26  ;;  %v6270_v55 = vpop.f32.mrb[113].mxu1  ;;  %v6166_v11 = vpop.f32.mrb[114].mxu0 }
0x19a9   : > { %7997 = vmatpush1.bf16.msra.mxu1 %v7081_v46  ;;  %v6594_v8 = vmul.f32 %v12469_v57, %v6270_v55  ;;  %7574 = vmatprep.subr.bf16.mxu0 %v7084_v42  ;;  %v6607_v36 = vmul.f32 %v12457_v29, %v6166_v11  ;;  %v6272_v19 = vpop.f32.mrb[114].mxu1  ;;  %v6168_v5 = vpop.f32.mrb[115].mxu0  ;;  %v6655_v15 = vmax.f32 %v6591_v12, 0.0  ;;  %v7089_v46 = vunpack.c.l.s8.bf16 %v12484_v31 }
0x19aa   : > { %7998 = vmatprep.subr.bf16.mxu1 %v7086_v63  ;;  %v6609_v16 = vmul.f32 %v12461_v53, %v6272_v19  ;;  %v6608_v56 = vmul.f32 %v12465_v32, %v6168_v5  ;;  %v6274_v13 = vpop.f32.mrb[115].mxu1  ;;  %v6657_v38 = vmax.f32 %v6593_v9, 0.0  ;;  %v6656_v42 = vmax.f32 %v6592_v37, 0.0 }
0x19ab   : > { %v6671_v62 = vmax.f32 %v6607_v36, 0.0  ;;  %v6610_v43 = vmul.f32 %v12469_v57, %v6274_v13  ;;  %v6658_v44 = vmax.f32 %v6594_v8, 0.0  ;;  %v7092_v12 = vunpack.c.h.s8.bf16 %v12472_v39 }
0x19ac   : > { %v6673_v23 = vmax.f32 %v6609_v16, 0.0  ;;  %7575 = vmatpush1.bf16.msra.mxu0 %v7083_v34  ;;  %v6672_v63 = vmax.f32 %v6608_v56, 0.0  ;;  %v7094_v37 = vunpack.c.h.s8.bf16 %v12476_v52  ;;  %v6792_v34 = vld [vmem:[%s10684_s28 + $0x188] sm:$0xff]  ;;  %v6794_v16 = vld [vmem:[%s10684_s28 + $0x198] sm:$0xff] }
0x19ad   : > { %v12495_v26 = vpack.c.bf16 %v6671_v62, %v6655_v15  ;;  %7999 = vmatpush1.bf16.msra.mxu1 %v7085_v10  ;;  %v6674_v55 = vmax.f32 %v6610_v43, 0.0  ;;  %7576 = vmatprep.subr.bf16.mxu0 %v7088_v51  ;;  %v6791_v51 = vld [vmem:[%s10684_s28 + $0x180] sm:$0xff]  ;;  %v7091_v15 = vunpack.c.h.s8.bf16 %v12479_v25  ;;  %v6793_v62 = vld [vmem:[%s10684_s28 + $0x190] sm:$0xff] }
0x19ae   : > { %v12498_v11 = vpack.c.bf16 %v6673_v23, %v6657_v38  ;;  %v12500_v36 = vpack.c.bf16 %v6672_v63, %v6656_v42  ;;  %8000 = vmatprep.subr.bf16.mxu1 %v7090_v3  ;;  %v6172_v9 = vpop.f32.mrb[116].mxu0  ;;  %v7093_v42 = vunpack.c.h.s8.bf16 %v12484_v31  ;;  %v7095_v25 = vunpack.c.l.s8.bf16 %v6791_v51 }
0x19af   : > { %v12504_v8 = vpack.c.bf16 %v6674_v55, %v6658_v44  ;;  %v6623_v19 = vmul.f32 %v12457_v29, %v6172_v9  ;;  %v6278_v5 = vpop.f32.mrb[116].mxu1  ;;  %v6174_v10 = vpop.f32.mrb[117].mxu0  ;;  %v7098_v9 = vunpack.c.l.s8.bf16 %v6794_v16 }
0x19b0   : > { %7577 = vmatpush1.bf16.msra.mxu0 %v7087_v49  ;;  %v6625_v39 = vmul.f32 %v12461_v53, %v6278_v5  ;;  %v6624_v56 = vmul.f32 %v12465_v32, %v6174_v10  ;;  %v6280_v13 = vpop.f32.mrb[117].mxu1  ;;  %v6176_v3 = vpop.f32.mrb[118].mxu0  ;;  %v7096_v49 = vunpack.c.l.s8.bf16 %v6792_v34 }
0x19b1   : > { %8001 = vmatpush1.bf16.msra.mxu1 %v7089_v46  ;;  %v6626_v52 = vmul.f32 %v12469_v57, %v6280_v13  ;;  %7578 = vmatprep.subr.bf16.mxu0 %v7092_v12  ;;  %v6639_v43 = vmul.f32 %v12457_v29, %v6176_v3  ;;  %v6282_v38 = vpop.f32.mrb[118].mxu1  ;;  %v6178_v23 = vpop.f32.mrb[119].mxu0  ;;  %v6687_v5 = vmax.f32 %v6623_v19, 0.0  ;;  %v7097_v12 = vunpack.c.l.s8.bf16 %v6793_v62 }
0x19b2   : > { %8002 = vmatprep.subr.bf16.mxu1 %v7094_v37  ;;  %v6641_v63 = vmul.f32 %v12461_v53, %v6282_v38  ;;  %v6640_v44 = vmul.f32 %v12465_v32, %v6178_v23  ;;  %v6284_v55 = vpop.f32.mrb[119].mxu1  ;;  %v6689_v29 = vmax.f32 %v6625_v39, 0.0  ;;  %v6688_v13 = vmax.f32 %v6624_v56, 0.0  ;;  %v6796_v56 = vld [vmem:[%s10684_s28 + $0x1a8] sm:$0xff] }
0x19b3   : > { %v6703_v46 = vmax.f32 %v6639_v43, 0.0  ;;  %v6642_v10 = vmul.f32 %v12469_v57, %v6284_v55  ;;  %v6690_v37 = vmax.f32 %v6626_v52, 0.0  ;;  %v7100_v32 = vunpack.c.h.s8.bf16 %v6792_v34  ;;  %v6795_v34 = vld [vmem:[%s10684_s28 + $0x1a0] sm:$0xff]  ;;  %v6800_v55 = vld [vmem:[%s10684_s28 + $0x1c8] sm:$0xff] }
0x19b4   : > { %v6705_v31 = vmax.f32 %v6641_v63, 0.0  ;;  %7579 = vmatpush1.bf16.msra.mxu0 %v7091_v15  ;;  %v6704_v3 = vmax.f32 %v6640_v44, 0.0  ;;  %v7102_v39 = vunpack.c.h.s8.bf16 %v6794_v16  ;;  %v6798_v15 = vld [vmem:[%s10684_s28 + $0x1b8] sm:$0xff]  ;;  %v7099_v52 = vunpack.c.h.s8.bf16 %v6791_v51 }
0x19b5   : > { %v12519_v60 = vpack.c.bf16 %v6703_v46, %v6687_v5  ;;  %8003 = vmatpush1.bf16.msra.mxu1 %v7093_v42  ;;  %v6706_v53 = vmax.f32 %v6642_v10, 0.0  ;;  %7580 = vmatprep.subr.bf16.mxu0 %v7096_v49  ;;  %v7101_v38 = vunpack.c.h.s8.bf16 %v6793_v62  ;;  %v7104_v42 = vunpack.c.l.s8.bf16 %v6796_v56  ;;  %v6797_v49 = vld [vmem:[%s10684_s28 + $0x1b0] sm:$0xff]  ;;  %v6799_v46 = vld [vmem:[%s10684_s28 + $0x1c0] sm:$0xff] }
0x19b6   : > { %v12521_v19 = vpack.c.bf16 %v6705_v31, %v6689_v29  ;;  %v12523_v57 = vpack.c.bf16 %v6704_v3, %v6688_v13  ;;  %8004 = vmatprep.subr.bf16.mxu1 %v7098_v9  ;;  %v7106_v23 = vunpack.c.l.s8.bf16 %v6798_v15  ;;  %v7103_v63 = vunpack.c.l.s8.bf16 %v6795_v34  ;;  %v6802_v9 = vld [vmem:[%s10684_s28 + $0x1d8] sm:$0xff] }
0x19b7   : > { %v12526_v43 = vpack.c.bf16 %v6706_v53, %v6690_v37  ;;  %v7105_v16 = vunpack.c.l.s8.bf16 %v6797_v49  ;;  %v7108_v44 = vunpack.c.h.s8.bf16 %v6796_v56  ;;  %v7110_v51 = vunpack.c.h.s8.bf16 %v6798_v15  ;;  %v6804_v37 = vld [vmem:[%s10684_s28 + $0x1e8] sm:$0xff]  ;;  %v6806_v53 = vld [vmem:[%s10684_s28 + $0x1f8] sm:$0xff]  ;;  %v6803_v15 = vld [vmem:[%s10684_s28 + $0x1e0] sm:$0xff] }
0x19b8   : > { %7581 = vmatpush1.bf16.msra.mxu0 %v7095_v25  ;;  %v7107_v25 = vunpack.c.h.s8.bf16 %v6795_v34  ;;  %v7109_v62 = vunpack.c.h.s8.bf16 %v6797_v49  ;;  %v7112_v5 = vunpack.c.l.s8.bf16 %v6800_v55  ;;  %v7114_v10 = vunpack.c.l.s8.bf16 %v6802_v9 }
0x19b9   : > { %8005 = vmatpush1.bf16.msra.mxu1 %v7097_v12  ;;  %7582 = vmatprep.subr.bf16.mxu0 %v7100_v32  ;;  %v6801_v12 = vld [vmem:[%s10684_s28 + $0x1d0] sm:$0xff]  ;;  %v7111_v29 = vunpack.c.l.s8.bf16 %v6799_v46  ;;  %v7116_v31 = vunpack.c.h.s8.bf16 %v6800_v55  ;;  %v7118_v3 = vunpack.c.h.s8.bf16 %v6802_v9  ;;  %v7115_v32 = vunpack.c.h.s8.bf16 %v6799_v46 }
0x19ba   : > { %8006 = vmatprep.subr.bf16.mxu1 %v7102_v39  ;;  %v7113_v13 = vunpack.c.l.s8.bf16 %v6801_v12  ;;  %v7117_v39 = vunpack.c.h.s8.bf16 %v6801_v12  ;;  %v7120_v56 = vunpack.c.l.s8.bf16 %v6804_v37  ;;  %v7126_v49 = vunpack.c.h.s8.bf16 %v6806_v53 }
0x19bc   : > { %7583 = vmatpush1.bf16.msra.mxu0 %v7099_v52  ;;  %v7122_v52 = vunpack.c.l.s8.bf16 %v6806_v53  ;;  %v6811_v53 = vld [vmem:[%s10684_s28 + $0x220] sm:$0xff] }
0x19bd   : > { %8007 = vmatpush1.bf16.msra.mxu1 %v7101_v38  ;;  %7584 = vmatprep.subr.bf16.mxu0 %v7104_v42  ;;  %v6805_v38 = vld [vmem:[%s10684_s28 + $0x1f0] sm:$0xff]  ;;  %v7119_v42 = vunpack.c.l.s8.bf16 %v6803_v15 }
0x19be   : > { %8008 = vmatprep.subr.bf16.mxu1 %v7106_v23  ;;  %v7121_v34 = vunpack.c.l.s8.bf16 %v6805_v38  ;;  %v7124_v23 = vunpack.c.h.s8.bf16 %v6804_v37 }
0x19c0   : > { %7585 = vmatpush1.bf16.msra.mxu0 %v7103_v63  ;;  %v6808_v63 = vld [vmem:[%s10684_s28 + $0x208] sm:$0xff] }
0x19c1   : > { %8009 = vmatpush1.bf16.msra.mxu1 %v7105_v16  ;;  %7586 = vmatprep.subr.bf16.mxu0 %v7108_v44  ;;  %v6810_v16 = vld [vmem:[%s10684_s28 + $0x218] sm:$0xff]  ;;  %v7123_v44 = vunpack.c.h.s8.bf16 %v6803_v15  ;;  %v7128_v55 = vunpack.c.l.s8.bf16 %v6808_v63 }
0x19c2   : > { %8010 = vmatprep.subr.bf16.mxu1 %v7110_v51  ;;  %v7125_v51 = vunpack.c.h.s8.bf16 %v6805_v38  ;;  %v7130_v9 = vunpack.c.l.s8.bf16 %v6810_v16  ;;  %v7134_v12 = vunpack.c.h.s8.bf16 %v6810_v16  ;;  %v6818_v38 = vld [vmem:[%s10684_s28 + $0x258] sm:$0xff]  ;;  %v6817_v16 = vld [vmem:[%s10684_s28 + $0x250] sm:$0xff] }
0x19c4   : > { %7587 = vmatpush1.bf16.msra.mxu0 %v7107_v25  ;;  %v6807_v25 = vld [vmem:[%s10684_s28 + $0x200] sm:$0xff] }
0x19c5   : > { %8011 = vmatpush1.bf16.msra.mxu1 %v7109_v62  ;;  %7588 = vmatprep.subr.bf16.mxu0 %v7112_v5  ;;  %v6809_v62 = vld [vmem:[%s10684_s28 + $0x210] sm:$0xff]  ;;  %v7127_v5 = vunpack.c.l.s8.bf16 %v6807_v25 }
0x19c6   : > { %8012 = vmatprep.subr.bf16.mxu1 %v7114_v10  ;;  %v7129_v46 = vunpack.c.l.s8.bf16 %v6809_v62  ;;  %v7132_v10 = vunpack.c.h.s8.bf16 %v6808_v63  ;;  %v7146_v63 = vunpack.c.l.s8.bf16 %v6818_v38 }
0x19c8   : > { %7589 = vmatpush1.bf16.msra.mxu0 %v7111_v29  ;;  %v6812_v29 = vld [vmem:[%s10684_s28 + $0x228] sm:$0xff] }
0x19c9   : > { %8013 = vmatpush1.bf16.msra.mxu1 %v7113_v13  ;;  %7590 = vmatprep.subr.bf16.mxu0 %v7116_v31  ;;  %v6814_v13 = vld [vmem:[%s10684_s28 + $0x238] sm:$0xff]  ;;  %v7131_v31 = vunpack.c.h.s8.bf16 %v6807_v25  ;;  %v7136_v37 = vunpack.c.l.s8.bf16 %v6812_v29  ;;  %v7140_v15 = vunpack.c.h.s8.bf16 %v6812_v29 }
0x19ca   : > { %8014 = vmatprep.subr.bf16.mxu1 %v7118_v3  ;;  %v7133_v3 = vunpack.c.h.s8.bf16 %v6809_v62  ;;  %v7149_v62 = vunpack.c.h.s8.bf16 %v6817_v16 }
0x19cc   : > { %7591 = vmatpush1.bf16.msra.mxu0 %v7115_v32  ;;  %v7138_v32 = vunpack.c.l.s8.bf16 %v6814_v13 }
0x19cd   : > { %8015 = vmatpush1.bf16.msra.mxu1 %v7117_v39  ;;  %7592 = vmatprep.subr.bf16.mxu0 %v7120_v56  ;;  %v6813_v39 = vld [vmem:[%s10684_s28 + $0x230] sm:$0xff]  ;;  %v7135_v56 = vunpack.c.l.s8.bf16 %v6811_v53 }
0x19ce   : > { %8016 = vmatprep.subr.bf16.mxu1 %v7122_v52  ;;  %v6816_v52 = vld [vmem:[%s10684_s28 + $0x248] sm:$0xff] }
0x19d0   : > { %7593 = vmatpush1.bf16.msra.mxu0 %v7119_v42  ;;  %v7139_v42 = vunpack.c.h.s8.bf16 %v6811_v53  ;;  %v6826_v53 = vld [vmem:[%s10684_s28 + $0x298] sm:$0xff] }
0x19d1   : > { %8017 = vmatpush1.bf16.msra.mxu1 %v7121_v34  ;;  %7594 = vmatprep.subr.bf16.mxu0 %v7124_v23  ;;  %v7141_v34 = vunpack.c.h.s8.bf16 %v6813_v39  ;;  %v7144_v23 = vunpack.c.l.s8.bf16 %v6816_v52 }
0x19d2   : > { %8018 = vmatprep.subr.bf16.mxu1 %v7126_v49  ;;  %v6815_v49 = vld [vmem:[%s10684_s28 + $0x240] sm:$0xff] }
0x19d3   : > { %v7147_v25 = vunpack.c.h.s8.bf16 %v6815_v49 }
0x19d4   : > { %7595 = vmatpush1.bf16.msra.mxu0 %v7123_v44  ;;  %v7145_v44 = vunpack.c.l.s8.bf16 %v6817_v16 }
0x19d5   : > { %8019 = vmatpush1.bf16.msra.mxu1 %v7125_v51  ;;  %7617 = vmatprep.subr.bf16.mxu0 %v7128_v55  ;;  %v7148_v51 = vunpack.c.h.s8.bf16 %v6816_v52  ;;  %v6820_v55 = vld [vmem:[%s10684_s28 + $0x268] sm:$0xff] }
0x19d6   : > { %8041 = vmatprep.subr.bf16.mxu1 %v7130_v9  ;;  %v6822_v9 = vld [vmem:[%s10684_s28 + $0x278] sm:$0xff] }
0x19d7   : > { %7597 = vmatmul.mubr.bf16.vlgmr.msra.gmra.mrb[128].mxu0 %v12209_v24 }
0x19d8   : > { %8021 = vmatmul.mubr.bf16.vlgmr.msra.gmra.mrb[128].mxu1 %v12209_v24  ;;  %7606 = vmatprep.mubr.bf16.mxu0 %v12236_v4  ;;  %v7137_v24 = vunpack.c.l.s8.bf16 %v6813_v39 }
0x19d9   : > { %7618 = vmatpush1.bf16.msra.mxu0 %v7127_v5  ;;  %8030 = vmatprep.mubr.bf16.mxu1 %v12236_v4  ;;  %v7142_v4 = vunpack.c.h.s8.bf16 %v6814_v13  ;;  %v7152_v5 = vunpack.c.l.s8.bf16 %v6820_v55 }
0x19da   : > { %8042 = vmatpush1.bf16.msra.mxu1 %v7129_v46  ;;  %7619 = vmatprep.subr.bf16.mxu0 %v7132_v10  ;;  %v6819_v46 = vld [vmem:[%s10684_s28 + $0x260] sm:$0xff]  ;;  %v7154_v10 = vunpack.c.l.s8.bf16 %v6822_v9 }
0x19db   : > { %8043 = vmatprep.subr.bf16.mxu1 %v7134_v12  ;;  %v6821_v12 = vld [vmem:[%s10684_s28 + $0x270] sm:$0xff]  ;;  %v7151_v29 = vunpack.c.l.s8.bf16 %v6819_v46 }
0x19dc   : > { %v7153_v13 = vunpack.c.l.s8.bf16 %v6821_v12  ;;  %v7157_v39 = vunpack.c.h.s8.bf16 %v6821_v12 }
0x19dd   : > { %7620 = vmatpush1.bf16.msra.mxu0 %v7131_v31  ;;  %v7156_v31 = vunpack.c.h.s8.bf16 %v6820_v55 }
0x19de   : > { %8044 = vmatpush1.bf16.msra.mxu1 %v7133_v3  ;;  %7621 = vmatprep.subr.bf16.mxu0 %v7136_v37  ;;  %v7158_v3 = vunpack.c.h.s8.bf16 %v6822_v9  ;;  %v6824_v37 = vld [vmem:[%s10684_s28 + $0x288] sm:$0xff] }
0x19df   : > { %7607 = vmatmul.mubr.bf16.gmra.mrb[132].mxu0 %v12231_v48  ;;  %8045 = vmatprep.subr.bf16.mxu1 %v7138_v32  ;;  %v7155_v32 = vunpack.c.h.s8.bf16 %v6819_v46  ;;  %v6834_v46 = vld [vmem:[%s10684_s28 + $0x2d8] sm:$0xff] }
0x19e0   : > { %8031 = vmatmul.mubr.bf16.gmra.mrb[132].mxu1 %v12231_v48  ;;  %7649 = vmatprep.mubr.bf16.mxu0 %v12353_v50  ;;  %v7143_v48 = vunpack.c.l.s8.bf16 %v6815_v49  ;;  %v6830_v49 = vld [vmem:[%s10684_s28 + $0x2b8] sm:$0xff] }
0x19e1   : > { %7622 = vmatpush1.bf16.msra.mxu0 %v7135_v56  ;;  %8073 = vmatprep.mubr.bf16.mxu1 %v12353_v50  ;;  %v7150_v50 = vunpack.c.h.s8.bf16 %v6818_v38  ;;  %v7160_v56 = vunpack.c.l.s8.bf16 %v6824_v37 }
0x19e2   : > { %8046 = vmatpush1.bf16.msra.mxu1 %v7137_v24  ;;  %7623 = vmatprep.subr.bf16.mxu0 %v7140_v15  ;;  %v6823_v24 = vld [vmem:[%s10684_s28 + $0x280] sm:$0xff]  ;;  %v7162_v15 = vunpack.c.l.s8.bf16 %v6826_v53 }
0x19e3   : > { %8047 = vmatprep.subr.bf16.mxu1 %v7142_v4  ;;  %v6825_v4 = vld [vmem:[%s10684_s28 + $0x290] sm:$0xff]  ;;  %v7159_v52 = vunpack.c.l.s8.bf16 %v6823_v24 }
0x19e4   : > { %v7161_v38 = vunpack.c.l.s8.bf16 %v6825_v4  ;;  %v7165_v16 = vunpack.c.h.s8.bf16 %v6825_v4 }
0x19e5   : > { %7624 = vmatpush1.bf16.msra.mxu0 %v7139_v42  ;;  %v7164_v42 = vunpack.c.h.s8.bf16 %v6824_v37 }
0x19e6   : > { %8048 = vmatpush1.bf16.msra.mxu1 %v7141_v34  ;;  %7625 = vmatprep.subr.bf16.mxu0 %v7144_v23  ;;  %v7166_v34 = vunpack.c.h.s8.bf16 %v6826_v53  ;;  %v6828_v23 = vld [vmem:[%s10684_s28 + $0x2a8] sm:$0xff] }
0x19e7   : > { %8049 = vmatprep.subr.bf16.mxu1 %v7146_v63  ;;  %v7163_v63 = vunpack.c.h.s8.bf16 %v6823_v24  ;;  %v6838_v24 = vld [vmem:[%s10684_s28 + $0x2f8] sm:$0xff] }
0x19e9   : > { %7626 = vmatpush1.bf16.msra.mxu0 %v7143_v48  ;;  %v7168_v48 = vunpack.c.l.s8.bf16 %v6828_v23 }
0x19ea   : > { %8050 = vmatpush1.bf16.msra.mxu1 %v7145_v44  ;;  %7627 = vmatprep.subr.bf16.mxu0 %v7148_v51  ;;  %v6827_v44 = vld [vmem:[%s10684_s28 + $0x2a0] sm:$0xff]  ;;  %v7170_v51 = vunpack.c.l.s8.bf16 %v6830_v49 }
0x19eb   : > { %8051 = vmatprep.subr.bf16.mxu1 %v7150_v50  ;;  %v6829_v50 = vld [vmem:[%s10684_s28 + $0x2b0] sm:$0xff]  ;;  %v7167_v55 = vunpack.c.l.s8.bf16 %v6827_v44 }
0x19ec   : > { %v7169_v9 = vunpack.c.l.s8.bf16 %v6829_v50  ;;  %v7173_v12 = vunpack.c.h.s8.bf16 %v6829_v50 }
0x19ed   : > { %7628 = vmatpush1.bf16.msra.mxu0 %v7147_v25  ;;  %v7172_v25 = vunpack.c.h.s8.bf16 %v6828_v23 }
0x19ee   : > { %8052 = vmatpush1.bf16.msra.mxu1 %v7149_v62  ;;  %7629 = vmatprep.subr.bf16.mxu0 %v7152_v5  ;;  %v7174_v62 = vunpack.c.h.s8.bf16 %v6830_v49  ;;  %v6832_v5 = vld [vmem:[%s10684_s28 + $0x2c8] sm:$0xff] }
0x19ef   : > { %8053 = vmatprep.subr.bf16.mxu1 %v7154_v10  ;;  %v7171_v10 = vunpack.c.h.s8.bf16 %v6827_v44  ;;  %v6842_v44 = vld [vmem:[%s10684_s28 + $0x318] sm:$0xff] }
0x19f1   : > { %7630 = vmatpush1.bf16.msra.mxu0 %v7151_v29  ;;  %v7176_v29 = vunpack.c.l.s8.bf16 %v6832_v5 }
0x19f2   : > { %8054 = vmatpush1.bf16.msra.mxu1 %v7153_v13  ;;  %7631 = vmatprep.subr.bf16.mxu0 %v7156_v31  ;;  %v6831_v13 = vld [vmem:[%s10684_s28 + $0x2c0] sm:$0xff]  ;;  %v7178_v31 = vunpack.c.l.s8.bf16 %v6834_v46 }
0x19f3   : > { %8055 = vmatprep.subr.bf16.mxu1 %v7158_v3  ;;  %v6833_v3 = vld [vmem:[%s10684_s28 + $0x2d0] sm:$0xff]  ;;  %v7175_v37 = vunpack.c.l.s8.bf16 %v6831_v13 }
0x19f4   : > { %v7177_v53 = vunpack.c.l.s8.bf16 %v6833_v3  ;;  %v7181_v4 = vunpack.c.h.s8.bf16 %v6833_v3 }
0x19f5   : > { %7632 = vmatpush1.bf16.msra.mxu0 %v7155_v32  ;;  %v7180_v32 = vunpack.c.h.s8.bf16 %v6832_v5 }
0x19f6   : > { %8056 = vmatpush1.bf16.msra.mxu1 %v7157_v39  ;;  %7633 = vmatprep.subr.bf16.mxu0 %v7160_v56  ;;  %v7182_v39 = vunpack.c.h.s8.bf16 %v6834_v46  ;;  %v6836_v56 = vld [vmem:[%s10684_s28 + $0x2e8] sm:$0xff] }
0x19f7   : > { %8057 = vmatprep.subr.bf16.mxu1 %v7162_v15  ;;  %v7179_v15 = vunpack.c.h.s8.bf16 %v6831_v13  ;;  %v6846_v13 = vld [vmem:[%s10684_s28 + $0x338] sm:$0xff] }
0x19f9   : > { %7634 = vmatpush1.bf16.msra.mxu0 %v7159_v52  ;;  %v7184_v52 = vunpack.c.l.s8.bf16 %v6836_v56 }
0x19fa   : > { %8058 = vmatpush1.bf16.msra.mxu1 %v7161_v38  ;;  %7635 = vmatprep.subr.bf16.mxu0 %v7164_v42  ;;  %v6835_v38 = vld [vmem:[%s10684_s28 + $0x2e0] sm:$0xff]  ;;  %v7186_v42 = vunpack.c.l.s8.bf16 %v6838_v24 }
0x19fb   : > { %8059 = vmatprep.subr.bf16.mxu1 %v7166_v34  ;;  %v6837_v34 = vld [vmem:[%s10684_s28 + $0x2f0] sm:$0xff]  ;;  %v7183_v23 = vunpack.c.l.s8.bf16 %v6835_v38 }
0x19fc   : > { %v7185_v49 = vunpack.c.l.s8.bf16 %v6837_v34  ;;  %v7189_v50 = vunpack.c.h.s8.bf16 %v6837_v34  ;;  %v6847_v34 = vld [vmem:[%s10684_s28 + $0x340] sm:$0xff] }
0x19fd   : > { %7636 = vmatpush1.bf16.msra.mxu0 %v7163_v63  ;;  %v7188_v63 = vunpack.c.h.s8.bf16 %v6836_v56 }
0x19fe   : > { %8060 = vmatpush1.bf16.msra.mxu1 %v7165_v16  ;;  %7637 = vmatprep.subr.bf16.mxu0 %v7168_v48  ;;  %v7190_v16 = vunpack.c.h.s8.bf16 %v6838_v24  ;;  %v6840_v48 = vld [vmem:[%s10684_s28 + $0x308] sm:$0xff] }
0x19ff   : > { %8061 = vmatprep.subr.bf16.mxu1 %v7170_v51  ;;  %v7187_v51 = vunpack.c.h.s8.bf16 %v6835_v38 }
0x1a01   : > { %7638 = vmatpush1.bf16.msra.mxu0 %v7167_v55  ;;  %v7192_v55 = vunpack.c.l.s8.bf16 %v6840_v48 }
0x1a02   : > { %8062 = vmatpush1.bf16.msra.mxu1 %v7169_v9  ;;  %7639 = vmatprep.subr.bf16.mxu0 %v7172_v25  ;;  %v7194_v9 = vunpack.c.l.s8.bf16 %v6842_v44  ;;  %v6839_v25 = vld [vmem:[%s10684_s28 + $0x300] sm:$0xff] }
0x1a03   : > { %8063 = vmatprep.subr.bf16.mxu1 %v7174_v62  ;;  %v6841_v62 = vld [vmem:[%s10684_s28 + $0x310] sm:$0xff]  ;;  %v7191_v5 = vunpack.c.l.s8.bf16 %v6839_v25 }
0x1a04   : > { %v7193_v46 = vunpack.c.l.s8.bf16 %v6841_v62  ;;  %v7197_v3 = vunpack.c.h.s8.bf16 %v6841_v62  ;;  %v12623_v62 = vld [vmem:[%s10684_s28 + $0x360] sm:$0xff] }
0x1a05   : > { %7640 = vmatpush1.bf16.msra.mxu0 %v7171_v10  ;;  %v7196_v10 = vunpack.c.h.s8.bf16 %v6840_v48 }
0x1a06   : > { %8064 = vmatpush1.bf16.msra.mxu1 %v7173_v12  ;;  %7641 = vmatprep.subr.bf16.mxu0 %v7176_v29  ;;  %v7198_v12 = vunpack.c.h.s8.bf16 %v6842_v44  ;;  %v6844_v29 = vld [vmem:[%s10684_s28 + $0x328] sm:$0xff]  ;;  %v12613_v44 = vrot.slane %v12451_v47, %v11192_v6 }
0x1a07   : > { %8065 = vmatprep.subr.bf16.mxu1 %v7178_v31  ;;  %v7195_v31 = vunpack.c.h.s8.bf16 %v6839_v25  ;;  %v7204_v24 = vunpack.c.h.s8.bf16 %v6844_v29 }
0x1a09   : > { %7642 = vmatpush1.bf16.msra.mxu0 %v7175_v37  ;;  %v7200_v37 = vunpack.c.l.s8.bf16 %v6844_v29 }
0x1a0a   : > { %8066 = vmatpush1.bf16.msra.mxu1 %v7177_v53  ;;  %7643 = vmatprep.subr.bf16.mxu0 %v7180_v32  ;;  %v6843_v53 = vld [vmem:[%s10684_s28 + $0x320] sm:$0xff]  ;;  %v7202_v32 = vunpack.c.l.s8.bf16 %v6846_v13 }
0x1a0b   : > { %8067 = vmatprep.subr.bf16.mxu1 %v7182_v39  ;;  %v6845_v39 = vld [vmem:[%s10684_s28 + $0x330] sm:$0xff]  ;;  %v7199_v56 = vunpack.c.l.s8.bf16 %v6843_v53 }
0x1a0c   : > { %v7205_v38 = vunpack.c.h.s8.bf16 %v6845_v39 }
0x1a0d   : > { %7644 = vmatpush1.bf16.msra.mxu0 %v7179_v15  ;;  %v6848_v15 = vld [vmem:[%s10684_s28 + $0x348] sm:$0xff] }
0x1a0e   : > { %8068 = vmatpush1.bf16.msra.mxu1 %v7181_v4  ;;  %7645 = vmatprep.subr.bf16.mxu0 %v7184_v52  ;;  %v6850_v4 = vld [vmem:[%s10684_s28 + $0x358] sm:$0xff]  ;;  %v7203_v52 = vunpack.c.h.s8.bf16 %v6843_v53 }
0x1a0f   : > { %8069 = vmatprep.subr.bf16.mxu1 %v7186_v42  ;;  %v7208_v42 = vunpack.c.l.s8.bf16 %v6848_v15 }
0x1a11   : > { %7646 = vmatpush1.bf16.msra.mxu0 %v7183_v23  ;;  %v7210_v23 = vunpack.c.l.s8.bf16 %v6850_v4 }
0x1a12   : > { %8070 = vmatpush1.bf16.msra.mxu1 %v7185_v49  ;;  %7647 = vmatprep.subr.bf16.mxu0 %v7188_v63  ;;  %v6849_v49 = vld [vmem:[%s10684_s28 + $0x350] sm:$0xff]  ;;  %v12601_v63 = vrot.slane %v12451_v47, %v11183_v59  ;;  %v7212_v59 = vunpack.c.h.s8.bf16 %v6848_v15 }
0x1a13   : > { %8071 = vmatprep.subr.bf16.mxu1 %v7190_v16  ;;  %v12609_v16 = vrot.slane %v12451_v47, %v11189_v7  ;;  %v7209_v48 = vunpack.c.l.s8.bf16 %v6849_v49  ;;  %v12620_v7 = vld [vmem:[%s10684_s28 + $0x378] sm:$0xff] }
0x1a15   : > { %7648 = vmatpush1.bf16.msra.mxu0 %v7187_v51 }
0x1a16   : > { %8072 = vmatpush1.bf16.msra.mxu1 %v7189_v50  ;;  %7670 = vmatprep.subr.bf16.mxu0 %v7192_v55  ;;  %v7214_v50 = vunpack.c.h.s8.bf16 %v6850_v4  ;;  %v12616_v55 = vld [vmem:[%s10684_s28 + $0x368] sm:$0xff] }
0x1a17   : > { %8094 = vmatprep.subr.bf16.mxu1 %v7194_v9  ;;  %v7216_v53 = vunpack.c.l.s8.bf16 %v12616_v55 }
0x1a18   : > { %7650 = vmatmul.mubr.bf16.vlgmr.msra.gmra.mrb[128].mxu0 %v12348_v61 }
0x1a19   : > { %8074 = vmatmul.mubr.bf16.vlgmr.msra.gmra.mrb[128].mxu1 %v12348_v61  ;;  %7659 = vmatprep.mubr.bf16.mxu0 %v12376_v54  ;;  %v7201_v61 = vunpack.c.l.s8.bf16 %v6845_v39 }
0x1a1a   : > { %7671 = vmatpush1.bf16.msra.mxu0 %v7191_v5  ;;  %8083 = vmatprep.mubr.bf16.mxu1 %v12376_v54  ;;  %v7206_v54 = vunpack.c.h.s8.bf16 %v6846_v13 }
0x1a1b   : > { %8095 = vmatpush1.bf16.msra.mxu1 %v7193_v46  ;;  %7672 = vmatprep.subr.bf16.mxu0 %v7196_v10  ;;  %v7211_v10 = vunpack.c.h.s8.bf16 %v6847_v34 }
0x1a1c   : > { %8096 = vmatprep.subr.bf16.mxu1 %v7198_v12  ;;  %v12628_v12 = vld [vmem:[%s10684_s28 + $0x370] sm:$0xff] }
0x1a1e   : > { %7673 = vmatpush1.bf16.msra.mxu0 %v7195_v31 }
0x1a1f   : > { %8097 = vmatpush1.bf16.msra.mxu1 %v7197_v3  ;;  %7674 = vmatprep.subr.bf16.mxu0 %v7200_v37  ;;  %v7213_v3 = vunpack.c.h.s8.bf16 %v6849_v49 }
0x1a20   : > { %7660 = vmatmul.mubr.bf16.gmra.mrb[132].mxu0 %v12372_v40  ;;  %8098 = vmatprep.subr.bf16.mxu1 %v7202_v32 }
0x1a21   : > { %8084 = vmatmul.mubr.bf16.gmra.mrb[132].mxu1 %v12372_v40  ;;  %7702 = vmatprep.mubr.bf16.mxu0 %v12357_v45  ;;  %v7207_v40 = vunpack.c.l.s8.bf16 %v6847_v34 }
0x1a22   : > { %7675 = vmatpush1.bf16.msra.mxu0 %v7199_v56  ;;  %8126 = vmatprep.mubr.bf16.mxu1 %v12357_v45  ;;  %v12605_v45 = vrot.slane %v12451_v47, %v11186_v1 }
0x1a23   : > { %8099 = vmatpush1.bf16.msra.mxu1 %v7201_v61  ;;  %7676 = vmatprep.subr.bf16.mxu0 %v7204_v24  ;;  %v7218_v61 = vunpack.c.l.s8.bf16 %v12620_v7  ;;  %v7215_v24 = vunpack.c.l.s8.bf16 %v12623_v62 }
0x1a24   : > { %8100 = vmatprep.subr.bf16.mxu1 %v7206_v54 }
0x1a26   : > { %7677 = vmatpush1.bf16.msra.mxu0 %v7203_v52  ;;  %v7217_v52 = vunpack.c.l.s8.bf16 %v12628_v12 }
0x1a27   : > { %8101 = vmatpush1.bf16.msra.mxu1 %v7205_v38  ;;  %7678 = vmatprep.subr.bf16.mxu0 %v7208_v42 }
0x1a28   : > { %8102 = vmatprep.subr.bf16.mxu1 %v7210_v23  ;;  %v6374_v51 = vpop.f32.mrb[120].mxu0 }
0x1a29   : > { %v6595_v1 = vmul.f32 %v12601_v63, %v6374_v51  ;;  %v6480_v9 = vpop.f32.mrb[120].mxu1  ;;  %v6376_v25 = vpop.f32.mrb[121].mxu0 }
0x1a2a   : > { %7679 = vmatpush1.bf16.msra.mxu0 %v7207_v40  ;;  %v6597_v5 = vmul.f32 %v12605_v45, %v6480_v9  ;;  %v6596_v6 = vmul.f32 %v12609_v16, %v6376_v25  ;;  %v6482_v47 = vpop.f32.mrb[121].mxu1  ;;  %v6378_v46 = vpop.f32.mrb[122].mxu0  ;;  %v7222_v9 = vunpack.c.h.s8.bf16 %v12620_v7  ;;  %v6856_v25 = vld [vmem:[%s10684_s28 + $0x388] sm:$0xff] }
0x1a2b   : > { %8103 = vmatpush1.bf16.msra.mxu1 %v7209_v48  ;;  %v6598_v29 = vmul.f32 %v12613_v44, %v6482_v47  ;;  %7680 = vmatprep.subr.bf16.mxu0 %v7212_v59  ;;  %v6611_v13 = vmul.f32 %v12601_v63, %v6378_v46  ;;  %v6484_v31 = vpop.f32.mrb[122].mxu1  ;;  %v6380_v37 = vpop.f32.mrb[123].mxu0  ;;  %v6659_v54 = vmax.f32 %v6595_v1, 0.0  ;;  %v7220_v59 = vunpack.c.h.s8.bf16 %v12616_v55 }
0x1a2c   : > { %8104 = vmatprep.subr.bf16.mxu1 %v7214_v50  ;;  %v6613_v32 = vmul.f32 %v12605_v45, %v6484_v31  ;;  %v6612_v39 = vmul.f32 %v12609_v16, %v6380_v37  ;;  %v6486_v56 = vpop.f32.mrb[123].mxu1  ;;  %v6661_v38 = vmax.f32 %v6597_v5, 0.0  ;;  %v6660_v42 = vmax.f32 %v6596_v6, 0.0 }
0x1a2d   : > { %v6675_v15 = vmax.f32 %v6611_v13, 0.0  ;;  %v6614_v4 = vmul.f32 %v12613_v44, %v6486_v56  ;;  %v6662_v49 = vmax.f32 %v6598_v29, 0.0  ;;  %v6855_v29 = vld [vmem:[%s10684_s28 + $0x380] sm:$0xff]  ;;  %v7219_v37 = vunpack.c.h.s8.bf16 %v12623_v62 }
0x1a2e   : > { %v6677_v34 = vmax.f32 %v6613_v32, 0.0  ;;  %7681 = vmatpush1.bf16.msra.mxu0 %v7211_v10  ;;  %v6676_v23 = vmax.f32 %v6612_v39, 0.0  ;;  %v6858_v10 = vld [vmem:[%s10684_s28 + $0x398] sm:$0xff]  ;;  %v7221_v56 = vunpack.c.h.s8.bf16 %v12628_v12  ;;  %v7223_v62 = vunpack.c.l.s8.bf16 %v6855_v29 }
0x1a2f   : > { %v12639_v40 = vpack.c.bf16 %v6675_v15, %v6659_v54  ;;  %8105 = vmatpush1.bf16.msra.mxu1 %v7213_v3  ;;  %v6678_v48 = vmax.f32 %v6614_v4, 0.0  ;;  %7682 = vmatprep.subr.bf16.mxu0 %v7216_v53  ;;  %v6857_v53 = vld [vmem:[%s10684_s28 + $0x390] sm:$0xff] }
0x1a30   : > { %v12642_v51 = vpack.c.bf16 %v6677_v34, %v6661_v38  ;;  %v12644_v50 = vpack.c.bf16 %v6676_v23, %v6660_v42  ;;  %8106 = vmatprep.subr.bf16.mxu1 %v7218_v61  ;;  %v6384_v1 = vpop.f32.mrb[124].mxu0  ;;  %v7226_v38 = vunpack.c.l.s8.bf16 %v6858_v10  ;;  %v7225_v23 = vunpack.c.l.s8.bf16 %v6857_v53 }
0x1a31   : > { %v12648_v5 = vpack.c.bf16 %v6678_v48, %v6662_v49  ;;  %v6627_v6 = vmul.f32 %v12601_v63, %v6384_v1  ;;  %v6490_v47 = vpop.f32.mrb[124].mxu1  ;;  %v6386_v46 = vpop.f32.mrb[125].mxu0 }
0x1a32   : > { %7683 = vmatpush1.bf16.msra.mxu0 %v7215_v24  ;;  %v6629_v55 = vmul.f32 %v12605_v45, %v6490_v47  ;;  %v6628_v13 = vmul.f32 %v12609_v16, %v6386_v46  ;;  %v6492_v31 = vpop.f32.mrb[125].mxu1  ;;  %v6388_v3 = vpop.f32.mrb[126].mxu0  ;;  %v7224_v24 = vunpack.c.l.s8.bf16 %v6856_v25  ;;  %v6860_v47 = vld [vmem:[%s10684_s28 + $0x3a8] sm:$0xff] }
0x1a33   : > { %8107 = vmatpush1.bf16.msra.mxu1 %v7217_v52  ;;  %v6630_v7 = vmul.f32 %v12613_v44, %v6492_v31  ;;  %7684 = vmatprep.subr.bf16.mxu0 %v7220_v59  ;;  %v6643_v32 = vmul.f32 %v12601_v63, %v6388_v3  ;;  %v6494_v39 = vpop.f32.mrb[126].mxu1  ;;  %v6390_v61 = vpop.f32.mrb[127].mxu0  ;;  %v6691_v42 = vmax.f32 %v6627_v6, 0.0  ;;  %v7230_v6 = vunpack.c.h.s8.bf16 %v6858_v10 }
0x1a34   : > { %8108 = vmatprep.subr.bf16.mxu1 %v7222_v9  ;;  %v6645_v54 = vmul.f32 %v12605_v45, %v6494_v39  ;;  %v6644_v15 = vmul.f32 %v12609_v16, %v6390_v61  ;;  %v6496_v4 = vpop.f32.mrb[127].mxu1  ;;  %v6693_v63 = vmax.f32 %v6629_v55, 0.0  ;;  %v6692_v49 = vmax.f32 %v6628_v13, 0.0  ;;  %v6862_v55 = vld [vmem:[%s10684_s28 + $0x3b8] sm:$0xff] }
0x1a35   : > { %v6707_v52 = vmax.f32 %v6643_v32, 0.0  ;;  %v6646_v34 = vmul.f32 %v12613_v44, %v6496_v4  ;;  %v6694_v59 = vmax.f32 %v6630_v7, 0.0  ;;  %v7228_v16 = vunpack.c.h.s8.bf16 %v6856_v25  ;;  %v6859_v25 = vld [vmem:[%s10684_s28 + $0x3a0] sm:$0xff]  ;;  %v6861_v7 = vld [vmem:[%s10684_s28 + $0x3b0] sm:$0xff]  ;;  %v6866_v61 = vld [vmem:[%s10684_s28 + $0x3d8] sm:$0xff] }
0x1a36   : > { %v6709_v12 = vmax.f32 %v6645_v54, 0.0  ;;  %7685 = vmatpush1.bf16.msra.mxu0 %v7219_v37  ;;  %v6708_v48 = vmax.f32 %v6644_v15, 0.0  ;;  %v7227_v13 = vunpack.c.h.s8.bf16 %v6855_v29  ;;  %v7229_v31 = vunpack.c.h.s8.bf16 %v6857_v53  ;;  %v6863_v15 = vld [vmem:[%s10684_s28 + $0x3c0] sm:$0xff] }
0x1a37   : > { %v12663_v1 = vpack.c.bf16 %v6707_v52, %v6691_v42  ;;  %8109 = vmatpush1.bf16.msra.mxu1 %v7221_v56  ;;  %v6710_v45 = vmax.f32 %v6646_v34, 0.0  ;;  %7686 = vmatprep.subr.bf16.mxu0 %v7224_v24  ;;  %v7232_v3 = vunpack.c.l.s8.bf16 %v6860_v47  ;;  %v7234_v37 = vunpack.c.l.s8.bf16 %v6862_v55  ;;  %v6864_v56 = vld [vmem:[%s10684_s28 + $0x3c8] sm:$0xff] }
0x1a38   : > { %v12665_v9 = vpack.c.bf16 %v6709_v12, %v6693_v63  ;;  %v12667_v44 = vpack.c.bf16 %v6708_v48, %v6692_v49  ;;  %8110 = vmatprep.subr.bf16.mxu1 %v7226_v38  ;;  %v7231_v32 = vunpack.c.l.s8.bf16 %v6859_v25  ;;  %v7233_v10 = vunpack.c.l.s8.bf16 %v6861_v7  ;;  %v6865_v38 = vld [vmem:[%s10684_s28 + $0x3d0] sm:$0xff]  ;;  %v6870_v63 = vld [vmem:[%s10684_s28 + $0x3f8] sm:$0xff] }
0x1a39   : > { %v12670_v46 = vpack.c.bf16 %v6710_v45, %v6694_v59  ;;  %v7236_v39 = vunpack.c.h.s8.bf16 %v6860_v47  ;;  %v7238_v29 = vunpack.c.h.s8.bf16 %v6862_v55  ;;  %v7235_v24 = vunpack.c.h.s8.bf16 %v6859_v25  ;;  %v6867_v59 = vld [vmem:[%s10684_s28 + $0x3e0] sm:$0xff] }
0x1a3a   : > { %7687 = vmatpush1.bf16.msra.mxu0 %v7223_v62  ;;  %v7237_v53 = vunpack.c.h.s8.bf16 %v6861_v7  ;;  %v7240_v54 = vunpack.c.l.s8.bf16 %v6864_v56  ;;  %v7242_v4 = vunpack.c.l.s8.bf16 %v6866_v61  ;;  %v7239_v62 = vunpack.c.l.s8.bf16 %v6863_v15 }
0x1a3b   : > { %8111 = vmatpush1.bf16.msra.mxu1 %v7225_v23  ;;  %7688 = vmatprep.subr.bf16.mxu0 %v7228_v16  ;;  %v7241_v42 = vunpack.c.l.s8.bf16 %v6865_v38  ;;  %v7244_v52 = vunpack.c.h.s8.bf16 %v6864_v56  ;;  %v7246_v34 = vunpack.c.h.s8.bf16 %v6866_v61  ;;  %v6868_v23 = vld [vmem:[%s10684_s28 + $0x3e8] sm:$0xff]  ;;  %v7243_v49 = vunpack.c.h.s8.bf16 %v6863_v15  ;;  %v6869_v16 = vld [vmem:[%s10684_s28 + $0x3f0] sm:$0xff] }
0x1a3c   : > { %8112 = vmatprep.subr.bf16.mxu1 %v7230_v6  ;;  %v7245_v12 = vunpack.c.h.s8.bf16 %v6865_v38  ;;  %v7248_v48 = vunpack.c.l.s8.bf16 %v6868_v23  ;;  %v7250_v45 = vunpack.c.l.s8.bf16 %v6870_v63  ;;  %v7247_v6 = vunpack.c.l.s8.bf16 %v6867_v59 }
0x1a3d   : > { %v7249_v47 = vunpack.c.l.s8.bf16 %v6869_v16  ;;  %v7252_v55 = vunpack.c.h.s8.bf16 %v6868_v23  ;;  %v7251_v25 = vunpack.c.h.s8.bf16 %v6867_v59 }
0x1a3e   : > { %7689 = vmatpush1.bf16.msra.mxu0 %v7227_v13  ;;  %v7254_v13 = vunpack.c.h.s8.bf16 %v6870_v63  ;;  %v6880_v63 = vld [vmem:[%s10684_s28 + $0x448] sm:$0xff] }
0x1a3f   : > { %8113 = vmatpush1.bf16.msra.mxu1 %v7229_v31  ;;  %7690 = vmatprep.subr.bf16.mxu0 %v7232_v3  ;;  %v6872_v31 = vld [vmem:[%s10684_s28 + $0x408] sm:$0xff]  ;;  %v6874_v3 = vld [vmem:[%s10684_s28 + $0x418] sm:$0xff]  ;;  %v7272_v59 = vunpack.c.l.s8.bf16 %v6880_v63 }
0x1a40   : > { %8114 = vmatprep.subr.bf16.mxu1 %v7234_v37  ;;  %v7253_v37 = vunpack.c.h.s8.bf16 %v6869_v16  ;;  %v7256_v7 = vunpack.c.l.s8.bf16 %v6872_v31  ;;  %v7260_v61 = vunpack.c.h.s8.bf16 %v6872_v31  ;;  %v6886_v31 = vld [vmem:[%s10684_s28 + $0x478] sm:$0xff] }
0x1a42   : > { %7691 = vmatpush1.bf16.msra.mxu0 %v7231_v32  ;;  %v7258_v32 = vunpack.c.l.s8.bf16 %v6874_v3 }
0x1a43   : > { %8115 = vmatpush1.bf16.msra.mxu1 %v7233_v10  ;;  %7692 = vmatprep.subr.bf16.mxu0 %v7236_v39  ;;  %v6871_v10 = vld [vmem:[%s10684_s28 + $0x400] sm:$0xff]  ;;  %v6873_v39 = vld [vmem:[%s10684_s28 + $0x410] sm:$0xff] }
0x1a44   : > { %8116 = vmatprep.subr.bf16.mxu1 %v7238_v29  ;;  %v7255_v29 = vunpack.c.l.s8.bf16 %v6871_v10  ;;  %v7257_v56 = vunpack.c.l.s8.bf16 %v6873_v39  ;;  %v7259_v15 = vunpack.c.h.s8.bf16 %v6871_v10  ;;  %v6885_v10 = vld [vmem:[%s10684_s28 + $0x470] sm:$0xff] }
0x1a46   : > { %7693 = vmatpush1.bf16.msra.mxu0 %v7235_v24  ;;  %v7262_v24 = vunpack.c.h.s8.bf16 %v6874_v3 }
0x1a47   : > { %8117 = vmatpush1.bf16.msra.mxu1 %v7237_v53  ;;  %7694 = vmatprep.subr.bf16.mxu0 %v7240_v54  ;;  %v6876_v53 = vld [vmem:[%s10684_s28 + $0x428] sm:$0xff]  ;;  %v6878_v54 = vld [vmem:[%s10684_s28 + $0x438] sm:$0xff] }
0x1a48   : > { %8118 = vmatprep.subr.bf16.mxu1 %v7242_v4  ;;  %v7261_v4 = vunpack.c.h.s8.bf16 %v6873_v39  ;;  %v7264_v38 = vunpack.c.l.s8.bf16 %v6876_v53  ;;  %v7268_v23 = vunpack.c.h.s8.bf16 %v6876_v53  ;;  %v6890_v53 = vld [vmem:[%s10684_s28 + $0x498] sm:$0xff] }
0x1a4a   : > { %7695 = vmatpush1.bf16.msra.mxu0 %v7239_v62  ;;  %v6875_v62 = vld [vmem:[%s10684_s28 + $0x420] sm:$0xff] }
0x1a4b   : > { %8119 = vmatpush1.bf16.msra.mxu1 %v7241_v42  ;;  %7696 = vmatprep.subr.bf16.mxu0 %v7244_v52  ;;  %v7266_v42 = vunpack.c.l.s8.bf16 %v6878_v54  ;;  %v6877_v52 = vld [vmem:[%s10684_s28 + $0x430] sm:$0xff] }
0x1a4c   : > { %8120 = vmatprep.subr.bf16.mxu1 %v7246_v34  ;;  %v7263_v34 = vunpack.c.l.s8.bf16 %v6875_v62 }
0x1a4e   : > { %7697 = vmatpush1.bf16.msra.mxu0 %v7243_v49  ;;  %v6882_v49 = vld [vmem:[%s10684_s28 + $0x458] sm:$0xff] }
0x1a4f   : > { %8121 = vmatpush1.bf16.msra.mxu1 %v7245_v12  ;;  %7698 = vmatprep.subr.bf16.mxu0 %v7248_v48  ;;  %v7267_v12 = vunpack.c.h.s8.bf16 %v6875_v62  ;;  %v7269_v48 = vunpack.c.h.s8.bf16 %v6877_v52  ;;  %v7274_v16 = vunpack.c.l.s8.bf16 %v6882_v49  ;;  %v7290_v62 = vunpack.c.l.s8.bf16 %v6890_v53 }
0x1a50   : > { %8122 = vmatprep.subr.bf16.mxu1 %v7250_v45  ;;  %v6879_v45 = vld [vmem:[%s10684_s28 + $0x440] sm:$0xff] }
0x1a51   : > { %v7275_v3 = vunpack.c.h.s8.bf16 %v6879_v45 }
0x1a52   : > { %7699 = vmatpush1.bf16.msra.mxu0 %v7247_v6  ;;  %v6881_v6 = vld [vmem:[%s10684_s28 + $0x450] sm:$0xff] }
0x1a53   : > { %8123 = vmatpush1.bf16.msra.mxu1 %v7249_v47  ;;  %7700 = vmatprep.subr.bf16.mxu0 %v7252_v55  ;;  %v7273_v47 = vunpack.c.l.s8.bf16 %v6881_v6  ;;  %v7276_v55 = vunpack.c.h.s8.bf16 %v6880_v63  ;;  %v6894_v63 = vld [vmem:[%s10684_s28 + $0x4b8] sm:$0xff] }
0x1a54   : > { %8124 = vmatprep.subr.bf16.mxu1 %v7254_v13  ;;  %v6884_v13 = vld [vmem:[%s10684_s28 + $0x468] sm:$0xff] }
0x1a56   : > { %7701 = vmatpush1.bf16.msra.mxu0 %v7251_v25  ;;  %v7277_v25 = vunpack.c.h.s8.bf16 %v6881_v6 }
0x1a57   : > { %8125 = vmatpush1.bf16.msra.mxu1 %v7253_v37  ;;  %7723 = vmatprep.subr.bf16.mxu0 %v7256_v7  ;;  %v7280_v37 = vunpack.c.l.s8.bf16 %v6884_v13  ;;  %v6883_v7 = vld [vmem:[%s10684_s28 + $0x460] sm:$0xff] }
0x1a58   : > { %8147 = vmatprep.subr.bf16.mxu1 %v7258_v32  ;;  %v7282_v32 = vunpack.c.l.s8.bf16 %v6886_v31  ;;  %v7279_v39 = vunpack.c.l.s8.bf16 %v6883_v7 }
0x1a59   : > { %7703 = vmatmul.mubr.bf16.vlgmr.msra.gmra.mrb[128].mxu0 %v12351_v58 }
0x1a5a   : > { %8127 = vmatmul.mubr.bf16.vlgmr.msra.gmra.mrb[128].mxu1 %v12351_v58  ;;  %7712 = vmatprep.mubr.bf16.mxu0 %v12379_v30  ;;  %v7265_v58 = vunpack.c.l.s8.bf16 %v6877_v52 }
0x1a5b   : > { %7724 = vmatpush1.bf16.msra.mxu0 %v7255_v29  ;;  %8136 = vmatprep.mubr.bf16.mxu1 %v12379_v30  ;;  %v7270_v30 = vunpack.c.h.s8.bf16 %v6878_v54  ;;  %v7281_v29 = vunpack.c.l.s8.bf16 %v6885_v10  ;;  %v7283_v54 = vunpack.c.h.s8.bf16 %v6883_v7 }
0x1a5c   : > { %8148 = vmatpush1.bf16.msra.mxu1 %v7257_v56  ;;  %7725 = vmatprep.subr.bf16.mxu0 %v7260_v61  ;;  %v7284_v56 = vunpack.c.h.s8.bf16 %v6884_v13  ;;  %v7286_v61 = vunpack.c.h.s8.bf16 %v6886_v31  ;;  %v6898_v13 = vld [vmem:[%s10684_s28 + $0x4d8] sm:$0xff] }
0x1a5d   : > { %8149 = vmatprep.subr.bf16.mxu1 %v7262_v24  ;;  %v6888_v24 = vld [vmem:[%s10684_s28 + $0x488] sm:$0xff]  ;;  %v7306_v7 = vunpack.c.l.s8.bf16 %v6898_v13 }
0x1a5f   : > { %7726 = vmatpush1.bf16.msra.mxu0 %v7259_v15  ;;  %v7285_v15 = vunpack.c.h.s8.bf16 %v6885_v10 }
0x1a60   : > { %8150 = vmatpush1.bf16.msra.mxu1 %v7261_v4  ;;  %7727 = vmatprep.subr.bf16.mxu0 %v7264_v38  ;;  %v7288_v4 = vunpack.c.l.s8.bf16 %v6888_v24  ;;  %v6887_v38 = vld [vmem:[%s10684_s28 + $0x480] sm:$0xff] }
0x1a61   : > { %7713 = vmatmul.mubr.bf16.gmra.mrb[132].mxu0 %v12374_v41  ;;  %8151 = vmatprep.subr.bf16.mxu1 %v7266_v42  ;;  %v6889_v42 = vld [vmem:[%s10684_s28 + $0x490] sm:$0xff]  ;;  %v7287_v52 = vunpack.c.l.s8.bf16 %v6887_v38 }
0x1a62   : > { %8137 = vmatmul.mubr.bf16.gmra.mrb[132].mxu1 %v12374_v41  ;;  %7755 = vmatprep.mubr.bf16.mxu0 %v12500_v36  ;;  %v7271_v41 = vunpack.c.l.s8.bf16 %v6879_v45  ;;  %v7298_v45 = vunpack.c.l.s8.bf16 %v6894_v63 }
0x1a63   : > { %7728 = vmatpush1.bf16.msra.mxu0 %v7263_v34  ;;  %8179 = vmatprep.mubr.bf16.mxu1 %v12500_v36  ;;  %v7278_v36 = vunpack.c.h.s8.bf16 %v6882_v49  ;;  %v7289_v34 = vunpack.c.l.s8.bf16 %v6889_v42  ;;  %v7291_v49 = vunpack.c.h.s8.bf16 %v6887_v38 }
0x1a64   : > { %8152 = vmatpush1.bf16.msra.mxu1 %v7265_v58  ;;  %7729 = vmatprep.subr.bf16.mxu0 %v7268_v23  ;;  %v7292_v58 = vunpack.c.h.s8.bf16 %v6888_v24  ;;  %v7294_v23 = vunpack.c.h.s8.bf16 %v6890_v53  ;;  %v6902_v24 = vld [vmem:[%s10684_s28 + $0x4f8] sm:$0xff] }
0x1a65   : > { %8153 = vmatprep.subr.bf16.mxu1 %v7270_v30  ;;  %v6892_v30 = vld [vmem:[%s10684_s28 + $0x4a8] sm:$0xff]  ;;  %v7314_v38 = vunpack.c.l.s8.bf16 %v6902_v24 }
0x1a67   : > { %7730 = vmatpush1.bf16.msra.mxu0 %v7267_v12  ;;  %v7293_v12 = vunpack.c.h.s8.bf16 %v6889_v42 }
0x1a68   : > { %8154 = vmatpush1.bf16.msra.mxu1 %v7269_v48  ;;  %7731 = vmatprep.subr.bf16.mxu0 %v7272_v59  ;;  %v7296_v48 = vunpack.c.l.s8.bf16 %v6892_v30  ;;  %v6891_v59 = vld [vmem:[%s10684_s28 + $0x4a0] sm:$0xff] }
0x1a69   : > { %8155 = vmatprep.subr.bf16.mxu1 %v7274_v16  ;;  %v6893_v16 = vld [vmem:[%s10684_s28 + $0x4b0] sm:$0xff]  ;;  %v7295_v6 = vunpack.c.l.s8.bf16 %v6891_v59  ;;  %v7299_v31 = vunpack.c.h.s8.bf16 %v6891_v59  ;;  %v6903_v59 = vld [vmem:[%s10684_s28 + $0x500] sm:$0xff] }
0x1a6b   : > { %7732 = vmatpush1.bf16.msra.mxu0 %v7271_v41  ;;  %v7297_v41 = vunpack.c.l.s8.bf16 %v6893_v16 }
0x1a6c   : > { %8156 = vmatpush1.bf16.msra.mxu1 %v7273_v47  ;;  %7733 = vmatprep.subr.bf16.mxu0 %v7276_v55  ;;  %v7300_v47 = vunpack.c.h.s8.bf16 %v6892_v30  ;;  %v7302_v55 = vunpack.c.h.s8.bf16 %v6894_v63  ;;  %v6906_v30 = vld [vmem:[%s10684_s28 + $0x518] sm:$0xff] }
0x1a6d   : > { %8157 = vmatprep.subr.bf16.mxu1 %v7278_v36  ;;  %v6896_v36 = vld [vmem:[%s10684_s28 + $0x4c8] sm:$0xff] }
0x1a6f   : > { %7734 = vmatpush1.bf16.msra.mxu0 %v7275_v3  ;;  %v7301_v3 = vunpack.c.h.s8.bf16 %v6893_v16  ;;  %v7319_v16 = vunpack.c.l.s8.bf16 %v6903_v59 }
0x1a70   : > { %8158 = vmatpush1.bf16.msra.mxu1 %v7277_v25  ;;  %7735 = vmatprep.subr.bf16.mxu0 %v7280_v37  ;;  %v7304_v25 = vunpack.c.l.s8.bf16 %v6896_v36  ;;  %v6895_v37 = vld [vmem:[%s10684_s28 + $0x4c0] sm:$0xff] }
0x1a71   : > { %8159 = vmatprep.subr.bf16.mxu1 %v7282_v32  ;;  %v6897_v32 = vld [vmem:[%s10684_s28 + $0x4d0] sm:$0xff]  ;;  %v7303_v10 = vunpack.c.l.s8.bf16 %v6895_v37  ;;  %v7307_v53 = vunpack.c.h.s8.bf16 %v6895_v37 }
0x1a73   : > { %7736 = vmatpush1.bf16.msra.mxu0 %v7279_v39  ;;  %v7305_v39 = vunpack.c.l.s8.bf16 %v6897_v32 }
0x1a74   : > { %8160 = vmatpush1.bf16.msra.mxu1 %v7281_v29  ;;  %7737 = vmatprep.subr.bf16.mxu0 %v7284_v56  ;;  %v7308_v29 = vunpack.c.h.s8.bf16 %v6896_v36  ;;  %v7310_v56 = vunpack.c.h.s8.bf16 %v6898_v13  ;;  %v6910_v36 = vld [vmem:[%s10684_s28 + $0x538] sm:$0xff]  ;;  %v7323_v13 = vunpack.c.h.s8.bf16 %v6903_v59 }
0x1a75   : > { %8161 = vmatprep.subr.bf16.mxu1 %v7286_v61  ;;  %v6900_v61 = vld [vmem:[%s10684_s28 + $0x4e8] sm:$0xff]  ;;  %v7330_v37 = vunpack.c.l.s8.bf16 %v6910_v36 }
0x1a77   : > { %7738 = vmatpush1.bf16.msra.mxu0 %v7283_v54  ;;  %v7309_v54 = vunpack.c.h.s8.bf16 %v6897_v32 }
0x1a78   : > { %8162 = vmatpush1.bf16.msra.mxu1 %v7285_v15  ;;  %7739 = vmatprep.subr.bf16.mxu0 %v7288_v4  ;;  %v7312_v15 = vunpack.c.l.s8.bf16 %v6900_v61  ;;  %v6899_v4 = vld [vmem:[%s10684_s28 + $0x4e0] sm:$0xff] }
0x1a79   : > { %8163 = vmatprep.subr.bf16.mxu1 %v7290_v62  ;;  %v6901_v62 = vld [vmem:[%s10684_s28 + $0x4f0] sm:$0xff]  ;;  %v7311_v42 = vunpack.c.l.s8.bf16 %v6899_v4  ;;  %v7315_v63 = vunpack.c.h.s8.bf16 %v6899_v4 }
0x1a7b   : > { %7740 = vmatpush1.bf16.msra.mxu0 %v7287_v52  ;;  %v7313_v52 = vunpack.c.l.s8.bf16 %v6901_v62 }
0x1a7c   : > { %8164 = vmatpush1.bf16.msra.mxu1 %v7289_v34  ;;  %7741 = vmatprep.subr.bf16.mxu0 %v7292_v58  ;;  %v7316_v34 = vunpack.c.h.s8.bf16 %v6900_v61  ;;  %v7318_v58 = vunpack.c.h.s8.bf16 %v6902_v24 }
0x1a7d   : > { %8165 = vmatprep.subr.bf16.mxu1 %v7294_v23  ;;  %v6904_v23 = vld [vmem:[%s10684_s28 + $0x508] sm:$0xff] }
0x1a7f   : > { %7742 = vmatpush1.bf16.msra.mxu0 %v7291_v49  ;;  %v7317_v49 = vunpack.c.h.s8.bf16 %v6901_v62  ;;  %v6916_v62 = vld [vmem:[%s10684_s28 + $0x568] sm:$0xff] }
0x1a80   : > { %8166 = vmatpush1.bf16.msra.mxu1 %v7293_v12  ;;  %7743 = vmatprep.subr.bf16.mxu0 %v7296_v48  ;;  %v7320_v12 = vunpack.c.l.s8.bf16 %v6904_v23  ;;  %v7322_v48 = vunpack.c.l.s8.bf16 %v6906_v30 }
0x1a81   : > { %8167 = vmatprep.subr.bf16.mxu1 %v7298_v45  ;;  %v6905_v45 = vld [vmem:[%s10684_s28 + $0x510] sm:$0xff] }
0x1a83   : > { %7744 = vmatpush1.bf16.msra.mxu0 %v7295_v6  ;;  %v7321_v6 = vunpack.c.l.s8.bf16 %v6905_v45 }
0x1a84   : > { %8168 = vmatpush1.bf16.msra.mxu1 %v7297_v41  ;;  %7745 = vmatprep.subr.bf16.mxu0 %v7300_v47  ;;  %v7324_v41 = vunpack.c.h.s8.bf16 %v6904_v23  ;;  %v7326_v47 = vunpack.c.h.s8.bf16 %v6906_v30  ;;  %v6915_v23 = vld [vmem:[%s10684_s28 + $0x560] sm:$0xff] }
0x1a85   : > { %8169 = vmatprep.subr.bf16.mxu1 %v7302_v55  ;;  %v6908_v55 = vld [vmem:[%s10684_s28 + $0x528] sm:$0xff] }
0x1a87   : > { %7746 = vmatpush1.bf16.msra.mxu0 %v7299_v31  ;;  %v7325_v31 = vunpack.c.h.s8.bf16 %v6905_v45  ;;  %v6920_v45 = vld [vmem:[%s10684_s28 + $0x588] sm:$0xff] }
0x1a88   : > { %8170 = vmatpush1.bf16.msra.mxu1 %v7301_v3  ;;  %7747 = vmatprep.subr.bf16.mxu0 %v7304_v25  ;;  %v7328_v3 = vunpack.c.l.s8.bf16 %v6908_v55  ;;  %v6907_v25 = vld [vmem:[%s10684_s28 + $0x520] sm:$0xff] }
0x1a89   : > { %8171 = vmatprep.subr.bf16.mxu1 %v7306_v7  ;;  %v6909_v7 = vld [vmem:[%s10684_s28 + $0x530] sm:$0xff]  ;;  %v7327_v32 = vunpack.c.l.s8.bf16 %v6907_v25 }
0x1a8a   : > { %v7333_v61 = vunpack.c.h.s8.bf16 %v6909_v7 }
0x1a8b   : > { %7748 = vmatpush1.bf16.msra.mxu0 %v7303_v10  ;;  %v7332_v10 = vunpack.c.h.s8.bf16 %v6908_v55  ;;  %v6919_v55 = vld [vmem:[%s10684_s28 + $0x580] sm:$0xff] }
0x1a8c   : > { %8172 = vmatpush1.bf16.msra.mxu1 %v7305_v39  ;;  %7749 = vmatprep.subr.bf16.mxu0 %v7308_v29  ;;  %v6912_v39 = vld [vmem:[%s10684_s28 + $0x548] sm:$0xff]  ;;  %v6914_v29 = vld [vmem:[%s10684_s28 + $0x558] sm:$0xff] }
0x1a8d   : > { %8173 = vmatprep.subr.bf16.mxu1 %v7310_v56  ;;  %v7331_v56 = vunpack.c.h.s8.bf16 %v6907_v25  ;;  %v7336_v24 = vunpack.c.l.s8.bf16 %v6912_v39  ;;  %v7356_v25 = vunpack.c.h.s8.bf16 %v6920_v45 }
0x1a8f   : > { %7750 = vmatpush1.bf16.msra.mxu0 %v7307_v53  ;;  %v6911_v53 = vld [vmem:[%s10684_s28 + $0x540] sm:$0xff] }
0x1a90   : > { %8174 = vmatpush1.bf16.msra.mxu1 %v7309_v54  ;;  %7751 = vmatprep.subr.bf16.mxu0 %v7312_v15  ;;  %v7338_v54 = vunpack.c.l.s8.bf16 %v6914_v29  ;;  %v6913_v15 = vld [vmem:[%s10684_s28 + $0x550] sm:$0xff] }
0x1a91   : > { %8175 = vmatprep.subr.bf16.mxu1 %v7314_v38  ;;  %v7337_v4 = vunpack.c.l.s8.bf16 %v6913_v15  ;;  %v7340_v38 = vunpack.c.h.s8.bf16 %v6912_v39  ;;  %v6923_v39 = vld [vmem:[%s10684_s28 + $0x5a0] sm:$0xff] }
0x1a93   : > { %7752 = vmatpush1.bf16.msra.mxu0 %v7311_v42  ;;  %v6918_v42 = vld [vmem:[%s10684_s28 + $0x578] sm:$0xff] }
0x1a94   : > { %8176 = vmatpush1.bf16.msra.mxu1 %v7313_v52  ;;  %7753 = vmatprep.subr.bf16.mxu0 %v7316_v34  ;;  %v7339_v52 = vunpack.c.h.s8.bf16 %v6911_v53  ;;  %v7341_v34 = vunpack.c.h.s8.bf16 %v6913_v15  ;;  %v7346_v30 = vunpack.c.l.s8.bf16 %v6918_v42  ;;  %v7350_v59 = vunpack.c.h.s8.bf16 %v6918_v42  ;;  %v6928_v15 = vld [vmem:[%s10684_s28 + $0x5c8] sm:$0xff] }
0x1a95   : > { %8177 = vmatprep.subr.bf16.mxu1 %v7318_v58  ;;  %v7344_v58 = vunpack.c.l.s8.bf16 %v6916_v62 }
0x1a97   : > { %7754 = vmatpush1.bf16.msra.mxu0 %v7315_v63  ;;  %v6917_v63 = vld [vmem:[%s10684_s28 + $0x570] sm:$0xff] }
0x1a98   : > { %8178 = vmatpush1.bf16.msra.mxu1 %v7317_v49  ;;  %7776 = vmatprep.subr.bf16.mxu0 %v7320_v12  ;;  %v7343_v49 = vunpack.c.l.s8.bf16 %v6915_v23  ;;  %v7345_v12 = vunpack.c.l.s8.bf16 %v6917_v63 }
0x1a99   : > { %8200 = vmatprep.subr.bf16.mxu1 %v7322_v48  ;;  %v7348_v48 = vunpack.c.h.s8.bf16 %v6916_v62  ;;  %v6927_v62 = vld [vmem:[%s10684_s28 + $0x5c0] sm:$0xff] }
0x1a9a   : > { %7756 = vmatmul.mubr.bf16.vlgmr.msra.gmra.mrb[128].mxu0 %v12495_v26 }
0x1a9b   : > { %8180 = vmatmul.mubr.bf16.vlgmr.msra.gmra.mrb[128].mxu1 %v12495_v26  ;;  %7765 = vmatprep.mubr.bf16.mxu0 %v12523_v57  ;;  %v7329_v26 = vunpack.c.l.s8.bf16 %v6909_v7  ;;  %v6924_v7 = vld [vmem:[%s10684_s28 + $0x5a8] sm:$0xff] }
0x1a9c   : > { %7777 = vmatpush1.bf16.msra.mxu0 %v7319_v16  ;;  %8189 = vmatprep.mubr.bf16.mxu1 %v12523_v57  ;;  %v7334_v57 = vunpack.c.h.s8.bf16 %v6910_v36  ;;  %v6922_v16 = vld [vmem:[%s10684_s28 + $0x598] sm:$0xff] }
0x1a9d   : > { %8201 = vmatpush1.bf16.msra.mxu1 %v7321_v6  ;;  %7778 = vmatprep.subr.bf16.mxu0 %v7324_v41  ;;  %v7347_v6 = vunpack.c.h.s8.bf16 %v6915_v23  ;;  %v7349_v41 = vunpack.c.h.s8.bf16 %v6917_v63  ;;  %v7354_v36 = vunpack.c.l.s8.bf16 %v6922_v16  ;;  %v7372_v23 = vunpack.c.h.s8.bf16 %v6928_v15  ;;  %v6932_v63 = vld [vmem:[%s10684_s28 + $0x5e8] sm:$0xff] }
0x1a9e   : > { %8202 = vmatprep.subr.bf16.mxu1 %v7326_v47  ;;  %v7352_v47 = vunpack.c.l.s8.bf16 %v6920_v45  ;;  %v6931_v45 = vld [vmem:[%s10684_s28 + $0x5e0] sm:$0xff] }
0x1aa0   : > { %7779 = vmatpush1.bf16.msra.mxu0 %v7323_v13  ;;  %v6921_v13 = vld [vmem:[%s10684_s28 + $0x590] sm:$0xff] }
0x1aa1   : > { %8203 = vmatpush1.bf16.msra.mxu1 %v7325_v31  ;;  %7780 = vmatprep.subr.bf16.mxu0 %v7328_v3  ;;  %v7351_v31 = vunpack.c.l.s8.bf16 %v6919_v55  ;;  %v7353_v3 = vunpack.c.l.s8.bf16 %v6921_v13 }
0x1aa2   : > { %7766 = vmatmul.mubr.bf16.gmra.mrb[132].mxu0 %v12519_v60  ;;  %8204 = vmatprep.subr.bf16.mxu1 %v7330_v37  ;;  %v7358_v37 = vunpack.c.h.s8.bf16 %v6922_v16 }
0x1aa3   : > { %8190 = vmatmul.mubr.bf16.gmra.mrb[132].mxu1 %v12519_v60  ;;  %7808 = vmatprep.mubr.bf16.mxu0 %v12504_v8  ;;  %v7335_v60 = vunpack.c.l.s8.bf16 %v6911_v53  ;;  %v7364_v53 = vunpack.c.h.s8.bf16 %v6924_v7 }
0x1aa4   : > { %7781 = vmatpush1.bf16.msra.mxu0 %v7327_v32  ;;  %8232 = vmatprep.mubr.bf16.mxu1 %v12504_v8  ;;  %v7342_v8 = vunpack.c.h.s8.bf16 %v6914_v29  ;;  %v6926_v32 = vld [vmem:[%s10684_s28 + $0x5b8] sm:$0xff] }
0x1aa5   : > { %8205 = vmatpush1.bf16.msra.mxu1 %v7329_v26  ;;  %7782 = vmatprep.subr.bf16.mxu0 %v7332_v10  ;;  %v7355_v26 = vunpack.c.h.s8.bf16 %v6919_v55  ;;  %v7357_v10 = vunpack.c.h.s8.bf16 %v6921_v13  ;;  %v7362_v29 = vunpack.c.l.s8.bf16 %v6926_v32  ;;  %v7380_v55 = vunpack.c.h.s8.bf16 %v6932_v63  ;;  %v6936_v13 = vld [vmem:[%s10684_s28 + $0x608] sm:$0xff] }
0x1aa6   : > { %8206 = vmatprep.subr.bf16.mxu1 %v7334_v57  ;;  %v7360_v57 = vunpack.c.l.s8.bf16 %v6924_v7 }
0x1aa8   : > { %7783 = vmatpush1.bf16.msra.mxu0 %v7331_v56  ;;  %v6925_v56 = vld [vmem:[%s10684_s28 + $0x5b0] sm:$0xff] }
0x1aa9   : > { %8207 = vmatpush1.bf16.msra.mxu1 %v7333_v61  ;;  %7784 = vmatprep.subr.bf16.mxu0 %v7336_v24  ;;  %v7359_v61 = vunpack.c.l.s8.bf16 %v6923_v39  ;;  %v7361_v24 = vunpack.c.l.s8.bf16 %v6925_v56 }
0x1aaa   : > { %8208 = vmatprep.subr.bf16.mxu1 %v7338_v54  ;;  %v7366_v54 = vunpack.c.h.s8.bf16 %v6926_v32  ;;  %v6935_v32 = vld [vmem:[%s10684_s28 + $0x600] sm:$0xff] }
0x1aac   : > { %7785 = vmatpush1.bf16.msra.mxu0 %v7335_v60  ;;  %v6930_v60 = vld [vmem:[%s10684_s28 + $0x5d8] sm:$0xff] }
0x1aad   : > { %8209 = vmatpush1.bf16.msra.mxu1 %v7337_v4  ;;  %7786 = vmatprep.subr.bf16.mxu0 %v7340_v38  ;;  %v7363_v4 = vunpack.c.h.s8.bf16 %v6923_v39  ;;  %v7365_v38 = vunpack.c.h.s8.bf16 %v6925_v56  ;;  %v7370_v42 = vunpack.c.l.s8.bf16 %v6930_v60  ;;  %v7388_v39 = vunpack.c.h.s8.bf16 %v6936_v13  ;;  %v6940_v56 = vld [vmem:[%s10684_s28 + $0x628] sm:$0xff] }
0x1aae   : > { %8210 = vmatprep.subr.bf16.mxu1 %v7342_v8  ;;  %v7368_v8 = vunpack.c.l.s8.bf16 %v6928_v15  ;;  %v6939_v15 = vld [vmem:[%s10684_s28 + $0x620] sm:$0xff] }
0x1ab0   : > { %7787 = vmatpush1.bf16.msra.mxu0 %v7339_v52  ;;  %v6929_v52 = vld [vmem:[%s10684_s28 + $0x5d0] sm:$0xff] }
0x1ab1   : > { %8211 = vmatpush1.bf16.msra.mxu1 %v7341_v34  ;;  %7788 = vmatprep.subr.bf16.mxu0 %v7344_v58  ;;  %v7367_v34 = vunpack.c.l.s8.bf16 %v6927_v62  ;;  %v7369_v58 = vunpack.c.l.s8.bf16 %v6929_v52 }
0x1ab2   : > { %8212 = vmatprep.subr.bf16.mxu1 %v7346_v30  ;;  %v7374_v30 = vunpack.c.h.s8.bf16 %v6930_v60 }
0x1ab4   : > { %7789 = vmatpush1.bf16.msra.mxu0 %v7343_v49  ;;  %v6934_v49 = vld [vmem:[%s10684_s28 + $0x5f8] sm:$0xff] }
0x1ab5   : > { %8213 = vmatpush1.bf16.msra.mxu1 %v7345_v12  ;;  %7790 = vmatprep.subr.bf16.mxu0 %v7348_v48  ;;  %v7371_v12 = vunpack.c.h.s8.bf16 %v6927_v62  ;;  %v7373_v48 = vunpack.c.h.s8.bf16 %v6929_v52  ;;  %v7378_v16 = vunpack.c.l.s8.bf16 %v6934_v49  ;;  %v6944_v62 = vld [vmem:[%s10684_s28 + $0x648] sm:$0xff]  ;;  %v7395_v52 = vunpack.c.h.s8.bf16 %v6939_v15 }
0x1ab6   : > { %8214 = vmatprep.subr.bf16.mxu1 %v7350_v59  ;;  %v7376_v59 = vunpack.c.l.s8.bf16 %v6932_v63  ;;  %v6945_v63 = vld [vmem:[%s10684_s28 + $0x650] sm:$0xff] }
0x1ab8   : > { %7791 = vmatpush1.bf16.msra.mxu0 %v7347_v6  ;;  %v6933_v6 = vld [vmem:[%s10684_s28 + $0x5f0] sm:$0xff] }
0x1ab9   : > { %8215 = vmatpush1.bf16.msra.mxu1 %v7349_v41  ;;  %7792 = vmatprep.subr.bf16.mxu0 %v7352_v47  ;;  %v7375_v41 = vunpack.c.l.s8.bf16 %v6931_v45  ;;  %v7377_v47 = vunpack.c.l.s8.bf16 %v6933_v6 }
0x1aba   : > { %8216 = vmatprep.subr.bf16.mxu1 %v7354_v36  ;;  %v7382_v36 = vunpack.c.h.s8.bf16 %v6934_v49  ;;  %v7401_v49 = vunpack.c.l.s8.bf16 %v6945_v63 }
0x1abc   : > { %7793 = vmatpush1.bf16.msra.mxu0 %v7351_v31  ;;  %v6938_v31 = vld [vmem:[%s10684_s28 + $0x618] sm:$0xff] }
0x1abd   : > { %8217 = vmatpush1.bf16.msra.mxu1 %v7353_v3  ;;  %7794 = vmatprep.subr.bf16.mxu0 %v7356_v25  ;;  %v7379_v3 = vunpack.c.h.s8.bf16 %v6931_v45  ;;  %v7381_v25 = vunpack.c.h.s8.bf16 %v6933_v6  ;;  %v7386_v7 = vunpack.c.l.s8.bf16 %v6938_v31 }
0x1abe   : > { %8218 = vmatprep.subr.bf16.mxu1 %v7358_v37  ;;  %v7384_v37 = vunpack.c.l.s8.bf16 %v6936_v13 }
0x1ac0   : > { %7795 = vmatpush1.bf16.msra.mxu0 %v7355_v26  ;;  %v6937_v26 = vld [vmem:[%s10684_s28 + $0x610] sm:$0xff] }
0x1ac1   : > { %8219 = vmatpush1.bf16.msra.mxu1 %v7357_v10  ;;  %7796 = vmatprep.subr.bf16.mxu0 %v7360_v57  ;;  %v7383_v10 = vunpack.c.l.s8.bf16 %v6935_v32  ;;  %v7385_v57 = vunpack.c.l.s8.bf16 %v6937_v26 }
0x1ac2   : > { %8220 = vmatprep.subr.bf16.mxu1 %v7362_v29  ;;  %v7390_v29 = vunpack.c.h.s8.bf16 %v6938_v31 }
0x1ac4   : > { %7797 = vmatpush1.bf16.msra.mxu0 %v7359_v61  ;;  %v6942_v61 = vld [vmem:[%s10684_s28 + $0x638] sm:$0xff] }
0x1ac5   : > { %8221 = vmatpush1.bf16.msra.mxu1 %v7361_v24  ;;  %7798 = vmatprep.subr.bf16.mxu0 %v7364_v53  ;;  %v7387_v24 = vunpack.c.h.s8.bf16 %v6935_v32  ;;  %v7389_v53 = vunpack.c.h.s8.bf16 %v6937_v26  ;;  %v7394_v60 = vunpack.c.l.s8.bf16 %v6942_v61 }
0x1ac6   : > { %8222 = vmatprep.subr.bf16.mxu1 %v7366_v54  ;;  %v7392_v54 = vunpack.c.l.s8.bf16 %v6940_v56 }
0x1ac8   : > { %7799 = vmatpush1.bf16.msra.mxu0 %v7363_v4  ;;  %v6941_v4 = vld [vmem:[%s10684_s28 + $0x630] sm:$0xff] }
0x1ac9   : > { %8223 = vmatpush1.bf16.msra.mxu1 %v7365_v38  ;;  %7800 = vmatprep.subr.bf16.mxu0 %v7368_v8  ;;  %v7391_v38 = vunpack.c.l.s8.bf16 %v6939_v15  ;;  %v7396_v8 = vunpack.c.h.s8.bf16 %v6940_v56 }
0x1aca   : > { %8224 = vmatprep.subr.bf16.mxu1 %v7370_v42  ;;  %v6946_v42 = vld [vmem:[%s10684_s28 + $0x658] sm:$0xff] }
0x1acc   : > { %7801 = vmatpush1.bf16.msra.mxu0 %v7367_v34  ;;  %v7397_v34 = vunpack.c.h.s8.bf16 %v6941_v4 }
0x1acd   : > { %8225 = vmatpush1.bf16.msra.mxu1 %v7369_v58  ;;  %7802 = vmatprep.subr.bf16.mxu0 %v7372_v23  ;;  %v7400_v58 = vunpack.c.l.s8.bf16 %v6944_v62  ;;  %v6943_v23 = vld [vmem:[%s10684_s28 + $0x640] sm:$0xff] }
0x1ace   : > { %8226 = vmatprep.subr.bf16.mxu1 %v7374_v30  ;;  %v7402_v30 = vunpack.c.l.s8.bf16 %v6946_v42  ;;  %v7403_v45 = vunpack.c.h.s8.bf16 %v6943_v23 }
0x1ad0   : > { %7803 = vmatpush1.bf16.msra.mxu0 %v7371_v12  ;;  %v7404_v12 = vunpack.c.h.s8.bf16 %v6944_v62 }
0x1ad1   : > { %8227 = vmatpush1.bf16.msra.mxu1 %v7373_v48  ;;  %7804 = vmatprep.subr.bf16.mxu0 %v7376_v59  ;;  %v6948_v48 = vld [vmem:[%s10684_s28 + $0x668] sm:$0xff]  ;;  %v6950_v59 = vld [vmem:[%s10684_s28 + $0x678] sm:$0xff] }
0x1ad2   : > { %8228 = vmatprep.subr.bf16.mxu1 %v7378_v16  ;;  %v7405_v16 = vunpack.c.h.s8.bf16 %v6945_v63  ;;  %v7408_v6 = vunpack.c.l.s8.bf16 %v6948_v48  ;;  %v7412_v31 = vunpack.c.h.s8.bf16 %v6948_v48 }
0x1ad4   : > { %7805 = vmatpush1.bf16.msra.mxu0 %v7375_v41  ;;  %v6947_v41 = vld [vmem:[%s10684_s28 + $0x660] sm:$0xff] }
0x1ad5   : > { %8229 = vmatpush1.bf16.msra.mxu1 %v7377_v47  ;;  %7806 = vmatprep.subr.bf16.mxu0 %v7380_v55  ;;  %v7410_v47 = vunpack.c.l.s8.bf16 %v6950_v59  ;;  %v6949_v55 = vld [vmem:[%s10684_s28 + $0x670] sm:$0xff] }
0x1ad6   : > { %8230 = vmatprep.subr.bf16.mxu1 %v7382_v36  ;;  %v7407_v36 = vunpack.c.l.s8.bf16 %v6947_v41  ;;  %v7409_v13 = vunpack.c.l.s8.bf16 %v6949_v55  ;;  %v7413_v32 = vunpack.c.h.s8.bf16 %v6949_v55 }
0x1ad8   : > { %7807 = vmatpush1.bf16.msra.mxu0 %v7379_v3  ;;  %v7414_v3 = vunpack.c.h.s8.bf16 %v6950_v59 }
0x1ad9   : > { %8231 = vmatpush1.bf16.msra.mxu1 %v7381_v25  ;;  %7829 = vmatprep.subr.bf16.mxu0 %v7384_v37  ;;  %v6952_v25 = vld [vmem:[%s10684_s28 + $0x688] sm:$0xff]  ;;  %v6954_v37 = vld [vmem:[%s10684_s28 + $0x698] sm:$0xff] }
0x1ada   : > { %8253 = vmatprep.subr.bf16.mxu1 %v7386_v7  ;;  %v7411_v7 = vunpack.c.h.s8.bf16 %v6947_v41  ;;  %v7416_v26 = vunpack.c.l.s8.bf16 %v6952_v25 }
0x1adb   : > { %7809 = vmatmul.mubr.bf16.vlgmr.msra.gmra.mrb[128].mxu0 %v12498_v11 }
0x1adc   : > { %8233 = vmatmul.mubr.bf16.vlgmr.msra.gmra.mrb[128].mxu1 %v12498_v11  ;;  %7818 = vmatprep.mubr.bf16.mxu0 %v12526_v43  ;;  %v7393_v11 = vunpack.c.l.s8.bf16 %v6941_v4 }
0x1add   : > { %7830 = vmatpush1.bf16.msra.mxu0 %v7383_v10  ;;  %8242 = vmatprep.mubr.bf16.mxu1 %v12526_v43  ;;  %v7398_v43 = vunpack.c.h.s8.bf16 %v6942_v61  ;;  %v6951_v10 = vld [vmem:[%s10684_s28 + $0x680] sm:$0xff]  ;;  %v7420_v61 = vunpack.c.h.s8.bf16 %v6952_v25 }
0x1ade   : > { %8254 = vmatpush1.bf16.msra.mxu1 %v7385_v57  ;;  %7831 = vmatprep.subr.bf16.mxu0 %v7388_v39  ;;  %v7418_v57 = vunpack.c.l.s8.bf16 %v6954_v37  ;;  %v6953_v39 = vld [vmem:[%s10684_s28 + $0x690] sm:$0xff]  ;;  %v7419_v15 = vunpack.c.h.s8.bf16 %v6951_v10 }
0x1adf   : > { %8255 = vmatprep.subr.bf16.mxu1 %v7390_v29  ;;  %v7415_v29 = vunpack.c.l.s8.bf16 %v6951_v10  ;;  %v7417_v56 = vunpack.c.l.s8.bf16 %v6953_v39 }
0x1ae1   : > { %7832 = vmatpush1.bf16.msra.mxu0 %v7387_v24  ;;  %v7422_v24 = vunpack.c.h.s8.bf16 %v6954_v37 }
0x1ae2   : > { %8256 = vmatpush1.bf16.msra.mxu1 %v7389_v53  ;;  %7833 = vmatprep.subr.bf16.mxu0 %v7392_v54  ;;  %v6956_v53 = vld [vmem:[%s10684_s28 + $0x6a8] sm:$0xff]  ;;  %v6958_v54 = vld [vmem:[%s10684_s28 + $0x6b8] sm:$0xff] }
0x1ae3   : > { %7819 = vmatmul.mubr.bf16.gmra.mrb[132].mxu0 %v12521_v19  ;;  %8257 = vmatprep.subr.bf16.mxu1 %v7394_v60  ;;  %v7421_v60 = vunpack.c.h.s8.bf16 %v6953_v39  ;;  %v7424_v4 = vunpack.c.l.s8.bf16 %v6956_v53 }
0x1ae4   : > { %8243 = vmatmul.mubr.bf16.gmra.mrb[132].mxu1 %v12521_v19  ;;  %7861 = vmatprep.mubr.bf16.mxu0 %v12644_v50  ;;  %v7399_v19 = vunpack.c.l.s8.bf16 %v6943_v23 }
0x1ae5   : > { %7834 = vmatpush1.bf16.msra.mxu0 %v7391_v38  ;;  %8285 = vmatprep.mubr.bf16.mxu1 %v12644_v50  ;;  %v7406_v50 = vunpack.c.h.s8.bf16 %v6946_v42  ;;  %v6955_v38 = vld [vmem:[%s10684_s28 + $0x6a0] sm:$0xff]  ;;  %v7428_v42 = vunpack.c.h.s8.bf16 %v6956_v53 }
0x1ae6   : > { %8258 = vmatpush1.bf16.msra.mxu1 %v7393_v11  ;;  %7835 = vmatprep.subr.bf16.mxu0 %v7396_v8  ;;  %v7426_v11 = vunpack.c.l.s8.bf16 %v6958_v54  ;;  %v6957_v8 = vld [vmem:[%s10684_s28 + $0x6b0] sm:$0xff]  ;;  %v7427_v23 = vunpack.c.h.s8.bf16 %v6955_v38 }
0x1ae7   : > { %8259 = vmatprep.subr.bf16.mxu1 %v7398_v43  ;;  %v7423_v43 = vunpack.c.l.s8.bf16 %v6955_v38  ;;  %v7425_v62 = vunpack.c.l.s8.bf16 %v6957_v8 }
0x1ae9   : > { %7836 = vmatpush1.bf16.msra.mxu0 %v7395_v52  ;;  %v7430_v52 = vunpack.c.h.s8.bf16 %v6958_v54 }
0x1aea   : > { %8260 = vmatpush1.bf16.msra.mxu1 %v7397_v34  ;;  %7837 = vmatprep.subr.bf16.mxu0 %v7400_v58  ;;  %v6960_v34 = vld [vmem:[%s10684_s28 + $0x6c8] sm:$0xff]  ;;  %v6962_v58 = vld [vmem:[%s10684_s28 + $0x6d8] sm:$0xff] }
0x1aeb   : > { %8261 = vmatprep.subr.bf16.mxu1 %v7402_v30  ;;  %v7429_v30 = vunpack.c.h.s8.bf16 %v6957_v8  ;;  %v7432_v63 = vunpack.c.l.s8.bf16 %v6960_v34  ;;  %v7436_v59 = vunpack.c.h.s8.bf16 %v6960_v34 }
0x1aed   : > { %7838 = vmatpush1.bf16.msra.mxu0 %v7399_v19  ;;  %v6959_v19 = vld [vmem:[%s10684_s28 + $0x6c0] sm:$0xff] }
0x1aee   : > { %8262 = vmatpush1.bf16.msra.mxu1 %v7401_v49  ;;  %7839 = vmatprep.subr.bf16.mxu0 %v7404_v12  ;;  %v7434_v49 = vunpack.c.l.s8.bf16 %v6962_v58  ;;  %v6961_v12 = vld [vmem:[%s10684_s28 + $0x6d0] sm:$0xff]  ;;  %v7435_v41 = vunpack.c.h.s8.bf16 %v6959_v19 }
0x1aef   : > { %8263 = vmatprep.subr.bf16.mxu1 %v7406_v50  ;;  %v7431_v50 = vunpack.c.l.s8.bf16 %v6959_v19  ;;  %v7433_v48 = vunpack.c.l.s8.bf16 %v6961_v12 }
0x1af1   : > { %7840 = vmatpush1.bf16.msra.mxu0 %v7403_v45  ;;  %v7438_v45 = vunpack.c.h.s8.bf16 %v6962_v58  ;;  %v6976_v58 = vld [vmem:[%s10684_s28 + $0x748] sm:$0xff] }
0x1af2   : > { %8264 = vmatpush1.bf16.msra.mxu1 %v7405_v16  ;;  %7841 = vmatprep.subr.bf16.mxu0 %v7408_v6  ;;  %v6964_v16 = vld [vmem:[%s10684_s28 + $0x6e8] sm:$0xff]  ;;  %v6966_v6 = vld [vmem:[%s10684_s28 + $0x6f8] sm:$0xff]  ;;  %v7464_v19 = vunpack.c.l.s8.bf16 %v6976_v58 }
0x1af3   : > { %8265 = vmatprep.subr.bf16.mxu1 %v7410_v47  ;;  %v7437_v47 = vunpack.c.h.s8.bf16 %v6961_v12  ;;  %v7440_v55 = vunpack.c.l.s8.bf16 %v6964_v16  ;;  %v7444_v37 = vunpack.c.h.s8.bf16 %v6964_v16  ;;  %v6982_v16 = vld [vmem:[%s10684_s28 + $0x778] sm:$0xff] }
0x1af5   : > { %7842 = vmatpush1.bf16.msra.mxu0 %v7407_v36  ;;  %v6963_v36 = vld [vmem:[%s10684_s28 + $0x6e0] sm:$0xff] }
0x1af6   : > { %8266 = vmatpush1.bf16.msra.mxu1 %v7409_v13  ;;  %7843 = vmatprep.subr.bf16.mxu0 %v7412_v31  ;;  %v7442_v13 = vunpack.c.l.s8.bf16 %v6966_v6  ;;  %v6965_v31 = vld [vmem:[%s10684_s28 + $0x6f0] sm:$0xff]  ;;  %v7443_v10 = vunpack.c.h.s8.bf16 %v6963_v36 }
0x1af7   : > { %8267 = vmatprep.subr.bf16.mxu1 %v7414_v3  ;;  %v7439_v3 = vunpack.c.l.s8.bf16 %v6963_v36  ;;  %v7441_v25 = vunpack.c.l.s8.bf16 %v6965_v31  ;;  %v7474_v36 = vunpack.c.l.s8.bf16 %v6982_v16 }
0x1af9   : > { %7844 = vmatpush1.bf16.msra.mxu0 %v7411_v7  ;;  %v7446_v7 = vunpack.c.h.s8.bf16 %v6966_v6 }
0x1afa   : > { %8268 = vmatpush1.bf16.msra.mxu1 %v7413_v32  ;;  %7845 = vmatprep.subr.bf16.mxu0 %v7416_v26  ;;  %v6968_v32 = vld [vmem:[%s10684_s28 + $0x708] sm:$0xff]  ;;  %v6970_v26 = vld [vmem:[%s10684_s28 + $0x718] sm:$0xff] }
0x1afb   : > { %8269 = vmatprep.subr.bf16.mxu1 %v7418_v57  ;;  %v7445_v57 = vunpack.c.h.s8.bf16 %v6965_v31  ;;  %v7448_v39 = vunpack.c.l.s8.bf16 %v6968_v32  ;;  %v7452_v54 = vunpack.c.h.s8.bf16 %v6968_v32  ;;  %v6986_v32 = vld [vmem:[%s10684_s28 + $0x798] sm:$0xff] }
0x1afd   : > { %7846 = vmatpush1.bf16.msra.mxu0 %v7415_v29  ;;  %v7450_v29 = vunpack.c.l.s8.bf16 %v6970_v26 }
0x1afe   : > { %8270 = vmatpush1.bf16.msra.mxu1 %v7417_v56  ;;  %7847 = vmatprep.subr.bf16.mxu0 %v7420_v61  ;;  %v6967_v56 = vld [vmem:[%s10684_s28 + $0x700] sm:$0xff]  ;;  %v6969_v61 = vld [vmem:[%s10684_s28 + $0x710] sm:$0xff] }
0x1aff   : > { %8271 = vmatprep.subr.bf16.mxu1 %v7422_v24  ;;  %v7447_v24 = vunpack.c.l.s8.bf16 %v6967_v56  ;;  %v7449_v53 = vunpack.c.l.s8.bf16 %v6969_v61  ;;  %v7451_v38 = vunpack.c.h.s8.bf16 %v6967_v56  ;;  %v6985_v56 = vld [vmem:[%s10684_s28 + $0x790] sm:$0xff] }
0x1b01   : > { %7848 = vmatpush1.bf16.msra.mxu0 %v7419_v15  ;;  %v7454_v15 = vunpack.c.h.s8.bf16 %v6970_v26 }
0x1b02   : > { %8272 = vmatpush1.bf16.msra.mxu1 %v7421_v60  ;;  %7849 = vmatprep.subr.bf16.mxu0 %v7424_v4  ;;  %v6972_v60 = vld [vmem:[%s10684_s28 + $0x728] sm:$0xff]  ;;  %v6974_v4 = vld [vmem:[%s10684_s28 + $0x738] sm:$0xff] }
0x1b03   : > { %8273 = vmatprep.subr.bf16.mxu1 %v7426_v11  ;;  %v7453_v11 = vunpack.c.h.s8.bf16 %v6969_v61  ;;  %v7456_v8 = vunpack.c.l.s8.bf16 %v6972_v60  ;;  %v7460_v34 = vunpack.c.h.s8.bf16 %v6972_v60  ;;  %v6990_v60 = vld [vmem:[%s10684_s28 + $0x7b8] sm:$0xff] }
0x1b05   : > { %7850 = vmatpush1.bf16.msra.mxu0 %v7423_v43  ;;  %v6971_v43 = vld [vmem:[%s10684_s28 + $0x720] sm:$0xff] }
0x1b06   : > { %8274 = vmatpush1.bf16.msra.mxu1 %v7425_v62  ;;  %7851 = vmatprep.subr.bf16.mxu0 %v7428_v42  ;;  %v7458_v62 = vunpack.c.l.s8.bf16 %v6974_v4  ;;  %v6973_v42 = vld [vmem:[%s10684_s28 + $0x730] sm:$0xff] }
0x1b07   : > { %8275 = vmatprep.subr.bf16.mxu1 %v7430_v52  ;;  %v7455_v52 = vunpack.c.l.s8.bf16 %v6971_v43 }
0x1b09   : > { %7852 = vmatpush1.bf16.msra.mxu0 %v7427_v23  ;;  %v6978_v23 = vld [vmem:[%s10684_s28 + $0x758] sm:$0xff] }
0x1b0a   : > { %8276 = vmatpush1.bf16.msra.mxu1 %v7429_v30  ;;  %7853 = vmatprep.subr.bf16.mxu0 %v7432_v63  ;;  %v7459_v30 = vunpack.c.h.s8.bf16 %v6971_v43  ;;  %v7461_v63 = vunpack.c.h.s8.bf16 %v6973_v42  ;;  %v7466_v12 = vunpack.c.l.s8.bf16 %v6978_v23  ;;  %v7490_v43 = vunpack.c.l.s8.bf16 %v6990_v60 }
0x1b0b   : > { %8277 = vmatprep.subr.bf16.mxu1 %v7434_v49  ;;  %v6975_v49 = vld [vmem:[%s10684_s28 + $0x740] sm:$0xff] }
0x1b0c   : > { %v7467_v6 = vunpack.c.h.s8.bf16 %v6975_v49 }
0x1b0d   : > { %7854 = vmatpush1.bf16.msra.mxu0 %v7431_v50  ;;  %v6977_v50 = vld [vmem:[%s10684_s28 + $0x750] sm:$0xff] }
0x1b0e   : > { %8278 = vmatpush1.bf16.msra.mxu1 %v7433_v48  ;;  %7855 = vmatprep.subr.bf16.mxu0 %v7436_v59  ;;  %v7465_v48 = vunpack.c.l.s8.bf16 %v6977_v50  ;;  %v7468_v59 = vunpack.c.h.s8.bf16 %v6976_v58  ;;  %v6994_v58 = vld [vmem:[%s10684_s28 + $0x7d8] sm:$0xff] }
0x1b0f   : > { %8279 = vmatprep.subr.bf16.mxu1 %v7438_v45  ;;  %v6980_v45 = vld [vmem:[%s10684_s28 + $0x768] sm:$0xff] }
0x1b11   : > { %7856 = vmatpush1.bf16.msra.mxu0 %v7435_v41  ;;  %v7469_v41 = vunpack.c.h.s8.bf16 %v6977_v50 }
0x1b12   : > { %8280 = vmatpush1.bf16.msra.mxu1 %v7437_v47  ;;  %7857 = vmatprep.subr.bf16.mxu0 %v7440_v55  ;;  %v7472_v47 = vunpack.c.l.s8.bf16 %v6980_v45  ;;  %v6979_v55 = vld [vmem:[%s10684_s28 + $0x760] sm:$0xff] }
0x1b13   : > { %8281 = vmatprep.subr.bf16.mxu1 %v7442_v13  ;;  %v6981_v13 = vld [vmem:[%s10684_s28 + $0x770] sm:$0xff]  ;;  %v7471_v31 = vunpack.c.l.s8.bf16 %v6979_v55  ;;  %v7475_v26 = vunpack.c.h.s8.bf16 %v6979_v55 }
0x1b15   : > { %7858 = vmatpush1.bf16.msra.mxu0 %v7439_v3  ;;  %v7473_v3 = vunpack.c.l.s8.bf16 %v6981_v13 }
0x1b16   : > { %8282 = vmatpush1.bf16.msra.mxu1 %v7441_v25  ;;  %7859 = vmatprep.subr.bf16.mxu0 %v7444_v37  ;;  %v7476_v25 = vunpack.c.h.s8.bf16 %v6980_v45  ;;  %v7478_v37 = vunpack.c.h.s8.bf16 %v6982_v16  ;;  %v6998_v45 = vld [vmem:[%s10684_s28 + $0x7f8] sm:$0xff] }
0x1b17   : > { %8283 = vmatprep.subr.bf16.mxu1 %v7446_v7  ;;  %v6984_v7 = vld [vmem:[%s10684_s28 + $0x788] sm:$0xff]  ;;  %v7506_v55 = vunpack.c.l.s8.bf16 %v6998_v45 }
0x1b19   : > { %7860 = vmatpush1.bf16.msra.mxu0 %v7443_v10  ;;  %v7477_v10 = vunpack.c.h.s8.bf16 %v6981_v13 }
0x1b1a   : > { %8284 = vmatpush1.bf16.msra.mxu1 %v7445_v57  ;;  %7882 = vmatprep.subr.bf16.mxu0 %v7448_v39  ;;  %v7480_v57 = vunpack.c.l.s8.bf16 %v6984_v7  ;;  %v6983_v39 = vld [vmem:[%s10684_s28 + $0x780] sm:$0xff] }
0x1b1b   : > { %8306 = vmatprep.subr.bf16.mxu1 %v7450_v29  ;;  %v7482_v29 = vunpack.c.l.s8.bf16 %v6986_v32  ;;  %v7479_v61 = vunpack.c.l.s8.bf16 %v6983_v39 }
0x1b1c   : > { %7862 = vmatmul.mubr.bf16.vlgmr.msra.gmra.mrb[128].mxu0 %v12639_v40 }
0x1b1d   : > { %8286 = vmatmul.mubr.bf16.vlgmr.msra.gmra.mrb[128].mxu1 %v12639_v40  ;;  %7871 = vmatprep.mubr.bf16.mxu0 %v12667_v44  ;;  %v7457_v40 = vunpack.c.l.s8.bf16 %v6973_v42 }
0x1b1e   : > { %7883 = vmatpush1.bf16.msra.mxu0 %v7447_v24  ;;  %8295 = vmatprep.mubr.bf16.mxu1 %v12667_v44  ;;  %v7462_v44 = vunpack.c.h.s8.bf16 %v6974_v4  ;;  %v7481_v24 = vunpack.c.l.s8.bf16 %v6985_v56  ;;  %v7483_v4 = vunpack.c.h.s8.bf16 %v6983_v39 }
0x1b1f   : > { %8307 = vmatpush1.bf16.msra.mxu1 %v7449_v53  ;;  %7884 = vmatprep.subr.bf16.mxu0 %v7452_v54  ;;  %v7484_v53 = vunpack.c.h.s8.bf16 %v6984_v7  ;;  %v7486_v54 = vunpack.c.h.s8.bf16 %v6986_v32  ;;  %v8359_v32 = vld [vmem:[%s710_s17] sm:$0xf] }
0x1b20   : > { %8308 = vmatprep.subr.bf16.mxu1 %v7454_v15  ;;  %v6988_v15 = vld [vmem:[%s10684_s28 + $0x7a8] sm:$0xff]  ;;  %v8376_v39 = vrot.slane %v8359_v32, %v10859_v22 }
0x1b22   : > { %7885 = vmatpush1.bf16.msra.mxu0 %v7451_v38  ;;  %v7485_v38 = vunpack.c.h.s8.bf16 %v6985_v56 }
0x1b23   : > { %8309 = vmatpush1.bf16.msra.mxu1 %v7453_v11  ;;  %7886 = vmatprep.subr.bf16.mxu0 %v7456_v8  ;;  %v7488_v11 = vunpack.c.l.s8.bf16 %v6988_v15  ;;  %v6987_v8 = vld [vmem:[%s10684_s28 + $0x7a0] sm:$0xff] }
0x1b24   : > { %7872 = vmatmul.mubr.bf16.gmra.mrb[132].mxu0 %v12663_v1  ;;  %8310 = vmatprep.subr.bf16.mxu1 %v7458_v62  ;;  %v6989_v62 = vld [vmem:[%s10684_s28 + $0x7b0] sm:$0xff]  ;;  %v7487_v42 = vunpack.c.l.s8.bf16 %v6987_v8 }
0x1b25   : > { %8296 = vmatmul.mubr.bf16.gmra.mrb[132].mxu1 %v12663_v1  ;;  %7914 = vmatprep.mubr.bf16.mxu0 %v12648_v5  ;;  %v7463_v1 = vunpack.c.l.s8.bf16 %v6975_v49  ;;  %v7498_v49 = vunpack.c.l.s8.bf16 %v6994_v58 }
0x1b26   : > { %7887 = vmatpush1.bf16.msra.mxu0 %v7455_v52  ;;  %8338 = vmatprep.mubr.bf16.mxu1 %v12648_v5  ;;  %v7470_v5 = vunpack.c.h.s8.bf16 %v6978_v23  ;;  %v7489_v52 = vunpack.c.l.s8.bf16 %v6989_v62  ;;  %v7491_v23 = vunpack.c.h.s8.bf16 %v6987_v8 }
0x1b27   : > { %8311 = vmatpush1.bf16.msra.mxu1 %v7457_v40  ;;  %7888 = vmatprep.subr.bf16.mxu0 %v7460_v34  ;;  %v7492_v40 = vunpack.c.h.s8.bf16 %v6988_v15  ;;  %v7494_v34 = vunpack.c.h.s8.bf16 %v6990_v60 }
0x1b28   : > { %8312 = vmatprep.subr.bf16.mxu1 %v7462_v44  ;;  %v6992_v44 = vld [vmem:[%s10684_s28 + $0x7c8] sm:$0xff] }
0x1b2a   : > { %7889 = vmatpush1.bf16.msra.mxu0 %v7459_v30  ;;  %v7493_v30 = vunpack.c.h.s8.bf16 %v6989_v62 }
0x1b2b   : > { %8313 = vmatpush1.bf16.msra.mxu1 %v7461_v63  ;;  %7890 = vmatprep.subr.bf16.mxu0 %v7464_v19  ;;  %v7496_v63 = vunpack.c.l.s8.bf16 %v6992_v44  ;;  %v6991_v19 = vld [vmem:[%s10684_s28 + $0x7c0] sm:$0xff] }
0x1b2c   : > { %8314 = vmatprep.subr.bf16.mxu1 %v7466_v12  ;;  %v6993_v12 = vld [vmem:[%s10684_s28 + $0x7d0] sm:$0xff]  ;;  %v7495_v50 = vunpack.c.l.s8.bf16 %v6991_v19  ;;  %v7499_v16 = vunpack.c.h.s8.bf16 %v6991_v19 }
0x1b2e   : > { %7891 = vmatpush1.bf16.msra.mxu0 %v7463_v1  ;;  %v7497_v1 = vunpack.c.l.s8.bf16 %v6993_v12 }
0x1b2f   : > { %8315 = vmatpush1.bf16.msra.mxu1 %v7465_v48  ;;  %7892 = vmatprep.subr.bf16.mxu0 %v7468_v59  ;;  %v7500_v48 = vunpack.c.h.s8.bf16 %v6992_v44  ;;  %v7502_v59 = vunpack.c.h.s8.bf16 %v6994_v58 }
0x1b30   : > { %8316 = vmatprep.subr.bf16.mxu1 %v7470_v5  ;;  %v6996_v5 = vld [vmem:[%s10684_s28 + $0x7e8] sm:$0xff] }
0x1b32   : > { %7893 = vmatpush1.bf16.msra.mxu0 %v7467_v6  ;;  %v7501_v6 = vunpack.c.h.s8.bf16 %v6993_v12 }
0x1b33   : > { %8317 = vmatpush1.bf16.msra.mxu1 %v7469_v41  ;;  %7894 = vmatprep.subr.bf16.mxu0 %v7472_v47  ;;  %v7504_v41 = vunpack.c.l.s8.bf16 %v6996_v5  ;;  %v6995_v47 = vld [vmem:[%s10684_s28 + $0x7e0] sm:$0xff] }
0x1b34   : > { %8318 = vmatprep.subr.bf16.mxu1 %v7474_v36  ;;  %v6997_v36 = vld [vmem:[%s10684_s28 + $0x7f0] sm:$0xff]  ;;  %v7503_v13 = vunpack.c.l.s8.bf16 %v6995_v47 }
0x1b35   : > { %v7509_v7 = vunpack.c.h.s8.bf16 %v6997_v36 }
0x1b36   : > { %7895 = vmatpush1.bf16.msra.mxu0 %v7471_v31  ;;  %v7505_v31 = vunpack.c.l.s8.bf16 %v6997_v36 }
0x1b37   : > { %8319 = vmatpush1.bf16.msra.mxu1 %v7473_v3  ;;  %7896 = vmatprep.subr.bf16.mxu0 %v7476_v25  ;;  %v7508_v3 = vunpack.c.h.s8.bf16 %v6996_v5  ;;  %v7510_v25 = vunpack.c.h.s8.bf16 %v6998_v45 }
0x1b38   : > { %8320 = vmatprep.subr.bf16.mxu1 %v7478_v37  ;;  %v7507_v37 = vunpack.c.h.s8.bf16 %v6995_v47 }
0x1b3a   : > { %7897 = vmatpush1.bf16.msra.mxu0 %v7475_v26  ;;  %v8364_v26 = vrot.slane %v8359_v32, %v10856_v21 }
0x1b3b   : > { %8321 = vmatpush1.bf16.msra.mxu1 %v7477_v10  ;;  %7898 = vmatprep.subr.bf16.mxu0 %v7480_v57  ;;  %v8372_v10 = vrot.slane %v8359_v32, %v10848_v14  ;;  %v8368_v57 = vrot.slane %v8359_v32, %v10853_v20 }
0x1b3c   : > { %8322 = vmatprep.subr.bf16.mxu1 %v7482_v29 }
0x1b3e   : > { %7899 = vmatpush1.bf16.msra.mxu0 %v7479_v61 }
0x1b3f   : > { %8323 = vmatpush1.bf16.msra.mxu1 %v7481_v24  ;;  %7900 = vmatprep.subr.bf16.mxu0 %v7484_v53 }
0x1b40   : > { %8324 = vmatprep.subr.bf16.mxu1 %v7486_v54 }
0x1b42   : > { %7901 = vmatpush1.bf16.msra.mxu0 %v7483_v4 }
0x1b43   : > { %8325 = vmatpush1.bf16.msra.mxu1 %v7485_v38  ;;  %7902 = vmatprep.subr.bf16.mxu0 %v7488_v11 }
0x1b44   : > { %8326 = vmatprep.subr.bf16.mxu1 %v7490_v43 }
0x1b46   : > { %7903 = vmatpush1.bf16.msra.mxu0 %v7487_v42 }
0x1b47   : > { %8327 = vmatpush1.bf16.msra.mxu1 %v7489_v52  ;;  %7904 = vmatprep.subr.bf16.mxu0 %v7492_v40 }
0x1b48   : > { %8328 = vmatprep.subr.bf16.mxu1 %v7494_v34 }
0x1b4a   : > { %7905 = vmatpush1.bf16.msra.mxu0 %v7491_v23 }
0x1b4b   : > { %8329 = vmatpush1.bf16.msra.mxu1 %v7493_v30  ;;  %7906 = vmatprep.subr.bf16.mxu0 %v7496_v63  ;;  %v13105_v63 = vld [vmem:[#allocation32_spill] sm:$0xff] }
0x1b4c   : > { %8330 = vmatprep.subr.bf16.mxu1 %v7498_v49 }
0x1b4e   : > { %7907 = vmatpush1.bf16.msra.mxu0 %v7495_v50 }
0x1b4f   : > { %8331 = vmatpush1.bf16.msra.mxu1 %v7497_v1  ;;  %7908 = vmatprep.subr.bf16.mxu0 %v7500_v48  ;;  %v13106_v1 = vld [vmem:[#allocation33_spill] sm:$0xff] }
0x1b50   : > { %8332 = vmatprep.subr.bf16.mxu1 %v7502_v59  ;;  %v13107_v59 = vld [vmem:[#allocation34_spill] sm:$0xff] }
0x1b52   : > { %7909 = vmatpush1.bf16.msra.mxu0 %v7499_v16 }
0x1b53   : > { %8333 = vmatpush1.bf16.msra.mxu1 %v7501_v6  ;;  %7910 = vmatprep.subr.bf16.mxu0 %v7504_v41  ;;  %v13108_v41 = vld [vmem:[#allocation36_spill] sm:$0xff] }
0x1b54   : > { %8334 = vmatprep.subr.bf16.mxu1 %v7506_v55  ;;  %v13109_v55 = vld [vmem:[#allocation35_spill] sm:$0xff] }
0x1b56   : > { %7911 = vmatpush1.bf16.msra.mxu0 %v7503_v13 }
0x1b57   : > { %8335 = vmatpush1.bf16.msra.mxu1 %v7505_v31  ;;  %7912 = vmatprep.subr.bf16.mxu0 %v7508_v3  ;;  %v13110_v31 = vld [vmem:[#allocation37_spill] sm:$0xff] }
0x1b58   : > { %8336 = vmatprep.subr.bf16.mxu1 %v7510_v25  ;;  %v13111_v25 = vld [vmem:[#allocation38_spill] sm:$0xff] }
0x1b5a   : > { %7913 = vmatpush1.bf16.msra.mxu0 %v7507_v37 }
0x1b5b   : > { %8337 = vmatpush1.bf16.msra.mxu1 %v7509_v7  ;;  %v13112_v7 = vld [vmem:[#allocation39_spill] sm:$0xff] }
0x1b5d   : > { %7915 = vmatmul.mubr.bf16.vlgmr.msra.gmra.mrb[128].mxu0 %v12642_v51 }
0x1b5e   : > { %8339 = vmatmul.mubr.bf16.vlgmr.msra.gmra.mrb[128].mxu1 %v12642_v51  ;;  %7924 = vmatprep.mubr.bf16.mxu0 %v12670_v46 }
0x1b5f   : > { %8348 = vmatprep.mubr.bf16.mxu1 %v12670_v46 }
0x1b65   : > { %7925 = vmatmul.mubr.bf16.gmra.mrb[132].mxu0 %v12665_v9 }
0x1b66   : > { %8349 = vmatmul.mubr.bf16.gmra.mrb[132].mxu1 %v12665_v9 }
0x1c30   : > { %v7916_v29 = vpop.f32.mrb[128].mxu0 }
0x1c31   : > { %v8381_v51 = vmul.f32 %v8364_v26, %v7916_v29  ;;  %v8340_v56 = vpop.f32.mrb[128].mxu1  ;;  %v7918_v61 = vpop.f32.mrb[129].mxu0 }
0x1c32   : > { %v8383_v24 = vmul.f32 %v8372_v10, %v8340_v56  ;;  %v8382_v46 = vmul.f32 %v8368_v57, %v7918_v61  ;;  %v8342_v53 = vpop.f32.mrb[129].mxu1  ;;  %v7920_v54 = vpop.f32.mrb[130].mxu0 }
0x1c33   : > { %v12856_v9 = vadd.f32 %v8381_v51, %v11825_v27  ;;  %v8384_v15 = vmul.f32 %v8376_v39, %v8342_v53  ;;  %v8385_v60 = vmul.f32 %v8364_v26, %v7920_v54  ;;  %v8344_v4 = vpop.f32.mrb[130].mxu1  ;;  %v7922_v38 = vpop.f32.mrb[131].mxu0 }
0x1c34   : > { %v12859_v11 = vadd.f32 %v8383_v24, %v11829_v35  ;;  %v12862_v8 = vadd.f32 %v8382_v46, %v11831_v18  ;;  %v8387_v43 = vmul.f32 %v8372_v10, %v8344_v4  ;;  %v8386_v62 = vmul.f32 %v8368_v57, %v7922_v38  ;;  %v8346_v42 = vpop.f32.mrb[131].mxu1 }
0x1c35   : > { %8413 = vst [vmem:[#allocation2] sm:$0xff] %v12856_v9  ;;  %v12866_v52 = vadd.f32 %v8384_v15, %v11841_v2  ;;  %v12869_v27 = vadd.f32 %v8385_v60, %v11837_v28  ;;  %v8388_v40 = vmul.f32 %v8376_v39, %v8346_v42  ;;  %v8434_v29 = vmul.f32 (!%p8887_p8), %v12856_v9, %v12856_v9 }
0x1c36   : > { %8415 = vst [vmem:[#allocation2 + $0x10] sm:$0xff] %v12859_v11  ;;  %8414 = vst [vmem:[#allocation2 + $0x8] sm:$0xff] %v12862_v8  ;;  %v12874_v35 = vadd.f32 %v8387_v43, %v11843_v33  ;;  %v12877_v18 = vadd.f32 %v8386_v62, %v11845_v17  ;;  %v8435_v51 = vmul.f32 (!%p8887_p8), %v12862_v8, %v12862_v8 }
0x1c37   : > { %8416 = vst [vmem:[#allocation2 + $0x18] sm:$0xff] %v12866_v52  ;;  %8417 = vst [vmem:[#allocation2 + $0x20] sm:$0xff] %v12869_v27  ;;  %v12882_v2 = vadd.f32 %v8388_v40, %v11853_v0  ;;  %v8436_v56 = vmul.f32 (!%p8887_p8), %v12859_v11, %v12859_v11  ;;  %v8437_v54 = vmul.f32 (!%p8887_p8), %v12866_v52, %v12866_v52 }
0x1c38   : > { %8419 = vst [vmem:[#allocation2 + $0x30] sm:$0xff] %v12874_v35  ;;  %8418 = vst [vmem:[#allocation2 + $0x28] sm:$0xff] %v12877_v18  ;;  %v7926_v28 = vpop.f32.mrb[132].mxu0  ;;  %v8450_v15 = vadd.f32 (!%p8887_p8), %v8435_v51, %v8434_v29  ;;  %v8438_v60 = vmul.f32 (!%p8887_p8), %v12869_v27, %v12869_v27  ;;  %v8439_v4 = vmul.f32 (!%p8887_p8), %v12877_v18, %v12877_v18 }
0x1c39   : > { %8420 = vst [vmem:[#allocation2 + $0x38] sm:$0xff] %v12882_v2  ;;  %v8389_v34 = vmul.f32 %v8364_v26, %v7926_v28  ;;  %v8350_v33 = vpop.f32.mrb[132].mxu1  ;;  %v7928_v44 = vpop.f32.mrb[133].mxu0  ;;  %v8440_v42 = vmul.f32 (!%p8887_p8), %v12874_v35, %v12874_v35  ;;  %v8441_v28 = vmul.f32 (!%p8887_p8), %v12882_v2, %v12882_v2 }
0x1c3a   : > { %v8391_v58 = vmul.f32 %v8372_v10, %v8350_v33  ;;  %v8390_v17 = vmul.f32 %v8368_v57, %v7928_v44  ;;  %v8352_v23 = vpop.f32.mrb[133].mxu1  ;;  %v7930_v30 = vpop.f32.mrb[134].mxu0  ;;  %v8451_v40 = vadd.f32 (!%p8887_p8), %v8450_v15, %v8436_v56 }
0x1c3b   : > { %v12888_v19 = vadd.f32 %v8389_v34, %v13105_v63  ;;  %v8392_v49 = vmul.f32 %v8376_v39, %v8352_v23  ;;  %v8393_v0 = vmul.f32 %v8364_v26, %v7930_v30  ;;  %v8354_v12 = vpop.f32.mrb[134].mxu1  ;;  %v7932_v50 = vpop.f32.mrb[135].mxu0  ;;  %8432 = sbr.rel (%p8887_p8) target bundleno = 7408 (0x1cf0), region = 124  ;;  %v8455_v34 = vadd.f32 (!%p8887_p8), %v8439_v4, %v8438_v60 }
0x1c3c   : > { %v12891_v48 = vadd.f32 %v8391_v58, %v13106_v1  ;;  %v12894_v5 = vadd.f32 %v8390_v17, %v13107_v59  ;;  %v8395_v45 = vmul.f32 %v8372_v10, %v8354_v12  ;;  %v8394_v16 = vmul.f32 %v8368_v57, %v7932_v50  ;;  %v8356_v6 = vpop.f32.mrb[135].mxu1 }
0x1c3d   : > { %8421 = vst [vmem:[#allocation2 + $0x40] sm:$0xff] %v12888_v19  ;;  %v12898_v47 = vadd.f32 %v8392_v49, %v13108_v41  ;;  %v12901_v36 = vadd.f32 %v8393_v0, %v13109_v55  ;;  %v8396_v13 = vmul.f32 %v8376_v39, %v8356_v6  ;;  %v8442_v26 = vmul.f32 (!%p8887_p8), %v12888_v19, %v12888_v19 }
0x1c3e   : > { %8423 = vst [vmem:[#allocation2 + $0x50] sm:$0xff] %v12891_v48  ;;  %8422 = vst [vmem:[#allocation2 + $0x48] sm:$0xff] %v12894_v5  ;;  %v12906_v3 = vadd.f32 %v8395_v45, %v13110_v31  ;;  %v12909_v37 = vadd.f32 %v8394_v16, %v13111_v25  ;;  %v8443_v10 = vmul.f32 (!%p8887_p8), %v12894_v5, %v12894_v5 }
0x1c3f   : > { %8424 = vst [vmem:[#allocation2 + $0x58] sm:$0xff] %v12898_v47  ;;  %8425 = vst [vmem:[#allocation2 + $0x60] sm:$0xff] %v12901_v36  ;;  %v12914_v32 = vadd.f32 %v8396_v13, %v13112_v7  ;;  %v8444_v57 = vmul.f32 (!%p8887_p8), %v12891_v48, %v12891_v48  ;;  %v8445_v39 = vmul.f32 (!%p8887_p8), %v12898_v47, %v12898_v47  ;;  %v8433_v13 = vld [vmem:[#allocation3] sm:$0xf] (!%p8887_p8) }
0x1c40   : > { %8427 = vst [vmem:[#allocation2 + $0x70] sm:$0xff] %v12906_v3  ;;  %8426 = vst [vmem:[#allocation2 + $0x68] sm:$0xff] %v12909_v37  ;;  %v8460_v61 = vadd.f32 (!%p8887_p8), %v8443_v10, %v8442_v26  ;;  %v8446_v24 = vmul.f32 (!%p8887_p8), %v12901_v36, %v12901_v36  ;;  %v8447_v46 = vmul.f32 (!%p8887_p8), %v12909_v37, %v12909_v37 }
0x1c41   : > { %8428 = vst [vmem:[#allocation2 + $0x78] sm:$0xff] %v12914_v32  ;;  %v8448_v53 = vmul.f32 (!%p8887_p8), %v12906_v3, %v12906_v3  ;;  %v8449_v43 = vmul.f32 (!%p8887_p8), %v12914_v32, %v12914_v32  ;;  %v8452_v58 = vadd.f32 (!%p8887_p8), %v8451_v40, %v8437_v54  ;;  %v8456_v17 = vadd.f32 (!%p8887_p8), %v8455_v34, %v8440_v42 }
0x1c42   : > { %v8461_v38 = vadd.f32 %v8460_v61, %v8444_v57  ;;  %v8465_v62 = vadd.f32 %v8447_v46, %v8446_v24  ;;  %v8502_v31 = vrot.slane %v8433_v13, %v10856_v21  ;;  %v8506_v25 = vrot.slane %v8433_v13, %v10853_v20 }
0x1c43   : > { %8453 = vadd.xlane.f32.xlu0 %v8452_v58  ;;  %v8457_v30 = vadd.f32 %v8456_v17, %v8441_v28  ;;  %v8510_v7 = vrot.slane %v8433_v13, %v10848_v14  ;;  %v8514_v26 = vrot.slane %v8433_v13, %v10859_v22 }
0x1c44   : > { %v8462_v33 = vadd.f32 %v8461_v38, %v8445_v39  ;;  %v8466_v44 = vadd.f32 %v8465_v62, %v8448_v53 }
0x1c46   : > { %8463 = vadd.xlane.f32.xlu1 %v8462_v33  ;;  %v8467_v23 = vadd.f32 %v8466_v44, %v8449_v43 }
0x1c47   : > { %8458 = vadd.xlane.f32.xlu0 %v8457_v30 }
0x1c4a   : > { %8468 = vadd.xlane.f32.xlu1 %v8467_v23 }
0x1cd0   : > { %v8454_v0 = vpop.xlane.xlu0 %8453 }
0x1cd1   : > { %v8470_v12 = vmul.f32 0.001953125, %v8454_v0 }
0x1cd3   : > { %v8464_v63 = vpop.xlane.xlu1 %8463  ;;  %v8474_v1 = vadd.f32 1e-06, %v8470_v12 }
0x1cd4   : > { %v8472_v49 = vmul.f32 0.001953125, %v8464_v63  ;;  %v8459_v16 = vpop.xlane.xlu0 %8458 }
0x1cd5   : > { %v8471_v6 = vmul.f32 0.001953125, %v8459_v16 }
0x1cd6   : > { %v8476_v50 = vadd.f32 1e-06, %v8472_v49 }
0x1cd7   : > { %v8469_v59 = vpop.xlane.xlu1 %8468  ;;  %v8475_v55 = vadd.f32 1e-06, %v8471_v6 }
0x1cd8   : > { %9715 = vrsqrt.f32 %v8476_v50  ;;  %v8473_v45 = vmul.f32 0.001953125, %v8469_v59 }
0x1cd9   : > { %9717 = vrsqrt.f32 %v8474_v1 }
0x1cda   : > { %v8477_v41 = vadd.f32 1e-06, %v8473_v45 }
0x1cdc   : > { %9719 = vrsqrt.f32 %v8477_v41 }
0x1cdd   : > { %9721 = vrsqrt.f32 %v8475_v55 }
0x1ce2   : > { %v9716_v10 = vpop.eup %9715 }
0x1ce3   : > { %v9718_v57 = vpop.eup %9717  ;;  %v8490_v39 = vmul.f32 %v9716_v10, %v12888_v19  ;;  %v8491_v29 = vmul.f32 %v9716_v10, %v12894_v5  ;;  %v8492_v51 = vmul.f32 %v9716_v10, %v12891_v48  ;;  %v8493_v56 = vmul.f32 %v9716_v10, %v12898_v47 }
0x1ce4   : > { %v8482_v61 = vmul.f32 %v9718_v57, %v12856_v9  ;;  %v8483_v21 = vmul.f32 %v9718_v57, %v12862_v8  ;;  %v8484_v20 = vmul.f32 %v9718_v57, %v12859_v11  ;;  %v8485_v14 = vmul.f32 %v9718_v57, %v12866_v52 }
0x1ce5   : > { %v8527_v24 = vmul.f32 %v8502_v31, %v8490_v39  ;;  %v8528_v22 = vmul.f32 %v8506_v25, %v8491_v29  ;;  %v8529_v46 = vmul.f32 %v8510_v7, %v8492_v51  ;;  %v8530_v53 = vmul.f32 %v8514_v26, %v8493_v56 }
0x1ce6   : > { %v9720_v54 = vpop.eup %9719  ;;  %v8519_v19 = vmul.f32 %v8502_v31, %v8482_v61  ;;  %v8520_v15 = vmul.f32 %v8506_v25, %v8483_v21  ;;  %v8521_v5 = vmul.f32 %v8510_v7, %v8484_v20  ;;  %v8522_v60 = vmul.f32 %v8514_v26, %v8485_v14 }
0x1ce7   : > { %v9722_v48 = vpop.eup %9721  ;;  %8543 = vst [vmem:[#allocation21 + $0x40] sm:$0xff] %v8527_v24  ;;  %8544 = vst [vmem:[#allocation21 + $0x48] sm:$0xff] %v8528_v22  ;;  %v8494_v9 = vmul.f32 %v9720_v54, %v12901_v36  ;;  %v8495_v11 = vmul.f32 %v9720_v54, %v12909_v37  ;;  %v8496_v8 = vmul.f32 %v9720_v54, %v12906_v3 }
0x1ce8   : > { %8545 = vst [vmem:[#allocation21 + $0x50] sm:$0xff] %v8529_v46  ;;  %8546 = vst [vmem:[#allocation21 + $0x58] sm:$0xff] %v8530_v53  ;;  %v8497_v52 = vmul.f32 %v9720_v54, %v12914_v32  ;;  %v8486_v47 = vmul.f32 %v9722_v48, %v12869_v27  ;;  %v8487_v4 = vmul.f32 %v9722_v48, %v12877_v18 }
0x1ce9   : > { %8535 = vst [vmem:[#allocation21] sm:$0xff] %v8519_v19  ;;  %8536 = vst [vmem:[#allocation21 + $0x8] sm:$0xff] %v8520_v15  ;;  %v8488_v38 = vmul.f32 %v9722_v48, %v12874_v35  ;;  %v8489_v43 = vmul.f32 %v9722_v48, %v12882_v2  ;;  %v8531_v62 = vmul.f32 %v8502_v31, %v8494_v9 }
0x1cea   : > { %8537 = vst [vmem:[#allocation21 + $0x10] sm:$0xff] %v8521_v5  ;;  %8538 = vst [vmem:[#allocation21 + $0x18] sm:$0xff] %v8522_v60  ;;  %v8532_v36 = vmul.f32 %v8506_v25, %v8495_v11  ;;  %v8533_v42 = vmul.f32 %v8510_v7, %v8496_v8  ;;  %v8534_v37 = vmul.f32 %v8514_v26, %v8497_v52 }
0x1ceb   : > { %v8523_v40 = vmul.f32 %v8502_v31, %v8486_v47  ;;  %v8524_v3 = vmul.f32 %v8506_v25, %v8487_v4  ;;  %v8525_v28 = vmul.f32 %v8510_v7, %v8488_v38  ;;  %v8526_v32 = vmul.f32 %v8514_v26, %v8489_v43  ;;  %8547 = vst [vmem:[#allocation21 + $0x60] sm:$0xff] %v8531_v62 }
0x1cec   : > { %8548 = vst [vmem:[#allocation21 + $0x68] sm:$0xff] %v8532_v36  ;;  %8549 = vst [vmem:[#allocation21 + $0x70] sm:$0xff] %v8533_v42 }
0x1ced   : > { %8550 = vst [vmem:[#allocation21 + $0x78] sm:$0xff] %v8534_v37  ;;  %8539 = vst [vmem:[#allocation21 + $0x20] sm:$0xff] %v8523_v40 }
0x1cee   : > { %8540 = vst [vmem:[#allocation21 + $0x28] sm:$0xff] %v8524_v3  ;;  %8541 = vst [vmem:[#allocation21 + $0x30] sm:$0xff] %v8525_v28 }
0x1cef   : > { %8542 = vst [vmem:[#allocation21 + $0x38] sm:$0xff] %v8526_v32 }
0x1cf0 PF: > { %p9468_p4 = scmp.eq.s32.totalorder %s10456_s1, 5  ;;  %s10157_s9 = smov [#allocation21]  }
0x1cf1   : > { %s8557_s23 = sshll.u32 %s10157_s9, 4  ;;  %s8558_s23 = int_to_ptr.vmem [resolvable:$true] %s8557_s23 }
0x1cf2   : > { %s10051_s15 = scalar_lea.vmem %s8558_s23, 2048  ;;  %p10058_p11 = scmp.lt.s32.totalorder %s8558_s23, %s8558_s23 }
0x1cf3   : > { %p10052_p5 = scmp.ne.s32.totalorder %s8558_s23, %s10051_s15  ;;  %p10059_p9 = scmp.lt.s32.totalorder %s10051_s15, %s10051_s15 }
0x1cf5   : > { %p10053_p3 = pnand %p10052_p5, %p9468_p4  ;;  %p10060_p10 = por %p10059_p9, %p10058_p11 }
0x1cf7   : > { %p10054_p2 = pneg %p10053_p3 }
0x1cf9   : > { %p10061_p13 = pnand %p10060_p10, %p10054_p2 }
0x1cfb   : > { %10064 = shalt.err (!%p10061_p13)
}
0x1cfc   : > { %s13113_s19 = sld [smem:[#allocation48_spill]] }
0x1d02   : > { %s10065_s28 = scalar_lea.hbm %s13113_s19, 2048 }
0x1d03   : > { %p10066_p1 = scmp.ne.s32.totalorder %s13113_s19, %s10065_s28  ;;  %p10071_p7 = scmp.lt.u32.totalorder %s10065_s28, %s13113_s19 }
0x1d05   : > { %p10067_p0 = pnand %p10066_p1, %p9468_p4 }
0x1d07   : > { %p10068_p12 = pneg %p10067_p0 }
0x1d09   : > { %p10073_p6 = pnand %p10071_p7, %p10068_p12 }
0x1d0b   : > { %10076 = shalt.err (!%p10073_p6)
}
0x1d0c   : > { %s10158_s20 = smov 512   ;;  %s10159_s25 = smov 32  }
0x1d0d   : > { %9427 = dma.vmem_to_hbm [thread:$0]  (%p9468_p4), %s8558_s23, 2048, %s13113_s19, [#allocation5], %s10158_s20, %s10158_s20, %s10159_s25  }
0x1d0e   : > { %10118 = dma.done.wait (%p9468_p4), [#allocation5], 2048  }
0x1d0f   : > { %10120 = vsyncadd (%p9468_p4), [#allocation5], 4294965248 }
0x1d10 PF: > { %s13114_s28 = sld [smem:[#allocation30_spill]]  ;;  %s13115_s11 = sld [smem:[#allocation29_spill]] }
0x1d11   : > { %s13116_s27 = sld [smem:[#allocation31_spill]]  ;;  %s13117_s25 = smov %s10127_s26 }
0x1d16   : > { %p37_p8 = scmp.ge.s32.totalorder %s13114_s28, 8   ;;  %s13118_s26 = smov %s13115_s11 }
0x1d18   :  { %39 = sbr.rel (!%p37_p8) target bundleno = 23 (0x17), region = 229 }
0x1d1f   :  { %8573 = vsyncpa [#allocation4], 1 }
0x1d20   :  { %8575 = vsyncpa [#allocation4 + $0x1], 1 }
0x1d21   :  { %8576 = vsyncpa [#allocation7], 1 }
0x1d22   :  { %8578 = vsyncpa [#allocation7 + $0x1], 1 }
0x1d23   :  { %8579 = vsyncpa [#allocation10], 1 }
0x1d24   :  { %8581 = vsyncpa [#allocation10 + $0x1], 1 }
0x1d25   :  { %8582 = vsyncpa [#allocation13], 1 }
0x1d26   :  { %8584 = vsyncpa [#allocation13 + $0x1], 1 }
0x1d27   :  { %8585 = vsyncpa [#allocation16], 1 }
0x1d28   :  { %8587 = vsyncpa [#allocation16 + $0x1], 1 }
0x1d29   :  { %8588 = vsyncpa [#allocation19], 1 }
0x1d2a   :  { %8590 = vsyncpa [#allocation19 + $0x1], 1 }
0x1d2b   :  { %8591 = vsyncpa [#allocation5], 1 }
0x1d2c   :  { %8593 = vsyncpa [#allocation5 + $0x1], 1 }

</bundles_post_ra>
